<compile_context>
chip_gen: v6e
topology: v6e:2x2x1
jax: 0.10.0
libtpu: 0.0.40
codegen_flags: <defaults>
</compile_context>

<pallas_src>
import functools

import jax
import jax.numpy as jnp
from jax.experimental import pallas as pl
from jax.experimental.pallas import tpu as pltpu

TOPIC_SIZE = 32      # T == topic embedding size == seq_hidden_size
SEQ_LEN = 16         # L: steps per sequence
BATCH = 16           # B: students
# B_BLK = 8 splits the batch across the two v7x TensorCores ("parallel" grid
# axis); on v5e/v6e (one TC) B_BLK = 16 / a single grid point is marginally
# better (one fewer ~0.35us grid step). Both fit VMEM trivially.
B_BLK = 8
TOP_K = 10           # k
N_WORDS = 4          # words per exercise (embedding-bag mean)
VOCAB = 64


# ---------------------------------------------------------------------------
# Pallas kernel: one grid point == the FULL L-step recurrence for B_BLK students.
# ---------------------------------------------------------------------------
def attn_gru_kernel(w_comb_ref, consts_ref, act_ref, wd_ref, hs_ref, score_ref):
    L, Bb, T = hs_ref.shape
    G = 3 * T
    hi = jax.lax.Precision.HIGHEST

    init_h = consts_ref[0]          # (Bb, T)  initial hidden, pre-broadcast
    b_hhn = consts_ref[1]           # (Bb, T)  GRU n-gate hidden bias, pre-broadcast
    w_comb = w_comb_ref[...]        # (2T, 128): [:T, :G] = W_hh.T ; [T:, G] = w_score[T:2T]

    h = init_h
    for t in range(L):              # static unroll: every index below is constant
        act_t = act_ref[t]          # (Bb, 128) = [gi_pre(96) | sv_pre(1) | pad]
        gi = act_t[:, :G]           # input-side gate pre-activations (+ b_ih, b_hh[r,z])
        sv = act_t[:, G:G + 1]      # v . w_score[:T] + b_score

        # -- attention over the hidden-state history (only rows j < t exist) --
        if t == 0:
            attn_h = init_h         # hidden is None -> attend to initial_h
        else:
            attn_h = wd_ref[t, 0] * hs_ref[0]
            for j in range(1, t):
                attn_h = attn_h + wd_ref[t, j] * hs_ref[j]

        # -- single MXU push: gh = h @ W_hh.T  and  score_h = attn_h . ws_h --
        x2 = jnp.concatenate([h, attn_h], axis=1)                     # (Bb, 2T)
        out = jnp.dot(x2, w_comb, precision=hi,
                      preferred_element_type=jnp.float32)             # (Bb, 128)
        gh = out[:, :G]
        score_ref[:, t:t + 1] = sv + out[:, G:G + 1]                  # resident block

        # -- GRU gates --
        r = jax.nn.sigmoid(gi[:, :T] + gh[:, :T])
        z = jax.nn.sigmoid(gi[:, T:2 * T] + gh[:, T:2 * T])
        n = jnp.tanh(gi[:, 2 * T:] + r * (gh[:, 2 * T:] + b_hhn))
        h = (1.0 - z) * n + z * h
        hs_ref[t] = h               # history row (also the attention value buffer)


# ---------------------------------------------------------------------------
# One-time parameter packing (hoisted out of the hot path).
# ---------------------------------------------------------------------------
def prepare_params(params, b_blk):
    f32 = jnp.float32
    w_ih = params["w_ih"].astype(f32)         # (3T, 2T+1)
    w_hh = params["w_hh"].astype(f32)         # (3T, T)
    b_ih = params["b_ih"].astype(f32)
    b_hh = params["b_hh"].astype(f32)
    w_score = params["w_score"].astype(f32)   # (1, 2T)
    b_score = params["b_score"].astype(f32)   # (1,)
    init_h = params["initial_h"].astype(f32)  # (T,)
    T = w_hh.shape[1]
    G = 3 * T

    # Input-side projection (hoisted off the recurrence).
    wx = w_ih[:, :2 * T].T                    # (2T, 3T)
    w_s = w_ih[:, 2 * T]                      # (3T,)
    # r/z gates: hidden bias can be folded into the input-side preactivation.
    gi_bias = b_ih + jnp.concatenate([b_hh[:2 * T], jnp.zeros((T,), f32)])

    # Combined recurrent weight: one MXU push/step yields [gh | score_h | pad].
    w_comb = jnp.zeros((2 * T, 128), f32)
    w_comb = w_comb.at[:T, :G].set(w_hh.T)
    w_comb = w_comb.at[T:2 * T, G].set(w_score[0, T:2 * T])

    consts = jnp.stack([jnp.broadcast_to(init_h, (b_blk, T)),
                        jnp.broadcast_to(b_hh[2 * T:], (b_blk, T))])   # (2, Bb, T)

    return dict(wx=wx, w_s=w_s, gi_bias=gi_bias, w_comb=w_comb,
                consts=consts, ws_v=w_score[0, :T], b_score=b_score[0])


def precompute_attn_weights(V, k):
    """Dense top-k softmax attention weights (depend only on topic vectors)."""
    B, L, _ = V.shape
    hi = jax.lax.Precision.HIGHEST
    sims = jnp.einsum("blt,bmt->blm", V, V, precision=hi)     # <v_t, v_j>
    j_idx = jnp.arange(L)
    mask = j_idx[None, :] < j_idx[:, None]                    # [t, j]: attend to j < t
    masked = jnp.where(mask[None, :, :], sims, -jnp.inf)
    vals, idx = jax.lax.top_k(masked, k)                      # (B, L, k)
    w = jax.nn.softmax(vals, axis=-1)
    # -inf picks (t < k) already get weight 0; the all--inf t == 0 row gives NaN
    # softmax -> force 0 (the kernel peels t == 0 and never reads this row).
    w = jnp.where(jnp.isfinite(vals), w, 0.0)
    dense = jnp.sum(jax.nn.one_hot(idx, L, dtype=V.dtype) * w[..., None], axis=-2)
    return dense                                              # (B, L_t, L_j)


def lstma_forward_sequence(topics, s_seq, emb_table, packed, *, k, b_blk):
    """Full LSTMA forward over a (B, L) batch of sequences."""
    hi = jax.lax.Precision.HIGHEST
    T = packed["w_comb"].shape[0] // 2
    G = 3 * T

    # Embedding bag: topic_v = embedding(topic).mean(0)
    V = emb_table[topics].mean(axis=2).astype(jnp.float32)            # (B, L, T)
    B, L, _ = V.shape
    assert B % b_blk == 0
    nb = B // b_blk
    s = s_seq.astype(jnp.float32)

    # ---- hoisted input-side precompute (one batched matmul, off the serial path)
    mp = (s >= 0.5).astype(jnp.float32)[..., None]
    xa = jnp.concatenate([V * mp, V * (1.0 - mp)], axis=-1)           # (B, L, 2T)
    gi_pre = (jnp.einsum("blk,kg->blg", xa, packed["wx"], precision=hi)
              + s[..., None] * packed["w_s"] + packed["gi_bias"])      # (B, L, 3T)
    sv_pre = jnp.einsum("blt,t->bl", V, packed["ws_v"], precision=hi) + packed["b_score"]

    # Lane-dense 128-wide activation slab: [gi_pre | sv_pre | pad].
    act = jnp.concatenate(
        [gi_pre, sv_pre[..., None],
         jnp.zeros((B, L, 128 - G - 1), jnp.float32)], axis=-1)        # (B, L, 128)
    act = act.reshape(nb, b_blk, L, 128).transpose(0, 2, 1, 3)         # (nb, L, Bb, 128)

    # ---- dense top-k attention weights, pre-expanded along T (~0.5 MB total)
    wd = precompute_attn_weights(V, k)                                 # (B, Lt, Lj)
    wd = wd.reshape(nb, b_blk, L, L).transpose(0, 2, 3, 1)             # (nb, Lt, Lj, Bb)
    wd_exp = jnp.broadcast_to(wd[..., None], (nb, L, L, b_blk, T))

    hs_out, sc_out = pl.pallas_call(
        attn_gru_kernel,
        out_shape=(jax.ShapeDtypeStruct((nb, L, b_blk, T), jnp.float32),
                   jax.ShapeDtypeStruct((nb, b_blk, L), jnp.float32)),
        grid_spec=pltpu.PrefetchScalarGridSpec(
            num_scalar_prefetch=0,
            grid=(nb,),
            in_specs=[
                pl.BlockSpec((2 * T, 128), lambda b: (0, 0)),                  # W_comb
                pl.BlockSpec((2, b_blk, T), lambda b: (0, 0, 0)),              # init_h / b_hh_n
                pl.BlockSpec((None, L, b_blk, 128), lambda b: (b, 0, 0, 0)),   # act slab
                pl.BlockSpec((None, L, L, b_blk, T), lambda b: (b, 0, 0, 0, 0)),  # attn w
            ],
            out_specs=(
                pl.BlockSpec((None, L, b_blk, T), lambda b: (b, 0, 0, 0)),     # h history
                pl.BlockSpec((None, b_blk, L), lambda b: (b, 0, 0)),           # scores
            ),
        ),
        compiler_params=pltpu.CompilerParams(
            dimension_semantics=("parallel",)),
    )(packed["w_comb"], packed["consts"], act, wd_exp)

    scores = sc_out.reshape(B, L)                                      # (B, L)
    hs_hist = hs_out.transpose(0, 2, 1, 3).reshape(B, L, T)            # (B, L, T)
    h_final = hs_hist[:, -1, :]
    return scores, (h_final, V, hs_hist)


# ---------------------------------------------------------------------------
# Pure-JAX reference mirroring the PyTorch module step by step.
# ---------------------------------------------------------------------------
def ref_lstma_sequence(V, S, params, k):
    hi = jax.lax.Precision.HIGHEST
    B, L, T = V.shape
    w_ih, w_hh = params["w_ih"], params["w_hh"]
    b_ih, b_hh = params["b_ih"], params["b_hh"]
    w_score, b_score = params["w_score"], params["b_score"]
    init_h = params["initial_h"]

    all_scores, all_hs = [], []
    for b in range(B):
        vs_list, hs_list, scores_b = [], [], []
        h = init_h
        for t in range(L):
            v = V[b, t]
            s = S[b, t]
            if t == 0:
                attn_h = init_h
            else:
                vs_mat = jnp.stack(vs_list)
                hs_mat = jnp.stack(hs_list)
                alpha = jnp.einsum("jt,t->j", vs_mat, v, precision=hi)
                kk = min(t, k)
                vals, idx = jax.lax.top_k(alpha, kk)
                w = jax.nn.softmax(vals)
                attn_h = jnp.einsum("j,jt->t", w, hs_mat[idx], precision=hi)
            pred_v = jnp.concatenate([v, attn_h])
            score = jnp.einsum("ot,t->o", w_score, pred_v, precision=hi) + b_score
            mp = (s >= 0.5).astype(jnp.float32)
            mn = (s < 0.5).astype(jnp.float32)
            x = jnp.concatenate([v * mp, v * mn, s[None]])
            gi = jnp.einsum("gi,i->g", w_ih, x, precision=hi) + b_ih
            gh = jnp.einsum("gt,t->g", w_hh, h, precision=hi) + b_hh
            r = jax.nn.sigmoid(gi[:T] + gh[:T])
            z = jax.nn.sigmoid(gi[T:2 * T] + gh[T:2 * T])
            n = jnp.tanh(gi[2 * T:] + r * gh[2 * T:])
            h = (1.0 - z) * n + z * h
            vs_list.append(v)
            hs_list.append(h)
            scores_b.append(score[0])
        all_scores.append(jnp.stack(scores_b))
        all_hs.append(jnp.stack(hs_list))
    return jnp.stack(all_scores), jnp.stack(all_hs)


if __name__ == "__main__":
    T, L, B = TOPIC_SIZE, SEQ_LEN, BATCH
    ks = jax.random.split(jax.random.PRNGKey(0), 10)
    scale = T ** -0.5

    params = {
        "w_ih": jax.random.uniform(ks[0], (3 * T, 2 * T + 1), jnp.float32, -scale, scale),
        "w_hh": jax.random.uniform(ks[1], (3 * T, T), jnp.float32, -scale, scale),
        "b_ih": jax.random.uniform(ks[2], (3 * T,), jnp.float32, -scale, scale),
        "b_hh": jax.random.uniform(ks[3], (3 * T,), jnp.float32, -scale, scale),
        "w_score": jax.random.uniform(ks[4], (1, 2 * T), jnp.float32, -scale, scale),
        "b_score": jax.random.uniform(ks[5], (1,), jnp.float32, -scale, scale),
        "initial_h": jax.random.uniform(ks[6], (T,), jnp.float32, -1.0, 1.0),
    }
    emb_table = 0.5 * jax.random.normal(ks[7], (VOCAB, T), jnp.float32)
    emb_table = emb_table.at[0].set(0.0)                   # padding_idx = 0
    topics = jax.random.randint(ks[8], (B, L, N_WORDS), 1, VOCAB)
    s_seq = jax.random.uniform(ks[9], (B, L), jnp.float32)

    packed = prepare_params(params, B_BLK)                 # one-time packing

    forward = jax.jit(functools.partial(lstma_forward_sequence, k=TOP_K, b_blk=B_BLK))
    scores, (h_final, V, hs_hist) = forward(topics, s_seq, emb_table, packed)
    jax.block_until_ready((scores, h_final, hs_hist))

    V_ref = emb_table[topics].mean(axis=2)
    scores_ref, hs_ref_hist = ref_lstma_sequence(V_ref, s_seq, params, TOP_K)

    assert jnp.allclose(scores, scores_ref, atol=2e-4, rtol=2e-4), \
        float(jnp.max(jnp.abs(scores - scores_ref)))
    assert jnp.allclose(hs_hist, hs_ref_hist, atol=2e-4, rtol=2e-4), \
        float(jnp.max(jnp.abs(hs_hist - hs_ref_hist)))
    assert jnp.allclose(h_final, hs_ref_hist[:, -1, :], atol=2e-4, rtol=2e-4)

    print("KERNEL_OK")
</pallas_src>

<mosaic_0001>
module attributes {stable_mosaic.version = 11 : i64} {
  func.func @attn_gru_kernel(%arg0: i32, %arg1: memref<64x128xf32, #tpu.memory_space<vmem>>, %arg2: memref<2x8x32xf32, #tpu.memory_space<vmem>>, %arg3: memref<1x16x8x128xf32, #tpu.memory_space<vmem>>, %arg4: memref<1x16x16x8x32xf32, #tpu.memory_space<vmem>>, %arg5: memref<1x16x8x32xf32, #tpu.memory_space<vmem>>, %arg6: memref<1x8x16xf32, #tpu.memory_space<vmem>>) attributes {dimension_semantics = [#tpu.dimension_semantics<parallel>], iteration_bounds = array<i64: 2>, scalar_prefetch = 0 : i64, scratch_operands = 0 : i64, tpu.core_type = #tpu.core_type<tc>, window_params = [{pipeline_mode = #tpu.pipeline_mode<synchronous>, transform_indices = @transform_0, window_bounds = array<i64: 64, 128>}, {pipeline_mode = #tpu.pipeline_mode<synchronous>, transform_indices = @transform_1, window_bounds = array<i64: 2, 8, 32>}, {transform_indices = @transform_2, window_bounds = array<i64: 1, 16, 8, 128>}, {transform_indices = @transform_3, window_bounds = array<i64: 1, 16, 16, 8, 32>}, {transform_indices = @transform_4, window_bounds = array<i64: 1, 16, 8, 32>}, {transform_indices = @transform_5, window_bounds = array<i64: 1, 8, 16>}]} {
    %c0 = arith.constant 0 : index
    %c0_0 = arith.constant 0 : index
    %c0_1 = arith.constant 0 : index
    %0 = vector.load %arg2[%c0, %c0_0, %c0_1] : memref<2x8x32xf32, #tpu.memory_space<vmem>>, vector<1x8x32xf32>
    %1 = vector.shape_cast %0 : vector<1x8x32xf32> to vector<8x32xf32>
    %c1 = arith.constant 1 : index
    %c0_2 = arith.constant 0 : index
    %c0_3 = arith.constant 0 : index
    %2 = vector.load %arg2[%c1, %c0_2, %c0_3] : memref<2x8x32xf32, #tpu.memory_space<vmem>>, vector<1x8x32xf32>
    %3 = vector.shape_cast %2 : vector<1x8x32xf32> to vector<8x32xf32>
    %c0_4 = arith.constant 0 : index
    %c0_5 = arith.constant 0 : index
    %4 = vector.load %arg1[%c0_4, %c0_5] : memref<64x128xf32, #tpu.memory_space<vmem>>, vector<64x128xf32>
    %c0_6 = arith.constant 0 : index
    %c0_7 = arith.constant 0 : index
    %c0_8 = arith.constant 0 : index
    %c0_9 = arith.constant 0 : index
    %5 = vector.load %arg3[%c0_6, %c0_7, %c0_8, %c0_9] : memref<1x16x8x128xf32, #tpu.memory_space<vmem>>, vector<1x1x8x128xf32>
    %6 = vector.shape_cast %5 : vector<1x1x8x128xf32> to vector<8x128xf32>
    %7 = vector.extract_strided_slice %6 {offsets = [0, 0], sizes = [8, 96], strides = [1, 1]} : vector<8x128xf32> to vector<8x96xf32>
    %8 = vector.extract_strided_slice %6 {offsets = [0, 96], sizes = [8, 1], strides = [1, 1]} : vector<8x128xf32> to vector<8x1xf32>
    %9 = tpu.concatenate %1, %1 in 1 : vector<8x32xf32>, vector<8x32xf32> -> vector<8x64xf32>
    %cst = arith.constant dense<0.000000e+00> : vector<8x128xf32>
    %10 = tpu.matmul %9, %4, %cst {dimension_numbers = #tpu.dot_dimension_numbers<[1], [0], [0], [1], [0, 0, 1, 1], [], []>, precision = #tpu.contract_precision<fp32>} : vector<8x64xf32>, vector<64x128xf32>, vector<8x128xf32> -> vector<8x128xf32>
    %11 = vector.extract_strided_slice %10 {offsets = [0, 0], sizes = [8, 96], strides = [1, 1]} : vector<8x128xf32> to vector<8x96xf32>
    %12 = vector.extract_strided_slice %10 {offsets = [0, 96], sizes = [8, 1], strides = [1, 1]} : vector<8x128xf32> to vector<8x1xf32>
    %13 = arith.addf %8, %12 : vector<8x1xf32>
    %c0_10 = arith.constant 0 : index
    %c0_11 = arith.constant 0 : index
    %c0_12 = arith.constant 0 : index
    %14 = vector.load %arg6[%c0_10, %c0_11, %c0_12] : memref<1x8x16xf32, #tpu.memory_space<vmem>>, vector<1x8x1xf32>
    %15 = vector.shape_cast %14 : vector<1x8x1xf32> to vector<8x1xf32>
    %16 = vector.shape_cast %13 : vector<8x1xf32> to vector<1x8x1xf32>
    tpu.vector_store %arg6[%c0_10, %c0_11, %c0_12], %16 {strides = array<i32>} : memref<1x8x16xf32, #tpu.memory_space<vmem>>, vector<1x8x1xf32>,
    %17 = vector.extract_strided_slice %7 {offsets = [0, 0], sizes = [8, 32], strides = [1, 1]} : vector<8x96xf32> to vector<8x32xf32>
    %18 = vector.extract_strided_slice %11 {offsets = [0, 0], sizes = [8, 32], strides = [1, 1]} : vector<8x96xf32> to vector<8x32xf32>
    %19 = arith.addf %17, %18 : vector<8x32xf32>
    %20 = arith.negf %19 : vector<8x32xf32>
    %21 = math.exp %20 : vector<8x32xf32>
    %cst_13 = arith.constant 1.000000e+00 : f32
    %22 = vector.broadcast %cst_13 : f32 to vector<8x32xf32>
    %23 = arith.addf %22, %21 : vector<8x32xf32>
    %24 = arith.divf %22, %23 : vector<8x32xf32>
    %25 = vector.extract_strided_slice %7 {offsets = [0, 32], sizes = [8, 32], strides = [1, 1]} : vector<8x96xf32> to vector<8x32xf32>
    %26 = vector.extract_strided_slice %11 {offsets = [0, 32], sizes = [8, 32], strides = [1, 1]} : vector<8x96xf32> to vector<8x32xf32>
    %27 = arith.addf %25, %26 : vector<8x32xf32>
    %28 = arith.negf %27 : vector<8x32xf32>
    %29 = math.exp %28 : vector<8x32xf32>
    %cst_14 = arith.constant 1.000000e+00 : f32
    %30 = vector.broadcast %cst_14 : f32 to vector<8x32xf32>
    %31 = arith.addf %30, %29 : vector<8x32xf32>
    %32 = arith.divf %30, %31 : vector<8x32xf32>
    %33 = vector.extract_strided_slice %7 {offsets = [0, 64], sizes = [8, 32], strides = [1, 1]} : vector<8x96xf32> to vector<8x32xf32>
    %34 = vector.extract_strided_slice %11 {offsets = [0, 64], sizes = [8, 32], strides = [1, 1]} : vector<8x96xf32> to vector<8x32xf32>
    %35 = arith.addf %34, %3 : vector<8x32xf32>
    %36 = arith.mulf %24, %35 : vector<8x32xf32>
    %37 = arith.addf %33, %36 : vector<8x32xf32>
    %38 = math.tanh %37 : vector<8x32xf32>
    %cst_15 = arith.constant 1.000000e+00 : f32
    %39 = vector.broadcast %cst_15 : f32 to vector<8x32xf32>
    %40 = arith.subf %39, %32 : vector<8x32xf32>
    %41 = arith.mulf %40, %38 : vector<8x32xf32>
    %42 = arith.mulf %32, %1 : vector<8x32xf32>
    %43 = arith.addf %41, %42 : vector<8x32xf32>
    %c0_16 = arith.constant 0 : index
    %c0_17 = arith.constant 0 : index
    %c0_18 = arith.constant 0 : index
    %c0_19 = arith.constant 0 : index
    %44 = vector.load %arg5[%c0_16, %c0_17, %c0_18, %c0_19] : memref<1x16x8x32xf32, #tpu.memory_space<vmem>>, vector<1x1x8x32xf32>
    %45 = vector.shape_cast %44 : vector<1x1x8x32xf32> to vector<8x32xf32>
    %46 = vector.shape_cast %43 : vector<8x32xf32> to vector<1x1x8x32xf32>
    tpu.vector_store %arg5[%c0_16, %c0_17, %c0_18, %c0_19], %46 {strides = array<i32>} : memref<1x16x8x32xf32, #tpu.memory_space<vmem>>, vector<1x1x8x32xf32>,
    %c0_20 = arith.constant 0 : index
    %c1_21 = arith.constant 1 : index
    %c0_22 = arith.constant 0 : index
    %c0_23 = arith.constant 0 : index
    %47 = vector.load %arg3[%c0_20, %c1_21, %c0_22, %c0_23] : memref<1x16x8x128xf32, #tpu.memory_space<vmem>>, vector<1x1x8x128xf32>
    %48 = vector.shape_cast %47 : vector<1x1x8x128xf32> to vector<8x128xf32>
    %49 = vector.extract_strided_slice %48 {offsets = [0, 0], sizes = [8, 96], strides = [1, 1]} : vector<8x128xf32> to vector<8x96xf32>
    %50 = vector.extract_strided_slice %48 {offsets = [0, 96], sizes = [8, 1], strides = [1, 1]} : vector<8x128xf32> to vector<8x1xf32>
    %c0_24 = arith.constant 0 : index
    %c1_25 = arith.constant 1 : index
    %c0_26 = arith.constant 0 : index
    %c0_27 = arith.constant 0 : index
    %c0_28 = arith.constant 0 : index
    %51 = vector.load %arg4[%c0_24, %c1_25, %c0_26, %c0_27, %c0_28] : memref<1x16x16x8x32xf32, #tpu.memory_space<vmem>>, vector<1x1x1x8x32xf32>
    %52 = vector.shape_cast %51 : vector<1x1x1x8x32xf32> to vector<8x32xf32>
    %c0_29 = arith.constant 0 : index
    %c0_30 = arith.constant 0 : index
    %c0_31 = arith.constant 0 : index
    %c0_32 = arith.constant 0 : index
    %53 = vector.load %arg5[%c0_29, %c0_30, %c0_31, %c0_32] : memref<1x16x8x32xf32, #tpu.memory_space<vmem>>, vector<1x1x8x32xf32>
    %54 = vector.shape_cast %53 : vector<1x1x8x32xf32> to vector<8x32xf32>
    %55 = arith.mulf %52, %54 : vector<8x32xf32>
    %56 = tpu.concatenate %43, %55 in 1 : vector<8x32xf32>, vector<8x32xf32> -> vector<8x64xf32>
    %cst_33 = arith.constant dense<0.000000e+00> : vector<8x128xf32>
    %57 = tpu.matmul %56, %4, %cst_33 {dimension_numbers = #tpu.dot_dimension_numbers<[1], [0], [0], [1], [0, 0, 1, 1], [], []>, precision = #tpu.contract_precision<fp32>} : vector<8x64xf32>, vector<64x128xf32>, vector<8x128xf32> -> vector<8x128xf32>
    %58 = vector.extract_strided_slice %57 {offsets = [0, 0], sizes = [8, 96], strides = [1, 1]} : vector<8x128xf32> to vector<8x96xf32>
    %59 = vector.extract_strided_slice %57 {offsets = [0, 96], sizes = [8, 1], strides = [1, 1]} : vector<8x128xf32> to vector<8x1xf32>
    %60 = arith.addf %50, %59 : vector<8x1xf32>
    %c0_34 = arith.constant 0 : index
    %c0_35 = arith.constant 0 : index
    %c1_36 = arith.constant 1 : index
    %61 = vector.load %arg6[%c0_34, %c0_35, %c1_36] : memref<1x8x16xf32, #tpu.memory_space<vmem>>, vector<1x8x1xf32>
    %62 = vector.shape_cast %61 : vector<1x8x1xf32> to vector<8x1xf32>
    %63 = vector.shape_cast %60 : vector<8x1xf32> to vector<1x8x1xf32>
    tpu.vector_store %arg6[%c0_34, %c0_35, %c1_36], %63 {strides = array<i32>} : memref<1x8x16xf32, #tpu.memory_space<vmem>>, vector<1x8x1xf32>,
    %64 = vector.extract_strided_slice %49 {offsets = [0, 0], sizes = [8, 32], strides = [1, 1]} : vector<8x96xf32> to vector<8x32xf32>
    %65 = vector.extract_strided_slice %58 {offsets = [0, 0], sizes = [8, 32], strides = [1, 1]} : vector<8x96xf32> to vector<8x32xf32>
    %66 = arith.addf %64, %65 : vector<8x32xf32>
    %67 = arith.negf %66 : vector<8x32xf32>
    %68 = math.exp %67 : vector<8x32xf32>
    %cst_37 = arith.constant 1.000000e+00 : f32
    %69 = vector.broadcast %cst_37 : f32 to vector<8x32xf32>
    %70 = arith.addf %69, %68 : vector<8x32xf32>
    %71 = arith.divf %69, %70 : vector<8x32xf32>
    %72 = vector.extract_strided_slice %49 {offsets = [0, 32], sizes = [8, 32], strides = [1, 1]} : vector<8x96xf32> to vector<8x32xf32>
    %73 = vector.extract_strided_slice %58 {offsets = [0, 32], sizes = [8, 32], strides = [1, 1]} : vector<8x96xf32> to vector<8x32xf32>
    %74 = arith.addf %72, %73 : vector<8x32xf32>
    %75 = arith.negf %74 : vector<8x32xf32>
    %76 = math.exp %75 : vector<8x32xf32>
    %cst_38 = arith.constant 1.000000e+00 : f32
    %77 = vector.broadcast %cst_38 : f32 to vector<8x32xf32>
    %78 = arith.addf %77, %76 : vector<8x32xf32>
    %79 = arith.divf %77, %78 : vector<8x32xf32>
    %80 = vector.extract_strided_slice %49 {offsets = [0, 64], sizes = [8, 32], strides = [1, 1]} : vector<8x96xf32> to vector<8x32xf32>
    %81 = vector.extract_strided_slice %58 {offsets = [0, 64], sizes = [8, 32], strides = [1, 1]} : vector<8x96xf32> to vector<8x32xf32>
    %82 = arith.addf %81, %3 : vector<8x32xf32>
    %83 = arith.mulf %71, %82 : vector<8x32xf32>
    %84 = arith.addf %80, %83 : vector<8x32xf32>
    %85 = math.tanh %84 : vector<8x32xf32>
    %cst_39 = arith.constant 1.000000e+00 : f32
    %86 = vector.broadcast %cst_39 : f32 to vector<8x32xf32>
    %87 = arith.subf %86, %79 : vector<8x32xf32>
    %88 = arith.mulf %87, %85 : vector<8x32xf32>
    %89 = arith.mulf %79, %43 : vector<8x32xf32>
    %90 = arith.addf %88, %89 : vector<8x32xf32>
    %c0_40 = arith.constant 0 : index
    %c1_41 = arith.constant 1 : index
    %c0_42 = arith.constant 0 : index
    %c0_43 = arith.constant 0 : index
    %91 = vector.load %arg5[%c0_40, %c1_41, %c0_42, %c0_43] : memref<1x16x8x32xf32, #tpu.memory_space<vmem>>, vector<1x1x8x32xf32>
    %92 = vector.shape_cast %91 : vector<1x1x8x32xf32> to vector<8x32xf32>
    %93 = vector.shape_cast %90 : vector<8x32xf32> to vector<1x1x8x32xf32>
    tpu.vector_store %arg5[%c0_40, %c1_41, %c0_42, %c0_43], %93 {strides = array<i32>} : memref<1x16x8x32xf32, #tpu.memory_space<vmem>>, vector<1x1x8x32xf32>,
    %c0_44 = arith.constant 0 : index
    %c2 = arith.constant 2 : index
    %c0_45 = arith.constant 0 : index
    %c0_46 = arith.constant 0 : index
    %94 = vector.load %arg3[%c0_44, %c2, %c0_45, %c0_46] : memref<1x16x8x128xf32, #tpu.memory_space<vmem>>, vector<1x1x8x128xf32>
    %95 = vector.shape_cast %94 : vector<1x1x8x128xf32> to vector<8x128xf32>
    %96 = vector.extract_strided_slice %95 {offsets = [0, 0], sizes = [8, 96], strides = [1, 1]} : vector<8x128xf32> to vector<8x96xf32>
    %97 = vector.extract_strided_slice %95 {offsets = [0, 96], sizes = [8, 1], strides = [1, 1]} : vector<8x128xf32> to vector<8x1xf32>
    %c0_47 = arith.constant 0 : index
    %c2_48 = arith.constant 2 : index
    %c0_49 = arith.constant 0 : index
    %c0_50 = arith.constant 0 : index
    %c0_51 = arith.constant 0 : index
    %98 = vector.load %arg4[%c0_47, %c2_48, %c0_49, %c0_50, %c0_51] : memref<1x16x16x8x32xf32, #tpu.memory_space<vmem>>, vector<1x1x1x8x32xf32>
    %99 = vector.shape_cast %98 : vector<1x1x1x8x32xf32> to vector<8x32xf32>
    %c0_52 = arith.constant 0 : index
    %c0_53 = arith.constant 0 : index
    %c0_54 = arith.constant 0 : index
    %c0_55 = arith.constant 0 : index
    %100 = vector.load %arg5[%c0_52, %c0_53, %c0_54, %c0_55] : memref<1x16x8x32xf32, #tpu.memory_space<vmem>>, vector<1x1x8x32xf32>
    %101 = vector.shape_cast %100 : vector<1x1x8x32xf32> to vector<8x32xf32>
    %102 = arith.mulf %99, %101 : vector<8x32xf32>
    %c0_56 = arith.constant 0 : index
    %c2_57 = arith.constant 2 : index
    %c1_58 = arith.constant 1 : index
    %c0_59 = arith.constant 0 : index
    %c0_60 = arith.constant 0 : index
    %103 = vector.load %arg4[%c0_56, %c2_57, %c1_58, %c0_59, %c0_60] : memref<1x16x16x8x32xf32, #tpu.memory_space<vmem>>, vector<1x1x1x8x32xf32>
    %104 = vector.shape_cast %103 : vector<1x1x1x8x32xf32> to vector<8x32xf32>
    %c0_61 = arith.constant 0 : index
    %c1_62 = arith.constant 1 : index
    %c0_63 = arith.constant 0 : index
    %c0_64 = arith.constant 0 : index
    %105 = vector.load %arg5[%c0_61, %c1_62, %c0_63, %c0_64] : memref<1x16x8x32xf32, #tpu.memory_space<vmem>>, vector<1x1x8x32xf32>
    %106 = vector.shape_cast %105 : vector<1x1x8x32xf32> to vector<8x32xf32>
    %107 = arith.mulf %104, %106 : vector<8x32xf32>
    %108 = arith.addf %102, %107 : vector<8x32xf32>
    %109 = tpu.concatenate %90, %108 in 1 : vector<8x32xf32>, vector<8x32xf32> -> vector<8x64xf32>
    %cst_65 = arith.constant dense<0.000000e+00> : vector<8x128xf32>
    %110 = tpu.matmul %109, %4, %cst_65 {dimension_numbers = #tpu.dot_dimension_numbers<[1], [0], [0], [1], [0, 0, 1, 1], [], []>, precision = #tpu.contract_precision<fp32>} : vector<8x64xf32>, vector<64x128xf32>, vector<8x128xf32> -> vector<8x128xf32>
    %111 = vector.extract_strided_slice %110 {offsets = [0, 0], sizes = [8, 96], strides = [1, 1]} : vector<8x128xf32> to vector<8x96xf32>
    %112 = vector.extract_strided_slice %110 {offsets = [0, 96], sizes = [8, 1], strides = [1, 1]} : vector<8x128xf32> to vector<8x1xf32>
    %113 = arith.addf %97, %112 : vector<8x1xf32>
    %c0_66 = arith.constant 0 : index
    %c0_67 = arith.constant 0 : index
    %c2_68 = arith.constant 2 : index
    %114 = vector.load %arg6[%c0_66, %c0_67, %c2_68] : memref<1x8x16xf32, #tpu.memory_space<vmem>>, vector<1x8x1xf32>
    %115 = vector.shape_cast %114 : vector<1x8x1xf32> to vector<8x1xf32>
    %116 = vector.shape_cast %113 : vector<8x1xf32> to vector<1x8x1xf32>
    tpu.vector_store %arg6[%c0_66, %c0_67, %c2_68], %116 {strides = array<i32>} : memref<1x8x16xf32, #tpu.memory_space<vmem>>, vector<1x8x1xf32>,
    %117 = vector.extract_strided_slice %96 {offsets = [0, 0], sizes = [8, 32], strides = [1, 1]} : vector<8x96xf32> to vector<8x32xf32>
    %118 = vector.extract_strided_slice %111 {offsets = [0, 0], sizes = [8, 32], strides = [1, 1]} : vector<8x96xf32> to vector<8x32xf32>
    %119 = arith.addf %117, %118 : vector<8x32xf32>
    %120 = arith.negf %119 : vector<8x32xf32>
    %121 = math.exp %120 : vector<8x32xf32>
    %cst_69 = arith.constant 1.000000e+00 : f32
    %122 = vector.broadcast %cst_69 : f32 to vector<8x32xf32>
    %123 = arith.addf %122, %121 : vector<8x32xf32>
    %124 = arith.divf %122, %123 : vector<8x32xf32>
    %125 = vector.extract_strided_slice %96 {offsets = [0, 32], sizes = [8, 32], strides = [1, 1]} : vector<8x96xf32> to vector<8x32xf32>
    %126 = vector.extract_strided_slice %111 {offsets = [0, 32], sizes = [8, 32], strides = [1, 1]} : vector<8x96xf32> to vector<8x32xf32>
    %127 = arith.addf %125, %126 : vector<8x32xf32>
    %128 = arith.negf %127 : vector<8x32xf32>
    %129 = math.exp %128 : vector<8x32xf32>
    %cst_70 = arith.constant 1.000000e+00 : f32
    %130 = vector.broadcast %cst_70 : f32 to vector<8x32xf32>
    %131 = arith.addf %130, %129 : vector<8x32xf32>
    %132 = arith.divf %130, %131 : vector<8x32xf32>
    %133 = vector.extract_strided_slice %96 {offsets = [0, 64], sizes = [8, 32], strides = [1, 1]} : vector<8x96xf32> to vector<8x32xf32>
    %134 = vector.extract_strided_slice %111 {offsets = [0, 64], sizes = [8, 32], strides = [1, 1]} : vector<8x96xf32> to vector<8x32xf32>
    %135 = arith.addf %134, %3 : vector<8x32xf32>
    %136 = arith.mulf %124, %135 : vector<8x32xf32>
    %137 = arith.addf %133, %136 : vector<8x32xf32>
    %138 = math.tanh %137 : vector<8x32xf32>
    %cst_71 = arith.constant 1.000000e+00 : f32
    %139 = vector.broadcast %cst_71 : f32 to vector<8x32xf32>
    %140 = arith.subf %139, %132 : vector<8x32xf32>
    %141 = arith.mulf %140, %138 : vector<8x32xf32>
    %142 = arith.mulf %132, %90 : vector<8x32xf32>
    %143 = arith.addf %141, %142 : vector<8x32xf32>
    %c0_72 = arith.constant 0 : index
    %c2_73 = arith.constant 2 : index
    %c0_74 = arith.constant 0 : index
    %c0_75 = arith.constant 0 : index
    %144 = vector.load %arg5[%c0_72, %c2_73, %c0_74, %c0_75] : memref<1x16x8x32xf32, #tpu.memory_space<vmem>>, vector<1x1x8x32xf32>
    %145 = vector.shape_cast %144 : vector<1x1x8x32xf32> to vector<8x32xf32>
    %146 = vector.shape_cast %143 : vector<8x32xf32> to vector<1x1x8x32xf32>
    tpu.vector_store %arg5[%c0_72, %c2_73, %c0_74, %c0_75], %146 {strides = array<i32>} : memref<1x16x8x32xf32, #tpu.memory_space<vmem>>, vector<1x1x8x32xf32>,
    %c0_76 = arith.constant 0 : index
    %c3 = arith.constant 3 : index
    %c0_77 = arith.constant 0 : index
    %c0_78 = arith.constant 0 : index
    %147 = vector.load %arg3[%c0_76, %c3, %c0_77, %c0_78] : memref<1x16x8x128xf32, #tpu.memory_space<vmem>>, vector<1x1x8x128xf32>
    %148 = vector.shape_cast %147 : vector<1x1x8x128xf32> to vector<8x128xf32>
    %149 = vector.extract_strided_slice %148 {offsets = [0, 0], sizes = [8, 96], strides = [1, 1]} : vector<8x128xf32> to vector<8x96xf32>
    %150 = vector.extract_strided_slice %148 {offsets = [0, 96], sizes = [8, 1], strides = [1, 1]} : vector<8x128xf32> to vector<8x1xf32>
    %c0_79 = arith.constant 0 : index
    %c3_80 = arith.constant 3 : index
    %c0_81 = arith.constant 0 : index
    %c0_82 = arith.constant 0 : index
    %c0_83 = arith.constant 0 : index
    %151 = vector.load %arg4[%c0_79, %c3_80, %c0_81, %c0_82, %c0_83] : memref<1x16x16x8x32xf32, #tpu.memory_space<vmem>>, vector<1x1x1x8x32xf32>
    %152 = vector.shape_cast %151 : vector<1x1x1x8x32xf32> to vector<8x32xf32>
    %c0_84 = arith.constant 0 : index
    %c0_85 = arith.constant 0 : index
    %c0_86 = arith.constant 0 : index
    %c0_87 = arith.constant 0 : index
    %153 = vector.load %arg5[%c0_84, %c0_85, %c0_86, %c0_87] : memref<1x16x8x32xf32, #tpu.memory_space<vmem>>, vector<1x1x8x32xf32>
    %154 = vector.shape_cast %153 : vector<1x1x8x32xf32> to vector<8x32xf32>
    %155 = arith.mulf %152, %154 : vector<8x32xf32>
    %c0_88 = arith.constant 0 : index
    %c3_89 = arith.constant 3 : index
    %c1_90 = arith.constant 1 : index
    %c0_91 = arith.constant 0 : index
    %c0_92 = arith.constant 0 : index
    %156 = vector.load %arg4[%c0_88, %c3_89, %c1_90, %c0_91, %c0_92] : memref<1x16x16x8x32xf32, #tpu.memory_space<vmem>>, vector<1x1x1x8x32xf32>
    %157 = vector.shape_cast %156 : vector<1x1x1x8x32xf32> to vector<8x32xf32>
    %c0_93 = arith.constant 0 : index
    %c1_94 = arith.constant 1 : index
    %c0_95 = arith.constant 0 : index
    %c0_96 = arith.constant 0 : index
    %158 = vector.load %arg5[%c0_93, %c1_94, %c0_95, %c0_96] : memref<1x16x8x32xf32, #tpu.memory_space<vmem>>, vector<1x1x8x32xf32>
    %159 = vector.shape_cast %158 : vector<1x1x8x32xf32> to vector<8x32xf32>
    %160 = arith.mulf %157, %159 : vector<8x32xf32>
    %161 = arith.addf %155, %160 : vector<8x32xf32>
    %c0_97 = arith.constant 0 : index
    %c3_98 = arith.constant 3 : index
    %c2_99 = arith.constant 2 : index
    %c0_100 = arith.constant 0 : index
    %c0_101 = arith.constant 0 : index
    %162 = vector.load %arg4[%c0_97, %c3_98, %c2_99, %c0_100, %c0_101] : memref<1x16x16x8x32xf32, #tpu.memory_space<vmem>>, vector<1x1x1x8x32xf32>
    %163 = vector.shape_cast %162 : vector<1x1x1x8x32xf32> to vector<8x32xf32>
    %c0_102 = arith.constant 0 : index
    %c2_103 = arith.constant 2 : index
    %c0_104 = arith.constant 0 : index
    %c0_105 = arith.constant 0 : index
    %164 = vector.load %arg5[%c0_102, %c2_103, %c0_104, %c0_105] : memref<1x16x8x32xf32, #tpu.memory_space<vmem>>, vector<1x1x8x32xf32>
    %165 = vector.shape_cast %164 : vector<1x1x8x32xf32> to vector<8x32xf32>
    %166 = arith.mulf %163, %165 : vector<8x32xf32>
    %167 = arith.addf %161, %166 : vector<8x32xf32>
    %168 = tpu.concatenate %143, %167 in 1 : vector<8x32xf32>, vector<8x32xf32> -> vector<8x64xf32>
    %cst_106 = arith.constant dense<0.000000e+00> : vector<8x128xf32>
    %169 = tpu.matmul %168, %4, %cst_106 {dimension_numbers = #tpu.dot_dimension_numbers<[1], [0], [0], [1], [0, 0, 1, 1], [], []>, precision = #tpu.contract_precision<fp32>} : vector<8x64xf32>, vector<64x128xf32>, vector<8x128xf32> -> vector<8x128xf32>
    %170 = vector.extract_strided_slice %169 {offsets = [0, 0], sizes = [8, 96], strides = [1, 1]} : vector<8x128xf32> to vector<8x96xf32>
    %171 = vector.extract_strided_slice %169 {offsets = [0, 96], sizes = [8, 1], strides = [1, 1]} : vector<8x128xf32> to vector<8x1xf32>
    %172 = arith.addf %150, %171 : vector<8x1xf32>
    %c0_107 = arith.constant 0 : index
    %c0_108 = arith.constant 0 : index
    %c3_109 = arith.constant 3 : index
    %173 = vector.load %arg6[%c0_107, %c0_108, %c3_109] : memref<1x8x16xf32, #tpu.memory_space<vmem>>, vector<1x8x1xf32>
    %174 = vector.shape_cast %173 : vector<1x8x1xf32> to vector<8x1xf32>
    %175 = vector.shape_cast %172 : vector<8x1xf32> to vector<1x8x1xf32>
    tpu.vector_store %arg6[%c0_107, %c0_108, %c3_109], %175 {strides = array<i32>} : memref<1x8x16xf32, #tpu.memory_space<vmem>>, vector<1x8x1xf32>,
    %176 = vector.extract_strided_slice %149 {offsets = [0, 0], sizes = [8, 32], strides = [1, 1]} : vector<8x96xf32> to vector<8x32xf32>
    %177 = vector.extract_strided_slice %170 {offsets = [0, 0], sizes = [8, 32], strides = [1, 1]} : vector<8x96xf32> to vector<8x32xf32>
    %178 = arith.addf %176, %177 : vector<8x32xf32>
    %179 = arith.negf %178 : vector<8x32xf32>
    %180 = math.exp %179 : vector<8x32xf32>
    %cst_110 = arith.constant 1.000000e+00 : f32
    %181 = vector.broadcast %cst_110 : f32 to vector<8x32xf32>
    %182 = arith.addf %181, %180 : vector<8x32xf32>
    %183 = arith.divf %181, %182 : vector<8x32xf32>
    %184 = vector.extract_strided_slice %149 {offsets = [0, 32], sizes = [8, 32], strides = [1, 1]} : vector<8x96xf32> to vector<8x32xf32>
    %185 = vector.extract_strided_slice %170 {offsets = [0, 32], sizes = [8, 32], strides = [1, 1]} : vector<8x96xf32> to vector<8x32xf32>
    %186 = arith.addf %184, %185 : vector<8x32xf32>
    %187 = arith.negf %186 : vector<8x32xf32>
    %188 = math.exp %187 : vector<8x32xf32>
    %cst_111 = arith.constant 1.000000e+00 : f32
    %189 = vector.broadcast %cst_111 : f32 to vector<8x32xf32>
    %190 = arith.addf %189, %188 : vector<8x32xf32>
    %191 = arith.divf %189, %190 : vector<8x32xf32>
    %192 = vector.extract_strided_slice %149 {offsets = [0, 64], sizes = [8, 32], strides = [1, 1]} : vector<8x96xf32> to vector<8x32xf32>
    %193 = vector.extract_strided_slice %170 {offsets = [0, 64], sizes = [8, 32], strides = [1, 1]} : vector<8x96xf32> to vector<8x32xf32>
    %194 = arith.addf %193, %3 : vector<8x32xf32>
    %195 = arith.mulf %183, %194 : vector<8x32xf32>
    %196 = arith.addf %192, %195 : vector<8x32xf32>
    %197 = math.tanh %196 : vector<8x32xf32>
    %cst_112 = arith.constant 1.000000e+00 : f32
    %198 = vector.broadcast %cst_112 : f32 to vector<8x32xf32>
    %199 = arith.subf %198, %191 : vector<8x32xf32>
    %200 = arith.mulf %199, %197 : vector<8x32xf32>
    %201 = arith.mulf %191, %143 : vector<8x32xf32>
    %202 = arith.addf %200, %201 : vector<8x32xf32>
    %c0_113 = arith.constant 0 : index
    %c3_114 = arith.constant 3 : index
    %c0_115 = arith.constant 0 : index
    %c0_116 = arith.constant 0 : index
    %203 = vector.load %arg5[%c0_113, %c3_114, %c0_115, %c0_116] : memref<1x16x8x32xf32, #tpu.memory_space<vmem>>, vector<1x1x8x32xf32>
    %204 = vector.shape_cast %203 : vector<1x1x8x32xf32> to vector<8x32xf32>
    %205 = vector.shape_cast %202 : vector<8x32xf32> to vector<1x1x8x32xf32>
    tpu.vector_store %arg5[%c0_113, %c3_114, %c0_115, %c0_116], %205 {strides = array<i32>} : memref<1x16x8x32xf32, #tpu.memory_space<vmem>>, vector<1x1x8x32xf32>,
    %c0_117 = arith.constant 0 : index
    %c4 = arith.constant 4 : index
    %c0_118 = arith.constant 0 : index
    %c0_119 = arith.constant 0 : index
    %206 = vector.load %arg3[%c0_117, %c4, %c0_118, %c0_119] : memref<1x16x8x128xf32, #tpu.memory_space<vmem>>, vector<1x1x8x128xf32>
    %207 = vector.shape_cast %206 : vector<1x1x8x128xf32> to vector<8x128xf32>
    %208 = vector.extract_strided_slice %207 {offsets = [0, 0], sizes = [8, 96], strides = [1, 1]} : vector<8x128xf32> to vector<8x96xf32>
    %209 = vector.extract_strided_slice %207 {offsets = [0, 96], sizes = [8, 1], strides = [1, 1]} : vector<8x128xf32> to vector<8x1xf32>
    %c0_120 = arith.constant 0 : index
    %c4_121 = arith.constant 4 : index
    %c0_122 = arith.constant 0 : index
    %c0_123 = arith.constant 0 : index
    %c0_124 = arith.constant 0 : index
    %210 = vector.load %arg4[%c0_120, %c4_121, %c0_122, %c0_123, %c0_124] : memref<1x16x16x8x32xf32, #tpu.memory_space<vmem>>, vector<1x1x1x8x32xf32>
    %211 = vector.shape_cast %210 : vector<1x1x1x8x32xf32> to vector<8x32xf32>
    %c0_125 = arith.constant 0 : index
    %c0_126 = arith.constant 0 : index
    %c0_127 = arith.constant 0 : index
    %c0_128 = arith.constant 0 : index
    %212 = vector.load %arg5[%c0_125, %c0_126, %c0_127, %c0_128] : memref<1x16x8x32xf32, #tpu.memory_space<vmem>>, vector<1x1x8x32xf32>
    %213 = vector.shape_cast %212 : vector<1x1x8x32xf32> to vector<8x32xf32>
    %214 = arith.mulf %211, %213 : vector<8x32xf32>
    %c0_129 = arith.constant 0 : index
    %c4_130 = arith.constant 4 : index
    %c1_131 = arith.constant 1 : index
    %c0_132 = arith.constant 0 : index
    %c0_133 = arith.constant 0 : index
    %215 = vector.load %arg4[%c0_129, %c4_130, %c1_131, %c0_132, %c0_133] : memref<1x16x16x8x32xf32, #tpu.memory_space<vmem>>, vector<1x1x1x8x32xf32>
    %216 = vector.shape_cast %215 : vector<1x1x1x8x32xf32> to vector<8x32xf32>
    %c0_134 = arith.constant 0 : index
    %c1_135 = arith.constant 1 : index
    %c0_136 = arith.constant 0 : index
    %c0_137 = arith.constant 0 : index
    %217 = vector.load %arg5[%c0_134, %c1_135, %c0_136, %c0_137] : memref<1x16x8x32xf32, #tpu.memory_space<vmem>>, vector<1x1x8x32xf32>
    %218 = vector.shape_cast %217 : vector<1x1x8x32xf32> to vector<8x32xf32>
    %219 = arith.mulf %216, %218 : vector<8x32xf32>
    %220 = arith.addf %214, %219 : vector<8x32xf32>
    %c0_138 = arith.constant 0 : index
    %c4_139 = arith.constant 4 : index
    %c2_140 = arith.constant 2 : index
    %c0_141 = arith.constant 0 : index
    %c0_142 = arith.constant 0 : index
    %221 = vector.load %arg4[%c0_138, %c4_139, %c2_140, %c0_141, %c0_142] : memref<1x16x16x8x32xf32, #tpu.memory_space<vmem>>, vector<1x1x1x8x32xf32>
    %222 = vector.shape_cast %221 : vector<1x1x1x8x32xf32> to vector<8x32xf32>
    %c0_143 = arith.constant 0 : index
    %c2_144 = arith.constant 2 : index
    %c0_145 = arith.constant 0 : index
    %c0_146 = arith.constant 0 : index
    %223 = vector.load %arg5[%c0_143, %c2_144, %c0_145, %c0_146] : memref<1x16x8x32xf32, #tpu.memory_space<vmem>>, vector<1x1x8x32xf32>
    %224 = vector.shape_cast %223 : vector<1x1x8x32xf32> to vector<8x32xf32>
    %225 = arith.mulf %222, %224 : vector<8x32xf32>
    %226 = arith.addf %220, %225 : vector<8x32xf32>
    %c0_147 = arith.constant 0 : index
    %c4_148 = arith.constant 4 : index
    %c3_149 = arith.constant 3 : index
    %c0_150 = arith.constant 0 : index
    %c0_151 = arith.constant 0 : index
    %227 = vector.load %arg4[%c0_147, %c4_148, %c3_149, %c0_150, %c0_151] : memref<1x16x16x8x32xf32, #tpu.memory_space<vmem>>, vector<1x1x1x8x32xf32>
    %228 = vector.shape_cast %227 : vector<1x1x1x8x32xf32> to vector<8x32xf32>
    %c0_152 = arith.constant 0 : index
    %c3_153 = arith.constant 3 : index
    %c0_154 = arith.constant 0 : index
    %c0_155 = arith.constant 0 : index
    %229 = vector.load %arg5[%c0_152, %c3_153, %c0_154, %c0_155] : memref<1x16x8x32xf32, #tpu.memory_space<vmem>>, vector<1x1x8x32xf32>
    %230 = vector.shape_cast %229 : vector<1x1x8x32xf32> to vector<8x32xf32>
    %231 = arith.mulf %228, %230 : vector<8x32xf32>
    %232 = arith.addf %226, %231 : vector<8x32xf32>
    %233 = tpu.concatenate %202, %232 in 1 : vector<8x32xf32>, vector<8x32xf32> -> vector<8x64xf32>
    %cst_156 = arith.constant dense<0.000000e+00> : vector<8x128xf32>
    %234 = tpu.matmul %233, %4, %cst_156 {dimension_numbers = #tpu.dot_dimension_numbers<[1], [0], [0], [1], [0, 0, 1, 1], [], []>, precision = #tpu.contract_precision<fp32>} : vector<8x64xf32>, vector<64x128xf32>, vector<8x128xf32> -> vector<8x128xf32>
    %235 = vector.extract_strided_slice %234 {offsets = [0, 0], sizes = [8, 96], strides = [1, 1]} : vector<8x128xf32> to vector<8x96xf32>
    %236 = vector.extract_strided_slice %234 {offsets = [0, 96], sizes = [8, 1], strides = [1, 1]} : vector<8x128xf32> to vector<8x1xf32>
    %237 = arith.addf %209, %236 : vector<8x1xf32>
    %c0_157 = arith.constant 0 : index
    %c0_158 = arith.constant 0 : index
    %c4_159 = arith.constant 4 : index
    %238 = vector.load %arg6[%c0_157, %c0_158, %c4_159] : memref<1x8x16xf32, #tpu.memory_space<vmem>>, vector<1x8x1xf32>
    %239 = vector.shape_cast %238 : vector<1x8x1xf32> to vector<8x1xf32>
    %240 = vector.shape_cast %237 : vector<8x1xf32> to vector<1x8x1xf32>
    tpu.vector_store %arg6[%c0_157, %c0_158, %c4_159], %240 {strides = array<i32>} : memref<1x8x16xf32, #tpu.memory_space<vmem>>, vector<1x8x1xf32>,
    %241 = vector.extract_strided_slice %208 {offsets = [0, 0], sizes = [8, 32], strides = [1, 1]} : vector<8x96xf32> to vector<8x32xf32>
    %242 = vector.extract_strided_slice %235 {offsets = [0, 0], sizes = [8, 32], strides = [1, 1]} : vector<8x96xf32> to vector<8x32xf32>
    %243 = arith.addf %241, %242 : vector<8x32xf32>
    %244 = arith.negf %243 : vector<8x32xf32>
    %245 = math.exp %244 : vector<8x32xf32>
    %cst_160 = arith.constant 1.000000e+00 : f32
    %246 = vector.broadcast %cst_160 : f32 to vector<8x32xf32>
    %247 = arith.addf %246, %245 : vector<8x32xf32>
    %248 = arith.divf %246, %247 : vector<8x32xf32>
    %249 = vector.extract_strided_slice %208 {offsets = [0, 32], sizes = [8, 32], strides = [1, 1]} : vector<8x96xf32> to vector<8x32xf32>
    %250 = vector.extract_strided_slice %235 {offsets = [0, 32], sizes = [8, 32], strides = [1, 1]} : vector<8x96xf32> to vector<8x32xf32>
    %251 = arith.addf %249, %250 : vector<8x32xf32>
    %252 = arith.negf %251 : vector<8x32xf32>
    %253 = math.exp %252 : vector<8x32xf32>
    %cst_161 = arith.constant 1.000000e+00 : f32
    %254 = vector.broadcast %cst_161 : f32 to vector<8x32xf32>
    %255 = arith.addf %254, %253 : vector<8x32xf32>
    %256 = arith.divf %254, %255 : vector<8x32xf32>
    %257 = vector.extract_strided_slice %208 {offsets = [0, 64], sizes = [8, 32], strides = [1, 1]} : vector<8x96xf32> to vector<8x32xf32>
    %258 = vector.extract_strided_slice %235 {offsets = [0, 64], sizes = [8, 32], strides = [1, 1]} : vector<8x96xf32> to vector<8x32xf32>
    %259 = arith.addf %258, %3 : vector<8x32xf32>
    %260 = arith.mulf %248, %259 : vector<8x32xf32>
    %261 = arith.addf %257, %260 : vector<8x32xf32>
    %262 = math.tanh %261 : vector<8x32xf32>
    %cst_162 = arith.constant 1.000000e+00 : f32
    %263 = vector.broadcast %cst_162 : f32 to vector<8x32xf32>
    %264 = arith.subf %263, %256 : vector<8x32xf32>
    %265 = arith.mulf %264, %262 : vector<8x32xf32>
    %266 = arith.mulf %256, %202 : vector<8x32xf32>
    %267 = arith.addf %265, %266 : vector<8x32xf32>
    %c0_163 = arith.constant 0 : index
    %c4_164 = arith.constant 4 : index
    %c0_165 = arith.constant 0 : index
    %c0_166 = arith.constant 0 : index
    %268 = vector.load %arg5[%c0_163, %c4_164, %c0_165, %c0_166] : memref<1x16x8x32xf32, #tpu.memory_space<vmem>>, vector<1x1x8x32xf32>
    %269 = vector.shape_cast %268 : vector<1x1x8x32xf32> to vector<8x32xf32>
    %270 = vector.shape_cast %267 : vector<8x32xf32> to vector<1x1x8x32xf32>
    tpu.vector_store %arg5[%c0_163, %c4_164, %c0_165, %c0_166], %270 {strides = array<i32>} : memref<1x16x8x32xf32, #tpu.memory_space<vmem>>, vector<1x1x8x32xf32>,
    %c0_167 = arith.constant 0 : index
    %c5 = arith.constant 5 : index
    %c0_168 = arith.constant 0 : index
    %c0_169 = arith.constant 0 : index
    %271 = vector.load %arg3[%c0_167, %c5, %c0_168, %c0_169] : memref<1x16x8x128xf32, #tpu.memory_space<vmem>>, vector<1x1x8x128xf32>
    %272 = vector.shape_cast %271 : vector<1x1x8x128xf32> to vector<8x128xf32>
    %273 = vector.extract_strided_slice %272 {offsets = [0, 0], sizes = [8, 96], strides = [1, 1]} : vector<8x128xf32> to vector<8x96xf32>
    %274 = vector.extract_strided_slice %272 {offsets = [0, 96], sizes = [8, 1], strides = [1, 1]} : vector<8x128xf32> to vector<8x1xf32>
    %c0_170 = arith.constant 0 : index
    %c5_171 = arith.constant 5 : index
    %c0_172 = arith.constant 0 : index
    %c0_173 = arith.constant 0 : index
    %c0_174 = arith.constant 0 : index
    %275 = vector.load %arg4[%c0_170, %c5_171, %c0_172, %c0_173, %c0_174] : memref<1x16x16x8x32xf32, #tpu.memory_space<vmem>>, vector<1x1x1x8x32xf32>
    %276 = vector.shape_cast %275 : vector<1x1x1x8x32xf32> to vector<8x32xf32>
    %c0_175 = arith.constant 0 : index
    %c0_176 = arith.constant 0 : index
    %c0_177 = arith.constant 0 : index
    %c0_178 = arith.constant 0 : index
    %277 = vector.load %arg5[%c0_175, %c0_176, %c0_177, %c0_178] : memref<1x16x8x32xf32, #tpu.memory_space<vmem>>, vector<1x1x8x32xf32>
    %278 = vector.shape_cast %277 : vector<1x1x8x32xf32> to vector<8x32xf32>
    %279 = arith.mulf %276, %278 : vector<8x32xf32>
    %c0_179 = arith.constant 0 : index
    %c5_180 = arith.constant 5 : index
    %c1_181 = arith.constant 1 : index
    %c0_182 = arith.constant 0 : index
    %c0_183 = arith.constant 0 : index
    %280 = vector.load %arg4[%c0_179, %c5_180, %c1_181, %c0_182, %c0_183] : memref<1x16x16x8x32xf32, #tpu.memory_space<vmem>>, vector<1x1x1x8x32xf32>
    %281 = vector.shape_cast %280 : vector<1x1x1x8x32xf32> to vector<8x32xf32>
    %c0_184 = arith.constant 0 : index
    %c1_185 = arith.constant 1 : index
    %c0_186 = arith.constant 0 : index
    %c0_187 = arith.constant 0 : index
    %282 = vector.load %arg5[%c0_184, %c1_185, %c0_186, %c0_187] : memref<1x16x8x32xf32, #tpu.memory_space<vmem>>, vector<1x1x8x32xf32>
    %283 = vector.shape_cast %282 : vector<1x1x8x32xf32> to vector<8x32xf32>
    %284 = arith.mulf %281, %283 : vector<8x32xf32>
    %285 = arith.addf %279, %284 : vector<8x32xf32>
    %c0_188 = arith.constant 0 : index
    %c5_189 = arith.constant 5 : index
    %c2_190 = arith.constant 2 : index
    %c0_191 = arith.constant 0 : index
    %c0_192 = arith.constant 0 : index
    %286 = vector.load %arg4[%c0_188, %c5_189, %c2_190, %c0_191, %c0_192] : memref<1x16x16x8x32xf32, #tpu.memory_space<vmem>>, vector<1x1x1x8x32xf32>
    %287 = vector.shape_cast %286 : vector<1x1x1x8x32xf32> to vector<8x32xf32>
    %c0_193 = arith.constant 0 : index
    %c2_194 = arith.constant 2 : index
    %c0_195 = arith.constant 0 : index
    %c0_196 = arith.constant 0 : index
    %288 = vector.load %arg5[%c0_193, %c2_194, %c0_195, %c0_196] : memref<1x16x8x32xf32, #tpu.memory_space<vmem>>, vector<1x1x8x32xf32>
    %289 = vector.shape_cast %288 : vector<1x1x8x32xf32> to vector<8x32xf32>
    %290 = arith.mulf %287, %289 : vector<8x32xf32>
    %291 = arith.addf %285, %290 : vector<8x32xf32>
    %c0_197 = arith.constant 0 : index
    %c5_198 = arith.constant 5 : index
    %c3_199 = arith.constant 3 : index
    %c0_200 = arith.constant 0 : index
    %c0_201 = arith.constant 0 : index
    %292 = vector.load %arg4[%c0_197, %c5_198, %c3_199, %c0_200, %c0_201] : memref<1x16x16x8x32xf32, #tpu.memory_space<vmem>>, vector<1x1x1x8x32xf32>
    %293 = vector.shape_cast %292 : vector<1x1x1x8x32xf32> to vector<8x32xf32>
    %c0_202 = arith.constant 0 : index
    %c3_203 = arith.constant 3 : index
    %c0_204 = arith.constant 0 : index
    %c0_205 = arith.constant 0 : index
    %294 = vector.load %arg5[%c0_202, %c3_203, %c0_204, %c0_205] : memref<1x16x8x32xf32, #tpu.memory_space<vmem>>, vector<1x1x8x32xf32>
    %295 = vector.shape_cast %294 : vector<1x1x8x32xf32> to vector<8x32xf32>
    %296 = arith.mulf %293, %295 : vector<8x32xf32>
    %297 = arith.addf %291, %296 : vector<8x32xf32>
    %c0_206 = arith.constant 0 : index
    %c5_207 = arith.constant 5 : index
    %c4_208 = arith.constant 4 : index
    %c0_209 = arith.constant 0 : index
    %c0_210 = arith.constant 0 : index
    %298 = vector.load %arg4[%c0_206, %c5_207, %c4_208, %c0_209, %c0_210] : memref<1x16x16x8x32xf32, #tpu.memory_space<vmem>>, vector<1x1x1x8x32xf32>
    %299 = vector.shape_cast %298 : vector<1x1x1x8x32xf32> to vector<8x32xf32>
    %c0_211 = arith.constant 0 : index
    %c4_212 = arith.constant 4 : index
    %c0_213 = arith.constant 0 : index
    %c0_214 = arith.constant 0 : index
    %300 = vector.load %arg5[%c0_211, %c4_212, %c0_213, %c0_214] : memref<1x16x8x32xf32, #tpu.memory_space<vmem>>, vector<1x1x8x32xf32>
    %301 = vector.shape_cast %300 : vector<1x1x8x32xf32> to vector<8x32xf32>
    %302 = arith.mulf %299, %301 : vector<8x32xf32>
    %303 = arith.addf %297, %302 : vector<8x32xf32>
    %304 = tpu.concatenate %267, %303 in 1 : vector<8x32xf32>, vector<8x32xf32> -> vector<8x64xf32>
    %cst_215 = arith.constant dense<0.000000e+00> : vector<8x128xf32>
    %305 = tpu.matmul %304, %4, %cst_215 {dimension_numbers = #tpu.dot_dimension_numbers<[1], [0], [0], [1], [0, 0, 1, 1], [], []>, precision = #tpu.contract_precision<fp32>} : vector<8x64xf32>, vector<64x128xf32>, vector<8x128xf32> -> vector<8x128xf32>
    %306 = vector.extract_strided_slice %305 {offsets = [0, 0], sizes = [8, 96], strides = [1, 1]} : vector<8x128xf32> to vector<8x96xf32>
    %307 = vector.extract_strided_slice %305 {offsets = [0, 96], sizes = [8, 1], strides = [1, 1]} : vector<8x128xf32> to vector<8x1xf32>
    %308 = arith.addf %274, %307 : vector<8x1xf32>
    %c0_216 = arith.constant 0 : index
    %c0_217 = arith.constant 0 : index
    %c5_218 = arith.constant 5 : index
    %309 = vector.load %arg6[%c0_216, %c0_217, %c5_218] : memref<1x8x16xf32, #tpu.memory_space<vmem>>, vector<1x8x1xf32>
    %310 = vector.shape_cast %309 : vector<1x8x1xf32> to vector<8x1xf32>
    %311 = vector.shape_cast %308 : vector<8x1xf32> to vector<1x8x1xf32>
    tpu.vector_store %arg6[%c0_216, %c0_217, %c5_218], %311 {strides = array<i32>} : memref<1x8x16xf32, #tpu.memory_space<vmem>>, vector<1x8x1xf32>,
    %312 = vector.extract_strided_slice %273 {offsets = [0, 0], sizes = [8, 32], strides = [1, 1]} : vector<8x96xf32> to vector<8x32xf32>
    %313 = vector.extract_strided_slice %306 {offsets = [0, 0], sizes = [8, 32], strides = [1, 1]} : vector<8x96xf32> to vector<8x32xf32>
    %314 = arith.addf %312, %313 : vector<8x32xf32>
    %315 = arith.negf %314 : vector<8x32xf32>
    %316 = math.exp %315 : vector<8x32xf32>
    %cst_219 = arith.constant 1.000000e+00 : f32
    %317 = vector.broadcast %cst_219 : f32 to vector<8x32xf32>
    %318 = arith.addf %317, %316 : vector<8x32xf32>
    %319 = arith.divf %317, %318 : vector<8x32xf32>
    %320 = vector.extract_strided_slice %273 {offsets = [0, 32], sizes = [8, 32], strides = [1, 1]} : vector<8x96xf32> to vector<8x32xf32>
    %321 = vector.extract_strided_slice %306 {offsets = [0, 32], sizes = [8, 32], strides = [1, 1]} : vector<8x96xf32> to vector<8x32xf32>
    %322 = arith.addf %320, %321 : vector<8x32xf32>
    %323 = arith.negf %322 : vector<8x32xf32>
    %324 = math.exp %323 : vector<8x32xf32>
    %cst_220 = arith.constant 1.000000e+00 : f32
    %325 = vector.broadcast %cst_220 : f32 to vector<8x32xf32>
    %326 = arith.addf %325, %324 : vector<8x32xf32>
    %327 = arith.divf %325, %326 : vector<8x32xf32>
    %328 = vector.extract_strided_slice %273 {offsets = [0, 64], sizes = [8, 32], strides = [1, 1]} : vector<8x96xf32> to vector<8x32xf32>
    %329 = vector.extract_strided_slice %306 {offsets = [0, 64], sizes = [8, 32], strides = [1, 1]} : vector<8x96xf32> to vector<8x32xf32>
    %330 = arith.addf %329, %3 : vector<8x32xf32>
    %331 = arith.mulf %319, %330 : vector<8x32xf32>
    %332 = arith.addf %328, %331 : vector<8x32xf32>
    %333 = math.tanh %332 : vector<8x32xf32>
    %cst_221 = arith.constant 1.000000e+00 : f32
    %334 = vector.broadcast %cst_221 : f32 to vector<8x32xf32>
    %335 = arith.subf %334, %327 : vector<8x32xf32>
    %336 = arith.mulf %335, %333 : vector<8x32xf32>
    %337 = arith.mulf %327, %267 : vector<8x32xf32>
    %338 = arith.addf %336, %337 : vector<8x32xf32>
    %c0_222 = arith.constant 0 : index
    %c5_223 = arith.constant 5 : index
    %c0_224 = arith.constant 0 : index
    %c0_225 = arith.constant 0 : index
    %339 = vector.load %arg5[%c0_222, %c5_223, %c0_224, %c0_225] : memref<1x16x8x32xf32, #tpu.memory_space<vmem>>, vector<1x1x8x32xf32>
    %340 = vector.shape_cast %339 : vector<1x1x8x32xf32> to vector<8x32xf32>
    %341 = vector.shape_cast %338 : vector<8x32xf32> to vector<1x1x8x32xf32>
    tpu.vector_store %arg5[%c0_222, %c5_223, %c0_224, %c0_225], %341 {strides = array<i32>} : memref<1x16x8x32xf32, #tpu.memory_space<vmem>>, vector<1x1x8x32xf32>,
    %c0_226 = arith.constant 0 : index
    %c6 = arith.constant 6 : index
    %c0_227 = arith.constant 0 : index
    %c0_228 = arith.constant 0 : index
    %342 = vector.load %arg3[%c0_226, %c6, %c0_227, %c0_228] : memref<1x16x8x128xf32, #tpu.memory_space<vmem>>, vector<1x1x8x128xf32>
    %343 = vector.shape_cast %342 : vector<1x1x8x128xf32> to vector<8x128xf32>
    %344 = vector.extract_strided_slice %343 {offsets = [0, 0], sizes = [8, 96], strides = [1, 1]} : vector<8x128xf32> to vector<8x96xf32>
    %345 = vector.extract_strided_slice %343 {offsets = [0, 96], sizes = [8, 1], strides = [1, 1]} : vector<8x128xf32> to vector<8x1xf32>
    %c0_229 = arith.constant 0 : index
    %c6_230 = arith.constant 6 : index
    %c0_231 = arith.constant 0 : index
    %c0_232 = arith.constant 0 : index
    %c0_233 = arith.constant 0 : index
    %346 = vector.load %arg4[%c0_229, %c6_230, %c0_231, %c0_232, %c0_233] : memref<1x16x16x8x32xf32, #tpu.memory_space<vmem>>, vector<1x1x1x8x32xf32>
    %347 = vector.shape_cast %346 : vector<1x1x1x8x32xf32> to vector<8x32xf32>
    %c0_234 = arith.constant 0 : index
    %c0_235 = arith.constant 0 : index
    %c0_236 = arith.constant 0 : index
    %c0_237 = arith.constant 0 : index
    %348 = vector.load %arg5[%c0_234, %c0_235, %c0_236, %c0_237] : memref<1x16x8x32xf32, #tpu.memory_space<vmem>>, vector<1x1x8x32xf32>
    %349 = vector.shape_cast %348 : vector<1x1x8x32xf32> to vector<8x32xf32>
    %350 = arith.mulf %347, %349 : vector<8x32xf32>
    %c0_238 = arith.constant 0 : index
    %c6_239 = arith.constant 6 : index
    %c1_240 = arith.constant 1 : index
    %c0_241 = arith.constant 0 : index
    %c0_242 = arith.constant 0 : index
    %351 = vector.load %arg4[%c0_238, %c6_239, %c1_240, %c0_241, %c0_242] : memref<1x16x16x8x32xf32, #tpu.memory_space<vmem>>, vector<1x1x1x8x32xf32>
    %352 = vector.shape_cast %351 : vector<1x1x1x8x32xf32> to vector<8x32xf32>
    %c0_243 = arith.constant 0 : index
    %c1_244 = arith.constant 1 : index
    %c0_245 = arith.constant 0 : index
    %c0_246 = arith.constant 0 : index
    %353 = vector.load %arg5[%c0_243, %c1_244, %c0_245, %c0_246] : memref<1x16x8x32xf32, #tpu.memory_space<vmem>>, vector<1x1x8x32xf32>
    %354 = vector.shape_cast %353 : vector<1x1x8x32xf32> to vector<8x32xf32>
    %355 = arith.mulf %352, %354 : vector<8x32xf32>
    %356 = arith.addf %350, %355 : vector<8x32xf32>
    %c0_247 = arith.constant 0 : index
    %c6_248 = arith.constant 6 : index
    %c2_249 = arith.constant 2 : index
    %c0_250 = arith.constant 0 : index
    %c0_251 = arith.constant 0 : index
    %357 = vector.load %arg4[%c0_247, %c6_248, %c2_249, %c0_250, %c0_251] : memref<1x16x16x8x32xf32, #tpu.memory_space<vmem>>, vector<1x1x1x8x32xf32>
    %358 = vector.shape_cast %357 : vector<1x1x1x8x32xf32> to vector<8x32xf32>
    %c0_252 = arith.constant 0 : index
    %c2_253 = arith.constant 2 : index
    %c0_254 = arith.constant 0 : index
    %c0_255 = arith.constant 0 : index
    %359 = vector.load %arg5[%c0_252, %c2_253, %c0_254, %c0_255] : memref<1x16x8x32xf32, #tpu.memory_space<vmem>>, vector<1x1x8x32xf32>
    %360 = vector.shape_cast %359 : vector<1x1x8x32xf32> to vector<8x32xf32>
    %361 = arith.mulf %358, %360 : vector<8x32xf32>
    %362 = arith.addf %356, %361 : vector<8x32xf32>
    %c0_256 = arith.constant 0 : index
    %c6_257 = arith.constant 6 : index
    %c3_258 = arith.constant 3 : index
    %c0_259 = arith.constant 0 : index
    %c0_260 = arith.constant 0 : index
    %363 = vector.load %arg4[%c0_256, %c6_257, %c3_258, %c0_259, %c0_260] : memref<1x16x16x8x32xf32, #tpu.memory_space<vmem>>, vector<1x1x1x8x32xf32>
    %364 = vector.shape_cast %363 : vector<1x1x1x8x32xf32> to vector<8x32xf32>
    %c0_261 = arith.constant 0 : index
    %c3_262 = arith.constant 3 : index
    %c0_263 = arith.constant 0 : index
    %c0_264 = arith.constant 0 : index
    %365 = vector.load %arg5[%c0_261, %c3_262, %c0_263, %c0_264] : memref<1x16x8x32xf32, #tpu.memory_space<vmem>>, vector<1x1x8x32xf32>
    %366 = vector.shape_cast %365 : vector<1x1x8x32xf32> to vector<8x32xf32>
    %367 = arith.mulf %364, %366 : vector<8x32xf32>
    %368 = arith.addf %362, %367 : vector<8x32xf32>
    %c0_265 = arith.constant 0 : index
    %c6_266 = arith.constant 6 : index
    %c4_267 = arith.constant 4 : index
    %c0_268 = arith.constant 0 : index
    %c0_269 = arith.constant 0 : index
    %369 = vector.load %arg4[%c0_265, %c6_266, %c4_267, %c0_268, %c0_269] : memref<1x16x16x8x32xf32, #tpu.memory_space<vmem>>, vector<1x1x1x8x32xf32>
    %370 = vector.shape_cast %369 : vector<1x1x1x8x32xf32> to vector<8x32xf32>
    %c0_270 = arith.constant 0 : index
    %c4_271 = arith.constant 4 : index
    %c0_272 = arith.constant 0 : index
    %c0_273 = arith.constant 0 : index
    %371 = vector.load %arg5[%c0_270, %c4_271, %c0_272, %c0_273] : memref<1x16x8x32xf32, #tpu.memory_space<vmem>>, vector<1x1x8x32xf32>
    %372 = vector.shape_cast %371 : vector<1x1x8x32xf32> to vector<8x32xf32>
    %373 = arith.mulf %370, %372 : vector<8x32xf32>
    %374 = arith.addf %368, %373 : vector<8x32xf32>
    %c0_274 = arith.constant 0 : index
    %c6_275 = arith.constant 6 : index
    %c5_276 = arith.constant 5 : index
    %c0_277 = arith.constant 0 : index
    %c0_278 = arith.constant 0 : index
    %375 = vector.load %arg4[%c0_274, %c6_275, %c5_276, %c0_277, %c0_278] : memref<1x16x16x8x32xf32, #tpu.memory_space<vmem>>, vector<1x1x1x8x32xf32>
    %376 = vector.shape_cast %375 : vector<1x1x1x8x32xf32> to vector<8x32xf32>
    %c0_279 = arith.constant 0 : index
    %c5_280 = arith.constant 5 : index
    %c0_281 = arith.constant 0 : index
    %c0_282 = arith.constant 0 : index
    %377 = vector.load %arg5[%c0_279, %c5_280, %c0_281, %c0_282] : memref<1x16x8x32xf32, #tpu.memory_space<vmem>>, vector<1x1x8x32xf32>
    %378 = vector.shape_cast %377 : vector<1x1x8x32xf32> to vector<8x32xf32>
    %379 = arith.mulf %376, %378 : vector<8x32xf32>
    %380 = arith.addf %374, %379 : vector<8x32xf32>
    %381 = tpu.concatenate %338, %380 in 1 : vector<8x32xf32>, vector<8x32xf32> -> vector<8x64xf32>
    %cst_283 = arith.constant dense<0.000000e+00> : vector<8x128xf32>
    %382 = tpu.matmul %381, %4, %cst_283 {dimension_numbers = #tpu.dot_dimension_numbers<[1], [0], [0], [1], [0, 0, 1, 1], [], []>, precision = #tpu.contract_precision<fp32>} : vector<8x64xf32>, vector<64x128xf32>, vector<8x128xf32> -> vector<8x128xf32>
    %383 = vector.extract_strided_slice %382 {offsets = [0, 0], sizes = [8, 96], strides = [1, 1]} : vector<8x128xf32> to vector<8x96xf32>
    %384 = vector.extract_strided_slice %382 {offsets = [0, 96], sizes = [8, 1], strides = [1, 1]} : vector<8x128xf32> to vector<8x1xf32>
    %385 = arith.addf %345, %384 : vector<8x1xf32>
    %c0_284 = arith.constant 0 : index
    %c0_285 = arith.constant 0 : index
    %c6_286 = arith.constant 6 : index
    %386 = vector.load %arg6[%c0_284, %c0_285, %c6_286] : memref<1x8x16xf32, #tpu.memory_space<vmem>>, vector<1x8x1xf32>
    %387 = vector.shape_cast %386 : vector<1x8x1xf32> to vector<8x1xf32>
    %388 = vector.shape_cast %385 : vector<8x1xf32> to vector<1x8x1xf32>
    tpu.vector_store %arg6[%c0_284, %c0_285, %c6_286], %388 {strides = array<i32>} : memref<1x8x16xf32, #tpu.memory_space<vmem>>, vector<1x8x1xf32>,
    %389 = vector.extract_strided_slice %344 {offsets = [0, 0], sizes = [8, 32], strides = [1, 1]} : vector<8x96xf32> to vector<8x32xf32>
    %390 = vector.extract_strided_slice %383 {offsets = [0, 0], sizes = [8, 32], strides = [1, 1]} : vector<8x96xf32> to vector<8x32xf32>
    %391 = arith.addf %389, %390 : vector<8x32xf32>
    %392 = arith.negf %391 : vector<8x32xf32>
    %393 = math.exp %392 : vector<8x32xf32>
    %cst_287 = arith.constant 1.000000e+00 : f32
    %394 = vector.broadcast %cst_287 : f32 to vector<8x32xf32>
    %395 = arith.addf %394, %393 : vector<8x32xf32>
    %396 = arith.divf %394, %395 : vector<8x32xf32>
    %397 = vector.extract_strided_slice %344 {offsets = [0, 32], sizes = [8, 32], strides = [1, 1]} : vector<8x96xf32> to vector<8x32xf32>
    %398 = vector.extract_strided_slice %383 {offsets = [0, 32], sizes = [8, 32], strides = [1, 1]} : vector<8x96xf32> to vector<8x32xf32>
    %399 = arith.addf %397, %398 : vector<8x32xf32>
    %400 = arith.negf %399 : vector<8x32xf32>
    %401 = math.exp %400 : vector<8x32xf32>
    %cst_288 = arith.constant 1.000000e+00 : f32
    %402 = vector.broadcast %cst_288 : f32 to vector<8x32xf32>
    %403 = arith.addf %402, %401 : vector<8x32xf32>
    %404 = arith.divf %402, %403 : vector<8x32xf32>
    %405 = vector.extract_strided_slice %344 {offsets = [0, 64], sizes = [8, 32], strides = [1, 1]} : vector<8x96xf32> to vector<8x32xf32>
    %406 = vector.extract_strided_slice %383 {offsets = [0, 64], sizes = [8, 32], strides = [1, 1]} : vector<8x96xf32> to vector<8x32xf32>
    %407 = arith.addf %406, %3 : vector<8x32xf32>
    %408 = arith.mulf %396, %407 : vector<8x32xf32>
    %409 = arith.addf %405, %408 : vector<8x32xf32>
    %410 = math.tanh %409 : vector<8x32xf32>
    %cst_289 = arith.constant 1.000000e+00 : f32
    %411 = vector.broadcast %cst_289 : f32 to vector<8x32xf32>
    %412 = arith.subf %411, %404 : vector<8x32xf32>
    %413 = arith.mulf %412, %410 : vector<8x32xf32>
    %414 = arith.mulf %404, %338 : vector<8x32xf32>
    %415 = arith.addf %413, %414 : vector<8x32xf32>
    %c0_290 = arith.constant 0 : index
    %c6_291 = arith.constant 6 : index
    %c0_292 = arith.constant 0 : index
    %c0_293 = arith.constant 0 : index
    %416 = vector.load %arg5[%c0_290, %c6_291, %c0_292, %c0_293] : memref<1x16x8x32xf32, #tpu.memory_space<vmem>>, vector<1x1x8x32xf32>
    %417 = vector.shape_cast %416 : vector<1x1x8x32xf32> to vector<8x32xf32>
    %418 = vector.shape_cast %415 : vector<8x32xf32> to vector<1x1x8x32xf32>
    tpu.vector_store %arg5[%c0_290, %c6_291, %c0_292, %c0_293], %418 {strides = array<i32>} : memref<1x16x8x32xf32, #tpu.memory_space<vmem>>, vector<1x1x8x32xf32>,
    %c0_294 = arith.constant 0 : index
    %c7 = arith.constant 7 : index
    %c0_295 = arith.constant 0 : index
    %c0_296 = arith.constant 0 : index
    %419 = vector.load %arg3[%c0_294, %c7, %c0_295, %c0_296] : memref<1x16x8x128xf32, #tpu.memory_space<vmem>>, vector<1x1x8x128xf32>
    %420 = vector.shape_cast %419 : vector<1x1x8x128xf32> to vector<8x128xf32>
    %421 = vector.extract_strided_slice %420 {offsets = [0, 0], sizes = [8, 96], strides = [1, 1]} : vector<8x128xf32> to vector<8x96xf32>
    %422 = vector.extract_strided_slice %420 {offsets = [0, 96], sizes = [8, 1], strides = [1, 1]} : vector<8x128xf32> to vector<8x1xf32>
    %c0_297 = arith.constant 0 : index
    %c7_298 = arith.constant 7 : index
    %c0_299 = arith.constant 0 : index
    %c0_300 = arith.constant 0 : index
    %c0_301 = arith.constant 0 : index
    %423 = vector.load %arg4[%c0_297, %c7_298, %c0_299, %c0_300, %c0_301] : memref<1x16x16x8x32xf32, #tpu.memory_space<vmem>>, vector<1x1x1x8x32xf32>
    %424 = vector.shape_cast %423 : vector<1x1x1x8x32xf32> to vector<8x32xf32>
    %c0_302 = arith.constant 0 : index
    %c0_303 = arith.constant 0 : index
    %c0_304 = arith.constant 0 : index
    %c0_305 = arith.constant 0 : index
    %425 = vector.load %arg5[%c0_302, %c0_303, %c0_304, %c0_305] : memref<1x16x8x32xf32, #tpu.memory_space<vmem>>, vector<1x1x8x32xf32>
    %426 = vector.shape_cast %425 : vector<1x1x8x32xf32> to vector<8x32xf32>
    %427 = arith.mulf %424, %426 : vector<8x32xf32>
    %c0_306 = arith.constant 0 : index
    %c7_307 = arith.constant 7 : index
    %c1_308 = arith.constant 1 : index
    %c0_309 = arith.constant 0 : index
    %c0_310 = arith.constant 0 : index
    %428 = vector.load %arg4[%c0_306, %c7_307, %c1_308, %c0_309, %c0_310] : memref<1x16x16x8x32xf32, #tpu.memory_space<vmem>>, vector<1x1x1x8x32xf32>
    %429 = vector.shape_cast %428 : vector<1x1x1x8x32xf32> to vector<8x32xf32>
    %c0_311 = arith.constant 0 : index
    %c1_312 = arith.constant 1 : index
    %c0_313 = arith.constant 0 : index
    %c0_314 = arith.constant 0 : index
    %430 = vector.load %arg5[%c0_311, %c1_312, %c0_313, %c0_314] : memref<1x16x8x32xf32, #tpu.memory_space<vmem>>, vector<1x1x8x32xf32>
    %431 = vector.shape_cast %430 : vector<1x1x8x32xf32> to vector<8x32xf32>
    %432 = arith.mulf %429, %431 : vector<8x32xf32>
    %433 = arith.addf %427, %432 : vector<8x32xf32>
    %c0_315 = arith.constant 0 : index
    %c7_316 = arith.constant 7 : index
    %c2_317 = arith.constant 2 : index
    %c0_318 = arith.constant 0 : index
    %c0_319 = arith.constant 0 : index
    %434 = vector.load %arg4[%c0_315, %c7_316, %c2_317, %c0_318, %c0_319] : memref<1x16x16x8x32xf32, #tpu.memory_space<vmem>>, vector<1x1x1x8x32xf32>
    %435 = vector.shape_cast %434 : vector<1x1x1x8x32xf32> to vector<8x32xf32>
    %c0_320 = arith.constant 0 : index
    %c2_321 = arith.constant 2 : index
    %c0_322 = arith.constant 0 : index
    %c0_323 = arith.constant 0 : index
    %436 = vector.load %arg5[%c0_320, %c2_321, %c0_322, %c0_323] : memref<1x16x8x32xf32, #tpu.memory_space<vmem>>, vector<1x1x8x32xf32>
    %437 = vector.shape_cast %436 : vector<1x1x8x32xf32> to vector<8x32xf32>
    %438 = arith.mulf %435, %437 : vector<8x32xf32>
    %439 = arith.addf %433, %438 : vector<8x32xf32>
    %c0_324 = arith.constant 0 : index
    %c7_325 = arith.constant 7 : index
    %c3_326 = arith.constant 3 : index
    %c0_327 = arith.constant 0 : index
    %c0_328 = arith.constant 0 : index
    %440 = vector.load %arg4[%c0_324, %c7_325, %c3_326, %c0_327, %c0_328] : memref<1x16x16x8x32xf32, #tpu.memory_space<vmem>>, vector<1x1x1x8x32xf32>
    %441 = vector.shape_cast %440 : vector<1x1x1x8x32xf32> to vector<8x32xf32>
    %c0_329 = arith.constant 0 : index
    %c3_330 = arith.constant 3 : index
    %c0_331 = arith.constant 0 : index
    %c0_332 = arith.constant 0 : index
    %442 = vector.load %arg5[%c0_329, %c3_330, %c0_331, %c0_332] : memref<1x16x8x32xf32, #tpu.memory_space<vmem>>, vector<1x1x8x32xf32>
    %443 = vector.shape_cast %442 : vector<1x1x8x32xf32> to vector<8x32xf32>
    %444 = arith.mulf %441, %443 : vector<8x32xf32>
    %445 = arith.addf %439, %444 : vector<8x32xf32>
    %c0_333 = arith.constant 0 : index
    %c7_334 = arith.constant 7 : index
    %c4_335 = arith.constant 4 : index
    %c0_336 = arith.constant 0 : index
    %c0_337 = arith.constant 0 : index
    %446 = vector.load %arg4[%c0_333, %c7_334, %c4_335, %c0_336, %c0_337] : memref<1x16x16x8x32xf32, #tpu.memory_space<vmem>>, vector<1x1x1x8x32xf32>
    %447 = vector.shape_cast %446 : vector<1x1x1x8x32xf32> to vector<8x32xf32>
    %c0_338 = arith.constant 0 : index
    %c4_339 = arith.constant 4 : index
    %c0_340 = arith.constant 0 : index
    %c0_341 = arith.constant 0 : index
    %448 = vector.load %arg5[%c0_338, %c4_339, %c0_340, %c0_341] : memref<1x16x8x32xf32, #tpu.memory_space<vmem>>, vector<1x1x8x32xf32>
    %449 = vector.shape_cast %448 : vector<1x1x8x32xf32> to vector<8x32xf32>
    %450 = arith.mulf %447, %449 : vector<8x32xf32>
    %451 = arith.addf %445, %450 : vector<8x32xf32>
    %c0_342 = arith.constant 0 : index
    %c7_343 = arith.constant 7 : index
    %c5_344 = arith.constant 5 : index
    %c0_345 = arith.constant 0 : index
    %c0_346 = arith.constant 0 : index
    %452 = vector.load %arg4[%c0_342, %c7_343, %c5_344, %c0_345, %c0_346] : memref<1x16x16x8x32xf32, #tpu.memory_space<vmem>>, vector<1x1x1x8x32xf32>
    %453 = vector.shape_cast %452 : vector<1x1x1x8x32xf32> to vector<8x32xf32>
    %c0_347 = arith.constant 0 : index
    %c5_348 = arith.constant 5 : index
    %c0_349 = arith.constant 0 : index
    %c0_350 = arith.constant 0 : index
    %454 = vector.load %arg5[%c0_347, %c5_348, %c0_349, %c0_350] : memref<1x16x8x32xf32, #tpu.memory_space<vmem>>, vector<1x1x8x32xf32>
    %455 = vector.shape_cast %454 : vector<1x1x8x32xf32> to vector<8x32xf32>
    %456 = arith.mulf %453, %455 : vector<8x32xf32>
    %457 = arith.addf %451, %456 : vector<8x32xf32>
    %c0_351 = arith.constant 0 : index
    %c7_352 = arith.constant 7 : index
    %c6_353 = arith.constant 6 : index
    %c0_354 = arith.constant 0 : index
    %c0_355 = arith.constant 0 : index
    %458 = vector.load %arg4[%c0_351, %c7_352, %c6_353, %c0_354, %c0_355] : memref<1x16x16x8x32xf32, #tpu.memory_space<vmem>>, vector<1x1x1x8x32xf32>
    %459 = vector.shape_cast %458 : vector<1x1x1x8x32xf32> to vector<8x32xf32>
    %c0_356 = arith.constant 0 : index
    %c6_357 = arith.constant 6 : index
    %c0_358 = arith.constant 0 : index
    %c0_359 = arith.constant 0 : index
    %460 = vector.load %arg5[%c0_356, %c6_357, %c0_358, %c0_359] : memref<1x16x8x32xf32, #tpu.memory_space<vmem>>, vector<1x1x8x32xf32>
    %461 = vector.shape_cast %460 : vector<1x1x8x32xf32> to vector<8x32xf32>
    %462 = arith.mulf %459, %461 : vector<8x32xf32>
    %463 = arith.addf %457, %462 : vector<8x32xf32>
    %464 = tpu.concatenate %415, %463 in 1 : vector<8x32xf32>, vector<8x32xf32> -> vector<8x64xf32>
    %cst_360 = arith.constant dense<0.000000e+00> : vector<8x128xf32>
    %465 = tpu.matmul %464, %4, %cst_360 {dimension_numbers = #tpu.dot_dimension_numbers<[1], [0], [0], [1], [0, 0, 1, 1], [], []>, precision = #tpu.contract_precision<fp32>} : vector<8x64xf32>, vector<64x128xf32>, vector<8x128xf32> -> vector<8x128xf32>
    %466 = vector.extract_strided_slice %465 {offsets = [0, 0], sizes = [8, 96], strides = [1, 1]} : vector<8x128xf32> to vector<8x96xf32>
    %467 = vector.extract_strided_slice %465 {offsets = [0, 96], sizes = [8, 1], strides = [1, 1]} : vector<8x128xf32> to vector<8x1xf32>
    %468 = arith.addf %422, %467 : vector<8x1xf32>
    %c0_361 = arith.constant 0 : index
    %c0_362 = arith.constant 0 : index
    %c7_363 = arith.constant 7 : index
    %469 = vector.load %arg6[%c0_361, %c0_362, %c7_363] : memref<1x8x16xf32, #tpu.memory_space<vmem>>, vector<1x8x1xf32>
    %470 = vector.shape_cast %469 : vector<1x8x1xf32> to vector<8x1xf32>
    %471 = vector.shape_cast %468 : vector<8x1xf32> to vector<1x8x1xf32>
    tpu.vector_store %arg6[%c0_361, %c0_362, %c7_363], %471 {strides = array<i32>} : memref<1x8x16xf32, #tpu.memory_space<vmem>>, vector<1x8x1xf32>,
    %472 = vector.extract_strided_slice %421 {offsets = [0, 0], sizes = [8, 32], strides = [1, 1]} : vector<8x96xf32> to vector<8x32xf32>
    %473 = vector.extract_strided_slice %466 {offsets = [0, 0], sizes = [8, 32], strides = [1, 1]} : vector<8x96xf32> to vector<8x32xf32>
    %474 = arith.addf %472, %473 : vector<8x32xf32>
    %475 = arith.negf %474 : vector<8x32xf32>
    %476 = math.exp %475 : vector<8x32xf32>
    %cst_364 = arith.constant 1.000000e+00 : f32
    %477 = vector.broadcast %cst_364 : f32 to vector<8x32xf32>
    %478 = arith.addf %477, %476 : vector<8x32xf32>
    %479 = arith.divf %477, %478 : vector<8x32xf32>
    %480 = vector.extract_strided_slice %421 {offsets = [0, 32], sizes = [8, 32], strides = [1, 1]} : vector<8x96xf32> to vector<8x32xf32>
    %481 = vector.extract_strided_slice %466 {offsets = [0, 32], sizes = [8, 32], strides = [1, 1]} : vector<8x96xf32> to vector<8x32xf32>
    %482 = arith.addf %480, %481 : vector<8x32xf32>
    %483 = arith.negf %482 : vector<8x32xf32>
    %484 = math.exp %483 : vector<8x32xf32>
    %cst_365 = arith.constant 1.000000e+00 : f32
    %485 = vector.broadcast %cst_365 : f32 to vector<8x32xf32>
    %486 = arith.addf %485, %484 : vector<8x32xf32>
    %487 = arith.divf %485, %486 : vector<8x32xf32>
    %488 = vector.extract_strided_slice %421 {offsets = [0, 64], sizes = [8, 32], strides = [1, 1]} : vector<8x96xf32> to vector<8x32xf32>
    %489 = vector.extract_strided_slice %466 {offsets = [0, 64], sizes = [8, 32], strides = [1, 1]} : vector<8x96xf32> to vector<8x32xf32>
    %490 = arith.addf %489, %3 : vector<8x32xf32>
    %491 = arith.mulf %479, %490 : vector<8x32xf32>
    %492 = arith.addf %488, %491 : vector<8x32xf32>
    %493 = math.tanh %492 : vector<8x32xf32>
    %cst_366 = arith.constant 1.000000e+00 : f32
    %494 = vector.broadcast %cst_366 : f32 to vector<8x32xf32>
    %495 = arith.subf %494, %487 : vector<8x32xf32>
    %496 = arith.mulf %495, %493 : vector<8x32xf32>
    %497 = arith.mulf %487, %415 : vector<8x32xf32>
    %498 = arith.addf %496, %497 : vector<8x32xf32>
    %c0_367 = arith.constant 0 : index
    %c7_368 = arith.constant 7 : index
    %c0_369 = arith.constant 0 : index
    %c0_370 = arith.constant 0 : index
    %499 = vector.load %arg5[%c0_367, %c7_368, %c0_369, %c0_370] : memref<1x16x8x32xf32, #tpu.memory_space<vmem>>, vector<1x1x8x32xf32>
    %500 = vector.shape_cast %499 : vector<1x1x8x32xf32> to vector<8x32xf32>
    %501 = vector.shape_cast %498 : vector<8x32xf32> to vector<1x1x8x32xf32>
    tpu.vector_store %arg5[%c0_367, %c7_368, %c0_369, %c0_370], %501 {strides = array<i32>} : memref<1x16x8x32xf32, #tpu.memory_space<vmem>>, vector<1x1x8x32xf32>,
    %c0_371 = arith.constant 0 : index
    %c8 = arith.constant 8 : index
    %c0_372 = arith.constant 0 : index
    %c0_373 = arith.constant 0 : index
    %502 = vector.load %arg3[%c0_371, %c8, %c0_372, %c0_373] : memref<1x16x8x128xf32, #tpu.memory_space<vmem>>, vector<1x1x8x128xf32>
    %503 = vector.shape_cast %502 : vector<1x1x8x128xf32> to vector<8x128xf32>
    %504 = vector.extract_strided_slice %503 {offsets = [0, 0], sizes = [8, 96], strides = [1, 1]} : vector<8x128xf32> to vector<8x96xf32>
    %505 = vector.extract_strided_slice %503 {offsets = [0, 96], sizes = [8, 1], strides = [1, 1]} : vector<8x128xf32> to vector<8x1xf32>
    %c0_374 = arith.constant 0 : index
    %c8_375 = arith.constant 8 : index
    %c0_376 = arith.constant 0 : index
    %c0_377 = arith.constant 0 : index
    %c0_378 = arith.constant 0 : index
    %506 = vector.load %arg4[%c0_374, %c8_375, %c0_376, %c0_377, %c0_378] : memref<1x16x16x8x32xf32, #tpu.memory_space<vmem>>, vector<1x1x1x8x32xf32>
    %507 = vector.shape_cast %506 : vector<1x1x1x8x32xf32> to vector<8x32xf32>
    %c0_379 = arith.constant 0 : index
    %c0_380 = arith.constant 0 : index
    %c0_381 = arith.constant 0 : index
    %c0_382 = arith.constant 0 : index
    %508 = vector.load %arg5[%c0_379, %c0_380, %c0_381, %c0_382] : memref<1x16x8x32xf32, #tpu.memory_space<vmem>>, vector<1x1x8x32xf32>
    %509 = vector.shape_cast %508 : vector<1x1x8x32xf32> to vector<8x32xf32>
    %510 = arith.mulf %507, %509 : vector<8x32xf32>
    %c0_383 = arith.constant 0 : index
    %c8_384 = arith.constant 8 : index
    %c1_385 = arith.constant 1 : index
    %c0_386 = arith.constant 0 : index
    %c0_387 = arith.constant 0 : index
    %511 = vector.load %arg4[%c0_383, %c8_384, %c1_385, %c0_386, %c0_387] : memref<1x16x16x8x32xf32, #tpu.memory_space<vmem>>, vector<1x1x1x8x32xf32>
    %512 = vector.shape_cast %511 : vector<1x1x1x8x32xf32> to vector<8x32xf32>
    %c0_388 = arith.constant 0 : index
    %c1_389 = arith.constant 1 : index
    %c0_390 = arith.constant 0 : index
    %c0_391 = arith.constant 0 : index
    %513 = vector.load %arg5[%c0_388, %c1_389, %c0_390, %c0_391] : memref<1x16x8x32xf32, #tpu.memory_space<vmem>>, vector<1x1x8x32xf32>
    %514 = vector.shape_cast %513 : vector<1x1x8x32xf32> to vector<8x32xf32>
    %515 = arith.mulf %512, %514 : vector<8x32xf32>
    %516 = arith.addf %510, %515 : vector<8x32xf32>
    %c0_392 = arith.constant 0 : index
    %c8_393 = arith.constant 8 : index
    %c2_394 = arith.constant 2 : index
    %c0_395 = arith.constant 0 : index
    %c0_396 = arith.constant 0 : index
    %517 = vector.load %arg4[%c0_392, %c8_393, %c2_394, %c0_395, %c0_396] : memref<1x16x16x8x32xf32, #tpu.memory_space<vmem>>, vector<1x1x1x8x32xf32>
    %518 = vector.shape_cast %517 : vector<1x1x1x8x32xf32> to vector<8x32xf32>
    %c0_397 = arith.constant 0 : index
    %c2_398 = arith.constant 2 : index
    %c0_399 = arith.constant 0 : index
    %c0_400 = arith.constant 0 : index
    %519 = vector.load %arg5[%c0_397, %c2_398, %c0_399, %c0_400] : memref<1x16x8x32xf32, #tpu.memory_space<vmem>>, vector<1x1x8x32xf32>
    %520 = vector.shape_cast %519 : vector<1x1x8x32xf32> to vector<8x32xf32>
    %521 = arith.mulf %518, %520 : vector<8x32xf32>
    %522 = arith.addf %516, %521 : vector<8x32xf32>
    %c0_401 = arith.constant 0 : index
    %c8_402 = arith.constant 8 : index
    %c3_403 = arith.constant 3 : index
    %c0_404 = arith.constant 0 : index
    %c0_405 = arith.constant 0 : index
    %523 = vector.load %arg4[%c0_401, %c8_402, %c3_403, %c0_404, %c0_405] : memref<1x16x16x8x32xf32, #tpu.memory_space<vmem>>, vector<1x1x1x8x32xf32>
    %524 = vector.shape_cast %523 : vector<1x1x1x8x32xf32> to vector<8x32xf32>
    %c0_406 = arith.constant 0 : index
    %c3_407 = arith.constant 3 : index
    %c0_408 = arith.constant 0 : index
    %c0_409 = arith.constant 0 : index
    %525 = vector.load %arg5[%c0_406, %c3_407, %c0_408, %c0_409] : memref<1x16x8x32xf32, #tpu.memory_space<vmem>>, vector<1x1x8x32xf32>
    %526 = vector.shape_cast %525 : vector<1x1x8x32xf32> to vector<8x32xf32>
    %527 = arith.mulf %524, %526 : vector<8x32xf32>
    %528 = arith.addf %522, %527 : vector<8x32xf32>
    %c0_410 = arith.constant 0 : index
    %c8_411 = arith.constant 8 : index
    %c4_412 = arith.constant 4 : index
    %c0_413 = arith.constant 0 : index
    %c0_414 = arith.constant 0 : index
    %529 = vector.load %arg4[%c0_410, %c8_411, %c4_412, %c0_413, %c0_414] : memref<1x16x16x8x32xf32, #tpu.memory_space<vmem>>, vector<1x1x1x8x32xf32>
    %530 = vector.shape_cast %529 : vector<1x1x1x8x32xf32> to vector<8x32xf32>
    %c0_415 = arith.constant 0 : index
    %c4_416 = arith.constant 4 : index
    %c0_417 = arith.constant 0 : index
    %c0_418 = arith.constant 0 : index
    %531 = vector.load %arg5[%c0_415, %c4_416, %c0_417, %c0_418] : memref<1x16x8x32xf32, #tpu.memory_space<vmem>>, vector<1x1x8x32xf32>
    %532 = vector.shape_cast %531 : vector<1x1x8x32xf32> to vector<8x32xf32>
    %533 = arith.mulf %530, %532 : vector<8x32xf32>
    %534 = arith.addf %528, %533 : vector<8x32xf32>
    %c0_419 = arith.constant 0 : index
    %c8_420 = arith.constant 8 : index
    %c5_421 = arith.constant 5 : index
    %c0_422 = arith.constant 0 : index
    %c0_423 = arith.constant 0 : index
    %535 = vector.load %arg4[%c0_419, %c8_420, %c5_421, %c0_422, %c0_423] : memref<1x16x16x8x32xf32, #tpu.memory_space<vmem>>, vector<1x1x1x8x32xf32>
    %536 = vector.shape_cast %535 : vector<1x1x1x8x32xf32> to vector<8x32xf32>
    %c0_424 = arith.constant 0 : index
    %c5_425 = arith.constant 5 : index
    %c0_426 = arith.constant 0 : index
    %c0_427 = arith.constant 0 : index
    %537 = vector.load %arg5[%c0_424, %c5_425, %c0_426, %c0_427] : memref<1x16x8x32xf32, #tpu.memory_space<vmem>>, vector<1x1x8x32xf32>
    %538 = vector.shape_cast %537 : vector<1x1x8x32xf32> to vector<8x32xf32>
    %539 = arith.mulf %536, %538 : vector<8x32xf32>
    %540 = arith.addf %534, %539 : vector<8x32xf32>
    %c0_428 = arith.constant 0 : index
    %c8_429 = arith.constant 8 : index
    %c6_430 = arith.constant 6 : index
    %c0_431 = arith.constant 0 : index
    %c0_432 = arith.constant 0 : index
    %541 = vector.load %arg4[%c0_428, %c8_429, %c6_430, %c0_431, %c0_432] : memref<1x16x16x8x32xf32, #tpu.memory_space<vmem>>, vector<1x1x1x8x32xf32>
    %542 = vector.shape_cast %541 : vector<1x1x1x8x32xf32> to vector<8x32xf32>
    %c0_433 = arith.constant 0 : index
    %c6_434 = arith.constant 6 : index
    %c0_435 = arith.constant 0 : index
    %c0_436 = arith.constant 0 : index
    %543 = vector.load %arg5[%c0_433, %c6_434, %c0_435, %c0_436] : memref<1x16x8x32xf32, #tpu.memory_space<vmem>>, vector<1x1x8x32xf32>
    %544 = vector.shape_cast %543 : vector<1x1x8x32xf32> to vector<8x32xf32>
    %545 = arith.mulf %542, %544 : vector<8x32xf32>
    %546 = arith.addf %540, %545 : vector<8x32xf32>
    %c0_437 = arith.constant 0 : index
    %c8_438 = arith.constant 8 : index
    %c7_439 = arith.constant 7 : index
    %c0_440 = arith.constant 0 : index
    %c0_441 = arith.constant 0 : index
    %547 = vector.load %arg4[%c0_437, %c8_438, %c7_439, %c0_440, %c0_441] : memref<1x16x16x8x32xf32, #tpu.memory_space<vmem>>, vector<1x1x1x8x32xf32>
    %548 = vector.shape_cast %547 : vector<1x1x1x8x32xf32> to vector<8x32xf32>
    %c0_442 = arith.constant 0 : index
    %c7_443 = arith.constant 7 : index
    %c0_444 = arith.constant 0 : index
    %c0_445 = arith.constant 0 : index
    %549 = vector.load %arg5[%c0_442, %c7_443, %c0_444, %c0_445] : memref<1x16x8x32xf32, #tpu.memory_space<vmem>>, vector<1x1x8x32xf32>
    %550 = vector.shape_cast %549 : vector<1x1x8x32xf32> to vector<8x32xf32>
    %551 = arith.mulf %548, %550 : vector<8x32xf32>
    %552 = arith.addf %546, %551 : vector<8x32xf32>
    %553 = tpu.concatenate %498, %552 in 1 : vector<8x32xf32>, vector<8x32xf32> -> vector<8x64xf32>
    %cst_446 = arith.constant dense<0.000000e+00> : vector<8x128xf32>
    %554 = tpu.matmul %553, %4, %cst_446 {dimension_numbers = #tpu.dot_dimension_numbers<[1], [0], [0], [1], [0, 0, 1, 1], [], []>, precision = #tpu.contract_precision<fp32>} : vector<8x64xf32>, vector<64x128xf32>, vector<8x128xf32> -> vector<8x128xf32>
    %555 = vector.extract_strided_slice %554 {offsets = [0, 0], sizes = [8, 96], strides = [1, 1]} : vector<8x128xf32> to vector<8x96xf32>
    %556 = vector.extract_strided_slice %554 {offsets = [0, 96], sizes = [8, 1], strides = [1, 1]} : vector<8x128xf32> to vector<8x1xf32>
    %557 = arith.addf %505, %556 : vector<8x1xf32>
    %c0_447 = arith.constant 0 : index
    %c0_448 = arith.constant 0 : index
    %c8_449 = arith.constant 8 : index
    %558 = vector.load %arg6[%c0_447, %c0_448, %c8_449] : memref<1x8x16xf32, #tpu.memory_space<vmem>>, vector<1x8x1xf32>
    %559 = vector.shape_cast %558 : vector<1x8x1xf32> to vector<8x1xf32>
    %560 = vector.shape_cast %557 : vector<8x1xf32> to vector<1x8x1xf32>
    tpu.vector_store %arg6[%c0_447, %c0_448, %c8_449], %560 {strides = array<i32>} : memref<1x8x16xf32, #tpu.memory_space<vmem>>, vector<1x8x1xf32>,
    %561 = vector.extract_strided_slice %504 {offsets = [0, 0], sizes = [8, 32], strides = [1, 1]} : vector<8x96xf32> to vector<8x32xf32>
    %562 = vector.extract_strided_slice %555 {offsets = [0, 0], sizes = [8, 32], strides = [1, 1]} : vector<8x96xf32> to vector<8x32xf32>
    %563 = arith.addf %561, %562 : vector<8x32xf32>
    %564 = arith.negf %563 : vector<8x32xf32>
    %565 = math.exp %564 : vector<8x32xf32>
    %cst_450 = arith.constant 1.000000e+00 : f32
    %566 = vector.broadcast %cst_450 : f32 to vector<8x32xf32>
    %567 = arith.addf %566, %565 : vector<8x32xf32>
    %568 = arith.divf %566, %567 : vector<8x32xf32>
    %569 = vector.extract_strided_slice %504 {offsets = [0, 32], sizes = [8, 32], strides = [1, 1]} : vector<8x96xf32> to vector<8x32xf32>
    %570 = vector.extract_strided_slice %555 {offsets = [0, 32], sizes = [8, 32], strides = [1, 1]} : vector<8x96xf32> to vector<8x32xf32>
    %571 = arith.addf %569, %570 : vector<8x32xf32>
    %572 = arith.negf %571 : vector<8x32xf32>
    %573 = math.exp %572 : vector<8x32xf32>
    %cst_451 = arith.constant 1.000000e+00 : f32
    %574 = vector.broadcast %cst_451 : f32 to vector<8x32xf32>
    %575 = arith.addf %574, %573 : vector<8x32xf32>
    %576 = arith.divf %574, %575 : vector<8x32xf32>
    %577 = vector.extract_strided_slice %504 {offsets = [0, 64], sizes = [8, 32], strides = [1, 1]} : vector<8x96xf32> to vector<8x32xf32>
    %578 = vector.extract_strided_slice %555 {offsets = [0, 64], sizes = [8, 32], strides = [1, 1]} : vector<8x96xf32> to vector<8x32xf32>
    %579 = arith.addf %578, %3 : vector<8x32xf32>
    %580 = arith.mulf %568, %579 : vector<8x32xf32>
    %581 = arith.addf %577, %580 : vector<8x32xf32>
    %582 = math.tanh %581 : vector<8x32xf32>
    %cst_452 = arith.constant 1.000000e+00 : f32
    %583 = vector.broadcast %cst_452 : f32 to vector<8x32xf32>
    %584 = arith.subf %583, %576 : vector<8x32xf32>
    %585 = arith.mulf %584, %582 : vector<8x32xf32>
    %586 = arith.mulf %576, %498 : vector<8x32xf32>
    %587 = arith.addf %585, %586 : vector<8x32xf32>
    %c0_453 = arith.constant 0 : index
    %c8_454 = arith.constant 8 : index
    %c0_455 = arith.constant 0 : index
    %c0_456 = arith.constant 0 : index
    %588 = vector.load %arg5[%c0_453, %c8_454, %c0_455, %c0_456] : memref<1x16x8x32xf32, #tpu.memory_space<vmem>>, vector<1x1x8x32xf32>
    %589 = vector.shape_cast %588 : vector<1x1x8x32xf32> to vector<8x32xf32>
    %590 = vector.shape_cast %587 : vector<8x32xf32> to vector<1x1x8x32xf32>
    tpu.vector_store %arg5[%c0_453, %c8_454, %c0_455, %c0_456], %590 {strides = array<i32>} : memref<1x16x8x32xf32, #tpu.memory_space<vmem>>, vector<1x1x8x32xf32>,
    %c0_457 = arith.constant 0 : index
    %c9 = arith.constant 9 : index
    %c0_458 = arith.constant 0 : index
    %c0_459 = arith.constant 0 : index
    %591 = vector.load %arg3[%c0_457, %c9, %c0_458, %c0_459] : memref<1x16x8x128xf32, #tpu.memory_space<vmem>>, vector<1x1x8x128xf32>
    %592 = vector.shape_cast %591 : vector<1x1x8x128xf32> to vector<8x128xf32>
    %593 = vector.extract_strided_slice %592 {offsets = [0, 0], sizes = [8, 96], strides = [1, 1]} : vector<8x128xf32> to vector<8x96xf32>
    %594 = vector.extract_strided_slice %592 {offsets = [0, 96], sizes = [8, 1], strides = [1, 1]} : vector<8x128xf32> to vector<8x1xf32>
    %c0_460 = arith.constant 0 : index
    %c9_461 = arith.constant 9 : index
    %c0_462 = arith.constant 0 : index
    %c0_463 = arith.constant 0 : index
    %c0_464 = arith.constant 0 : index
    %595 = vector.load %arg4[%c0_460, %c9_461, %c0_462, %c0_463, %c0_464] : memref<1x16x16x8x32xf32, #tpu.memory_space<vmem>>, vector<1x1x1x8x32xf32>
    %596 = vector.shape_cast %595 : vector<1x1x1x8x32xf32> to vector<8x32xf32>
    %c0_465 = arith.constant 0 : index
    %c0_466 = arith.constant 0 : index
    %c0_467 = arith.constant 0 : index
    %c0_468 = arith.constant 0 : index
    %597 = vector.load %arg5[%c0_465, %c0_466, %c0_467, %c0_468] : memref<1x16x8x32xf32, #tpu.memory_space<vmem>>, vector<1x1x8x32xf32>
    %598 = vector.shape_cast %597 : vector<1x1x8x32xf32> to vector<8x32xf32>
    %599 = arith.mulf %596, %598 : vector<8x32xf32>
    %c0_469 = arith.constant 0 : index
    %c9_470 = arith.constant 9 : index
    %c1_471 = arith.constant 1 : index
    %c0_472 = arith.constant 0 : index
    %c0_473 = arith.constant 0 : index
    %600 = vector.load %arg4[%c0_469, %c9_470, %c1_471, %c0_472, %c0_473] : memref<1x16x16x8x32xf32, #tpu.memory_space<vmem>>, vector<1x1x1x8x32xf32>
    %601 = vector.shape_cast %600 : vector<1x1x1x8x32xf32> to vector<8x32xf32>
    %c0_474 = arith.constant 0 : index
    %c1_475 = arith.constant 1 : index
    %c0_476 = arith.constant 0 : index
    %c0_477 = arith.constant 0 : index
    %602 = vector.load %arg5[%c0_474, %c1_475, %c0_476, %c0_477] : memref<1x16x8x32xf32, #tpu.memory_space<vmem>>, vector<1x1x8x32xf32>
    %603 = vector.shape_cast %602 : vector<1x1x8x32xf32> to vector<8x32xf32>
    %604 = arith.mulf %601, %603 : vector<8x32xf32>
    %605 = arith.addf %599, %604 : vector<8x32xf32>
    %c0_478 = arith.constant 0 : index
    %c9_479 = arith.constant 9 : index
    %c2_480 = arith.constant 2 : index
    %c0_481 = arith.constant 0 : index
    %c0_482 = arith.constant 0 : index
    %606 = vector.load %arg4[%c0_478, %c9_479, %c2_480, %c0_481, %c0_482] : memref<1x16x16x8x32xf32, #tpu.memory_space<vmem>>, vector<1x1x1x8x32xf32>
    %607 = vector.shape_cast %606 : vector<1x1x1x8x32xf32> to vector<8x32xf32>
    %c0_483 = arith.constant 0 : index
    %c2_484 = arith.constant 2 : index
    %c0_485 = arith.constant 0 : index
    %c0_486 = arith.constant 0 : index
    %608 = vector.load %arg5[%c0_483, %c2_484, %c0_485, %c0_486] : memref<1x16x8x32xf32, #tpu.memory_space<vmem>>, vector<1x1x8x32xf32>
    %609 = vector.shape_cast %608 : vector<1x1x8x32xf32> to vector<8x32xf32>
    %610 = arith.mulf %607, %609 : vector<8x32xf32>
    %611 = arith.addf %605, %610 : vector<8x32xf32>
    %c0_487 = arith.constant 0 : index
    %c9_488 = arith.constant 9 : index
    %c3_489 = arith.constant 3 : index
    %c0_490 = arith.constant 0 : index
    %c0_491 = arith.constant 0 : index
    %612 = vector.load %arg4[%c0_487, %c9_488, %c3_489, %c0_490, %c0_491] : memref<1x16x16x8x32xf32, #tpu.memory_space<vmem>>, vector<1x1x1x8x32xf32>
    %613 = vector.shape_cast %612 : vector<1x1x1x8x32xf32> to vector<8x32xf32>
    %c0_492 = arith.constant 0 : index
    %c3_493 = arith.constant 3 : index
    %c0_494 = arith.constant 0 : index
    %c0_495 = arith.constant 0 : index
    %614 = vector.load %arg5[%c0_492, %c3_493, %c0_494, %c0_495] : memref<1x16x8x32xf32, #tpu.memory_space<vmem>>, vector<1x1x8x32xf32>
    %615 = vector.shape_cast %614 : vector<1x1x8x32xf32> to vector<8x32xf32>
    %616 = arith.mulf %613, %615 : vector<8x32xf32>
    %617 = arith.addf %611, %616 : vector<8x32xf32>
    %c0_496 = arith.constant 0 : index
    %c9_497 = arith.constant 9 : index
    %c4_498 = arith.constant 4 : index
    %c0_499 = arith.constant 0 : index
    %c0_500 = arith.constant 0 : index
    %618 = vector.load %arg4[%c0_496, %c9_497, %c4_498, %c0_499, %c0_500] : memref<1x16x16x8x32xf32, #tpu.memory_space<vmem>>, vector<1x1x1x8x32xf32>
    %619 = vector.shape_cast %618 : vector<1x1x1x8x32xf32> to vector<8x32xf32>
    %c0_501 = arith.constant 0 : index
    %c4_502 = arith.constant 4 : index
    %c0_503 = arith.constant 0 : index
    %c0_504 = arith.constant 0 : index
    %620 = vector.load %arg5[%c0_501, %c4_502, %c0_503, %c0_504] : memref<1x16x8x32xf32, #tpu.memory_space<vmem>>, vector<1x1x8x32xf32>
    %621 = vector.shape_cast %620 : vector<1x1x8x32xf32> to vector<8x32xf32>
    %622 = arith.mulf %619, %621 : vector<8x32xf32>
    %623 = arith.addf %617, %622 : vector<8x32xf32>
    %c0_505 = arith.constant 0 : index
    %c9_506 = arith.constant 9 : index
    %c5_507 = arith.constant 5 : index
    %c0_508 = arith.constant 0 : index
    %c0_509 = arith.constant 0 : index
    %624 = vector.load %arg4[%c0_505, %c9_506, %c5_507, %c0_508, %c0_509] : memref<1x16x16x8x32xf32, #tpu.memory_space<vmem>>, vector<1x1x1x8x32xf32>
    %625 = vector.shape_cast %624 : vector<1x1x1x8x32xf32> to vector<8x32xf32>
    %c0_510 = arith.constant 0 : index
    %c5_511 = arith.constant 5 : index
    %c0_512 = arith.constant 0 : index
    %c0_513 = arith.constant 0 : index
    %626 = vector.load %arg5[%c0_510, %c5_511, %c0_512, %c0_513] : memref<1x16x8x32xf32, #tpu.memory_space<vmem>>, vector<1x1x8x32xf32>
    %627 = vector.shape_cast %626 : vector<1x1x8x32xf32> to vector<8x32xf32>
    %628 = arith.mulf %625, %627 : vector<8x32xf32>
    %629 = arith.addf %623, %628 : vector<8x32xf32>
    %c0_514 = arith.constant 0 : index
    %c9_515 = arith.constant 9 : index
    %c6_516 = arith.constant 6 : index
    %c0_517 = arith.constant 0 : index
    %c0_518 = arith.constant 0 : index
    %630 = vector.load %arg4[%c0_514, %c9_515, %c6_516, %c0_517, %c0_518] : memref<1x16x16x8x32xf32, #tpu.memory_space<vmem>>, vector<1x1x1x8x32xf32>
    %631 = vector.shape_cast %630 : vector<1x1x1x8x32xf32> to vector<8x32xf32>
    %c0_519 = arith.constant 0 : index
    %c6_520 = arith.constant 6 : index
    %c0_521 = arith.constant 0 : index
    %c0_522 = arith.constant 0 : index
    %632 = vector.load %arg5[%c0_519, %c6_520, %c0_521, %c0_522] : memref<1x16x8x32xf32, #tpu.memory_space<vmem>>, vector<1x1x8x32xf32>
    %633 = vector.shape_cast %632 : vector<1x1x8x32xf32> to vector<8x32xf32>
    %634 = arith.mulf %631, %633 : vector<8x32xf32>
    %635 = arith.addf %629, %634 : vector<8x32xf32>
    %c0_523 = arith.constant 0 : index
    %c9_524 = arith.constant 9 : index
    %c7_525 = arith.constant 7 : index
    %c0_526 = arith.constant 0 : index
    %c0_527 = arith.constant 0 : index
    %636 = vector.load %arg4[%c0_523, %c9_524, %c7_525, %c0_526, %c0_527] : memref<1x16x16x8x32xf32, #tpu.memory_space<vmem>>, vector<1x1x1x8x32xf32>
    %637 = vector.shape_cast %636 : vector<1x1x1x8x32xf32> to vector<8x32xf32>
    %c0_528 = arith.constant 0 : index
    %c7_529 = arith.constant 7 : index
    %c0_530 = arith.constant 0 : index
    %c0_531 = arith.constant 0 : index
    %638 = vector.load %arg5[%c0_528, %c7_529, %c0_530, %c0_531] : memref<1x16x8x32xf32, #tpu.memory_space<vmem>>, vector<1x1x8x32xf32>
    %639 = vector.shape_cast %638 : vector<1x1x8x32xf32> to vector<8x32xf32>
    %640 = arith.mulf %637, %639 : vector<8x32xf32>
    %641 = arith.addf %635, %640 : vector<8x32xf32>
    %c0_532 = arith.constant 0 : index
    %c9_533 = arith.constant 9 : index
    %c8_534 = arith.constant 8 : index
    %c0_535 = arith.constant 0 : index
    %c0_536 = arith.constant 0 : index
    %642 = vector.load %arg4[%c0_532, %c9_533, %c8_534, %c0_535, %c0_536] : memref<1x16x16x8x32xf32, #tpu.memory_space<vmem>>, vector<1x1x1x8x32xf32>
    %643 = vector.shape_cast %642 : vector<1x1x1x8x32xf32> to vector<8x32xf32>
    %c0_537 = arith.constant 0 : index
    %c8_538 = arith.constant 8 : index
    %c0_539 = arith.constant 0 : index
    %c0_540 = arith.constant 0 : index
    %644 = vector.load %arg5[%c0_537, %c8_538, %c0_539, %c0_540] : memref<1x16x8x32xf32, #tpu.memory_space<vmem>>, vector<1x1x8x32xf32>
    %645 = vector.shape_cast %644 : vector<1x1x8x32xf32> to vector<8x32xf32>
    %646 = arith.mulf %643, %645 : vector<8x32xf32>
    %647 = arith.addf %641, %646 : vector<8x32xf32>
    %648 = tpu.concatenate %587, %647 in 1 : vector<8x32xf32>, vector<8x32xf32> -> vector<8x64xf32>
    %cst_541 = arith.constant dense<0.000000e+00> : vector<8x128xf32>
    %649 = tpu.matmul %648, %4, %cst_541 {dimension_numbers = #tpu.dot_dimension_numbers<[1], [0], [0], [1], [0, 0, 1, 1], [], []>, precision = #tpu.contract_precision<fp32>} : vector<8x64xf32>, vector<64x128xf32>, vector<8x128xf32> -> vector<8x128xf32>
    %650 = vector.extract_strided_slice %649 {offsets = [0, 0], sizes = [8, 96], strides = [1, 1]} : vector<8x128xf32> to vector<8x96xf32>
    %651 = vector.extract_strided_slice %649 {offsets = [0, 96], sizes = [8, 1], strides = [1, 1]} : vector<8x128xf32> to vector<8x1xf32>
    %652 = arith.addf %594, %651 : vector<8x1xf32>
    %c0_542 = arith.constant 0 : index
    %c0_543 = arith.constant 0 : index
    %c9_544 = arith.constant 9 : index
    %653 = vector.load %arg6[%c0_542, %c0_543, %c9_544] : memref<1x8x16xf32, #tpu.memory_space<vmem>>, vector<1x8x1xf32>
    %654 = vector.shape_cast %653 : vector<1x8x1xf32> to vector<8x1xf32>
    %655 = vector.shape_cast %652 : vector<8x1xf32> to vector<1x8x1xf32>
    tpu.vector_store %arg6[%c0_542, %c0_543, %c9_544], %655 {strides = array<i32>} : memref<1x8x16xf32, #tpu.memory_space<vmem>>, vector<1x8x1xf32>,
    %656 = vector.extract_strided_slice %593 {offsets = [0, 0], sizes = [8, 32], strides = [1, 1]} : vector<8x96xf32> to vector<8x32xf32>
    %657 = vector.extract_strided_slice %650 {offsets = [0, 0], sizes = [8, 32], strides = [1, 1]} : vector<8x96xf32> to vector<8x32xf32>
    %658 = arith.addf %656, %657 : vector<8x32xf32>
    %659 = arith.negf %658 : vector<8x32xf32>
    %660 = math.exp %659 : vector<8x32xf32>
    %cst_545 = arith.constant 1.000000e+00 : f32
    %661 = vector.broadcast %cst_545 : f32 to vector<8x32xf32>
    %662 = arith.addf %661, %660 : vector<8x32xf32>
    %663 = arith.divf %661, %662 : vector<8x32xf32>
    %664 = vector.extract_strided_slice %593 {offsets = [0, 32], sizes = [8, 32], strides = [1, 1]} : vector<8x96xf32> to vector<8x32xf32>
    %665 = vector.extract_strided_slice %650 {offsets = [0, 32], sizes = [8, 32], strides = [1, 1]} : vector<8x96xf32> to vector<8x32xf32>
    %666 = arith.addf %664, %665 : vector<8x32xf32>
    %667 = arith.negf %666 : vector<8x32xf32>
    %668 = math.exp %667 : vector<8x32xf32>
    %cst_546 = arith.constant 1.000000e+00 : f32
    %669 = vector.broadcast %cst_546 : f32 to vector<8x32xf32>
    %670 = arith.addf %669, %668 : vector<8x32xf32>
    %671 = arith.divf %669, %670 : vector<8x32xf32>
    %672 = vector.extract_strided_slice %593 {offsets = [0, 64], sizes = [8, 32], strides = [1, 1]} : vector<8x96xf32> to vector<8x32xf32>
    %673 = vector.extract_strided_slice %650 {offsets = [0, 64], sizes = [8, 32], strides = [1, 1]} : vector<8x96xf32> to vector<8x32xf32>
    %674 = arith.addf %673, %3 : vector<8x32xf32>
    %675 = arith.mulf %663, %674 : vector<8x32xf32>
    %676 = arith.addf %672, %675 : vector<8x32xf32>
    %677 = math.tanh %676 : vector<8x32xf32>
    %cst_547 = arith.constant 1.000000e+00 : f32
    %678 = vector.broadcast %cst_547 : f32 to vector<8x32xf32>
    %679 = arith.subf %678, %671 : vector<8x32xf32>
    %680 = arith.mulf %679, %677 : vector<8x32xf32>
    %681 = arith.mulf %671, %587 : vector<8x32xf32>
    %682 = arith.addf %680, %681 : vector<8x32xf32>
    %c0_548 = arith.constant 0 : index
    %c9_549 = arith.constant 9 : index
    %c0_550 = arith.constant 0 : index
    %c0_551 = arith.constant 0 : index
    %683 = vector.load %arg5[%c0_548, %c9_549, %c0_550, %c0_551] : memref<1x16x8x32xf32, #tpu.memory_space<vmem>>, vector<1x1x8x32xf32>
    %684 = vector.shape_cast %683 : vector<1x1x8x32xf32> to vector<8x32xf32>
    %685 = vector.shape_cast %682 : vector<8x32xf32> to vector<1x1x8x32xf32>
    tpu.vector_store %arg5[%c0_548, %c9_549, %c0_550, %c0_551], %685 {strides = array<i32>} : memref<1x16x8x32xf32, #tpu.memory_space<vmem>>, vector<1x1x8x32xf32>,
    %c0_552 = arith.constant 0 : index
    %c10 = arith.constant 10 : index
    %c0_553 = arith.constant 0 : index
    %c0_554 = arith.constant 0 : index
    %686 = vector.load %arg3[%c0_552, %c10, %c0_553, %c0_554] : memref<1x16x8x128xf32, #tpu.memory_space<vmem>>, vector<1x1x8x128xf32>
    %687 = vector.shape_cast %686 : vector<1x1x8x128xf32> to vector<8x128xf32>
    %688 = vector.extract_strided_slice %687 {offsets = [0, 0], sizes = [8, 96], strides = [1, 1]} : vector<8x128xf32> to vector<8x96xf32>
    %689 = vector.extract_strided_slice %687 {offsets = [0, 96], sizes = [8, 1], strides = [1, 1]} : vector<8x128xf32> to vector<8x1xf32>
    %c0_555 = arith.constant 0 : index
    %c10_556 = arith.constant 10 : index
    %c0_557 = arith.constant 0 : index
    %c0_558 = arith.constant 0 : index
    %c0_559 = arith.constant 0 : index
    %690 = vector.load %arg4[%c0_555, %c10_556, %c0_557, %c0_558, %c0_559] : memref<1x16x16x8x32xf32, #tpu.memory_space<vmem>>, vector<1x1x1x8x32xf32>
    %691 = vector.shape_cast %690 : vector<1x1x1x8x32xf32> to vector<8x32xf32>
    %c0_560 = arith.constant 0 : index
    %c0_561 = arith.constant 0 : index
    %c0_562 = arith.constant 0 : index
    %c0_563 = arith.constant 0 : index
    %692 = vector.load %arg5[%c0_560, %c0_561, %c0_562, %c0_563] : memref<1x16x8x32xf32, #tpu.memory_space<vmem>>, vector<1x1x8x32xf32>
    %693 = vector.shape_cast %692 : vector<1x1x8x32xf32> to vector<8x32xf32>
    %694 = arith.mulf %691, %693 : vector<8x32xf32>
    %c0_564 = arith.constant 0 : index
    %c10_565 = arith.constant 10 : index
    %c1_566 = arith.constant 1 : index
    %c0_567 = arith.constant 0 : index
    %c0_568 = arith.constant 0 : index
    %695 = vector.load %arg4[%c0_564, %c10_565, %c1_566, %c0_567, %c0_568] : memref<1x16x16x8x32xf32, #tpu.memory_space<vmem>>, vector<1x1x1x8x32xf32>
    %696 = vector.shape_cast %695 : vector<1x1x1x8x32xf32> to vector<8x32xf32>
    %c0_569 = arith.constant 0 : index
    %c1_570 = arith.constant 1 : index
    %c0_571 = arith.constant 0 : index
    %c0_572 = arith.constant 0 : index
    %697 = vector.load %arg5[%c0_569, %c1_570, %c0_571, %c0_572] : memref<1x16x8x32xf32, #tpu.memory_space<vmem>>, vector<1x1x8x32xf32>
    %698 = vector.shape_cast %697 : vector<1x1x8x32xf32> to vector<8x32xf32>
    %699 = arith.mulf %696, %698 : vector<8x32xf32>
    %700 = arith.addf %694, %699 : vector<8x32xf32>
    %c0_573 = arith.constant 0 : index
    %c10_574 = arith.constant 10 : index
    %c2_575 = arith.constant 2 : index
    %c0_576 = arith.constant 0 : index
    %c0_577 = arith.constant 0 : index
    %701 = vector.load %arg4[%c0_573, %c10_574, %c2_575, %c0_576, %c0_577] : memref<1x16x16x8x32xf32, #tpu.memory_space<vmem>>, vector<1x1x1x8x32xf32>
    %702 = vector.shape_cast %701 : vector<1x1x1x8x32xf32> to vector<8x32xf32>
    %c0_578 = arith.constant 0 : index
    %c2_579 = arith.constant 2 : index
    %c0_580 = arith.constant 0 : index
    %c0_581 = arith.constant 0 : index
    %703 = vector.load %arg5[%c0_578, %c2_579, %c0_580, %c0_581] : memref<1x16x8x32xf32, #tpu.memory_space<vmem>>, vector<1x1x8x32xf32>
    %704 = vector.shape_cast %703 : vector<1x1x8x32xf32> to vector<8x32xf32>
    %705 = arith.mulf %702, %704 : vector<8x32xf32>
    %706 = arith.addf %700, %705 : vector<8x32xf32>
    %c0_582 = arith.constant 0 : index
    %c10_583 = arith.constant 10 : index
    %c3_584 = arith.constant 3 : index
    %c0_585 = arith.constant 0 : index
    %c0_586 = arith.constant 0 : index
    %707 = vector.load %arg4[%c0_582, %c10_583, %c3_584, %c0_585, %c0_586] : memref<1x16x16x8x32xf32, #tpu.memory_space<vmem>>, vector<1x1x1x8x32xf32>
    %708 = vector.shape_cast %707 : vector<1x1x1x8x32xf32> to vector<8x32xf32>
    %c0_587 = arith.constant 0 : index
    %c3_588 = arith.constant 3 : index
    %c0_589 = arith.constant 0 : index
    %c0_590 = arith.constant 0 : index
    %709 = vector.load %arg5[%c0_587, %c3_588, %c0_589, %c0_590] : memref<1x16x8x32xf32, #tpu.memory_space<vmem>>, vector<1x1x8x32xf32>
    %710 = vector.shape_cast %709 : vector<1x1x8x32xf32> to vector<8x32xf32>
    %711 = arith.mulf %708, %710 : vector<8x32xf32>
    %712 = arith.addf %706, %711 : vector<8x32xf32>
    %c0_591 = arith.constant 0 : index
    %c10_592 = arith.constant 10 : index
    %c4_593 = arith.constant 4 : index
    %c0_594 = arith.constant 0 : index
    %c0_595 = arith.constant 0 : index
    %713 = vector.load %arg4[%c0_591, %c10_592, %c4_593, %c0_594, %c0_595] : memref<1x16x16x8x32xf32, #tpu.memory_space<vmem>>, vector<1x1x1x8x32xf32>
    %714 = vector.shape_cast %713 : vector<1x1x1x8x32xf32> to vector<8x32xf32>
    %c0_596 = arith.constant 0 : index
    %c4_597 = arith.constant 4 : index
    %c0_598 = arith.constant 0 : index
    %c0_599 = arith.constant 0 : index
    %715 = vector.load %arg5[%c0_596, %c4_597, %c0_598, %c0_599] : memref<1x16x8x32xf32, #tpu.memory_space<vmem>>, vector<1x1x8x32xf32>
    %716 = vector.shape_cast %715 : vector<1x1x8x32xf32> to vector<8x32xf32>
    %717 = arith.mulf %714, %716 : vector<8x32xf32>
    %718 = arith.addf %712, %717 : vector<8x32xf32>
    %c0_600 = arith.constant 0 : index
    %c10_601 = arith.constant 10 : index
    %c5_602 = arith.constant 5 : index
    %c0_603 = arith.constant 0 : index
    %c0_604 = arith.constant 0 : index
    %719 = vector.load %arg4[%c0_600, %c10_601, %c5_602, %c0_603, %c0_604] : memref<1x16x16x8x32xf32, #tpu.memory_space<vmem>>, vector<1x1x1x8x32xf32>
    %720 = vector.shape_cast %719 : vector<1x1x1x8x32xf32> to vector<8x32xf32>
    %c0_605 = arith.constant 0 : index
    %c5_606 = arith.constant 5 : index
    %c0_607 = arith.constant 0 : index
    %c0_608 = arith.constant 0 : index
    %721 = vector.load %arg5[%c0_605, %c5_606, %c0_607, %c0_608] : memref<1x16x8x32xf32, #tpu.memory_space<vmem>>, vector<1x1x8x32xf32>
    %722 = vector.shape_cast %721 : vector<1x1x8x32xf32> to vector<8x32xf32>
    %723 = arith.mulf %720, %722 : vector<8x32xf32>
    %724 = arith.addf %718, %723 : vector<8x32xf32>
    %c0_609 = arith.constant 0 : index
    %c10_610 = arith.constant 10 : index
    %c6_611 = arith.constant 6 : index
    %c0_612 = arith.constant 0 : index
    %c0_613 = arith.constant 0 : index
    %725 = vector.load %arg4[%c0_609, %c10_610, %c6_611, %c0_612, %c0_613] : memref<1x16x16x8x32xf32, #tpu.memory_space<vmem>>, vector<1x1x1x8x32xf32>
    %726 = vector.shape_cast %725 : vector<1x1x1x8x32xf32> to vector<8x32xf32>
    %c0_614 = arith.constant 0 : index
    %c6_615 = arith.constant 6 : index
    %c0_616 = arith.constant 0 : index
    %c0_617 = arith.constant 0 : index
    %727 = vector.load %arg5[%c0_614, %c6_615, %c0_616, %c0_617] : memref<1x16x8x32xf32, #tpu.memory_space<vmem>>, vector<1x1x8x32xf32>
    %728 = vector.shape_cast %727 : vector<1x1x8x32xf32> to vector<8x32xf32>
    %729 = arith.mulf %726, %728 : vector<8x32xf32>
    %730 = arith.addf %724, %729 : vector<8x32xf32>
    %c0_618 = arith.constant 0 : index
    %c10_619 = arith.constant 10 : index
    %c7_620 = arith.constant 7 : index
    %c0_621 = arith.constant 0 : index
    %c0_622 = arith.constant 0 : index
    %731 = vector.load %arg4[%c0_618, %c10_619, %c7_620, %c0_621, %c0_622] : memref<1x16x16x8x32xf32, #tpu.memory_space<vmem>>, vector<1x1x1x8x32xf32>
    %732 = vector.shape_cast %731 : vector<1x1x1x8x32xf32> to vector<8x32xf32>
    %c0_623 = arith.constant 0 : index
    %c7_624 = arith.constant 7 : index
    %c0_625 = arith.constant 0 : index
    %c0_626 = arith.constant 0 : index
    %733 = vector.load %arg5[%c0_623, %c7_624, %c0_625, %c0_626] : memref<1x16x8x32xf32, #tpu.memory_space<vmem>>, vector<1x1x8x32xf32>
    %734 = vector.shape_cast %733 : vector<1x1x8x32xf32> to vector<8x32xf32>
    %735 = arith.mulf %732, %734 : vector<8x32xf32>
    %736 = arith.addf %730, %735 : vector<8x32xf32>
    %c0_627 = arith.constant 0 : index
    %c10_628 = arith.constant 10 : index
    %c8_629 = arith.constant 8 : index
    %c0_630 = arith.constant 0 : index
    %c0_631 = arith.constant 0 : index
    %737 = vector.load %arg4[%c0_627, %c10_628, %c8_629, %c0_630, %c0_631] : memref<1x16x16x8x32xf32, #tpu.memory_space<vmem>>, vector<1x1x1x8x32xf32>
    %738 = vector.shape_cast %737 : vector<1x1x1x8x32xf32> to vector<8x32xf32>
    %c0_632 = arith.constant 0 : index
    %c8_633 = arith.constant 8 : index
    %c0_634 = arith.constant 0 : index
    %c0_635 = arith.constant 0 : index
    %739 = vector.load %arg5[%c0_632, %c8_633, %c0_634, %c0_635] : memref<1x16x8x32xf32, #tpu.memory_space<vmem>>, vector<1x1x8x32xf32>
    %740 = vector.shape_cast %739 : vector<1x1x8x32xf32> to vector<8x32xf32>
    %741 = arith.mulf %738, %740 : vector<8x32xf32>
    %742 = arith.addf %736, %741 : vector<8x32xf32>
    %c0_636 = arith.constant 0 : index
    %c10_637 = arith.constant 10 : index
    %c9_638 = arith.constant 9 : index
    %c0_639 = arith.constant 0 : index
    %c0_640 = arith.constant 0 : index
    %743 = vector.load %arg4[%c0_636, %c10_637, %c9_638, %c0_639, %c0_640] : memref<1x16x16x8x32xf32, #tpu.memory_space<vmem>>, vector<1x1x1x8x32xf32>
    %744 = vector.shape_cast %743 : vector<1x1x1x8x32xf32> to vector<8x32xf32>
    %c0_641 = arith.constant 0 : index
    %c9_642 = arith.constant 9 : index
    %c0_643 = arith.constant 0 : index
    %c0_644 = arith.constant 0 : index
    %745 = vector.load %arg5[%c0_641, %c9_642, %c0_643, %c0_644] : memref<1x16x8x32xf32, #tpu.memory_space<vmem>>, vector<1x1x8x32xf32>
    %746 = vector.shape_cast %745 : vector<1x1x8x32xf32> to vector<8x32xf32>
    %747 = arith.mulf %744, %746 : vector<8x32xf32>
    %748 = arith.addf %742, %747 : vector<8x32xf32>
    %749 = tpu.concatenate %682, %748 in 1 : vector<8x32xf32>, vector<8x32xf32> -> vector<8x64xf32>
    %cst_645 = arith.constant dense<0.000000e+00> : vector<8x128xf32>
    %750 = tpu.matmul %749, %4, %cst_645 {dimension_numbers = #tpu.dot_dimension_numbers<[1], [0], [0], [1], [0, 0, 1, 1], [], []>, precision = #tpu.contract_precision<fp32>} : vector<8x64xf32>, vector<64x128xf32>, vector<8x128xf32> -> vector<8x128xf32>
    %751 = vector.extract_strided_slice %750 {offsets = [0, 0], sizes = [8, 96], strides = [1, 1]} : vector<8x128xf32> to vector<8x96xf32>
    %752 = vector.extract_strided_slice %750 {offsets = [0, 96], sizes = [8, 1], strides = [1, 1]} : vector<8x128xf32> to vector<8x1xf32>
    %753 = arith.addf %689, %752 : vector<8x1xf32>
    %c0_646 = arith.constant 0 : index
    %c0_647 = arith.constant 0 : index
    %c10_648 = arith.constant 10 : index
    %754 = vector.load %arg6[%c0_646, %c0_647, %c10_648] : memref<1x8x16xf32, #tpu.memory_space<vmem>>, vector<1x8x1xf32>
    %755 = vector.shape_cast %754 : vector<1x8x1xf32> to vector<8x1xf32>
    %756 = vector.shape_cast %753 : vector<8x1xf32> to vector<1x8x1xf32>
    tpu.vector_store %arg6[%c0_646, %c0_647, %c10_648], %756 {strides = array<i32>} : memref<1x8x16xf32, #tpu.memory_space<vmem>>, vector<1x8x1xf32>,
    %757 = vector.extract_strided_slice %688 {offsets = [0, 0], sizes = [8, 32], strides = [1, 1]} : vector<8x96xf32> to vector<8x32xf32>
    %758 = vector.extract_strided_slice %751 {offsets = [0, 0], sizes = [8, 32], strides = [1, 1]} : vector<8x96xf32> to vector<8x32xf32>
    %759 = arith.addf %757, %758 : vector<8x32xf32>
    %760 = arith.negf %759 : vector<8x32xf32>
    %761 = math.exp %760 : vector<8x32xf32>
    %cst_649 = arith.constant 1.000000e+00 : f32
    %762 = vector.broadcast %cst_649 : f32 to vector<8x32xf32>
    %763 = arith.addf %762, %761 : vector<8x32xf32>
    %764 = arith.divf %762, %763 : vector<8x32xf32>
    %765 = vector.extract_strided_slice %688 {offsets = [0, 32], sizes = [8, 32], strides = [1, 1]} : vector<8x96xf32> to vector<8x32xf32>
    %766 = vector.extract_strided_slice %751 {offsets = [0, 32], sizes = [8, 32], strides = [1, 1]} : vector<8x96xf32> to vector<8x32xf32>
    %767 = arith.addf %765, %766 : vector<8x32xf32>
    %768 = arith.negf %767 : vector<8x32xf32>
    %769 = math.exp %768 : vector<8x32xf32>
    %cst_650 = arith.constant 1.000000e+00 : f32
    %770 = vector.broadcast %cst_650 : f32 to vector<8x32xf32>
    %771 = arith.addf %770, %769 : vector<8x32xf32>
    %772 = arith.divf %770, %771 : vector<8x32xf32>
    %773 = vector.extract_strided_slice %688 {offsets = [0, 64], sizes = [8, 32], strides = [1, 1]} : vector<8x96xf32> to vector<8x32xf32>
    %774 = vector.extract_strided_slice %751 {offsets = [0, 64], sizes = [8, 32], strides = [1, 1]} : vector<8x96xf32> to vector<8x32xf32>
    %775 = arith.addf %774, %3 : vector<8x32xf32>
    %776 = arith.mulf %764, %775 : vector<8x32xf32>
    %777 = arith.addf %773, %776 : vector<8x32xf32>
    %778 = math.tanh %777 : vector<8x32xf32>
    %cst_651 = arith.constant 1.000000e+00 : f32
    %779 = vector.broadcast %cst_651 : f32 to vector<8x32xf32>
    %780 = arith.subf %779, %772 : vector<8x32xf32>
    %781 = arith.mulf %780, %778 : vector<8x32xf32>
    %782 = arith.mulf %772, %682 : vector<8x32xf32>
    %783 = arith.addf %781, %782 : vector<8x32xf32>
    %c0_652 = arith.constant 0 : index
    %c10_653 = arith.constant 10 : index
    %c0_654 = arith.constant 0 : index
    %c0_655 = arith.constant 0 : index
    %784 = vector.load %arg5[%c0_652, %c10_653, %c0_654, %c0_655] : memref<1x16x8x32xf32, #tpu.memory_space<vmem>>, vector<1x1x8x32xf32>
    %785 = vector.shape_cast %784 : vector<1x1x8x32xf32> to vector<8x32xf32>
    %786 = vector.shape_cast %783 : vector<8x32xf32> to vector<1x1x8x32xf32>
    tpu.vector_store %arg5[%c0_652, %c10_653, %c0_654, %c0_655], %786 {strides = array<i32>} : memref<1x16x8x32xf32, #tpu.memory_space<vmem>>, vector<1x1x8x32xf32>,
    %c0_656 = arith.constant 0 : index
    %c11 = arith.constant 11 : index
    %c0_657 = arith.constant 0 : index
    %c0_658 = arith.constant 0 : index
    %787 = vector.load %arg3[%c0_656, %c11, %c0_657, %c0_658] : memref<1x16x8x128xf32, #tpu.memory_space<vmem>>, vector<1x1x8x128xf32>
    %788 = vector.shape_cast %787 : vector<1x1x8x128xf32> to vector<8x128xf32>
    %789 = vector.extract_strided_slice %788 {offsets = [0, 0], sizes = [8, 96], strides = [1, 1]} : vector<8x128xf32> to vector<8x96xf32>
    %790 = vector.extract_strided_slice %788 {offsets = [0, 96], sizes = [8, 1], strides = [1, 1]} : vector<8x128xf32> to vector<8x1xf32>
    %c0_659 = arith.constant 0 : index
    %c11_660 = arith.constant 11 : index
    %c0_661 = arith.constant 0 : index
    %c0_662 = arith.constant 0 : index
    %c0_663 = arith.constant 0 : index
    %791 = vector.load %arg4[%c0_659, %c11_660, %c0_661, %c0_662, %c0_663] : memref<1x16x16x8x32xf32, #tpu.memory_space<vmem>>, vector<1x1x1x8x32xf32>
    %792 = vector.shape_cast %791 : vector<1x1x1x8x32xf32> to vector<8x32xf32>
    %c0_664 = arith.constant 0 : index
    %c0_665 = arith.constant 0 : index
    %c0_666 = arith.constant 0 : index
    %c0_667 = arith.constant 0 : index
    %793 = vector.load %arg5[%c0_664, %c0_665, %c0_666, %c0_667] : memref<1x16x8x32xf32, #tpu.memory_space<vmem>>, vector<1x1x8x32xf32>
    %794 = vector.shape_cast %793 : vector<1x1x8x32xf32> to vector<8x32xf32>
    %795 = arith.mulf %792, %794 : vector<8x32xf32>
    %c0_668 = arith.constant 0 : index
    %c11_669 = arith.constant 11 : index
    %c1_670 = arith.constant 1 : index
    %c0_671 = arith.constant 0 : index
    %c0_672 = arith.constant 0 : index
    %796 = vector.load %arg4[%c0_668, %c11_669, %c1_670, %c0_671, %c0_672] : memref<1x16x16x8x32xf32, #tpu.memory_space<vmem>>, vector<1x1x1x8x32xf32>
    %797 = vector.shape_cast %796 : vector<1x1x1x8x32xf32> to vector<8x32xf32>
    %c0_673 = arith.constant 0 : index
    %c1_674 = arith.constant 1 : index
    %c0_675 = arith.constant 0 : index
    %c0_676 = arith.constant 0 : index
    %798 = vector.load %arg5[%c0_673, %c1_674, %c0_675, %c0_676] : memref<1x16x8x32xf32, #tpu.memory_space<vmem>>, vector<1x1x8x32xf32>
    %799 = vector.shape_cast %798 : vector<1x1x8x32xf32> to vector<8x32xf32>
    %800 = arith.mulf %797, %799 : vector<8x32xf32>
    %801 = arith.addf %795, %800 : vector<8x32xf32>
    %c0_677 = arith.constant 0 : index
    %c11_678 = arith.constant 11 : index
    %c2_679 = arith.constant 2 : index
    %c0_680 = arith.constant 0 : index
    %c0_681 = arith.constant 0 : index
    %802 = vector.load %arg4[%c0_677, %c11_678, %c2_679, %c0_680, %c0_681] : memref<1x16x16x8x32xf32, #tpu.memory_space<vmem>>, vector<1x1x1x8x32xf32>
    %803 = vector.shape_cast %802 : vector<1x1x1x8x32xf32> to vector<8x32xf32>
    %c0_682 = arith.constant 0 : index
    %c2_683 = arith.constant 2 : index
    %c0_684 = arith.constant 0 : index
    %c0_685 = arith.constant 0 : index
    %804 = vector.load %arg5[%c0_682, %c2_683, %c0_684, %c0_685] : memref<1x16x8x32xf32, #tpu.memory_space<vmem>>, vector<1x1x8x32xf32>
    %805 = vector.shape_cast %804 : vector<1x1x8x32xf32> to vector<8x32xf32>
    %806 = arith.mulf %803, %805 : vector<8x32xf32>
    %807 = arith.addf %801, %806 : vector<8x32xf32>
    %c0_686 = arith.constant 0 : index
    %c11_687 = arith.constant 11 : index
    %c3_688 = arith.constant 3 : index
    %c0_689 = arith.constant 0 : index
    %c0_690 = arith.constant 0 : index
    %808 = vector.load %arg4[%c0_686, %c11_687, %c3_688, %c0_689, %c0_690] : memref<1x16x16x8x32xf32, #tpu.memory_space<vmem>>, vector<1x1x1x8x32xf32>
    %809 = vector.shape_cast %808 : vector<1x1x1x8x32xf32> to vector<8x32xf32>
    %c0_691 = arith.constant 0 : index
    %c3_692 = arith.constant 3 : index
    %c0_693 = arith.constant 0 : index
    %c0_694 = arith.constant 0 : index
    %810 = vector.load %arg5[%c0_691, %c3_692, %c0_693, %c0_694] : memref<1x16x8x32xf32, #tpu.memory_space<vmem>>, vector<1x1x8x32xf32>
    %811 = vector.shape_cast %810 : vector<1x1x8x32xf32> to vector<8x32xf32>
    %812 = arith.mulf %809, %811 : vector<8x32xf32>
    %813 = arith.addf %807, %812 : vector<8x32xf32>
    %c0_695 = arith.constant 0 : index
    %c11_696 = arith.constant 11 : index
    %c4_697 = arith.constant 4 : index
    %c0_698 = arith.constant 0 : index
    %c0_699 = arith.constant 0 : index
    %814 = vector.load %arg4[%c0_695, %c11_696, %c4_697, %c0_698, %c0_699] : memref<1x16x16x8x32xf32, #tpu.memory_space<vmem>>, vector<1x1x1x8x32xf32>
    %815 = vector.shape_cast %814 : vector<1x1x1x8x32xf32> to vector<8x32xf32>
    %c0_700 = arith.constant 0 : index
    %c4_701 = arith.constant 4 : index
    %c0_702 = arith.constant 0 : index
    %c0_703 = arith.constant 0 : index
    %816 = vector.load %arg5[%c0_700, %c4_701, %c0_702, %c0_703] : memref<1x16x8x32xf32, #tpu.memory_space<vmem>>, vector<1x1x8x32xf32>
    %817 = vector.shape_cast %816 : vector<1x1x8x32xf32> to vector<8x32xf32>
    %818 = arith.mulf %815, %817 : vector<8x32xf32>
    %819 = arith.addf %813, %818 : vector<8x32xf32>
    %c0_704 = arith.constant 0 : index
    %c11_705 = arith.constant 11 : index
    %c5_706 = arith.constant 5 : index
    %c0_707 = arith.constant 0 : index
    %c0_708 = arith.constant 0 : index
    %820 = vector.load %arg4[%c0_704, %c11_705, %c5_706, %c0_707, %c0_708] : memref<1x16x16x8x32xf32, #tpu.memory_space<vmem>>, vector<1x1x1x8x32xf32>
    %821 = vector.shape_cast %820 : vector<1x1x1x8x32xf32> to vector<8x32xf32>
    %c0_709 = arith.constant 0 : index
    %c5_710 = arith.constant 5 : index
    %c0_711 = arith.constant 0 : index
    %c0_712 = arith.constant 0 : index
    %822 = vector.load %arg5[%c0_709, %c5_710, %c0_711, %c0_712] : memref<1x16x8x32xf32, #tpu.memory_space<vmem>>, vector<1x1x8x32xf32>
    %823 = vector.shape_cast %822 : vector<1x1x8x32xf32> to vector<8x32xf32>
    %824 = arith.mulf %821, %823 : vector<8x32xf32>
    %825 = arith.addf %819, %824 : vector<8x32xf32>
    %c0_713 = arith.constant 0 : index
    %c11_714 = arith.constant 11 : index
    %c6_715 = arith.constant 6 : index
    %c0_716 = arith.constant 0 : index
    %c0_717 = arith.constant 0 : index
    %826 = vector.load %arg4[%c0_713, %c11_714, %c6_715, %c0_716, %c0_717] : memref<1x16x16x8x32xf32, #tpu.memory_space<vmem>>, vector<1x1x1x8x32xf32>
    %827 = vector.shape_cast %826 : vector<1x1x1x8x32xf32> to vector<8x32xf32>
    %c0_718 = arith.constant 0 : index
    %c6_719 = arith.constant 6 : index
    %c0_720 = arith.constant 0 : index
    %c0_721 = arith.constant 0 : index
    %828 = vector.load %arg5[%c0_718, %c6_719, %c0_720, %c0_721] : memref<1x16x8x32xf32, #tpu.memory_space<vmem>>, vector<1x1x8x32xf32>
    %829 = vector.shape_cast %828 : vector<1x1x8x32xf32> to vector<8x32xf32>
    %830 = arith.mulf %827, %829 : vector<8x32xf32>
    %831 = arith.addf %825, %830 : vector<8x32xf32>
    %c0_722 = arith.constant 0 : index
    %c11_723 = arith.constant 11 : index
    %c7_724 = arith.constant 7 : index
    %c0_725 = arith.constant 0 : index
    %c0_726 = arith.constant 0 : index
    %832 = vector.load %arg4[%c0_722, %c11_723, %c7_724, %c0_725, %c0_726] : memref<1x16x16x8x32xf32, #tpu.memory_space<vmem>>, vector<1x1x1x8x32xf32>
    %833 = vector.shape_cast %832 : vector<1x1x1x8x32xf32> to vector<8x32xf32>
    %c0_727 = arith.constant 0 : index
    %c7_728 = arith.constant 7 : index
    %c0_729 = arith.constant 0 : index
    %c0_730 = arith.constant 0 : index
    %834 = vector.load %arg5[%c0_727, %c7_728, %c0_729, %c0_730] : memref<1x16x8x32xf32, #tpu.memory_space<vmem>>, vector<1x1x8x32xf32>
    %835 = vector.shape_cast %834 : vector<1x1x8x32xf32> to vector<8x32xf32>
    %836 = arith.mulf %833, %835 : vector<8x32xf32>
    %837 = arith.addf %831, %836 : vector<8x32xf32>
    %c0_731 = arith.constant 0 : index
    %c11_732 = arith.constant 11 : index
    %c8_733 = arith.constant 8 : index
    %c0_734 = arith.constant 0 : index
    %c0_735 = arith.constant 0 : index
    %838 = vector.load %arg4[%c0_731, %c11_732, %c8_733, %c0_734, %c0_735] : memref<1x16x16x8x32xf32, #tpu.memory_space<vmem>>, vector<1x1x1x8x32xf32>
    %839 = vector.shape_cast %838 : vector<1x1x1x8x32xf32> to vector<8x32xf32>
    %c0_736 = arith.constant 0 : index
    %c8_737 = arith.constant 8 : index
    %c0_738 = arith.constant 0 : index
    %c0_739 = arith.constant 0 : index
    %840 = vector.load %arg5[%c0_736, %c8_737, %c0_738, %c0_739] : memref<1x16x8x32xf32, #tpu.memory_space<vmem>>, vector<1x1x8x32xf32>
    %841 = vector.shape_cast %840 : vector<1x1x8x32xf32> to vector<8x32xf32>
    %842 = arith.mulf %839, %841 : vector<8x32xf32>
    %843 = arith.addf %837, %842 : vector<8x32xf32>
    %c0_740 = arith.constant 0 : index
    %c11_741 = arith.constant 11 : index
    %c9_742 = arith.constant 9 : index
    %c0_743 = arith.constant 0 : index
    %c0_744 = arith.constant 0 : index
    %844 = vector.load %arg4[%c0_740, %c11_741, %c9_742, %c0_743, %c0_744] : memref<1x16x16x8x32xf32, #tpu.memory_space<vmem>>, vector<1x1x1x8x32xf32>
    %845 = vector.shape_cast %844 : vector<1x1x1x8x32xf32> to vector<8x32xf32>
    %c0_745 = arith.constant 0 : index
    %c9_746 = arith.constant 9 : index
    %c0_747 = arith.constant 0 : index
    %c0_748 = arith.constant 0 : index
    %846 = vector.load %arg5[%c0_745, %c9_746, %c0_747, %c0_748] : memref<1x16x8x32xf32, #tpu.memory_space<vmem>>, vector<1x1x8x32xf32>
    %847 = vector.shape_cast %846 : vector<1x1x8x32xf32> to vector<8x32xf32>
    %848 = arith.mulf %845, %847 : vector<8x32xf32>
    %849 = arith.addf %843, %848 : vector<8x32xf32>
    %c0_749 = arith.constant 0 : index
    %c11_750 = arith.constant 11 : index
    %c10_751 = arith.constant 10 : index
    %c0_752 = arith.constant 0 : index
    %c0_753 = arith.constant 0 : index
    %850 = vector.load %arg4[%c0_749, %c11_750, %c10_751, %c0_752, %c0_753] : memref<1x16x16x8x32xf32, #tpu.memory_space<vmem>>, vector<1x1x1x8x32xf32>
    %851 = vector.shape_cast %850 : vector<1x1x1x8x32xf32> to vector<8x32xf32>
    %c0_754 = arith.constant 0 : index
    %c10_755 = arith.constant 10 : index
    %c0_756 = arith.constant 0 : index
    %c0_757 = arith.constant 0 : index
    %852 = vector.load %arg5[%c0_754, %c10_755, %c0_756, %c0_757] : memref<1x16x8x32xf32, #tpu.memory_space<vmem>>, vector<1x1x8x32xf32>
    %853 = vector.shape_cast %852 : vector<1x1x8x32xf32> to vector<8x32xf32>
    %854 = arith.mulf %851, %853 : vector<8x32xf32>
    %855 = arith.addf %849, %854 : vector<8x32xf32>
    %856 = tpu.concatenate %783, %855 in 1 : vector<8x32xf32>, vector<8x32xf32> -> vector<8x64xf32>
    %cst_758 = arith.constant dense<0.000000e+00> : vector<8x128xf32>
    %857 = tpu.matmul %856, %4, %cst_758 {dimension_numbers = #tpu.dot_dimension_numbers<[1], [0], [0], [1], [0, 0, 1, 1], [], []>, precision = #tpu.contract_precision<fp32>} : vector<8x64xf32>, vector<64x128xf32>, vector<8x128xf32> -> vector<8x128xf32>
    %858 = vector.extract_strided_slice %857 {offsets = [0, 0], sizes = [8, 96], strides = [1, 1]} : vector<8x128xf32> to vector<8x96xf32>
    %859 = vector.extract_strided_slice %857 {offsets = [0, 96], sizes = [8, 1], strides = [1, 1]} : vector<8x128xf32> to vector<8x1xf32>
    %860 = arith.addf %790, %859 : vector<8x1xf32>
    %c0_759 = arith.constant 0 : index
    %c0_760 = arith.constant 0 : index
    %c11_761 = arith.constant 11 : index
    %861 = vector.load %arg6[%c0_759, %c0_760, %c11_761] : memref<1x8x16xf32, #tpu.memory_space<vmem>>, vector<1x8x1xf32>
    %862 = vector.shape_cast %861 : vector<1x8x1xf32> to vector<8x1xf32>
    %863 = vector.shape_cast %860 : vector<8x1xf32> to vector<1x8x1xf32>
    tpu.vector_store %arg6[%c0_759, %c0_760, %c11_761], %863 {strides = array<i32>} : memref<1x8x16xf32, #tpu.memory_space<vmem>>, vector<1x8x1xf32>,
    %864 = vector.extract_strided_slice %789 {offsets = [0, 0], sizes = [8, 32], strides = [1, 1]} : vector<8x96xf32> to vector<8x32xf32>
    %865 = vector.extract_strided_slice %858 {offsets = [0, 0], sizes = [8, 32], strides = [1, 1]} : vector<8x96xf32> to vector<8x32xf32>
    %866 = arith.addf %864, %865 : vector<8x32xf32>
    %867 = arith.negf %866 : vector<8x32xf32>
    %868 = math.exp %867 : vector<8x32xf32>
    %cst_762 = arith.constant 1.000000e+00 : f32
    %869 = vector.broadcast %cst_762 : f32 to vector<8x32xf32>
    %870 = arith.addf %869, %868 : vector<8x32xf32>
    %871 = arith.divf %869, %870 : vector<8x32xf32>
    %872 = vector.extract_strided_slice %789 {offsets = [0, 32], sizes = [8, 32], strides = [1, 1]} : vector<8x96xf32> to vector<8x32xf32>
    %873 = vector.extract_strided_slice %858 {offsets = [0, 32], sizes = [8, 32], strides = [1, 1]} : vector<8x96xf32> to vector<8x32xf32>
    %874 = arith.addf %872, %873 : vector<8x32xf32>
    %875 = arith.negf %874 : vector<8x32xf32>
    %876 = math.exp %875 : vector<8x32xf32>
    %cst_763 = arith.constant 1.000000e+00 : f32
    %877 = vector.broadcast %cst_763 : f32 to vector<8x32xf32>
    %878 = arith.addf %877, %876 : vector<8x32xf32>
    %879 = arith.divf %877, %878 : vector<8x32xf32>
    %880 = vector.extract_strided_slice %789 {offsets = [0, 64], sizes = [8, 32], strides = [1, 1]} : vector<8x96xf32> to vector<8x32xf32>
    %881 = vector.extract_strided_slice %858 {offsets = [0, 64], sizes = [8, 32], strides = [1, 1]} : vector<8x96xf32> to vector<8x32xf32>
    %882 = arith.addf %881, %3 : vector<8x32xf32>
    %883 = arith.mulf %871, %882 : vector<8x32xf32>
    %884 = arith.addf %880, %883 : vector<8x32xf32>
    %885 = math.tanh %884 : vector<8x32xf32>
    %cst_764 = arith.constant 1.000000e+00 : f32
    %886 = vector.broadcast %cst_764 : f32 to vector<8x32xf32>
    %887 = arith.subf %886, %879 : vector<8x32xf32>
    %888 = arith.mulf %887, %885 : vector<8x32xf32>
    %889 = arith.mulf %879, %783 : vector<8x32xf32>
    %890 = arith.addf %888, %889 : vector<8x32xf32>
    %c0_765 = arith.constant 0 : index
    %c11_766 = arith.constant 11 : index
    %c0_767 = arith.constant 0 : index
    %c0_768 = arith.constant 0 : index
    %891 = vector.load %arg5[%c0_765, %c11_766, %c0_767, %c0_768] : memref<1x16x8x32xf32, #tpu.memory_space<vmem>>, vector<1x1x8x32xf32>
    %892 = vector.shape_cast %891 : vector<1x1x8x32xf32> to vector<8x32xf32>
    %893 = vector.shape_cast %890 : vector<8x32xf32> to vector<1x1x8x32xf32>
    tpu.vector_store %arg5[%c0_765, %c11_766, %c0_767, %c0_768], %893 {strides = array<i32>} : memref<1x16x8x32xf32, #tpu.memory_space<vmem>>, vector<1x1x8x32xf32>,
    %c0_769 = arith.constant 0 : index
    %c12 = arith.constant 12 : index
    %c0_770 = arith.constant 0 : index
    %c0_771 = arith.constant 0 : index
    %894 = vector.load %arg3[%c0_769, %c12, %c0_770, %c0_771] : memref<1x16x8x128xf32, #tpu.memory_space<vmem>>, vector<1x1x8x128xf32>
    %895 = vector.shape_cast %894 : vector<1x1x8x128xf32> to vector<8x128xf32>
    %896 = vector.extract_strided_slice %895 {offsets = [0, 0], sizes = [8, 96], strides = [1, 1]} : vector<8x128xf32> to vector<8x96xf32>
    %897 = vector.extract_strided_slice %895 {offsets = [0, 96], sizes = [8, 1], strides = [1, 1]} : vector<8x128xf32> to vector<8x1xf32>
    %c0_772 = arith.constant 0 : index
    %c12_773 = arith.constant 12 : index
    %c0_774 = arith.constant 0 : index
    %c0_775 = arith.constant 0 : index
    %c0_776 = arith.constant 0 : index
    %898 = vector.load %arg4[%c0_772, %c12_773, %c0_774, %c0_775, %c0_776] : memref<1x16x16x8x32xf32, #tpu.memory_space<vmem>>, vector<1x1x1x8x32xf32>
    %899 = vector.shape_cast %898 : vector<1x1x1x8x32xf32> to vector<8x32xf32>
    %c0_777 = arith.constant 0 : index
    %c0_778 = arith.constant 0 : index
    %c0_779 = arith.constant 0 : index
    %c0_780 = arith.constant 0 : index
    %900 = vector.load %arg5[%c0_777, %c0_778, %c0_779, %c0_780] : memref<1x16x8x32xf32, #tpu.memory_space<vmem>>, vector<1x1x8x32xf32>
    %901 = vector.shape_cast %900 : vector<1x1x8x32xf32> to vector<8x32xf32>
    %902 = arith.mulf %899, %901 : vector<8x32xf32>
    %c0_781 = arith.constant 0 : index
    %c12_782 = arith.constant 12 : index
    %c1_783 = arith.constant 1 : index
    %c0_784 = arith.constant 0 : index
    %c0_785 = arith.constant 0 : index
    %903 = vector.load %arg4[%c0_781, %c12_782, %c1_783, %c0_784, %c0_785] : memref<1x16x16x8x32xf32, #tpu.memory_space<vmem>>, vector<1x1x1x8x32xf32>
    %904 = vector.shape_cast %903 : vector<1x1x1x8x32xf32> to vector<8x32xf32>
    %c0_786 = arith.constant 0 : index
    %c1_787 = arith.constant 1 : index
    %c0_788 = arith.constant 0 : index
    %c0_789 = arith.constant 0 : index
    %905 = vector.load %arg5[%c0_786, %c1_787, %c0_788, %c0_789] : memref<1x16x8x32xf32, #tpu.memory_space<vmem>>, vector<1x1x8x32xf32>
    %906 = vector.shape_cast %905 : vector<1x1x8x32xf32> to vector<8x32xf32>
    %907 = arith.mulf %904, %906 : vector<8x32xf32>
    %908 = arith.addf %902, %907 : vector<8x32xf32>
    %c0_790 = arith.constant 0 : index
    %c12_791 = arith.constant 12 : index
    %c2_792 = arith.constant 2 : index
    %c0_793 = arith.constant 0 : index
    %c0_794 = arith.constant 0 : index
    %909 = vector.load %arg4[%c0_790, %c12_791, %c2_792, %c0_793, %c0_794] : memref<1x16x16x8x32xf32, #tpu.memory_space<vmem>>, vector<1x1x1x8x32xf32>
    %910 = vector.shape_cast %909 : vector<1x1x1x8x32xf32> to vector<8x32xf32>
    %c0_795 = arith.constant 0 : index
    %c2_796 = arith.constant 2 : index
    %c0_797 = arith.constant 0 : index
    %c0_798 = arith.constant 0 : index
    %911 = vector.load %arg5[%c0_795, %c2_796, %c0_797, %c0_798] : memref<1x16x8x32xf32, #tpu.memory_space<vmem>>, vector<1x1x8x32xf32>
    %912 = vector.shape_cast %911 : vector<1x1x8x32xf32> to vector<8x32xf32>
    %913 = arith.mulf %910, %912 : vector<8x32xf32>
    %914 = arith.addf %908, %913 : vector<8x32xf32>
    %c0_799 = arith.constant 0 : index
    %c12_800 = arith.constant 12 : index
    %c3_801 = arith.constant 3 : index
    %c0_802 = arith.constant 0 : index
    %c0_803 = arith.constant 0 : index
    %915 = vector.load %arg4[%c0_799, %c12_800, %c3_801, %c0_802, %c0_803] : memref<1x16x16x8x32xf32, #tpu.memory_space<vmem>>, vector<1x1x1x8x32xf32>
    %916 = vector.shape_cast %915 : vector<1x1x1x8x32xf32> to vector<8x32xf32>
    %c0_804 = arith.constant 0 : index
    %c3_805 = arith.constant 3 : index
    %c0_806 = arith.constant 0 : index
    %c0_807 = arith.constant 0 : index
    %917 = vector.load %arg5[%c0_804, %c3_805, %c0_806, %c0_807] : memref<1x16x8x32xf32, #tpu.memory_space<vmem>>, vector<1x1x8x32xf32>
    %918 = vector.shape_cast %917 : vector<1x1x8x32xf32> to vector<8x32xf32>
    %919 = arith.mulf %916, %918 : vector<8x32xf32>
    %920 = arith.addf %914, %919 : vector<8x32xf32>
    %c0_808 = arith.constant 0 : index
    %c12_809 = arith.constant 12 : index
    %c4_810 = arith.constant 4 : index
    %c0_811 = arith.constant 0 : index
    %c0_812 = arith.constant 0 : index
    %921 = vector.load %arg4[%c0_808, %c12_809, %c4_810, %c0_811, %c0_812] : memref<1x16x16x8x32xf32, #tpu.memory_space<vmem>>, vector<1x1x1x8x32xf32>
    %922 = vector.shape_cast %921 : vector<1x1x1x8x32xf32> to vector<8x32xf32>
    %c0_813 = arith.constant 0 : index
    %c4_814 = arith.constant 4 : index
    %c0_815 = arith.constant 0 : index
    %c0_816 = arith.constant 0 : index
    %923 = vector.load %arg5[%c0_813, %c4_814, %c0_815, %c0_816] : memref<1x16x8x32xf32, #tpu.memory_space<vmem>>, vector<1x1x8x32xf32>
    %924 = vector.shape_cast %923 : vector<1x1x8x32xf32> to vector<8x32xf32>
    %925 = arith.mulf %922, %924 : vector<8x32xf32>
    %926 = arith.addf %920, %925 : vector<8x32xf32>
    %c0_817 = arith.constant 0 : index
    %c12_818 = arith.constant 12 : index
    %c5_819 = arith.constant 5 : index
    %c0_820 = arith.constant 0 : index
    %c0_821 = arith.constant 0 : index
    %927 = vector.load %arg4[%c0_817, %c12_818, %c5_819, %c0_820, %c0_821] : memref<1x16x16x8x32xf32, #tpu.memory_space<vmem>>, vector<1x1x1x8x32xf32>
    %928 = vector.shape_cast %927 : vector<1x1x1x8x32xf32> to vector<8x32xf32>
    %c0_822 = arith.constant 0 : index
    %c5_823 = arith.constant 5 : index
    %c0_824 = arith.constant 0 : index
    %c0_825 = arith.constant 0 : index
    %929 = vector.load %arg5[%c0_822, %c5_823, %c0_824, %c0_825] : memref<1x16x8x32xf32, #tpu.memory_space<vmem>>, vector<1x1x8x32xf32>
    %930 = vector.shape_cast %929 : vector<1x1x8x32xf32> to vector<8x32xf32>
    %931 = arith.mulf %928, %930 : vector<8x32xf32>
    %932 = arith.addf %926, %931 : vector<8x32xf32>
    %c0_826 = arith.constant 0 : index
    %c12_827 = arith.constant 12 : index
    %c6_828 = arith.constant 6 : index
    %c0_829 = arith.constant 0 : index
    %c0_830 = arith.constant 0 : index
    %933 = vector.load %arg4[%c0_826, %c12_827, %c6_828, %c0_829, %c0_830] : memref<1x16x16x8x32xf32, #tpu.memory_space<vmem>>, vector<1x1x1x8x32xf32>
    %934 = vector.shape_cast %933 : vector<1x1x1x8x32xf32> to vector<8x32xf32>
    %c0_831 = arith.constant 0 : index
    %c6_832 = arith.constant 6 : index
    %c0_833 = arith.constant 0 : index
    %c0_834 = arith.constant 0 : index
    %935 = vector.load %arg5[%c0_831, %c6_832, %c0_833, %c0_834] : memref<1x16x8x32xf32, #tpu.memory_space<vmem>>, vector<1x1x8x32xf32>
    %936 = vector.shape_cast %935 : vector<1x1x8x32xf32> to vector<8x32xf32>
    %937 = arith.mulf %934, %936 : vector<8x32xf32>
    %938 = arith.addf %932, %937 : vector<8x32xf32>
    %c0_835 = arith.constant 0 : index
    %c12_836 = arith.constant 12 : index
    %c7_837 = arith.constant 7 : index
    %c0_838 = arith.constant 0 : index
    %c0_839 = arith.constant 0 : index
    %939 = vector.load %arg4[%c0_835, %c12_836, %c7_837, %c0_838, %c0_839] : memref<1x16x16x8x32xf32, #tpu.memory_space<vmem>>, vector<1x1x1x8x32xf32>
    %940 = vector.shape_cast %939 : vector<1x1x1x8x32xf32> to vector<8x32xf32>
    %c0_840 = arith.constant 0 : index
    %c7_841 = arith.constant 7 : index
    %c0_842 = arith.constant 0 : index
    %c0_843 = arith.constant 0 : index
    %941 = vector.load %arg5[%c0_840, %c7_841, %c0_842, %c0_843] : memref<1x16x8x32xf32, #tpu.memory_space<vmem>>, vector<1x1x8x32xf32>
    %942 = vector.shape_cast %941 : vector<1x1x8x32xf32> to vector<8x32xf32>
    %943 = arith.mulf %940, %942 : vector<8x32xf32>
    %944 = arith.addf %938, %943 : vector<8x32xf32>
    %c0_844 = arith.constant 0 : index
    %c12_845 = arith.constant 12 : index
    %c8_846 = arith.constant 8 : index
    %c0_847 = arith.constant 0 : index
    %c0_848 = arith.constant 0 : index
    %945 = vector.load %arg4[%c0_844, %c12_845, %c8_846, %c0_847, %c0_848] : memref<1x16x16x8x32xf32, #tpu.memory_space<vmem>>, vector<1x1x1x8x32xf32>
    %946 = vector.shape_cast %945 : vector<1x1x1x8x32xf32> to vector<8x32xf32>
    %c0_849 = arith.constant 0 : index
    %c8_850 = arith.constant 8 : index
    %c0_851 = arith.constant 0 : index
    %c0_852 = arith.constant 0 : index
    %947 = vector.load %arg5[%c0_849, %c8_850, %c0_851, %c0_852] : memref<1x16x8x32xf32, #tpu.memory_space<vmem>>, vector<1x1x8x32xf32>
    %948 = vector.shape_cast %947 : vector<1x1x8x32xf32> to vector<8x32xf32>
    %949 = arith.mulf %946, %948 : vector<8x32xf32>
    %950 = arith.addf %944, %949 : vector<8x32xf32>
    %c0_853 = arith.constant 0 : index
    %c12_854 = arith.constant 12 : index
    %c9_855 = arith.constant 9 : index
    %c0_856 = arith.constant 0 : index
    %c0_857 = arith.constant 0 : index
    %951 = vector.load %arg4[%c0_853, %c12_854, %c9_855, %c0_856, %c0_857] : memref<1x16x16x8x32xf32, #tpu.memory_space<vmem>>, vector<1x1x1x8x32xf32>
    %952 = vector.shape_cast %951 : vector<1x1x1x8x32xf32> to vector<8x32xf32>
    %c0_858 = arith.constant 0 : index
    %c9_859 = arith.constant 9 : index
    %c0_860 = arith.constant 0 : index
    %c0_861 = arith.constant 0 : index
    %953 = vector.load %arg5[%c0_858, %c9_859, %c0_860, %c0_861] : memref<1x16x8x32xf32, #tpu.memory_space<vmem>>, vector<1x1x8x32xf32>
    %954 = vector.shape_cast %953 : vector<1x1x8x32xf32> to vector<8x32xf32>
    %955 = arith.mulf %952, %954 : vector<8x32xf32>
    %956 = arith.addf %950, %955 : vector<8x32xf32>
    %c0_862 = arith.constant 0 : index
    %c12_863 = arith.constant 12 : index
    %c10_864 = arith.constant 10 : index
    %c0_865 = arith.constant 0 : index
    %c0_866 = arith.constant 0 : index
    %957 = vector.load %arg4[%c0_862, %c12_863, %c10_864, %c0_865, %c0_866] : memref<1x16x16x8x32xf32, #tpu.memory_space<vmem>>, vector<1x1x1x8x32xf32>
    %958 = vector.shape_cast %957 : vector<1x1x1x8x32xf32> to vector<8x32xf32>
    %c0_867 = arith.constant 0 : index
    %c10_868 = arith.constant 10 : index
    %c0_869 = arith.constant 0 : index
    %c0_870 = arith.constant 0 : index
    %959 = vector.load %arg5[%c0_867, %c10_868, %c0_869, %c0_870] : memref<1x16x8x32xf32, #tpu.memory_space<vmem>>, vector<1x1x8x32xf32>
    %960 = vector.shape_cast %959 : vector<1x1x8x32xf32> to vector<8x32xf32>
    %961 = arith.mulf %958, %960 : vector<8x32xf32>
    %962 = arith.addf %956, %961 : vector<8x32xf32>
    %c0_871 = arith.constant 0 : index
    %c12_872 = arith.constant 12 : index
    %c11_873 = arith.constant 11 : index
    %c0_874 = arith.constant 0 : index
    %c0_875 = arith.constant 0 : index
    %963 = vector.load %arg4[%c0_871, %c12_872, %c11_873, %c0_874, %c0_875] : memref<1x16x16x8x32xf32, #tpu.memory_space<vmem>>, vector<1x1x1x8x32xf32>
    %964 = vector.shape_cast %963 : vector<1x1x1x8x32xf32> to vector<8x32xf32>
    %c0_876 = arith.constant 0 : index
    %c11_877 = arith.constant 11 : index
    %c0_878 = arith.constant 0 : index
    %c0_879 = arith.constant 0 : index
    %965 = vector.load %arg5[%c0_876, %c11_877, %c0_878, %c0_879] : memref<1x16x8x32xf32, #tpu.memory_space<vmem>>, vector<1x1x8x32xf32>
    %966 = vector.shape_cast %965 : vector<1x1x8x32xf32> to vector<8x32xf32>
    %967 = arith.mulf %964, %966 : vector<8x32xf32>
    %968 = arith.addf %962, %967 : vector<8x32xf32>
    %969 = tpu.concatenate %890, %968 in 1 : vector<8x32xf32>, vector<8x32xf32> -> vector<8x64xf32>
    %cst_880 = arith.constant dense<0.000000e+00> : vector<8x128xf32>
    %970 = tpu.matmul %969, %4, %cst_880 {dimension_numbers = #tpu.dot_dimension_numbers<[1], [0], [0], [1], [0, 0, 1, 1], [], []>, precision = #tpu.contract_precision<fp32>} : vector<8x64xf32>, vector<64x128xf32>, vector<8x128xf32> -> vector<8x128xf32>
    %971 = vector.extract_strided_slice %970 {offsets = [0, 0], sizes = [8, 96], strides = [1, 1]} : vector<8x128xf32> to vector<8x96xf32>
    %972 = vector.extract_strided_slice %970 {offsets = [0, 96], sizes = [8, 1], strides = [1, 1]} : vector<8x128xf32> to vector<8x1xf32>
    %973 = arith.addf %897, %972 : vector<8x1xf32>
    %c0_881 = arith.constant 0 : index
    %c0_882 = arith.constant 0 : index
    %c12_883 = arith.constant 12 : index
    %974 = vector.load %arg6[%c0_881, %c0_882, %c12_883] : memref<1x8x16xf32, #tpu.memory_space<vmem>>, vector<1x8x1xf32>
    %975 = vector.shape_cast %974 : vector<1x8x1xf32> to vector<8x1xf32>
    %976 = vector.shape_cast %973 : vector<8x1xf32> to vector<1x8x1xf32>
    tpu.vector_store %arg6[%c0_881, %c0_882, %c12_883], %976 {strides = array<i32>} : memref<1x8x16xf32, #tpu.memory_space<vmem>>, vector<1x8x1xf32>,
    %977 = vector.extract_strided_slice %896 {offsets = [0, 0], sizes = [8, 32], strides = [1, 1]} : vector<8x96xf32> to vector<8x32xf32>
    %978 = vector.extract_strided_slice %971 {offsets = [0, 0], sizes = [8, 32], strides = [1, 1]} : vector<8x96xf32> to vector<8x32xf32>
    %979 = arith.addf %977, %978 : vector<8x32xf32>
    %980 = arith.negf %979 : vector<8x32xf32>
    %981 = math.exp %980 : vector<8x32xf32>
    %cst_884 = arith.constant 1.000000e+00 : f32
    %982 = vector.broadcast %cst_884 : f32 to vector<8x32xf32>
    %983 = arith.addf %982, %981 : vector<8x32xf32>
    %984 = arith.divf %982, %983 : vector<8x32xf32>
    %985 = vector.extract_strided_slice %896 {offsets = [0, 32], sizes = [8, 32], strides = [1, 1]} : vector<8x96xf32> to vector<8x32xf32>
    %986 = vector.extract_strided_slice %971 {offsets = [0, 32], sizes = [8, 32], strides = [1, 1]} : vector<8x96xf32> to vector<8x32xf32>
    %987 = arith.addf %985, %986 : vector<8x32xf32>
    %988 = arith.negf %987 : vector<8x32xf32>
    %989 = math.exp %988 : vector<8x32xf32>
    %cst_885 = arith.constant 1.000000e+00 : f32
    %990 = vector.broadcast %cst_885 : f32 to vector<8x32xf32>
    %991 = arith.addf %990, %989 : vector<8x32xf32>
    %992 = arith.divf %990, %991 : vector<8x32xf32>
    %993 = vector.extract_strided_slice %896 {offsets = [0, 64], sizes = [8, 32], strides = [1, 1]} : vector<8x96xf32> to vector<8x32xf32>
    %994 = vector.extract_strided_slice %971 {offsets = [0, 64], sizes = [8, 32], strides = [1, 1]} : vector<8x96xf32> to vector<8x32xf32>
    %995 = arith.addf %994, %3 : vector<8x32xf32>
    %996 = arith.mulf %984, %995 : vector<8x32xf32>
    %997 = arith.addf %993, %996 : vector<8x32xf32>
    %998 = math.tanh %997 : vector<8x32xf32>
    %cst_886 = arith.constant 1.000000e+00 : f32
    %999 = vector.broadcast %cst_886 : f32 to vector<8x32xf32>
    %1000 = arith.subf %999, %992 : vector<8x32xf32>
    %1001 = arith.mulf %1000, %998 : vector<8x32xf32>
    %1002 = arith.mulf %992, %890 : vector<8x32xf32>
    %1003 = arith.addf %1001, %1002 : vector<8x32xf32>
    %c0_887 = arith.constant 0 : index
    %c12_888 = arith.constant 12 : index
    %c0_889 = arith.constant 0 : index
    %c0_890 = arith.constant 0 : index
    %1004 = vector.load %arg5[%c0_887, %c12_888, %c0_889, %c0_890] : memref<1x16x8x32xf32, #tpu.memory_space<vmem>>, vector<1x1x8x32xf32>
    %1005 = vector.shape_cast %1004 : vector<1x1x8x32xf32> to vector<8x32xf32>
    %1006 = vector.shape_cast %1003 : vector<8x32xf32> to vector<1x1x8x32xf32>
    tpu.vector_store %arg5[%c0_887, %c12_888, %c0_889, %c0_890], %1006 {strides = array<i32>} : memref<1x16x8x32xf32, #tpu.memory_space<vmem>>, vector<1x1x8x32xf32>,
    %c0_891 = arith.constant 0 : index
    %c13 = arith.constant 13 : index
    %c0_892 = arith.constant 0 : index
    %c0_893 = arith.constant 0 : index
    %1007 = vector.load %arg3[%c0_891, %c13, %c0_892, %c0_893] : memref<1x16x8x128xf32, #tpu.memory_space<vmem>>, vector<1x1x8x128xf32>
    %1008 = vector.shape_cast %1007 : vector<1x1x8x128xf32> to vector<8x128xf32>
    %1009 = vector.extract_strided_slice %1008 {offsets = [0, 0], sizes = [8, 96], strides = [1, 1]} : vector<8x128xf32> to vector<8x96xf32>
    %1010 = vector.extract_strided_slice %1008 {offsets = [0, 96], sizes = [8, 1], strides = [1, 1]} : vector<8x128xf32> to vector<8x1xf32>
    %c0_894 = arith.constant 0 : index
    %c13_895 = arith.constant 13 : index
    %c0_896 = arith.constant 0 : index
    %c0_897 = arith.constant 0 : index
    %c0_898 = arith.constant 0 : index
    %1011 = vector.load %arg4[%c0_894, %c13_895, %c0_896, %c0_897, %c0_898] : memref<1x16x16x8x32xf32, #tpu.memory_space<vmem>>, vector<1x1x1x8x32xf32>
    %1012 = vector.shape_cast %1011 : vector<1x1x1x8x32xf32> to vector<8x32xf32>
    %c0_899 = arith.constant 0 : index
    %c0_900 = arith.constant 0 : index
    %c0_901 = arith.constant 0 : index
    %c0_902 = arith.constant 0 : index
    %1013 = vector.load %arg5[%c0_899, %c0_900, %c0_901, %c0_902] : memref<1x16x8x32xf32, #tpu.memory_space<vmem>>, vector<1x1x8x32xf32>
    %1014 = vector.shape_cast %1013 : vector<1x1x8x32xf32> to vector<8x32xf32>
    %1015 = arith.mulf %1012, %1014 : vector<8x32xf32>
    %c0_903 = arith.constant 0 : index
    %c13_904 = arith.constant 13 : index
    %c1_905 = arith.constant 1 : index
    %c0_906 = arith.constant 0 : index
    %c0_907 = arith.constant 0 : index
    %1016 = vector.load %arg4[%c0_903, %c13_904, %c1_905, %c0_906, %c0_907] : memref<1x16x16x8x32xf32, #tpu.memory_space<vmem>>, vector<1x1x1x8x32xf32>
    %1017 = vector.shape_cast %1016 : vector<1x1x1x8x32xf32> to vector<8x32xf32>
    %c0_908 = arith.constant 0 : index
    %c1_909 = arith.constant 1 : index
    %c0_910 = arith.constant 0 : index
    %c0_911 = arith.constant 0 : index
    %1018 = vector.load %arg5[%c0_908, %c1_909, %c0_910, %c0_911] : memref<1x16x8x32xf32, #tpu.memory_space<vmem>>, vector<1x1x8x32xf32>
    %1019 = vector.shape_cast %1018 : vector<1x1x8x32xf32> to vector<8x32xf32>
    %1020 = arith.mulf %1017, %1019 : vector<8x32xf32>
    %1021 = arith.addf %1015, %1020 : vector<8x32xf32>
    %c0_912 = arith.constant 0 : index
    %c13_913 = arith.constant 13 : index
    %c2_914 = arith.constant 2 : index
    %c0_915 = arith.constant 0 : index
    %c0_916 = arith.constant 0 : index
    %1022 = vector.load %arg4[%c0_912, %c13_913, %c2_914, %c0_915, %c0_916] : memref<1x16x16x8x32xf32, #tpu.memory_space<vmem>>, vector<1x1x1x8x32xf32>
    %1023 = vector.shape_cast %1022 : vector<1x1x1x8x32xf32> to vector<8x32xf32>
    %c0_917 = arith.constant 0 : index
    %c2_918 = arith.constant 2 : index
    %c0_919 = arith.constant 0 : index
    %c0_920 = arith.constant 0 : index
    %1024 = vector.load %arg5[%c0_917, %c2_918, %c0_919, %c0_920] : memref<1x16x8x32xf32, #tpu.memory_space<vmem>>, vector<1x1x8x32xf32>
    %1025 = vector.shape_cast %1024 : vector<1x1x8x32xf32> to vector<8x32xf32>
    %1026 = arith.mulf %1023, %1025 : vector<8x32xf32>
    %1027 = arith.addf %1021, %1026 : vector<8x32xf32>
    %c0_921 = arith.constant 0 : index
    %c13_922 = arith.constant 13 : index
    %c3_923 = arith.constant 3 : index
    %c0_924 = arith.constant 0 : index
    %c0_925 = arith.constant 0 : index
    %1028 = vector.load %arg4[%c0_921, %c13_922, %c3_923, %c0_924, %c0_925] : memref<1x16x16x8x32xf32, #tpu.memory_space<vmem>>, vector<1x1x1x8x32xf32>
    %1029 = vector.shape_cast %1028 : vector<1x1x1x8x32xf32> to vector<8x32xf32>
    %c0_926 = arith.constant 0 : index
    %c3_927 = arith.constant 3 : index
    %c0_928 = arith.constant 0 : index
    %c0_929 = arith.constant 0 : index
    %1030 = vector.load %arg5[%c0_926, %c3_927, %c0_928, %c0_929] : memref<1x16x8x32xf32, #tpu.memory_space<vmem>>, vector<1x1x8x32xf32>
    %1031 = vector.shape_cast %1030 : vector<1x1x8x32xf32> to vector<8x32xf32>
    %1032 = arith.mulf %1029, %1031 : vector<8x32xf32>
    %1033 = arith.addf %1027, %1032 : vector<8x32xf32>
    %c0_930 = arith.constant 0 : index
    %c13_931 = arith.constant 13 : index
    %c4_932 = arith.constant 4 : index
    %c0_933 = arith.constant 0 : index
    %c0_934 = arith.constant 0 : index
    %1034 = vector.load %arg4[%c0_930, %c13_931, %c4_932, %c0_933, %c0_934] : memref<1x16x16x8x32xf32, #tpu.memory_space<vmem>>, vector<1x1x1x8x32xf32>
    %1035 = vector.shape_cast %1034 : vector<1x1x1x8x32xf32> to vector<8x32xf32>
    %c0_935 = arith.constant 0 : index
    %c4_936 = arith.constant 4 : index
    %c0_937 = arith.constant 0 : index
    %c0_938 = arith.constant 0 : index
    %1036 = vector.load %arg5[%c0_935, %c4_936, %c0_937, %c0_938] : memref<1x16x8x32xf32, #tpu.memory_space<vmem>>, vector<1x1x8x32xf32>
    %1037 = vector.shape_cast %1036 : vector<1x1x8x32xf32> to vector<8x32xf32>
    %1038 = arith.mulf %1035, %1037 : vector<8x32xf32>
    %1039 = arith.addf %1033, %1038 : vector<8x32xf32>
    %c0_939 = arith.constant 0 : index
    %c13_940 = arith.constant 13 : index
    %c5_941 = arith.constant 5 : index
    %c0_942 = arith.constant 0 : index
    %c0_943 = arith.constant 0 : index
    %1040 = vector.load %arg4[%c0_939, %c13_940, %c5_941, %c0_942, %c0_943] : memref<1x16x16x8x32xf32, #tpu.memory_space<vmem>>, vector<1x1x1x8x32xf32>
    %1041 = vector.shape_cast %1040 : vector<1x1x1x8x32xf32> to vector<8x32xf32>
    %c0_944 = arith.constant 0 : index
    %c5_945 = arith.constant 5 : index
    %c0_946 = arith.constant 0 : index
    %c0_947 = arith.constant 0 : index
    %1042 = vector.load %arg5[%c0_944, %c5_945, %c0_946, %c0_947] : memref<1x16x8x32xf32, #tpu.memory_space<vmem>>, vector<1x1x8x32xf32>
    %1043 = vector.shape_cast %1042 : vector<1x1x8x32xf32> to vector<8x32xf32>
    %1044 = arith.mulf %1041, %1043 : vector<8x32xf32>
    %1045 = arith.addf %1039, %1044 : vector<8x32xf32>
    %c0_948 = arith.constant 0 : index
    %c13_949 = arith.constant 13 : index
    %c6_950 = arith.constant 6 : index
    %c0_951 = arith.constant 0 : index
    %c0_952 = arith.constant 0 : index
    %1046 = vector.load %arg4[%c0_948, %c13_949, %c6_950, %c0_951, %c0_952] : memref<1x16x16x8x32xf32, #tpu.memory_space<vmem>>, vector<1x1x1x8x32xf32>
    %1047 = vector.shape_cast %1046 : vector<1x1x1x8x32xf32> to vector<8x32xf32>
    %c0_953 = arith.constant 0 : index
    %c6_954 = arith.constant 6 : index
    %c0_955 = arith.constant 0 : index
    %c0_956 = arith.constant 0 : index
    %1048 = vector.load %arg5[%c0_953, %c6_954, %c0_955, %c0_956] : memref<1x16x8x32xf32, #tpu.memory_space<vmem>>, vector<1x1x8x32xf32>
    %1049 = vector.shape_cast %1048 : vector<1x1x8x32xf32> to vector<8x32xf32>
    %1050 = arith.mulf %1047, %1049 : vector<8x32xf32>
    %1051 = arith.addf %1045, %1050 : vector<8x32xf32>
    %c0_957 = arith.constant 0 : index
    %c13_958 = arith.constant 13 : index
    %c7_959 = arith.constant 7 : index
    %c0_960 = arith.constant 0 : index
    %c0_961 = arith.constant 0 : index
    %1052 = vector.load %arg4[%c0_957, %c13_958, %c7_959, %c0_960, %c0_961] : memref<1x16x16x8x32xf32, #tpu.memory_space<vmem>>, vector<1x1x1x8x32xf32>
    %1053 = vector.shape_cast %1052 : vector<1x1x1x8x32xf32> to vector<8x32xf32>
    %c0_962 = arith.constant 0 : index
    %c7_963 = arith.constant 7 : index
    %c0_964 = arith.constant 0 : index
    %c0_965 = arith.constant 0 : index
    %1054 = vector.load %arg5[%c0_962, %c7_963, %c0_964, %c0_965] : memref<1x16x8x32xf32, #tpu.memory_space<vmem>>, vector<1x1x8x32xf32>
    %1055 = vector.shape_cast %1054 : vector<1x1x8x32xf32> to vector<8x32xf32>
    %1056 = arith.mulf %1053, %1055 : vector<8x32xf32>
    %1057 = arith.addf %1051, %1056 : vector<8x32xf32>
    %c0_966 = arith.constant 0 : index
    %c13_967 = arith.constant 13 : index
    %c8_968 = arith.constant 8 : index
    %c0_969 = arith.constant 0 : index
    %c0_970 = arith.constant 0 : index
    %1058 = vector.load %arg4[%c0_966, %c13_967, %c8_968, %c0_969, %c0_970] : memref<1x16x16x8x32xf32, #tpu.memory_space<vmem>>, vector<1x1x1x8x32xf32>
    %1059 = vector.shape_cast %1058 : vector<1x1x1x8x32xf32> to vector<8x32xf32>
    %c0_971 = arith.constant 0 : index
    %c8_972 = arith.constant 8 : index
    %c0_973 = arith.constant 0 : index
    %c0_974 = arith.constant 0 : index
    %1060 = vector.load %arg5[%c0_971, %c8_972, %c0_973, %c0_974] : memref<1x16x8x32xf32, #tpu.memory_space<vmem>>, vector<1x1x8x32xf32>
    %1061 = vector.shape_cast %1060 : vector<1x1x8x32xf32> to vector<8x32xf32>
    %1062 = arith.mulf %1059, %1061 : vector<8x32xf32>
    %1063 = arith.addf %1057, %1062 : vector<8x32xf32>
    %c0_975 = arith.constant 0 : index
    %c13_976 = arith.constant 13 : index
    %c9_977 = arith.constant 9 : index
    %c0_978 = arith.constant 0 : index
    %c0_979 = arith.constant 0 : index
    %1064 = vector.load %arg4[%c0_975, %c13_976, %c9_977, %c0_978, %c0_979] : memref<1x16x16x8x32xf32, #tpu.memory_space<vmem>>, vector<1x1x1x8x32xf32>
    %1065 = vector.shape_cast %1064 : vector<1x1x1x8x32xf32> to vector<8x32xf32>
    %c0_980 = arith.constant 0 : index
    %c9_981 = arith.constant 9 : index
    %c0_982 = arith.constant 0 : index
    %c0_983 = arith.constant 0 : index
    %1066 = vector.load %arg5[%c0_980, %c9_981, %c0_982, %c0_983] : memref<1x16x8x32xf32, #tpu.memory_space<vmem>>, vector<1x1x8x32xf32>
    %1067 = vector.shape_cast %1066 : vector<1x1x8x32xf32> to vector<8x32xf32>
    %1068 = arith.mulf %1065, %1067 : vector<8x32xf32>
    %1069 = arith.addf %1063, %1068 : vector<8x32xf32>
    %c0_984 = arith.constant 0 : index
    %c13_985 = arith.constant 13 : index
    %c10_986 = arith.constant 10 : index
    %c0_987 = arith.constant 0 : index
    %c0_988 = arith.constant 0 : index
    %1070 = vector.load %arg4[%c0_984, %c13_985, %c10_986, %c0_987, %c0_988] : memref<1x16x16x8x32xf32, #tpu.memory_space<vmem>>, vector<1x1x1x8x32xf32>
    %1071 = vector.shape_cast %1070 : vector<1x1x1x8x32xf32> to vector<8x32xf32>
    %c0_989 = arith.constant 0 : index
    %c10_990 = arith.constant 10 : index
    %c0_991 = arith.constant 0 : index
    %c0_992 = arith.constant 0 : index
    %1072 = vector.load %arg5[%c0_989, %c10_990, %c0_991, %c0_992] : memref<1x16x8x32xf32, #tpu.memory_space<vmem>>, vector<1x1x8x32xf32>
    %1073 = vector.shape_cast %1072 : vector<1x1x8x32xf32> to vector<8x32xf32>
    %1074 = arith.mulf %1071, %1073 : vector<8x32xf32>
    %1075 = arith.addf %1069, %1074 : vector<8x32xf32>
    %c0_993 = arith.constant 0 : index
    %c13_994 = arith.constant 13 : index
    %c11_995 = arith.constant 11 : index
    %c0_996 = arith.constant 0 : index
    %c0_997 = arith.constant 0 : index
    %1076 = vector.load %arg4[%c0_993, %c13_994, %c11_995, %c0_996, %c0_997] : memref<1x16x16x8x32xf32, #tpu.memory_space<vmem>>, vector<1x1x1x8x32xf32>
    %1077 = vector.shape_cast %1076 : vector<1x1x1x8x32xf32> to vector<8x32xf32>
    %c0_998 = arith.constant 0 : index
    %c11_999 = arith.constant 11 : index
    %c0_1000 = arith.constant 0 : index
    %c0_1001 = arith.constant 0 : index
    %1078 = vector.load %arg5[%c0_998, %c11_999, %c0_1000, %c0_1001] : memref<1x16x8x32xf32, #tpu.memory_space<vmem>>, vector<1x1x8x32xf32>
    %1079 = vector.shape_cast %1078 : vector<1x1x8x32xf32> to vector<8x32xf32>
    %1080 = arith.mulf %1077, %1079 : vector<8x32xf32>
    %1081 = arith.addf %1075, %1080 : vector<8x32xf32>
    %c0_1002 = arith.constant 0 : index
    %c13_1003 = arith.constant 13 : index
    %c12_1004 = arith.constant 12 : index
    %c0_1005 = arith.constant 0 : index
    %c0_1006 = arith.constant 0 : index
    %1082 = vector.load %arg4[%c0_1002, %c13_1003, %c12_1004, %c0_1005, %c0_1006] : memref<1x16x16x8x32xf32, #tpu.memory_space<vmem>>, vector<1x1x1x8x32xf32>
    %1083 = vector.shape_cast %1082 : vector<1x1x1x8x32xf32> to vector<8x32xf32>
    %c0_1007 = arith.constant 0 : index
    %c12_1008 = arith.constant 12 : index
    %c0_1009 = arith.constant 0 : index
    %c0_1010 = arith.constant 0 : index
    %1084 = vector.load %arg5[%c0_1007, %c12_1008, %c0_1009, %c0_1010] : memref<1x16x8x32xf32, #tpu.memory_space<vmem>>, vector<1x1x8x32xf32>
    %1085 = vector.shape_cast %1084 : vector<1x1x8x32xf32> to vector<8x32xf32>
    %1086 = arith.mulf %1083, %1085 : vector<8x32xf32>
    %1087 = arith.addf %1081, %1086 : vector<8x32xf32>
    %1088 = tpu.concatenate %1003, %1087 in 1 : vector<8x32xf32>, vector<8x32xf32> -> vector<8x64xf32>
    %cst_1011 = arith.constant dense<0.000000e+00> : vector<8x128xf32>
    %1089 = tpu.matmul %1088, %4, %cst_1011 {dimension_numbers = #tpu.dot_dimension_numbers<[1], [0], [0], [1], [0, 0, 1, 1], [], []>, precision = #tpu.contract_precision<fp32>} : vector<8x64xf32>, vector<64x128xf32>, vector<8x128xf32> -> vector<8x128xf32>
    %1090 = vector.extract_strided_slice %1089 {offsets = [0, 0], sizes = [8, 96], strides = [1, 1]} : vector<8x128xf32> to vector<8x96xf32>
    %1091 = vector.extract_strided_slice %1089 {offsets = [0, 96], sizes = [8, 1], strides = [1, 1]} : vector<8x128xf32> to vector<8x1xf32>
    %1092 = arith.addf %1010, %1091 : vector<8x1xf32>
    %c0_1012 = arith.constant 0 : index
    %c0_1013 = arith.constant 0 : index
    %c13_1014 = arith.constant 13 : index
    %1093 = vector.load %arg6[%c0_1012, %c0_1013, %c13_1014] : memref<1x8x16xf32, #tpu.memory_space<vmem>>, vector<1x8x1xf32>
    %1094 = vector.shape_cast %1093 : vector<1x8x1xf32> to vector<8x1xf32>
    %1095 = vector.shape_cast %1092 : vector<8x1xf32> to vector<1x8x1xf32>
    tpu.vector_store %arg6[%c0_1012, %c0_1013, %c13_1014], %1095 {strides = array<i32>} : memref<1x8x16xf32, #tpu.memory_space<vmem>>, vector<1x8x1xf32>,
    %1096 = vector.extract_strided_slice %1009 {offsets = [0, 0], sizes = [8, 32], strides = [1, 1]} : vector<8x96xf32> to vector<8x32xf32>
    %1097 = vector.extract_strided_slice %1090 {offsets = [0, 0], sizes = [8, 32], strides = [1, 1]} : vector<8x96xf32> to vector<8x32xf32>
    %1098 = arith.addf %1096, %1097 : vector<8x32xf32>
    %1099 = arith.negf %1098 : vector<8x32xf32>
    %1100 = math.exp %1099 : vector<8x32xf32>
    %cst_1015 = arith.constant 1.000000e+00 : f32
    %1101 = vector.broadcast %cst_1015 : f32 to vector<8x32xf32>
    %1102 = arith.addf %1101, %1100 : vector<8x32xf32>
    %1103 = arith.divf %1101, %1102 : vector<8x32xf32>
    %1104 = vector.extract_strided_slice %1009 {offsets = [0, 32], sizes = [8, 32], strides = [1, 1]} : vector<8x96xf32> to vector<8x32xf32>
    %1105 = vector.extract_strided_slice %1090 {offsets = [0, 32], sizes = [8, 32], strides = [1, 1]} : vector<8x96xf32> to vector<8x32xf32>
    %1106 = arith.addf %1104, %1105 : vector<8x32xf32>
    %1107 = arith.negf %1106 : vector<8x32xf32>
    %1108 = math.exp %1107 : vector<8x32xf32>
    %cst_1016 = arith.constant 1.000000e+00 : f32
    %1109 = vector.broadcast %cst_1016 : f32 to vector<8x32xf32>
    %1110 = arith.addf %1109, %1108 : vector<8x32xf32>
    %1111 = arith.divf %1109, %1110 : vector<8x32xf32>
    %1112 = vector.extract_strided_slice %1009 {offsets = [0, 64], sizes = [8, 32], strides = [1, 1]} : vector<8x96xf32> to vector<8x32xf32>
    %1113 = vector.extract_strided_slice %1090 {offsets = [0, 64], sizes = [8, 32], strides = [1, 1]} : vector<8x96xf32> to vector<8x32xf32>
    %1114 = arith.addf %1113, %3 : vector<8x32xf32>
    %1115 = arith.mulf %1103, %1114 : vector<8x32xf32>
    %1116 = arith.addf %1112, %1115 : vector<8x32xf32>
    %1117 = math.tanh %1116 : vector<8x32xf32>
    %cst_1017 = arith.constant 1.000000e+00 : f32
    %1118 = vector.broadcast %cst_1017 : f32 to vector<8x32xf32>
    %1119 = arith.subf %1118, %1111 : vector<8x32xf32>
    %1120 = arith.mulf %1119, %1117 : vector<8x32xf32>
    %1121 = arith.mulf %1111, %1003 : vector<8x32xf32>
    %1122 = arith.addf %1120, %1121 : vector<8x32xf32>
    %c0_1018 = arith.constant 0 : index
    %c13_1019 = arith.constant 13 : index
    %c0_1020 = arith.constant 0 : index
    %c0_1021 = arith.constant 0 : index
    %1123 = vector.load %arg5[%c0_1018, %c13_1019, %c0_1020, %c0_1021] : memref<1x16x8x32xf32, #tpu.memory_space<vmem>>, vector<1x1x8x32xf32>
    %1124 = vector.shape_cast %1123 : vector<1x1x8x32xf32> to vector<8x32xf32>
    %1125 = vector.shape_cast %1122 : vector<8x32xf32> to vector<1x1x8x32xf32>
    tpu.vector_store %arg5[%c0_1018, %c13_1019, %c0_1020, %c0_1021], %1125 {strides = array<i32>} : memref<1x16x8x32xf32, #tpu.memory_space<vmem>>, vector<1x1x8x32xf32>,
    %c0_1022 = arith.constant 0 : index
    %c14 = arith.constant 14 : index
    %c0_1023 = arith.constant 0 : index
    %c0_1024 = arith.constant 0 : index
    %1126 = vector.load %arg3[%c0_1022, %c14, %c0_1023, %c0_1024] : memref<1x16x8x128xf32, #tpu.memory_space<vmem>>, vector<1x1x8x128xf32>
    %1127 = vector.shape_cast %1126 : vector<1x1x8x128xf32> to vector<8x128xf32>
    %1128 = vector.extract_strided_slice %1127 {offsets = [0, 0], sizes = [8, 96], strides = [1, 1]} : vector<8x128xf32> to vector<8x96xf32>
    %1129 = vector.extract_strided_slice %1127 {offsets = [0, 96], sizes = [8, 1], strides = [1, 1]} : vector<8x128xf32> to vector<8x1xf32>
    %c0_1025 = arith.constant 0 : index
    %c14_1026 = arith.constant 14 : index
    %c0_1027 = arith.constant 0 : index
    %c0_1028 = arith.constant 0 : index
    %c0_1029 = arith.constant 0 : index
    %1130 = vector.load %arg4[%c0_1025, %c14_1026, %c0_1027, %c0_1028, %c0_1029] : memref<1x16x16x8x32xf32, #tpu.memory_space<vmem>>, vector<1x1x1x8x32xf32>
    %1131 = vector.shape_cast %1130 : vector<1x1x1x8x32xf32> to vector<8x32xf32>
    %c0_1030 = arith.constant 0 : index
    %c0_1031 = arith.constant 0 : index
    %c0_1032 = arith.constant 0 : index
    %c0_1033 = arith.constant 0 : index
    %1132 = vector.load %arg5[%c0_1030, %c0_1031, %c0_1032, %c0_1033] : memref<1x16x8x32xf32, #tpu.memory_space<vmem>>, vector<1x1x8x32xf32>
    %1133 = vector.shape_cast %1132 : vector<1x1x8x32xf32> to vector<8x32xf32>
    %1134 = arith.mulf %1131, %1133 : vector<8x32xf32>
    %c0_1034 = arith.constant 0 : index
    %c14_1035 = arith.constant 14 : index
    %c1_1036 = arith.constant 1 : index
    %c0_1037 = arith.constant 0 : index
    %c0_1038 = arith.constant 0 : index
    %1135 = vector.load %arg4[%c0_1034, %c14_1035, %c1_1036, %c0_1037, %c0_1038] : memref<1x16x16x8x32xf32, #tpu.memory_space<vmem>>, vector<1x1x1x8x32xf32>
    %1136 = vector.shape_cast %1135 : vector<1x1x1x8x32xf32> to vector<8x32xf32>
    %c0_1039 = arith.constant 0 : index
    %c1_1040 = arith.constant 1 : index
    %c0_1041 = arith.constant 0 : index
    %c0_1042 = arith.constant 0 : index
    %1137 = vector.load %arg5[%c0_1039, %c1_1040, %c0_1041, %c0_1042] : memref<1x16x8x32xf32, #tpu.memory_space<vmem>>, vector<1x1x8x32xf32>
    %1138 = vector.shape_cast %1137 : vector<1x1x8x32xf32> to vector<8x32xf32>
    %1139 = arith.mulf %1136, %1138 : vector<8x32xf32>
    %1140 = arith.addf %1134, %1139 : vector<8x32xf32>
    %c0_1043 = arith.constant 0 : index
    %c14_1044 = arith.constant 14 : index
    %c2_1045 = arith.constant 2 : index
    %c0_1046 = arith.constant 0 : index
    %c0_1047 = arith.constant 0 : index
    %1141 = vector.load %arg4[%c0_1043, %c14_1044, %c2_1045, %c0_1046, %c0_1047] : memref<1x16x16x8x32xf32, #tpu.memory_space<vmem>>, vector<1x1x1x8x32xf32>
    %1142 = vector.shape_cast %1141 : vector<1x1x1x8x32xf32> to vector<8x32xf32>
    %c0_1048 = arith.constant 0 : index
    %c2_1049 = arith.constant 2 : index
    %c0_1050 = arith.constant 0 : index
    %c0_1051 = arith.constant 0 : index
    %1143 = vector.load %arg5[%c0_1048, %c2_1049, %c0_1050, %c0_1051] : memref<1x16x8x32xf32, #tpu.memory_space<vmem>>, vector<1x1x8x32xf32>
    %1144 = vector.shape_cast %1143 : vector<1x1x8x32xf32> to vector<8x32xf32>
    %1145 = arith.mulf %1142, %1144 : vector<8x32xf32>
    %1146 = arith.addf %1140, %1145 : vector<8x32xf32>
    %c0_1052 = arith.constant 0 : index
    %c14_1053 = arith.constant 14 : index
    %c3_1054 = arith.constant 3 : index
    %c0_1055 = arith.constant 0 : index
    %c0_1056 = arith.constant 0 : index
    %1147 = vector.load %arg4[%c0_1052, %c14_1053, %c3_1054, %c0_1055, %c0_1056] : memref<1x16x16x8x32xf32, #tpu.memory_space<vmem>>, vector<1x1x1x8x32xf32>
    %1148 = vector.shape_cast %1147 : vector<1x1x1x8x32xf32> to vector<8x32xf32>
    %c0_1057 = arith.constant 0 : index
    %c3_1058 = arith.constant 3 : index
    %c0_1059 = arith.constant 0 : index
    %c0_1060 = arith.constant 0 : index
    %1149 = vector.load %arg5[%c0_1057, %c3_1058, %c0_1059, %c0_1060] : memref<1x16x8x32xf32, #tpu.memory_space<vmem>>, vector<1x1x8x32xf32>
    %1150 = vector.shape_cast %1149 : vector<1x1x8x32xf32> to vector<8x32xf32>
    %1151 = arith.mulf %1148, %1150 : vector<8x32xf32>
    %1152 = arith.addf %1146, %1151 : vector<8x32xf32>
    %c0_1061 = arith.constant 0 : index
    %c14_1062 = arith.constant 14 : index
    %c4_1063 = arith.constant 4 : index
    %c0_1064 = arith.constant 0 : index
    %c0_1065 = arith.constant 0 : index
    %1153 = vector.load %arg4[%c0_1061, %c14_1062, %c4_1063, %c0_1064, %c0_1065] : memref<1x16x16x8x32xf32, #tpu.memory_space<vmem>>, vector<1x1x1x8x32xf32>
    %1154 = vector.shape_cast %1153 : vector<1x1x1x8x32xf32> to vector<8x32xf32>
    %c0_1066 = arith.constant 0 : index
    %c4_1067 = arith.constant 4 : index
    %c0_1068 = arith.constant 0 : index
    %c0_1069 = arith.constant 0 : index
    %1155 = vector.load %arg5[%c0_1066, %c4_1067, %c0_1068, %c0_1069] : memref<1x16x8x32xf32, #tpu.memory_space<vmem>>, vector<1x1x8x32xf32>
    %1156 = vector.shape_cast %1155 : vector<1x1x8x32xf32> to vector<8x32xf32>
    %1157 = arith.mulf %1154, %1156 : vector<8x32xf32>
    %1158 = arith.addf %1152, %1157 : vector<8x32xf32>
    %c0_1070 = arith.constant 0 : index
    %c14_1071 = arith.constant 14 : index
    %c5_1072 = arith.constant 5 : index
    %c0_1073 = arith.constant 0 : index
    %c0_1074 = arith.constant 0 : index
    %1159 = vector.load %arg4[%c0_1070, %c14_1071, %c5_1072, %c0_1073, %c0_1074] : memref<1x16x16x8x32xf32, #tpu.memory_space<vmem>>, vector<1x1x1x8x32xf32>
    %1160 = vector.shape_cast %1159 : vector<1x1x1x8x32xf32> to vector<8x32xf32>
    %c0_1075 = arith.constant 0 : index
    %c5_1076 = arith.constant 5 : index
    %c0_1077 = arith.constant 0 : index
    %c0_1078 = arith.constant 0 : index
    %1161 = vector.load %arg5[%c0_1075, %c5_1076, %c0_1077, %c0_1078] : memref<1x16x8x32xf32, #tpu.memory_space<vmem>>, vector<1x1x8x32xf32>
    %1162 = vector.shape_cast %1161 : vector<1x1x8x32xf32> to vector<8x32xf32>
    %1163 = arith.mulf %1160, %1162 : vector<8x32xf32>
    %1164 = arith.addf %1158, %1163 : vector<8x32xf32>
    %c0_1079 = arith.constant 0 : index
    %c14_1080 = arith.constant 14 : index
    %c6_1081 = arith.constant 6 : index
    %c0_1082 = arith.constant 0 : index
    %c0_1083 = arith.constant 0 : index
    %1165 = vector.load %arg4[%c0_1079, %c14_1080, %c6_1081, %c0_1082, %c0_1083] : memref<1x16x16x8x32xf32, #tpu.memory_space<vmem>>, vector<1x1x1x8x32xf32>
    %1166 = vector.shape_cast %1165 : vector<1x1x1x8x32xf32> to vector<8x32xf32>
    %c0_1084 = arith.constant 0 : index
    %c6_1085 = arith.constant 6 : index
    %c0_1086 = arith.constant 0 : index
    %c0_1087 = arith.constant 0 : index
    %1167 = vector.load %arg5[%c0_1084, %c6_1085, %c0_1086, %c0_1087] : memref<1x16x8x32xf32, #tpu.memory_space<vmem>>, vector<1x1x8x32xf32>
    %1168 = vector.shape_cast %1167 : vector<1x1x8x32xf32> to vector<8x32xf32>
    %1169 = arith.mulf %1166, %1168 : vector<8x32xf32>
    %1170 = arith.addf %1164, %1169 : vector<8x32xf32>
    %c0_1088 = arith.constant 0 : index
    %c14_1089 = arith.constant 14 : index
    %c7_1090 = arith.constant 7 : index
    %c0_1091 = arith.constant 0 : index
    %c0_1092 = arith.constant 0 : index
    %1171 = vector.load %arg4[%c0_1088, %c14_1089, %c7_1090, %c0_1091, %c0_1092] : memref<1x16x16x8x32xf32, #tpu.memory_space<vmem>>, vector<1x1x1x8x32xf32>
    %1172 = vector.shape_cast %1171 : vector<1x1x1x8x32xf32> to vector<8x32xf32>
    %c0_1093 = arith.constant 0 : index
    %c7_1094 = arith.constant 7 : index
    %c0_1095 = arith.constant 0 : index
    %c0_1096 = arith.constant 0 : index
    %1173 = vector.load %arg5[%c0_1093, %c7_1094, %c0_1095, %c0_1096] : memref<1x16x8x32xf32, #tpu.memory_space<vmem>>, vector<1x1x8x32xf32>
    %1174 = vector.shape_cast %1173 : vector<1x1x8x32xf32> to vector<8x32xf32>
    %1175 = arith.mulf %1172, %1174 : vector<8x32xf32>
    %1176 = arith.addf %1170, %1175 : vector<8x32xf32>
    %c0_1097 = arith.constant 0 : index
    %c14_1098 = arith.constant 14 : index
    %c8_1099 = arith.constant 8 : index
    %c0_1100 = arith.constant 0 : index
    %c0_1101 = arith.constant 0 : index
    %1177 = vector.load %arg4[%c0_1097, %c14_1098, %c8_1099, %c0_1100, %c0_1101] : memref<1x16x16x8x32xf32, #tpu.memory_space<vmem>>, vector<1x1x1x8x32xf32>
    %1178 = vector.shape_cast %1177 : vector<1x1x1x8x32xf32> to vector<8x32xf32>
    %c0_1102 = arith.constant 0 : index
    %c8_1103 = arith.constant 8 : index
    %c0_1104 = arith.constant 0 : index
    %c0_1105 = arith.constant 0 : index
    %1179 = vector.load %arg5[%c0_1102, %c8_1103, %c0_1104, %c0_1105] : memref<1x16x8x32xf32, #tpu.memory_space<vmem>>, vector<1x1x8x32xf32>
    %1180 = vector.shape_cast %1179 : vector<1x1x8x32xf32> to vector<8x32xf32>
    %1181 = arith.mulf %1178, %1180 : vector<8x32xf32>
    %1182 = arith.addf %1176, %1181 : vector<8x32xf32>
    %c0_1106 = arith.constant 0 : index
    %c14_1107 = arith.constant 14 : index
    %c9_1108 = arith.constant 9 : index
    %c0_1109 = arith.constant 0 : index
    %c0_1110 = arith.constant 0 : index
    %1183 = vector.load %arg4[%c0_1106, %c14_1107, %c9_1108, %c0_1109, %c0_1110] : memref<1x16x16x8x32xf32, #tpu.memory_space<vmem>>, vector<1x1x1x8x32xf32>
    %1184 = vector.shape_cast %1183 : vector<1x1x1x8x32xf32> to vector<8x32xf32>
    %c0_1111 = arith.constant 0 : index
    %c9_1112 = arith.constant 9 : index
    %c0_1113 = arith.constant 0 : index
    %c0_1114 = arith.constant 0 : index
    %1185 = vector.load %arg5[%c0_1111, %c9_1112, %c0_1113, %c0_1114] : memref<1x16x8x32xf32, #tpu.memory_space<vmem>>, vector<1x1x8x32xf32>
    %1186 = vector.shape_cast %1185 : vector<1x1x8x32xf32> to vector<8x32xf32>
    %1187 = arith.mulf %1184, %1186 : vector<8x32xf32>
    %1188 = arith.addf %1182, %1187 : vector<8x32xf32>
    %c0_1115 = arith.constant 0 : index
    %c14_1116 = arith.constant 14 : index
    %c10_1117 = arith.constant 10 : index
    %c0_1118 = arith.constant 0 : index
    %c0_1119 = arith.constant 0 : index
    %1189 = vector.load %arg4[%c0_1115, %c14_1116, %c10_1117, %c0_1118, %c0_1119] : memref<1x16x16x8x32xf32, #tpu.memory_space<vmem>>, vector<1x1x1x8x32xf32>
    %1190 = vector.shape_cast %1189 : vector<1x1x1x8x32xf32> to vector<8x32xf32>
    %c0_1120 = arith.constant 0 : index
    %c10_1121 = arith.constant 10 : index
    %c0_1122 = arith.constant 0 : index
    %c0_1123 = arith.constant 0 : index
    %1191 = vector.load %arg5[%c0_1120, %c10_1121, %c0_1122, %c0_1123] : memref<1x16x8x32xf32, #tpu.memory_space<vmem>>, vector<1x1x8x32xf32>
    %1192 = vector.shape_cast %1191 : vector<1x1x8x32xf32> to vector<8x32xf32>
    %1193 = arith.mulf %1190, %1192 : vector<8x32xf32>
    %1194 = arith.addf %1188, %1193 : vector<8x32xf32>
    %c0_1124 = arith.constant 0 : index
    %c14_1125 = arith.constant 14 : index
    %c11_1126 = arith.constant 11 : index
    %c0_1127 = arith.constant 0 : index
    %c0_1128 = arith.constant 0 : index
    %1195 = vector.load %arg4[%c0_1124, %c14_1125, %c11_1126, %c0_1127, %c0_1128] : memref<1x16x16x8x32xf32, #tpu.memory_space<vmem>>, vector<1x1x1x8x32xf32>
    %1196 = vector.shape_cast %1195 : vector<1x1x1x8x32xf32> to vector<8x32xf32>
    %c0_1129 = arith.constant 0 : index
    %c11_1130 = arith.constant 11 : index
    %c0_1131 = arith.constant 0 : index
    %c0_1132 = arith.constant 0 : index
    %1197 = vector.load %arg5[%c0_1129, %c11_1130, %c0_1131, %c0_1132] : memref<1x16x8x32xf32, #tpu.memory_space<vmem>>, vector<1x1x8x32xf32>
    %1198 = vector.shape_cast %1197 : vector<1x1x8x32xf32> to vector<8x32xf32>
    %1199 = arith.mulf %1196, %1198 : vector<8x32xf32>
    %1200 = arith.addf %1194, %1199 : vector<8x32xf32>
    %c0_1133 = arith.constant 0 : index
    %c14_1134 = arith.constant 14 : index
    %c12_1135 = arith.constant 12 : index
    %c0_1136 = arith.constant 0 : index
    %c0_1137 = arith.constant 0 : index
    %1201 = vector.load %arg4[%c0_1133, %c14_1134, %c12_1135, %c0_1136, %c0_1137] : memref<1x16x16x8x32xf32, #tpu.memory_space<vmem>>, vector<1x1x1x8x32xf32>
    %1202 = vector.shape_cast %1201 : vector<1x1x1x8x32xf32> to vector<8x32xf32>
    %c0_1138 = arith.constant 0 : index
    %c12_1139 = arith.constant 12 : index
    %c0_1140 = arith.constant 0 : index
    %c0_1141 = arith.constant 0 : index
    %1203 = vector.load %arg5[%c0_1138, %c12_1139, %c0_1140, %c0_1141] : memref<1x16x8x32xf32, #tpu.memory_space<vmem>>, vector<1x1x8x32xf32>
    %1204 = vector.shape_cast %1203 : vector<1x1x8x32xf32> to vector<8x32xf32>
    %1205 = arith.mulf %1202, %1204 : vector<8x32xf32>
    %1206 = arith.addf %1200, %1205 : vector<8x32xf32>
    %c0_1142 = arith.constant 0 : index
    %c14_1143 = arith.constant 14 : index
    %c13_1144 = arith.constant 13 : index
    %c0_1145 = arith.constant 0 : index
    %c0_1146 = arith.constant 0 : index
    %1207 = vector.load %arg4[%c0_1142, %c14_1143, %c13_1144, %c0_1145, %c0_1146] : memref<1x16x16x8x32xf32, #tpu.memory_space<vmem>>, vector<1x1x1x8x32xf32>
    %1208 = vector.shape_cast %1207 : vector<1x1x1x8x32xf32> to vector<8x32xf32>
    %c0_1147 = arith.constant 0 : index
    %c13_1148 = arith.constant 13 : index
    %c0_1149 = arith.constant 0 : index
    %c0_1150 = arith.constant 0 : index
    %1209 = vector.load %arg5[%c0_1147, %c13_1148, %c0_1149, %c0_1150] : memref<1x16x8x32xf32, #tpu.memory_space<vmem>>, vector<1x1x8x32xf32>
    %1210 = vector.shape_cast %1209 : vector<1x1x8x32xf32> to vector<8x32xf32>
    %1211 = arith.mulf %1208, %1210 : vector<8x32xf32>
    %1212 = arith.addf %1206, %1211 : vector<8x32xf32>
    %1213 = tpu.concatenate %1122, %1212 in 1 : vector<8x32xf32>, vector<8x32xf32> -> vector<8x64xf32>
    %cst_1151 = arith.constant dense<0.000000e+00> : vector<8x128xf32>
    %1214 = tpu.matmul %1213, %4, %cst_1151 {dimension_numbers = #tpu.dot_dimension_numbers<[1], [0], [0], [1], [0, 0, 1, 1], [], []>, precision = #tpu.contract_precision<fp32>} : vector<8x64xf32>, vector<64x128xf32>, vector<8x128xf32> -> vector<8x128xf32>
    %1215 = vector.extract_strided_slice %1214 {offsets = [0, 0], sizes = [8, 96], strides = [1, 1]} : vector<8x128xf32> to vector<8x96xf32>
    %1216 = vector.extract_strided_slice %1214 {offsets = [0, 96], sizes = [8, 1], strides = [1, 1]} : vector<8x128xf32> to vector<8x1xf32>
    %1217 = arith.addf %1129, %1216 : vector<8x1xf32>
    %c0_1152 = arith.constant 0 : index
    %c0_1153 = arith.constant 0 : index
    %c14_1154 = arith.constant 14 : index
    %1218 = vector.load %arg6[%c0_1152, %c0_1153, %c14_1154] : memref<1x8x16xf32, #tpu.memory_space<vmem>>, vector<1x8x1xf32>
    %1219 = vector.shape_cast %1218 : vector<1x8x1xf32> to vector<8x1xf32>
    %1220 = vector.shape_cast %1217 : vector<8x1xf32> to vector<1x8x1xf32>
    tpu.vector_store %arg6[%c0_1152, %c0_1153, %c14_1154], %1220 {strides = array<i32>} : memref<1x8x16xf32, #tpu.memory_space<vmem>>, vector<1x8x1xf32>,
    %1221 = vector.extract_strided_slice %1128 {offsets = [0, 0], sizes = [8, 32], strides = [1, 1]} : vector<8x96xf32> to vector<8x32xf32>
    %1222 = vector.extract_strided_slice %1215 {offsets = [0, 0], sizes = [8, 32], strides = [1, 1]} : vector<8x96xf32> to vector<8x32xf32>
    %1223 = arith.addf %1221, %1222 : vector<8x32xf32>
    %1224 = arith.negf %1223 : vector<8x32xf32>
    %1225 = math.exp %1224 : vector<8x32xf32>
    %cst_1155 = arith.constant 1.000000e+00 : f32
    %1226 = vector.broadcast %cst_1155 : f32 to vector<8x32xf32>
    %1227 = arith.addf %1226, %1225 : vector<8x32xf32>
    %1228 = arith.divf %1226, %1227 : vector<8x32xf32>
    %1229 = vector.extract_strided_slice %1128 {offsets = [0, 32], sizes = [8, 32], strides = [1, 1]} : vector<8x96xf32> to vector<8x32xf32>
    %1230 = vector.extract_strided_slice %1215 {offsets = [0, 32], sizes = [8, 32], strides = [1, 1]} : vector<8x96xf32> to vector<8x32xf32>
    %1231 = arith.addf %1229, %1230 : vector<8x32xf32>
    %1232 = arith.negf %1231 : vector<8x32xf32>
    %1233 = math.exp %1232 : vector<8x32xf32>
    %cst_1156 = arith.constant 1.000000e+00 : f32
    %1234 = vector.broadcast %cst_1156 : f32 to vector<8x32xf32>
    %1235 = arith.addf %1234, %1233 : vector<8x32xf32>
    %1236 = arith.divf %1234, %1235 : vector<8x32xf32>
    %1237 = vector.extract_strided_slice %1128 {offsets = [0, 64], sizes = [8, 32], strides = [1, 1]} : vector<8x96xf32> to vector<8x32xf32>
    %1238 = vector.extract_strided_slice %1215 {offsets = [0, 64], sizes = [8, 32], strides = [1, 1]} : vector<8x96xf32> to vector<8x32xf32>
    %1239 = arith.addf %1238, %3 : vector<8x32xf32>
    %1240 = arith.mulf %1228, %1239 : vector<8x32xf32>
    %1241 = arith.addf %1237, %1240 : vector<8x32xf32>
    %1242 = math.tanh %1241 : vector<8x32xf32>
    %cst_1157 = arith.constant 1.000000e+00 : f32
    %1243 = vector.broadcast %cst_1157 : f32 to vector<8x32xf32>
    %1244 = arith.subf %1243, %1236 : vector<8x32xf32>
    %1245 = arith.mulf %1244, %1242 : vector<8x32xf32>
    %1246 = arith.mulf %1236, %1122 : vector<8x32xf32>
    %1247 = arith.addf %1245, %1246 : vector<8x32xf32>
    %c0_1158 = arith.constant 0 : index
    %c14_1159 = arith.constant 14 : index
    %c0_1160 = arith.constant 0 : index
    %c0_1161 = arith.constant 0 : index
    %1248 = vector.load %arg5[%c0_1158, %c14_1159, %c0_1160, %c0_1161] : memref<1x16x8x32xf32, #tpu.memory_space<vmem>>, vector<1x1x8x32xf32>
    %1249 = vector.shape_cast %1248 : vector<1x1x8x32xf32> to vector<8x32xf32>
    %1250 = vector.shape_cast %1247 : vector<8x32xf32> to vector<1x1x8x32xf32>
    tpu.vector_store %arg5[%c0_1158, %c14_1159, %c0_1160, %c0_1161], %1250 {strides = array<i32>} : memref<1x16x8x32xf32, #tpu.memory_space<vmem>>, vector<1x1x8x32xf32>,
    %c0_1162 = arith.constant 0 : index
    %c15 = arith.constant 15 : index
    %c0_1163 = arith.constant 0 : index
    %c0_1164 = arith.constant 0 : index
    %1251 = vector.load %arg3[%c0_1162, %c15, %c0_1163, %c0_1164] : memref<1x16x8x128xf32, #tpu.memory_space<vmem>>, vector<1x1x8x128xf32>
    %1252 = vector.shape_cast %1251 : vector<1x1x8x128xf32> to vector<8x128xf32>
    %1253 = vector.extract_strided_slice %1252 {offsets = [0, 0], sizes = [8, 96], strides = [1, 1]} : vector<8x128xf32> to vector<8x96xf32>
    %1254 = vector.extract_strided_slice %1252 {offsets = [0, 96], sizes = [8, 1], strides = [1, 1]} : vector<8x128xf32> to vector<8x1xf32>
    %c0_1165 = arith.constant 0 : index
    %c15_1166 = arith.constant 15 : index
    %c0_1167 = arith.constant 0 : index
    %c0_1168 = arith.constant 0 : index
    %c0_1169 = arith.constant 0 : index
    %1255 = vector.load %arg4[%c0_1165, %c15_1166, %c0_1167, %c0_1168, %c0_1169] : memref<1x16x16x8x32xf32, #tpu.memory_space<vmem>>, vector<1x1x1x8x32xf32>
    %1256 = vector.shape_cast %1255 : vector<1x1x1x8x32xf32> to vector<8x32xf32>
    %c0_1170 = arith.constant 0 : index
    %c0_1171 = arith.constant 0 : index
    %c0_1172 = arith.constant 0 : index
    %c0_1173 = arith.constant 0 : index
    %1257 = vector.load %arg5[%c0_1170, %c0_1171, %c0_1172, %c0_1173] : memref<1x16x8x32xf32, #tpu.memory_space<vmem>>, vector<1x1x8x32xf32>
    %1258 = vector.shape_cast %1257 : vector<1x1x8x32xf32> to vector<8x32xf32>
    %1259 = arith.mulf %1256, %1258 : vector<8x32xf32>
    %c0_1174 = arith.constant 0 : index
    %c15_1175 = arith.constant 15 : index
    %c1_1176 = arith.constant 1 : index
    %c0_1177 = arith.constant 0 : index
    %c0_1178 = arith.constant 0 : index
    %1260 = vector.load %arg4[%c0_1174, %c15_1175, %c1_1176, %c0_1177, %c0_1178] : memref<1x16x16x8x32xf32, #tpu.memory_space<vmem>>, vector<1x1x1x8x32xf32>
    %1261 = vector.shape_cast %1260 : vector<1x1x1x8x32xf32> to vector<8x32xf32>
    %c0_1179 = arith.constant 0 : index
    %c1_1180 = arith.constant 1 : index
    %c0_1181 = arith.constant 0 : index
    %c0_1182 = arith.constant 0 : index
    %1262 = vector.load %arg5[%c0_1179, %c1_1180, %c0_1181, %c0_1182] : memref<1x16x8x32xf32, #tpu.memory_space<vmem>>, vector<1x1x8x32xf32>
    %1263 = vector.shape_cast %1262 : vector<1x1x8x32xf32> to vector<8x32xf32>
    %1264 = arith.mulf %1261, %1263 : vector<8x32xf32>
    %1265 = arith.addf %1259, %1264 : vector<8x32xf32>
    %c0_1183 = arith.constant 0 : index
    %c15_1184 = arith.constant 15 : index
    %c2_1185 = arith.constant 2 : index
    %c0_1186 = arith.constant 0 : index
    %c0_1187 = arith.constant 0 : index
    %1266 = vector.load %arg4[%c0_1183, %c15_1184, %c2_1185, %c0_1186, %c0_1187] : memref<1x16x16x8x32xf32, #tpu.memory_space<vmem>>, vector<1x1x1x8x32xf32>
    %1267 = vector.shape_cast %1266 : vector<1x1x1x8x32xf32> to vector<8x32xf32>
    %c0_1188 = arith.constant 0 : index
    %c2_1189 = arith.constant 2 : index
    %c0_1190 = arith.constant 0 : index
    %c0_1191 = arith.constant 0 : index
    %1268 = vector.load %arg5[%c0_1188, %c2_1189, %c0_1190, %c0_1191] : memref<1x16x8x32xf32, #tpu.memory_space<vmem>>, vector<1x1x8x32xf32>
    %1269 = vector.shape_cast %1268 : vector<1x1x8x32xf32> to vector<8x32xf32>
    %1270 = arith.mulf %1267, %1269 : vector<8x32xf32>
    %1271 = arith.addf %1265, %1270 : vector<8x32xf32>
    %c0_1192 = arith.constant 0 : index
    %c15_1193 = arith.constant 15 : index
    %c3_1194 = arith.constant 3 : index
    %c0_1195 = arith.constant 0 : index
    %c0_1196 = arith.constant 0 : index
    %1272 = vector.load %arg4[%c0_1192, %c15_1193, %c3_1194, %c0_1195, %c0_1196] : memref<1x16x16x8x32xf32, #tpu.memory_space<vmem>>, vector<1x1x1x8x32xf32>
    %1273 = vector.shape_cast %1272 : vector<1x1x1x8x32xf32> to vector<8x32xf32>
    %c0_1197 = arith.constant 0 : index
    %c3_1198 = arith.constant 3 : index
    %c0_1199 = arith.constant 0 : index
    %c0_1200 = arith.constant 0 : index
    %1274 = vector.load %arg5[%c0_1197, %c3_1198, %c0_1199, %c0_1200] : memref<1x16x8x32xf32, #tpu.memory_space<vmem>>, vector<1x1x8x32xf32>
    %1275 = vector.shape_cast %1274 : vector<1x1x8x32xf32> to vector<8x32xf32>
    %1276 = arith.mulf %1273, %1275 : vector<8x32xf32>
    %1277 = arith.addf %1271, %1276 : vector<8x32xf32>
    %c0_1201 = arith.constant 0 : index
    %c15_1202 = arith.constant 15 : index
    %c4_1203 = arith.constant 4 : index
    %c0_1204 = arith.constant 0 : index
    %c0_1205 = arith.constant 0 : index
    %1278 = vector.load %arg4[%c0_1201, %c15_1202, %c4_1203, %c0_1204, %c0_1205] : memref<1x16x16x8x32xf32, #tpu.memory_space<vmem>>, vector<1x1x1x8x32xf32>
    %1279 = vector.shape_cast %1278 : vector<1x1x1x8x32xf32> to vector<8x32xf32>
    %c0_1206 = arith.constant 0 : index
    %c4_1207 = arith.constant 4 : index
    %c0_1208 = arith.constant 0 : index
    %c0_1209 = arith.constant 0 : index
    %1280 = vector.load %arg5[%c0_1206, %c4_1207, %c0_1208, %c0_1209] : memref<1x16x8x32xf32, #tpu.memory_space<vmem>>, vector<1x1x8x32xf32>
    %1281 = vector.shape_cast %1280 : vector<1x1x8x32xf32> to vector<8x32xf32>
    %1282 = arith.mulf %1279, %1281 : vector<8x32xf32>
    %1283 = arith.addf %1277, %1282 : vector<8x32xf32>
    %c0_1210 = arith.constant 0 : index
    %c15_1211 = arith.constant 15 : index
    %c5_1212 = arith.constant 5 : index
    %c0_1213 = arith.constant 0 : index
    %c0_1214 = arith.constant 0 : index
    %1284 = vector.load %arg4[%c0_1210, %c15_1211, %c5_1212, %c0_1213, %c0_1214] : memref<1x16x16x8x32xf32, #tpu.memory_space<vmem>>, vector<1x1x1x8x32xf32>
    %1285 = vector.shape_cast %1284 : vector<1x1x1x8x32xf32> to vector<8x32xf32>
    %c0_1215 = arith.constant 0 : index
    %c5_1216 = arith.constant 5 : index
    %c0_1217 = arith.constant 0 : index
    %c0_1218 = arith.constant 0 : index
    %1286 = vector.load %arg5[%c0_1215, %c5_1216, %c0_1217, %c0_1218] : memref<1x16x8x32xf32, #tpu.memory_space<vmem>>, vector<1x1x8x32xf32>
    %1287 = vector.shape_cast %1286 : vector<1x1x8x32xf32> to vector<8x32xf32>
    %1288 = arith.mulf %1285, %1287 : vector<8x32xf32>
    %1289 = arith.addf %1283, %1288 : vector<8x32xf32>
    %c0_1219 = arith.constant 0 : index
    %c15_1220 = arith.constant 15 : index
    %c6_1221 = arith.constant 6 : index
    %c0_1222 = arith.constant 0 : index
    %c0_1223 = arith.constant 0 : index
    %1290 = vector.load %arg4[%c0_1219, %c15_1220, %c6_1221, %c0_1222, %c0_1223] : memref<1x16x16x8x32xf32, #tpu.memory_space<vmem>>, vector<1x1x1x8x32xf32>
    %1291 = vector.shape_cast %1290 : vector<1x1x1x8x32xf32> to vector<8x32xf32>
    %c0_1224 = arith.constant 0 : index
    %c6_1225 = arith.constant 6 : index
    %c0_1226 = arith.constant 0 : index
    %c0_1227 = arith.constant 0 : index
    %1292 = vector.load %arg5[%c0_1224, %c6_1225, %c0_1226, %c0_1227] : memref<1x16x8x32xf32, #tpu.memory_space<vmem>>, vector<1x1x8x32xf32>
    %1293 = vector.shape_cast %1292 : vector<1x1x8x32xf32> to vector<8x32xf32>
    %1294 = arith.mulf %1291, %1293 : vector<8x32xf32>
    %1295 = arith.addf %1289, %1294 : vector<8x32xf32>
    %c0_1228 = arith.constant 0 : index
    %c15_1229 = arith.constant 15 : index
    %c7_1230 = arith.constant 7 : index
    %c0_1231 = arith.constant 0 : index
    %c0_1232 = arith.constant 0 : index
    %1296 = vector.load %arg4[%c0_1228, %c15_1229, %c7_1230, %c0_1231, %c0_1232] : memref<1x16x16x8x32xf32, #tpu.memory_space<vmem>>, vector<1x1x1x8x32xf32>
    %1297 = vector.shape_cast %1296 : vector<1x1x1x8x32xf32> to vector<8x32xf32>
    %c0_1233 = arith.constant 0 : index
    %c7_1234 = arith.constant 7 : index
    %c0_1235 = arith.constant 0 : index
    %c0_1236 = arith.constant 0 : index
    %1298 = vector.load %arg5[%c0_1233, %c7_1234, %c0_1235, %c0_1236] : memref<1x16x8x32xf32, #tpu.memory_space<vmem>>, vector<1x1x8x32xf32>
    %1299 = vector.shape_cast %1298 : vector<1x1x8x32xf32> to vector<8x32xf32>
    %1300 = arith.mulf %1297, %1299 : vector<8x32xf32>
    %1301 = arith.addf %1295, %1300 : vector<8x32xf32>
    %c0_1237 = arith.constant 0 : index
    %c15_1238 = arith.constant 15 : index
    %c8_1239 = arith.constant 8 : index
    %c0_1240 = arith.constant 0 : index
    %c0_1241 = arith.constant 0 : index
    %1302 = vector.load %arg4[%c0_1237, %c15_1238, %c8_1239, %c0_1240, %c0_1241] : memref<1x16x16x8x32xf32, #tpu.memory_space<vmem>>, vector<1x1x1x8x32xf32>
    %1303 = vector.shape_cast %1302 : vector<1x1x1x8x32xf32> to vector<8x32xf32>
    %c0_1242 = arith.constant 0 : index
    %c8_1243 = arith.constant 8 : index
    %c0_1244 = arith.constant 0 : index
    %c0_1245 = arith.constant 0 : index
    %1304 = vector.load %arg5[%c0_1242, %c8_1243, %c0_1244, %c0_1245] : memref<1x16x8x32xf32, #tpu.memory_space<vmem>>, vector<1x1x8x32xf32>
    %1305 = vector.shape_cast %1304 : vector<1x1x8x32xf32> to vector<8x32xf32>
    %1306 = arith.mulf %1303, %1305 : vector<8x32xf32>
    %1307 = arith.addf %1301, %1306 : vector<8x32xf32>
    %c0_1246 = arith.constant 0 : index
    %c15_1247 = arith.constant 15 : index
    %c9_1248 = arith.constant 9 : index
    %c0_1249 = arith.constant 0 : index
    %c0_1250 = arith.constant 0 : index
    %1308 = vector.load %arg4[%c0_1246, %c15_1247, %c9_1248, %c0_1249, %c0_1250] : memref<1x16x16x8x32xf32, #tpu.memory_space<vmem>>, vector<1x1x1x8x32xf32>
    %1309 = vector.shape_cast %1308 : vector<1x1x1x8x32xf32> to vector<8x32xf32>
    %c0_1251 = arith.constant 0 : index
    %c9_1252 = arith.constant 9 : index
    %c0_1253 = arith.constant 0 : index
    %c0_1254 = arith.constant 0 : index
    %1310 = vector.load %arg5[%c0_1251, %c9_1252, %c0_1253, %c0_1254] : memref<1x16x8x32xf32, #tpu.memory_space<vmem>>, vector<1x1x8x32xf32>
    %1311 = vector.shape_cast %1310 : vector<1x1x8x32xf32> to vector<8x32xf32>
    %1312 = arith.mulf %1309, %1311 : vector<8x32xf32>
    %1313 = arith.addf %1307, %1312 : vector<8x32xf32>
    %c0_1255 = arith.constant 0 : index
    %c15_1256 = arith.constant 15 : index
    %c10_1257 = arith.constant 10 : index
    %c0_1258 = arith.constant 0 : index
    %c0_1259 = arith.constant 0 : index
    %1314 = vector.load %arg4[%c0_1255, %c15_1256, %c10_1257, %c0_1258, %c0_1259] : memref<1x16x16x8x32xf32, #tpu.memory_space<vmem>>, vector<1x1x1x8x32xf32>
    %1315 = vector.shape_cast %1314 : vector<1x1x1x8x32xf32> to vector<8x32xf32>
    %c0_1260 = arith.constant 0 : index
    %c10_1261 = arith.constant 10 : index
    %c0_1262 = arith.constant 0 : index
    %c0_1263 = arith.constant 0 : index
    %1316 = vector.load %arg5[%c0_1260, %c10_1261, %c0_1262, %c0_1263] : memref<1x16x8x32xf32, #tpu.memory_space<vmem>>, vector<1x1x8x32xf32>
    %1317 = vector.shape_cast %1316 : vector<1x1x8x32xf32> to vector<8x32xf32>
    %1318 = arith.mulf %1315, %1317 : vector<8x32xf32>
    %1319 = arith.addf %1313, %1318 : vector<8x32xf32>
    %c0_1264 = arith.constant 0 : index
    %c15_1265 = arith.constant 15 : index
    %c11_1266 = arith.constant 11 : index
    %c0_1267 = arith.constant 0 : index
    %c0_1268 = arith.constant 0 : index
    %1320 = vector.load %arg4[%c0_1264, %c15_1265, %c11_1266, %c0_1267, %c0_1268] : memref<1x16x16x8x32xf32, #tpu.memory_space<vmem>>, vector<1x1x1x8x32xf32>
    %1321 = vector.shape_cast %1320 : vector<1x1x1x8x32xf32> to vector<8x32xf32>
    %c0_1269 = arith.constant 0 : index
    %c11_1270 = arith.constant 11 : index
    %c0_1271 = arith.constant 0 : index
    %c0_1272 = arith.constant 0 : index
    %1322 = vector.load %arg5[%c0_1269, %c11_1270, %c0_1271, %c0_1272] : memref<1x16x8x32xf32, #tpu.memory_space<vmem>>, vector<1x1x8x32xf32>
    %1323 = vector.shape_cast %1322 : vector<1x1x8x32xf32> to vector<8x32xf32>
    %1324 = arith.mulf %1321, %1323 : vector<8x32xf32>
    %1325 = arith.addf %1319, %1324 : vector<8x32xf32>
    %c0_1273 = arith.constant 0 : index
    %c15_1274 = arith.constant 15 : index
    %c12_1275 = arith.constant 12 : index
    %c0_1276 = arith.constant 0 : index
    %c0_1277 = arith.constant 0 : index
    %1326 = vector.load %arg4[%c0_1273, %c15_1274, %c12_1275, %c0_1276, %c0_1277] : memref<1x16x16x8x32xf32, #tpu.memory_space<vmem>>, vector<1x1x1x8x32xf32>
    %1327 = vector.shape_cast %1326 : vector<1x1x1x8x32xf32> to vector<8x32xf32>
    %c0_1278 = arith.constant 0 : index
    %c12_1279 = arith.constant 12 : index
    %c0_1280 = arith.constant 0 : index
    %c0_1281 = arith.constant 0 : index
    %1328 = vector.load %arg5[%c0_1278, %c12_1279, %c0_1280, %c0_1281] : memref<1x16x8x32xf32, #tpu.memory_space<vmem>>, vector<1x1x8x32xf32>
    %1329 = vector.shape_cast %1328 : vector<1x1x8x32xf32> to vector<8x32xf32>
    %1330 = arith.mulf %1327, %1329 : vector<8x32xf32>
    %1331 = arith.addf %1325, %1330 : vector<8x32xf32>
    %c0_1282 = arith.constant 0 : index
    %c15_1283 = arith.constant 15 : index
    %c13_1284 = arith.constant 13 : index
    %c0_1285 = arith.constant 0 : index
    %c0_1286 = arith.constant 0 : index
    %1332 = vector.load %arg4[%c0_1282, %c15_1283, %c13_1284, %c0_1285, %c0_1286] : memref<1x16x16x8x32xf32, #tpu.memory_space<vmem>>, vector<1x1x1x8x32xf32>
    %1333 = vector.shape_cast %1332 : vector<1x1x1x8x32xf32> to vector<8x32xf32>
    %c0_1287 = arith.constant 0 : index
    %c13_1288 = arith.constant 13 : index
    %c0_1289 = arith.constant 0 : index
    %c0_1290 = arith.constant 0 : index
    %1334 = vector.load %arg5[%c0_1287, %c13_1288, %c0_1289, %c0_1290] : memref<1x16x8x32xf32, #tpu.memory_space<vmem>>, vector<1x1x8x32xf32>
    %1335 = vector.shape_cast %1334 : vector<1x1x8x32xf32> to vector<8x32xf32>
    %1336 = arith.mulf %1333, %1335 : vector<8x32xf32>
    %1337 = arith.addf %1331, %1336 : vector<8x32xf32>
    %c0_1291 = arith.constant 0 : index
    %c15_1292 = arith.constant 15 : index
    %c14_1293 = arith.constant 14 : index
    %c0_1294 = arith.constant 0 : index
    %c0_1295 = arith.constant 0 : index
    %1338 = vector.load %arg4[%c0_1291, %c15_1292, %c14_1293, %c0_1294, %c0_1295] : memref<1x16x16x8x32xf32, #tpu.memory_space<vmem>>, vector<1x1x1x8x32xf32>
    %1339 = vector.shape_cast %1338 : vector<1x1x1x8x32xf32> to vector<8x32xf32>
    %c0_1296 = arith.constant 0 : index
    %c14_1297 = arith.constant 14 : index
    %c0_1298 = arith.constant 0 : index
    %c0_1299 = arith.constant 0 : index
    %1340 = vector.load %arg5[%c0_1296, %c14_1297, %c0_1298, %c0_1299] : memref<1x16x8x32xf32, #tpu.memory_space<vmem>>, vector<1x1x8x32xf32>
    %1341 = vector.shape_cast %1340 : vector<1x1x8x32xf32> to vector<8x32xf32>
    %1342 = arith.mulf %1339, %1341 : vector<8x32xf32>
    %1343 = arith.addf %1337, %1342 : vector<8x32xf32>
    %1344 = tpu.concatenate %1247, %1343 in 1 : vector<8x32xf32>, vector<8x32xf32> -> vector<8x64xf32>
    %cst_1300 = arith.constant dense<0.000000e+00> : vector<8x128xf32>
    %1345 = tpu.matmul %1344, %4, %cst_1300 {dimension_numbers = #tpu.dot_dimension_numbers<[1], [0], [0], [1], [0, 0, 1, 1], [], []>, precision = #tpu.contract_precision<fp32>} : vector<8x64xf32>, vector<64x128xf32>, vector<8x128xf32> -> vector<8x128xf32>
    %1346 = vector.extract_strided_slice %1345 {offsets = [0, 0], sizes = [8, 96], strides = [1, 1]} : vector<8x128xf32> to vector<8x96xf32>
    %1347 = vector.extract_strided_slice %1345 {offsets = [0, 96], sizes = [8, 1], strides = [1, 1]} : vector<8x128xf32> to vector<8x1xf32>
    %1348 = arith.addf %1254, %1347 : vector<8x1xf32>
    %c0_1301 = arith.constant 0 : index
    %c0_1302 = arith.constant 0 : index
    %c15_1303 = arith.constant 15 : index
    %1349 = vector.load %arg6[%c0_1301, %c0_1302, %c15_1303] : memref<1x8x16xf32, #tpu.memory_space<vmem>>, vector<1x8x1xf32>
    %1350 = vector.shape_cast %1349 : vector<1x8x1xf32> to vector<8x1xf32>
    %1351 = vector.shape_cast %1348 : vector<8x1xf32> to vector<1x8x1xf32>
    tpu.vector_store %arg6[%c0_1301, %c0_1302, %c15_1303], %1351 {strides = array<i32>} : memref<1x8x16xf32, #tpu.memory_space<vmem>>, vector<1x8x1xf32>,
    %1352 = vector.extract_strided_slice %1253 {offsets = [0, 0], sizes = [8, 32], strides = [1, 1]} : vector<8x96xf32> to vector<8x32xf32>
    %1353 = vector.extract_strided_slice %1346 {offsets = [0, 0], sizes = [8, 32], strides = [1, 1]} : vector<8x96xf32> to vector<8x32xf32>
    %1354 = arith.addf %1352, %1353 : vector<8x32xf32>
    %1355 = arith.negf %1354 : vector<8x32xf32>
    %1356 = math.exp %1355 : vector<8x32xf32>
    %cst_1304 = arith.constant 1.000000e+00 : f32
    %1357 = vector.broadcast %cst_1304 : f32 to vector<8x32xf32>
    %1358 = arith.addf %1357, %1356 : vector<8x32xf32>
    %1359 = arith.divf %1357, %1358 : vector<8x32xf32>
    %1360 = vector.extract_strided_slice %1253 {offsets = [0, 32], sizes = [8, 32], strides = [1, 1]} : vector<8x96xf32> to vector<8x32xf32>
    %1361 = vector.extract_strided_slice %1346 {offsets = [0, 32], sizes = [8, 32], strides = [1, 1]} : vector<8x96xf32> to vector<8x32xf32>
    %1362 = arith.addf %1360, %1361 : vector<8x32xf32>
    %1363 = arith.negf %1362 : vector<8x32xf32>
    %1364 = math.exp %1363 : vector<8x32xf32>
    %cst_1305 = arith.constant 1.000000e+00 : f32
    %1365 = vector.broadcast %cst_1305 : f32 to vector<8x32xf32>
    %1366 = arith.addf %1365, %1364 : vector<8x32xf32>
    %1367 = arith.divf %1365, %1366 : vector<8x32xf32>
    %1368 = vector.extract_strided_slice %1253 {offsets = [0, 64], sizes = [8, 32], strides = [1, 1]} : vector<8x96xf32> to vector<8x32xf32>
    %1369 = vector.extract_strided_slice %1346 {offsets = [0, 64], sizes = [8, 32], strides = [1, 1]} : vector<8x96xf32> to vector<8x32xf32>
    %1370 = arith.addf %1369, %3 : vector<8x32xf32>
    %1371 = arith.mulf %1359, %1370 : vector<8x32xf32>
    %1372 = arith.addf %1368, %1371 : vector<8x32xf32>
    %1373 = math.tanh %1372 : vector<8x32xf32>
    %cst_1306 = arith.constant 1.000000e+00 : f32
    %1374 = vector.broadcast %cst_1306 : f32 to vector<8x32xf32>
    %1375 = arith.subf %1374, %1367 : vector<8x32xf32>
    %1376 = arith.mulf %1375, %1373 : vector<8x32xf32>
    %1377 = arith.mulf %1367, %1247 : vector<8x32xf32>
    %1378 = arith.addf %1376, %1377 : vector<8x32xf32>
    %c0_1307 = arith.constant 0 : index
    %c15_1308 = arith.constant 15 : index
    %c0_1309 = arith.constant 0 : index
    %c0_1310 = arith.constant 0 : index
    %1379 = vector.load %arg5[%c0_1307, %c15_1308, %c0_1309, %c0_1310] : memref<1x16x8x32xf32, #tpu.memory_space<vmem>>, vector<1x1x8x32xf32>
    %1380 = vector.shape_cast %1379 : vector<1x1x8x32xf32> to vector<8x32xf32>
    %1381 = vector.shape_cast %1378 : vector<8x32xf32> to vector<1x1x8x32xf32>
    tpu.vector_store %arg5[%c0_1307, %c15_1308, %c0_1309, %c0_1310], %1381 {strides = array<i32>} : memref<1x16x8x32xf32, #tpu.memory_space<vmem>>, vector<1x1x8x32xf32>,
    return
  }
  func.func @transform_0(%arg0: i32) -> (i32, i32) {
    %c0_i32 = arith.constant 0 : i32
    %c0_i32_0 = arith.constant 0 : i32
    %c0_i32_1 = arith.constant 0 : i32
    return %c0_i32, %c0_i32_0 : i32, i32
  }
  func.func @transform_1(%arg0: i32) -> (i32, i32, i32) {
    %c0_i32 = arith.constant 0 : i32
    %c0_i32_0 = arith.constant 0 : i32
    %c0_i32_1 = arith.constant 0 : i32
    %c0_i32_2 = arith.constant 0 : i32
    return %c0_i32, %c0_i32_0, %c0_i32_1 : i32, i32, i32
  }
  func.func @transform_2(%arg0: i32) -> (i32, i32, i32, i32) {
    %c0_i32 = arith.constant 0 : i32
    %c0_i32_0 = arith.constant 0 : i32
    %c0_i32_1 = arith.constant 0 : i32
    %c0_i32_2 = arith.constant 0 : i32
    return %arg0, %c0_i32, %c0_i32_0, %c0_i32_1 : i32, i32, i32, i32
  }
  func.func @transform_3(%arg0: i32) -> (i32, i32, i32, i32, i32) {
    %c0_i32 = arith.constant 0 : i32
    %c0_i32_0 = arith.constant 0 : i32
    %c0_i32_1 = arith.constant 0 : i32
    %c0_i32_2 = arith.constant 0 : i32
    %c0_i32_3 = arith.constant 0 : i32
    return %arg0, %c0_i32, %c0_i32_0, %c0_i32_1, %c0_i32_2 : i32, i32, i32, i32, i32
  }
  func.func @transform_4(%arg0: i32) -> (i32, i32, i32, i32) {
    %c0_i32 = arith.constant 0 : i32
    %c0_i32_0 = arith.constant 0 : i32
    %c0_i32_1 = arith.constant 0 : i32
    %c0_i32_2 = arith.constant 0 : i32
    return %arg0, %c0_i32, %c0_i32_0, %c0_i32_1 : i32, i32, i32, i32
  }
  func.func @transform_5(%arg0: i32) -> (i32, i32, i32) {
    %c0_i32 = arith.constant 0 : i32
    %c0_i32_0 = arith.constant 0 : i32
    %c0_i32_1 = arith.constant 0 : i32
    return %arg0, %c0_i32, %c0_i32_0 : i32, i32, i32
  }
}

</mosaic_0001>

<bundles_post_ra>
// kernel: lstma_forward_sequence.1
= control target key start
LH: loop header
LB: loop body
LE: loop exit
PB: predicated region body
PF: predicated region fallthrough
CT: control target
= control target key end

     0   :  { %11 = vsyncpa [#allocation3], 0  ;;  %s16471_s0 = inlined_call_operand.vmem [shape: f32[64,128], index: 0, kind: input, shape index: {}]   ;;  %s16472_s1 = inlined_call_operand.vmem [shape: f32[2,8,32], index: 1, kind: input, shape index: {}]   ;;  %s16473_s2 = inlined_call_operand.vmem [shape: f32[2,16,8,128], index: 2, kind: input, shape index: {}]   ;;  %s16474_s3 = inlined_call_operand.vmem [shape: f32[2,16,16,8,32], index: 3, kind: input, shape index: {}]   ;;  %s16475_s4 = inlined_call_operand.vmem [shape: f32[2,16,8,32], index: 4, kind: output, shape index: {0}]   ;;  %s16476_s5 = inlined_call_operand.hbm [shape: f32[2,8,16], index: 5, kind: output, shape index: {1}]  }
   0x1   :  { %13 = vsyncpa [#allocation3 + $0x1], 0  ;;  %s13596_s18 = smov 0   ;;  %s13598_s19 = smov 0  }
   0x2   :  { %s13600_s20 = smov 0   ;;  %s13602_s21 = smov 0  }
   0x3 LB: > { %s13617_s22 = sadd.s32 4294967295, %s13543_s21   ;;  %s10350_s23 = sadd.s32 4294967294, %s13543_s21   ;;  %s13543_s21 = sphi %s13602_s21, %s16617_s21   ;;  %s13539_s20 = sphi %s13600_s20, %s16616_s20   ;;  %s13535_s19 = sphi %s13598_s19, %s16615_s19   ;;  %s13531_s18 = sphi %s13596_s18, %s16614_s18  }
   0x4   : > { %s13621_s24 = sadd.s32 1, %s13543_s21   ;;  %s146_s25 = sadd.s32 1, %s13539_s20 }
   0x5   : > { %s143_s26 = ssub.s32 %s13543_s21, %s13621_s24  ;;  %p156_p0 = scmp.ne.s32.totalorder %s13539_s20, %s13535_s19 }
   0x6   : > { %p144_p1 = scmp.eq.s32.totalorder %s143_s26, 0  ;;  %p157_p2 = scmp.eq.s32.totalorder %s13617_s22, 1 }
   0x7   : > { %p162_p3 = scmp.ne.s32.totalorder %s13535_s19, %s13531_s18  ;;  %p163_p4 = scmp.eq.s32.totalorder %s10350_s23, 1 }
   0x8   : > { %s13632_s27 = scalar_select %p144_p1, %s13539_s20, %s146_s25  }
   0x9   : > { %p13634_p5 = por %p157_p2, %p156_p0  ;;  %p13638_p6 = por %p163_p4, %p162_p3 }
   0xa   : > { %p10353_p7 = scmp.ge.s32.totalorder %s13543_s21, 1  ;;  %p203_p8 = scmp.lt.s32.totalorder %s13543_s21, 3 }
   0xc   : > { %p204_p9 = pnand %p10353_p7, %p203_p8 }
   0xe   : > { %207 = sbr.rel (%p204_p9) target bundleno = 13671 (0x3567), region = 36 }
  0x13   : > { %v13647_v0 = vld [vmem:[%s16472_s1] sm:$0xff]  ;;  %v266_v1 = vld [vmem:[%s16471_s0 + $0x38] sm:$0xff]  ;;  %v265_v2 = vld [vmem:[%s16471_s0 + $0x30] sm:$0xff]  ;;  %s13545_s11 = smov 32   ;;  %v16477_v3 = vmov 0.0   ;;  %vm13547_vm0 = vmmov 0  }
  0x14   : > { %269 = vrot.lane.b32.xlu0 %v13647_v0, %s13545_s11  ;;  %11523 = vmatprep.subr.mxu1 %v16477_v3  ;;  %v13658_v4 = vand.u32 4294901760, %v266_v1  ;;  %v13660_v5 = vand.u32 4294901760, %v265_v2  ;;  %v264_v6 = vld [vmem:[%s16471_s0 + $0x28] sm:$0xff]  ;;  %v263_v7 = vld [vmem:[%s16471_s0 + $0x20] sm:$0xff]  ;;  %v262_v8 = vld [vmem:[%s16471_s0 + $0x18] sm:$0xff]  ;;  %s13548_s10 = smov 64  }
  0x15   : > { %v13671_v9 = vand.u32 4294901760, %v264_v6  ;;  %v13673_v10 = vand.u32 4294901760, %v263_v7  ;;  %11504 = vmatprep.subr.mxu0 %v16477_v3  ;;  %v13676_v11 = vand.u32 4294901760, %v262_v8  ;;  %v261_v12 = vld [vmem:[%s16471_s0 + $0x10] sm:$0xff]  ;;  %v260_v13 = vld [vmem:[%s16471_s0 + $0x8] sm:$0xff]  ;;  %v259_v14 = vld [vmem:[%s16471_s0] sm:$0xff]  ;;  %11539 = vmatprep.mubr.msk.f32.mxu1 %vm13547_vm0, %v16477_v3 }
  0x16   : > { %v13688_v15 = vsub.f32 %v266_v1, %v13658_v4  ;;  %v13691_v16 = vsub.f32 %v265_v2, %v13660_v5  ;;  %11505 = vmatpush3.msra.mxu0 %v13658_v4  ;;  %v13694_v17 = vand.u32 4294901760, %v261_v12  ;;  %v13696_v18 = vand.u32 4294901760, %v260_v13  ;;  %11520 = vmatprep.mubr.msk.f32.mxu0 %vm13547_vm0, %v16477_v3  ;;  %v10361_v50 = vld [vmem:[%s16472_s1 + $0x8] sm:$0xff]  ;;  %p241_p10 = scmp.lt.s32.totalorder %s13617_s22, 1  ;;  %s13549_s17 = smov 96  }
  0x17   : > { %v13699_v19 = vsub.f32 %v264_v6, %v13671_v9  ;;  %v13702_v20 = vsub.f32 %v263_v7, %v13673_v10  ;;  %v13705_v21 = vsub.f32 %v262_v8, %v13676_v11  ;;  %11506 = vmatprep.subr.mxu0 %v16477_v3  ;;  %v13708_v22 = vand.u32 4294901760, %v259_v14  ;;  %s13550_s9 = smov 34   ;;  %s13553_s14 = smov 40  }
  0x18   : > { %v13711_v23 = vand.u32 4294901760, %v13688_v15  ;;  %v13714_v24 = vand.u32 4294901760, %v13691_v16  ;;  %11507 = vmatpush3.msra.mxu0 %v13660_v5  ;;  %v13718_v25 = vsub.f32 %v261_v12, %v13694_v17  ;;  %v13736_v31 = vsub.f32 %v260_v13, %v13696_v18  ;;  %829 = vrot.lane.b32.xlu0 %v10361_v50, %s13548_s10  ;;  %s13939_s12 = scalar_select %p241_p10, %s13617_s22, 1 }
  0x19   : > { %v13721_v26 = vand.u32 4294901760, %v13699_v19  ;;  %v13724_v27 = vand.u32 4294901760, %v13702_v20  ;;  %11508 = vmatprep.subr.mxu0 %v16477_v3  ;;  %v13732_v30 = vand.u32 4294901760, %v13705_v21  ;;  %v13742_v33 = vsub.f32 %v259_v14, %v13708_v22  ;;  %s13554_s15 = smov 42   ;;  %s13558_s6 = smov 35  }
  0x1a   : > { %v381_v28 = vsub.f32 %v13688_v15, %v13711_v23  ;;  %v388_v29 = vsub.f32 %v13691_v16, %v13714_v24  ;;  %11509 = vmatpush3.msra.mxu0 %v13671_v9  ;;  %v13751_v37 = vand.u32 4294901760, %v13718_v25  ;;  %v13761_v40 = vand.u32 4294901760, %v13736_v31  ;;  %s10637_s13 = sshll.u32 %s13939_s12, 7  ;;  %s10638_s30 = sshll.u32 %s13939_s12, 11 }
  0x1b   : > { %v395_v32 = vsub.f32 %v13699_v19, %v13721_v26  ;;  %11510 = vmatprep.subr.mxu0 %v16477_v3  ;;  %v402_v36 = vsub.f32 %v13702_v20, %v13724_v27  ;;  %v409_v39 = vsub.f32 %v13705_v21, %v13732_v30  ;;  %v13773_v43 = vand.u32 4294901760, %v13742_v33  ;;  %s13945_s16 = scalar_lea.vmem %s16473_s2, %s10637_s13  ;;  %s13961_s26 = scalar_lea.vmem %s16475_s4, %s10637_s13 }
  0x1c   : > { %v13744_v34 = vand.u32 4294901760, %v381_v28  ;;  %v13746_v35 = vand.u32 4294901760, %v388_v29  ;;  %11511 = vmatpush3.msra.mxu0 %v13673_v10  ;;  %16522 = vst [vmem:[#allocation8_spill] sm:$0xff] %v13761_v40  ;;  %v416_v42 = vsub.f32 %v13718_v25, %v13751_v37  ;;  %v423_v45 = vsub.f32 %v13736_v31, %v13761_v40  ;;  %s13969_s8 = scalar_lea.vmem %s16474_s3, %s10638_s30  ;;  %s13551_s12 = smov 36  }
  0x1d   : > { %11512 = vmatprep.subr.mxu0 %v16477_v3  ;;  %v13756_v38 = vand.u32 4294901760, %v395_v32  ;;  %v13768_v41 = vand.u32 4294901760, %v402_v36  ;;  %16524 = vst [vmem:[#allocation10_spill] sm:$0xff] %v13773_v43  ;;  %v13779_v44 = vand.u32 4294901760, %v409_v39  ;;  %v430_v47 = vsub.f32 %v13742_v33, %v13773_v43  ;;  %s13552_s13 = smov 38   ;;  %s13557_s30 = smov 33  }
  0x1e   : > { %16519 = vst [vmem:[#allocation5_spill] sm:$0xff] %v13744_v34  ;;  %16520 = vst [vmem:[#allocation6_spill] sm:$0xff] %v13746_v35  ;;  %11524 = vmatpush3.msra.mxu1 %v13744_v34  ;;  %11513 = vmatpush3.msra.mxu0 %v13676_v11  ;;  %v13787_v46 = vand.u32 4294901760, %v416_v42  ;;  %v13795_v48 = vand.u32 4294901760, %v423_v45  ;;  %vm272_vm1 = vcmask 261120   ;;  %vm274_vm2 = vcmask 523264  }
  0x1f   : > { %16521 = vst [vmem:[#allocation7_spill] sm:$0xff] %v13756_v38  ;;  %11525 = vmatprep.subr.mxu1 %v16477_v3  ;;  %16523 = vst [vmem:[#allocation9_spill] sm:$0xff] %v13768_v41  ;;  %11514 = vmatprep.subr.mxu0 %v16477_v3  ;;  %v13802_v49 = vand.u32 4294901760, %v430_v47  ;;  %v267_v42 = vld [vmem:[%s13945_s16] sm:$0xff]  ;;  %vm820_vm3 = vcmask 7168   ;;  %s13559_s7 = smov 37  }
  0x20   : > { %11526 = vmatpush3.msra.mxu1 %v13746_v35  ;;  %11515 = vmatpush3.msra.mxu0 %v13694_v17  ;;  %16525 = vst [vmem:[#allocation11_spill] sm:$0xff] %v13779_v44  ;;  %16526 = vst [vmem:[#allocation12_spill] sm:$0xff] %v13787_v46  ;;  %vm1413_vm4 = vcmask 15368   ;;  %vm2008_vm5 = vcmask 23568   ;;  %vm2608_vm6 = vcmask 31768   ;;  %vm3213_vm7 = vcmask 39968  }
  0x21   : > { %11527 = vmatprep.subr.mxu1 %v16477_v3  ;;  %11516 = vmatprep.subr.mxu0 %v16477_v3  ;;  %16527 = vst [vmem:[#allocation13_spill] sm:$0xff] %v13795_v48  ;;  %16528 = vst [vmem:[#allocation14_spill] sm:$0xff] %v13802_v49  ;;  %vm3823_vm8 = vcmask 48168   ;;  %vm4438_vm9 = vcmask 56368   ;;  %vm5058_vm10 = vcmask 64568   ;;  %vm5683_vm11 = vcmask 72768  }
  0x22   : > { %11528 = vmatpush3.msra.mxu1 %v13756_v38  ;;  %11517 = vmatpush3.msra.mxu0 %v13696_v18  ;;  %vm6313_vm12 = vcmask 80968   ;;  %vm6948_vm13 = vcmask 89168   ;;  %vm7588_vm14 = vcmask 97368   ;;  %vm8233_vm15 = vcmask 105568  }
  0x23   : > { %11529 = vmatprep.subr.mxu1 %v16477_v3  ;;  %11518 = vmatprep.subr.mxu0 %v16477_v3 }
  0x24   : > { %11530 = vmatpush3.msra.mxu1 %v13768_v41  ;;  %11519 = vmatpush3.msra.mxu0 %v13708_v22 }
  0x25   : > { %11531 = vmatprep.subr.mxu1 %v16477_v3  ;;  %11542 = vmatprep.subr.mxu0 %v16477_v3 }
  0x26   : > { %11532 = vmatpush3.msra.mxu1 %v13779_v44 }
  0x27   : > { %11533 = vmatprep.subr.mxu1 %v16477_v3 }
  0x28   : > { %11534 = vmatpush3.msra.mxu1 %v13787_v46 }
  0x29   : > { %11535 = vmatprep.subr.mxu1 %v16477_v3 }
  0x2a   : > { %11536 = vmatpush3.msra.mxu1 %v13795_v48 }
  0x2b   : > { %11537 = vmatprep.subr.mxu1 %v16477_v3 }
  0x2c   : > { %11538 = vmatpush3.msra.mxu1 %v13802_v49 }
  0x2d   : > { %11561 = vmatprep.subr.mxu1 %v16477_v3 }
  0x86   : > { %v13813_v51 = vpop.permute.xlu0 %269 }
  0x87   : > { %v273_v52 = vsel %vm272_vm1, %v13647_v0, %v13813_v51 }
  0x88   : > { %v276_v53 = vsel %vm274_vm2, %v273_v52, 0 }
  0x89   : > { %v13819_v54 = vand.u32 4294901760, %v276_v53 }
  0x8a   : > { %v13933_v32 = vpop.permute.xlu0 %829 }
  0x8b   : > { %v352_v55 = vsub.f32 %v276_v53, %v13819_v54  ;;  %11540 = vmatmul.mubr.f32.vlgmr.msra.gmra.mxu1 %v13819_v54  ;;  %16529 = vst [vmem:[#allocation15_spill] sm:$0xff] %v13933_v32 }
  0x8c   : > { %11562 = vmatpush3.msra.mxu1 %v13658_v4  ;;  %11577 = vmatprep.mubr.msk.f32.mxu1 %vm13547_vm0, %v16477_v3 }
  0x8d   : > { %11563 = vmatprep.subr.mxu1 %v16477_v3  ;;  %v353_v56 = vand.u32 4294901760, %v352_v55 }
  0x8e   : > { %11564 = vmatpush3.msra.mxu1 %v13660_v5 }
  0x8f   : > { %11565 = vmatprep.subr.mxu1 %v16477_v3  ;;  %v354_v57 = vsub.f32 %v352_v55, %v353_v56 }
  0x90   : > { %11566 = vmatpush3.msra.mxu1 %v13671_v9 }
  0x91   : > { %11567 = vmatprep.subr.mxu1 %v16477_v3  ;;  %v355_v58 = vand.u32 4294901760, %v354_v57 }
  0x92   : > { %11568 = vmatpush3.msra.mxu1 %v13673_v10 }
  0x93   : > { %11569 = vmatprep.subr.mxu1 %v16477_v3  ;;  %11521 = vmatmul.mubr.f32.vlgmr.msra.gmra.mxu0 %v355_v58 }
  0x94   : > { %11543 = vmatpush3.msra.mxu0 %v13688_v15  ;;  %11570 = vmatpush3.msra.mxu1 %v13676_v11 }
  0x95   : > { %11544 = vmatprep.subr.mxu0 %v16477_v3  ;;  %11571 = vmatprep.subr.mxu1 %v16477_v3 }
  0x96   : > { %11545 = vmatpush3.msra.mxu0 %v13691_v16  ;;  %11572 = vmatpush3.msra.mxu1 %v13694_v17 }
  0x97   : > { %11546 = vmatprep.subr.mxu0 %v16477_v3  ;;  %11573 = vmatprep.subr.mxu1 %v16477_v3 }
  0x98   : > { %11547 = vmatpush3.msra.mxu0 %v13699_v19  ;;  %11574 = vmatpush3.msra.mxu1 %v13696_v18 }
  0x99   : > { %11548 = vmatprep.subr.mxu0 %v16477_v3  ;;  %11575 = vmatprep.subr.mxu1 %v16477_v3 }
  0x9a   : > { %11549 = vmatpush3.msra.mxu0 %v13702_v20  ;;  %11576 = vmatpush3.msra.mxu1 %v13708_v22 }
  0x9b   : > { %11550 = vmatprep.subr.mxu0 %v16477_v3  ;;  %11578 = vmatmul.mubr.f32.vlgmr.msra.gmra.mxu1 %v353_v56 }
  0x9c   : > { %11599 = vmatprep.subr.mxu1 %v16477_v3  ;;  %11551 = vmatpush3.msra.mxu0 %v13705_v21 }
  0x9d   : > { %11600 = vmatpush3.msra.mxu1 %v13658_v4  ;;  %11552 = vmatprep.subr.mxu0 %v16477_v3 }
  0x9e   : > { %11601 = vmatprep.subr.mxu1 %v16477_v3  ;;  %11553 = vmatpush3.msra.mxu0 %v13718_v25 }
  0x9f   : > { %11602 = vmatpush3.msra.mxu1 %v13660_v5  ;;  %11554 = vmatprep.subr.mxu0 %v16477_v3 }
  0xa0   : > { %11603 = vmatprep.subr.mxu1 %v16477_v3  ;;  %11555 = vmatpush3.msra.mxu0 %v13736_v31 }
  0xa1   : > { %11604 = vmatpush3.msra.mxu1 %v13671_v9  ;;  %11556 = vmatprep.subr.mxu0 %v16477_v3 }
  0xa2   : > { %11605 = vmatprep.subr.mxu1 %v16477_v3  ;;  %11557 = vmatpush3.msra.mxu0 %v13742_v33 }
  0xa3   : > { %11558 = vmatprep.mubr.msk.f32.mxu0 %vm13547_vm0, %v16477_v3  ;;  %11606 = vmatpush3.msra.mxu1 %v13673_v10 }
  0xa4   : > { %11559 = vmatmul.mubr.f32.vlgmr.msra.gmra.mxu0 %v352_v55  ;;  %11580 = vmatprep.subr.mxu0 %v16477_v3 }
  0xa5   : > { %11607 = vmatprep.subr.mxu1 %v16477_v3  ;;  %11581 = vmatpush3.msra.mxu0 %v13711_v23 }
  0xa6   : > { %11608 = vmatpush3.msra.mxu1 %v13676_v11  ;;  %11582 = vmatprep.subr.mxu0 %v16477_v3 }
  0xa7   : > { %11609 = vmatprep.subr.mxu1 %v16477_v3  ;;  %11583 = vmatpush3.msra.mxu0 %v13714_v24 }
  0xa8   : > { %11610 = vmatpush3.msra.mxu1 %v13694_v17  ;;  %11584 = vmatprep.subr.mxu0 %v16477_v3 }
  0xa9   : > { %11611 = vmatprep.subr.mxu1 %v16477_v3  ;;  %11585 = vmatpush3.msra.mxu0 %v13721_v26 }
  0xaa   : > { %11612 = vmatpush3.msra.mxu1 %v13696_v18  ;;  %11586 = vmatprep.subr.mxu0 %v16477_v3 }
  0xab   : > { %11613 = vmatprep.subr.mxu1 %v16477_v3  ;;  %11587 = vmatpush3.msra.mxu0 %v13724_v27 }
  0xac   : > { %11614 = vmatpush3.msra.mxu1 %v13708_v22  ;;  %11615 = vmatprep.mubr.msk.f32.mxu1 %vm13547_vm0, %v16477_v3 }
  0xad   : > { %11588 = vmatprep.subr.mxu0 %v16477_v3  ;;  %11616 = vmatmul.mubr.f32.vlgmr.msra.gmra.mxu1 %v13819_v54 }
  0xae   : > { %11589 = vmatpush3.msra.mxu0 %v13732_v30  ;;  %11596 = vmatprep.mubr.msk.f32.mxu0 %vm13547_vm0, %v16477_v3 }
  0xaf   : > { %11590 = vmatprep.subr.mxu0 %v16477_v3  ;;  %11637 = vmatprep.subr.mxu1 %v16477_v3 }
  0xb0   : > { %11591 = vmatpush3.msra.mxu0 %v13751_v37  ;;  %11638 = vmatpush3.msra.mxu1 %v13744_v34 }
  0xb1   : > { %11592 = vmatprep.subr.mxu0 %v16477_v3  ;;  %11639 = vmatprep.subr.mxu1 %v16477_v3 }
  0xb2   : > { %11593 = vmatpush3.msra.mxu0 %v13761_v40  ;;  %11640 = vmatpush3.msra.mxu1 %v13746_v35 }
  0xb3   : > { %11594 = vmatprep.subr.mxu0 %v16477_v3  ;;  %11641 = vmatprep.subr.mxu1 %v16477_v3 }
  0xb4   : > { %11595 = vmatpush3.msra.mxu0 %v13773_v43  ;;  %11642 = vmatpush3.msra.mxu1 %v13756_v38 }
  0xb5   : > { %11597 = vmatmul.mubr.f32.vlgmr.msra.gmra.mxu0 %v13819_v54  ;;  %11643 = vmatprep.subr.mxu1 %v16477_v3 }
  0xb6   : > { %11644 = vmatpush3.msra.mxu1 %v13768_v41  ;;  %11618 = vmatprep.subr.mxu0 %v16477_v3 }
  0xb7   : > { %11645 = vmatprep.subr.mxu1 %v16477_v3  ;;  %11619 = vmatpush3.msra.mxu0 %v13658_v4 }
  0xb8   : > { %11646 = vmatpush3.msra.mxu1 %v13779_v44  ;;  %11620 = vmatprep.subr.mxu0 %v16477_v3 }
  0xb9   : > { %11647 = vmatprep.subr.mxu1 %v16477_v3  ;;  %11621 = vmatpush3.msra.mxu0 %v13660_v5 }
  0xba   : > { %11648 = vmatpush3.msra.mxu1 %v13787_v46  ;;  %11622 = vmatprep.subr.mxu0 %v16477_v3 }
  0xbb   : > { %11649 = vmatprep.subr.mxu1 %v16477_v3  ;;  %11623 = vmatpush3.msra.mxu0 %v13671_v9 }
  0xbc   : > { %11650 = vmatpush3.msra.mxu1 %v13795_v48  ;;  %11624 = vmatprep.subr.mxu0 %v16477_v3 }
  0xbd   : > { %11651 = vmatprep.subr.mxu1 %v16477_v3  ;;  %11625 = vmatpush3.msra.mxu0 %v13673_v10 }
  0xbe   : > { %11652 = vmatpush3.msra.mxu1 %v13802_v49  ;;  %11626 = vmatprep.subr.mxu0 %v16477_v3 }
  0xbf   : > { %11653 = vmatprep.mubr.msk.f32.mxu1 %vm13547_vm0, %v16477_v3  ;;  %11675 = vmatprep.subr.mxu1 %v16477_v3 }
  0xc0   : > { %11627 = vmatpush3.msra.mxu0 %v13676_v11  ;;  %11634 = vmatprep.mubr.msk.f32.mxu0 %vm13547_vm0, %v16477_v3 }
  0xc1   : > { %11628 = vmatprep.subr.mxu0 %v16477_v3 }
  0xc2   : > { %11629 = vmatpush3.msra.mxu0 %v13694_v17 }
  0xc3   : > { %11630 = vmatprep.subr.mxu0 %v16477_v3 }
  0xc4   : > { %11631 = vmatpush3.msra.mxu0 %v13696_v18 }
  0xc5   : > { %11632 = vmatprep.subr.mxu0 %v16477_v3 }
  0xc6   : > { %11633 = vmatpush3.msra.mxu0 %v13708_v22 }
  0xc7   : > { %11656 = vmatprep.subr.mxu0 %v16477_v3 }
 0x14b   : > { %v468_v59 = vpop.f32.mrf.mxu1 }
 0x14d   : > { %v11541_v60 = vpop.f32.mrf.mxu1 }
 0x153   : > { %v357_v61 = vpop.f32.mrf.mxu0 }
 0x154   : > { %v469_v7 = vadd.f32 %v468_v59, %v357_v61 }
 0x155   : > { %v11522_v62 = vpop.f32.mrf.mxu0 }
 0x15b   : > { %v637_v63 = vpop.f32.mrf.mxu1 }
 0x15d   : > { %v11579_v0 = vpop.f32.mrf.mxu1 }
 0x164   : > { %v556_v1 = vpop.f32.mrf.mxu0 }
 0x165   : > { %v557_v12 = vadd.f32 %v556_v1, %v469_v7 }
 0x166   : > { %v11560_v2 = vpop.f32.mrf.mxu0 }
 0x167   : > { %v638_v13 = vadd.f32 %v637_v63, %v557_v12 }
 0x16d   : > { %v811_v6 = vpop.f32.mrf.mxu1 }
 0x16f   : > { %v11617_v8 = vpop.f32.mrf.mxu1 }
 0x175   : > { %v732_v14 = vpop.f32.mrf.mxu0 }
 0x176   : > { %v733_v28 = vadd.f32 %v732_v14, %v638_v13 }
 0x177   : > { %v11598_v29 = vpop.f32.mrf.mxu0 }
 0x178   : > { %v812_v36 = vadd.f32 %v811_v6, %v733_v28 }
 0x17a   : > { %v832_v39 = vadd.f32 %v13933_v32, %v812_v36  ;;  %v13948_v45 = vadd.f32 %v812_v36, %v267_v42 }
 0x17c   : > { %834 = vrot.lane.b32.xlu1 %v832_v39, %s13548_s10  ;;  %16530 = vst [vmem:[#allocation16_spill] sm:$0xff] %v13948_v45  ;;  %v10362_v47 = vmul.f32 -1.442695, %v13948_v45 }
 0x17e   : > { %13387 = vpow2.f32 %v10362_v47 }
 0x18b   : > { %v13388_v50 = vpop.eup %13387 }
 0x18c   : > { %v825_v52 = vadd.f32 1.0, %v13388_v50 }
 0x18e   : > { %13389 = vrcp.f32 %v825_v52 }
 0x19b   : > { %v13390_v53 = vpop.eup %13389 }
 0x19c   : > { %v844_v59 = vsub.f32 1.0, %v13390_v53  ;;  %v850_v61 = vmul.f32 %v13390_v53, %v13813_v51  ;;  %v10364_v51 = vld [vmem:[%s13969_s8 + $0x80] sm:$0xff] }
 0x1ee   : > { %v835_v54 = vpop.permute.xlu1 %834 }
 0x1ef   : > { %v837_v55 = vmul.f32 %v13390_v53, %v835_v54 }
 0x1f1   : > { %839 = vrot.lane.b32.xlu1 %v837_v55, %s13548_s10 }
 0x263   : > { %v840_v56 = vpop.permute.xlu1 %839 }
 0x264   : > { %v842_v57 = vadd.f32 %v840_v56, %v267_v42 }
 0x266   : > { %13391 = vtanh.f32 %v842_v57 }
 0x273   : > { %v13392_v58 = vpop.eup %13391 }
 0x274   : > { %846 = vrot.lane.b32.xlu0 %v13392_v58, %s13549_s17 }
 0x2e6   : > { %v847_v60 = vpop.permute.xlu0 %846 }
 0x2e7   : > { %v849_v62 = vmul.f32 %v847_v60, %v844_v59 }
 0x2e9   : > { %v13954_v63 = vadd.f32 %v850_v61, %v849_v62 }
 0x2eb   : > { %853 = vrot.lane.b32.xlu1 %v13954_v63, %s13549_s17 }
 0x35d   : > { %v854_v0 = vpop.permute.xlu1 %853 }
 0x35e   : > { %856 = vst.msk [vmem:[%s13961_s26] sm:$0xff] %vm272_vm1, %v854_v0 }
 0x365   : > { %v13973_v1 = vld [vmem:[%s13961_s26] sm:$0xff] }
 0x366   : > { %v862_v2 = vmul.f32 %v10364_v51, %v13973_v1 }
 0x368   : > { %864 = vrot.lane.b32.xlu0 %v862_v2, %s13545_s11  ;;  %v10363_v2 = vld [vmem:[%s13945_s16 + $0x8] sm:$0xff] }
 0x3da   : > { %v865_v6 = vpop.permute.xlu0 %864 }
 0x3db   : > { %v867_v7 = vsel %vm272_vm1, %v854_v0, %v865_v6 }
 0x3dc   : > { %v869_v8 = vsel %vm274_vm2, %v867_v7, 0 }
 0x3dd   : > { %v13979_v12 = vand.u32 4294901760, %v869_v8 }
 0x3df   : > { %v945_v13 = vsub.f32 %v869_v8, %v13979_v12  ;;  %11654 = vmatmul.mubr.f32.vlgmr.msra.gmra.mxu1 %v13979_v12 }
 0x3e0   : > { %11676 = vmatpush3.msra.mxu1 %v13658_v4  ;;  %11691 = vmatprep.mubr.msk.f32.mxu1 %vm13547_vm0, %v16477_v3 }
 0x3e1   : > { %v946_v14 = vand.u32 4294901760, %v945_v13  ;;  %11677 = vmatprep.subr.mxu1 %v16477_v3 }
 0x3e2   : > { %11678 = vmatpush3.msra.mxu1 %v13660_v5 }
 0x3e3   : > { %11679 = vmatprep.subr.mxu1 %v16477_v3  ;;  %v947_v28 = vsub.f32 %v945_v13, %v946_v14 }
 0x3e4   : > { %11680 = vmatpush3.msra.mxu1 %v13671_v9 }
 0x3e5   : > { %11681 = vmatprep.subr.mxu1 %v16477_v3  ;;  %v948_v29 = vand.u32 4294901760, %v947_v28 }
 0x3e6   : > { %11682 = vmatpush3.msra.mxu1 %v13673_v10 }
 0x3e7   : > { %11683 = vmatprep.subr.mxu1 %v16477_v3  ;;  %11635 = vmatmul.mubr.f32.vlgmr.msra.gmra.mxu0 %v948_v29 }
 0x3e8   : > { %11657 = vmatpush3.msra.mxu0 %v13688_v15  ;;  %11684 = vmatpush3.msra.mxu1 %v13676_v11 }
 0x3e9   : > { %11658 = vmatprep.subr.mxu0 %v16477_v3  ;;  %11685 = vmatprep.subr.mxu1 %v16477_v3 }
 0x3ea   : > { %11659 = vmatpush3.msra.mxu0 %v13691_v16  ;;  %11686 = vmatpush3.msra.mxu1 %v13694_v17 }
 0x3eb   : > { %11660 = vmatprep.subr.mxu0 %v16477_v3  ;;  %11687 = vmatprep.subr.mxu1 %v16477_v3 }
 0x3ec   : > { %11661 = vmatpush3.msra.mxu0 %v13699_v19  ;;  %11688 = vmatpush3.msra.mxu1 %v13696_v18 }
 0x3ed   : > { %11662 = vmatprep.subr.mxu0 %v16477_v3  ;;  %11689 = vmatprep.subr.mxu1 %v16477_v3 }
 0x3ee   : > { %11663 = vmatpush3.msra.mxu0 %v13702_v20  ;;  %11690 = vmatpush3.msra.mxu1 %v13708_v22 }
 0x3ef   : > { %11664 = vmatprep.subr.mxu0 %v16477_v3  ;;  %11692 = vmatmul.mubr.f32.vlgmr.msra.gmra.mxu1 %v946_v14 }
 0x3f0   : > { %11713 = vmatprep.subr.mxu1 %v16477_v3  ;;  %11665 = vmatpush3.msra.mxu0 %v13705_v21 }
 0x3f1   : > { %11714 = vmatpush3.msra.mxu1 %v13658_v4  ;;  %11666 = vmatprep.subr.mxu0 %v16477_v3 }
 0x3f2   : > { %11715 = vmatprep.subr.mxu1 %v16477_v3  ;;  %11667 = vmatpush3.msra.mxu0 %v13718_v25 }
 0x3f3   : > { %11716 = vmatpush3.msra.mxu1 %v13660_v5  ;;  %11668 = vmatprep.subr.mxu0 %v16477_v3 }
 0x3f4   : > { %11717 = vmatprep.subr.mxu1 %v16477_v3  ;;  %11669 = vmatpush3.msra.mxu0 %v13736_v31 }
 0x3f5   : > { %11718 = vmatpush3.msra.mxu1 %v13671_v9  ;;  %11670 = vmatprep.subr.mxu0 %v16477_v3 }
 0x3f6   : > { %11719 = vmatprep.subr.mxu1 %v16477_v3  ;;  %11671 = vmatpush3.msra.mxu0 %v13742_v33 }
 0x3f7   : > { %11672 = vmatprep.mubr.msk.f32.mxu0 %vm13547_vm0, %v16477_v3  ;;  %11720 = vmatpush3.msra.mxu1 %v13673_v10 }
 0x3f8   : > { %11673 = vmatmul.mubr.f32.vlgmr.msra.gmra.mxu0 %v945_v13  ;;  %11694 = vmatprep.subr.mxu0 %v16477_v3 }
 0x3f9   : > { %11721 = vmatprep.subr.mxu1 %v16477_v3  ;;  %11695 = vmatpush3.msra.mxu0 %v13711_v23 }
 0x3fa   : > { %11722 = vmatpush3.msra.mxu1 %v13676_v11  ;;  %11696 = vmatprep.subr.mxu0 %v16477_v3 }
 0x3fb   : > { %11723 = vmatprep.subr.mxu1 %v16477_v3  ;;  %11697 = vmatpush3.msra.mxu0 %v13714_v24 }
 0x3fc   : > { %11724 = vmatpush3.msra.mxu1 %v13694_v17  ;;  %11698 = vmatprep.subr.mxu0 %v16477_v3 }
 0x3fd   : > { %11725 = vmatprep.subr.mxu1 %v16477_v3  ;;  %11699 = vmatpush3.msra.mxu0 %v13721_v26 }
 0x3fe   : > { %11726 = vmatpush3.msra.mxu1 %v13696_v18  ;;  %11700 = vmatprep.subr.mxu0 %v16477_v3 }
 0x3ff   : > { %11727 = vmatprep.subr.mxu1 %v16477_v3  ;;  %11701 = vmatpush3.msra.mxu0 %v13724_v27 }
 0x400   : > { %11728 = vmatpush3.msra.mxu1 %v13708_v22  ;;  %11729 = vmatprep.mubr.msk.f32.mxu1 %vm13547_vm0, %v16477_v3 }
 0x401   : > { %11702 = vmatprep.subr.mxu0 %v16477_v3  ;;  %11730 = vmatmul.mubr.f32.vlgmr.msra.gmra.mxu1 %v13979_v12 }
 0x402   : > { %11703 = vmatpush3.msra.mxu0 %v13732_v30  ;;  %11710 = vmatprep.mubr.msk.f32.mxu0 %vm13547_vm0, %v16477_v3 }
 0x403   : > { %11704 = vmatprep.subr.mxu0 %v16477_v3  ;;  %11751 = vmatprep.subr.mxu1 %v16477_v3 }
 0x404   : > { %11705 = vmatpush3.msra.mxu0 %v13751_v37  ;;  %11752 = vmatpush3.msra.mxu1 %v13744_v34 }
 0x405   : > { %11706 = vmatprep.subr.mxu0 %v16477_v3  ;;  %11753 = vmatprep.subr.mxu1 %v16477_v3 }
 0x406   : > { %11707 = vmatpush3.msra.mxu0 %v13761_v40  ;;  %11754 = vmatpush3.msra.mxu1 %v13746_v35 }
 0x407   : > { %11708 = vmatprep.subr.mxu0 %v16477_v3  ;;  %11755 = vmatprep.subr.mxu1 %v16477_v3 }
 0x408   : > { %11709 = vmatpush3.msra.mxu0 %v13773_v43  ;;  %11756 = vmatpush3.msra.mxu1 %v13756_v38 }
 0x409   : > { %11711 = vmatmul.mubr.f32.vlgmr.msra.gmra.mxu0 %v13979_v12  ;;  %11757 = vmatprep.subr.mxu1 %v16477_v3 }
 0x40a   : > { %11758 = vmatpush3.msra.mxu1 %v13768_v41  ;;  %11732 = vmatprep.subr.mxu0 %v16477_v3 }
 0x40b   : > { %11759 = vmatprep.subr.mxu1 %v16477_v3  ;;  %11733 = vmatpush3.msra.mxu0 %v13658_v4 }
 0x40c   : > { %11760 = vmatpush3.msra.mxu1 %v13779_v44  ;;  %11734 = vmatprep.subr.mxu0 %v16477_v3 }
 0x40d   : > { %11761 = vmatprep.subr.mxu1 %v16477_v3  ;;  %11735 = vmatpush3.msra.mxu0 %v13660_v5 }
 0x40e   : > { %11762 = vmatpush3.msra.mxu1 %v13787_v46  ;;  %11736 = vmatprep.subr.mxu0 %v16477_v3 }
 0x40f   : > { %11763 = vmatprep.subr.mxu1 %v16477_v3  ;;  %11737 = vmatpush3.msra.mxu0 %v13671_v9 }
 0x410   : > { %11764 = vmatpush3.msra.mxu1 %v13795_v48  ;;  %11738 = vmatprep.subr.mxu0 %v16477_v3 }
 0x411   : > { %11765 = vmatprep.subr.mxu1 %v16477_v3  ;;  %11739 = vmatpush3.msra.mxu0 %v13673_v10 }
 0x412   : > { %11766 = vmatpush3.msra.mxu1 %v13802_v49  ;;  %11740 = vmatprep.subr.mxu0 %v16477_v3 }
 0x413   : > { %11767 = vmatprep.mubr.msk.f32.mxu1 %vm13547_vm0, %v16477_v3  ;;  %11789 = vmatprep.subr.mxu1 %v16477_v3 }
 0x414   : > { %11741 = vmatpush3.msra.mxu0 %v13676_v11  ;;  %11748 = vmatprep.mubr.msk.f32.mxu0 %vm13547_vm0, %v16477_v3 }
 0x415   : > { %11742 = vmatprep.subr.mxu0 %v16477_v3 }
 0x416   : > { %11743 = vmatpush3.msra.mxu0 %v13694_v17 }
 0x417   : > { %11744 = vmatprep.subr.mxu0 %v16477_v3 }
 0x418   : > { %11745 = vmatpush3.msra.mxu0 %v13696_v18 }
 0x419   : > { %11746 = vmatprep.subr.mxu0 %v16477_v3 }
 0x41a   : > { %11747 = vmatpush3.msra.mxu0 %v13708_v22 }
 0x41b   : > { %11770 = vmatprep.subr.mxu0 %v16477_v3 }
 0x49f   : > { %v1061_v36 = vpop.f32.mrf.mxu1 }
 0x4a1   : > { %v11655_v39 = vpop.f32.mrf.mxu1 }
 0x4a7   : > { %v950_v42 = vpop.f32.mrf.mxu0 }
 0x4a8   : > { %v1062_v56 = vadd.f32 %v1061_v36, %v950_v42 }
 0x4a9   : > { %v11636_v47 = vpop.f32.mrf.mxu0 }
 0x4af   : > { %v1230_v50 = vpop.f32.mrf.mxu1 }
 0x4b1   : > { %v11693_v52 = vpop.f32.mrf.mxu1 }
 0x4b8   : > { %v1149_v53 = vpop.f32.mrf.mxu0 }
 0x4b9   : > { %v1150_v58 = vadd.f32 %v1149_v53, %v1062_v56  ;;  %v10374_v56 = vld [vmem:[%s13969_s8 + $0x180] sm:$0xff] }
 0x4ba   : > { %v11674_v54 = vpop.f32.mrf.mxu0 }
 0x4bb   : > { %v1231_v59 = vadd.f32 %v1230_v50, %v1150_v58  ;;  %v10369_v58 = vld [vmem:[%s13969_s8 + $0x108] sm:$0xff] }
 0x4c1   : > { %v1404_v55 = vpop.f32.mrf.mxu1 }
 0x4c3   : > { %v11731_v57 = vpop.f32.mrf.mxu1 }
 0x4c4   : > { %v10382_v57 = vld [vmem:[%s13969_s8 + $0x200] sm:$0xff] }
 0x4c9   : > { %v1325_v60 = vpop.f32.mrf.mxu0 }
 0x4ca   : > { %v1326_v61 = vadd.f32 %v1325_v60, %v1231_v59  ;;  %v10375_v59 = vld [vmem:[%s13969_s8 + $0x188] sm:$0xff]  ;;  %v14115_v60 = vld [vmem:[%s13961_s26] sm:$0xff] }
 0x4cb   : > { %v11712_v62 = vpop.f32.mrf.mxu0  ;;  %16532 = vst [vmem:[#allocation18_spill] sm:$0xff] %v14115_v60 }
 0x4cc   : > { %v1405_v0 = vadd.f32 %v1404_v55, %v1326_v61  ;;  %v10368_v55 = vld [vmem:[%s13969_s8 + $0x100] sm:$0xff]  ;;  %v10419_v62 = vld [vmem:[%s13969_s8 + $0x388] sm:$0xff] }
 0x4cd   : > { %v10418_v61 = vld [vmem:[%s13969_s8 + $0x380] sm:$0xff] }
 0x4ce   : > { %v1421_v51 = vadd.f32 %v1405_v0, %v13933_v32  ;;  %v14096_v6 = vadd.f32 %v10363_v2, %v1405_v0  ;;  %v1452_v0 = vmul.f32 %v10368_v55, %v13973_v1 }
 0x4d0   : > { %1423 = vrot.lane.b32.xlu1 %v1421_v51, %s13548_s10  ;;  %16531 = vst [vmem:[#allocation17_spill] sm:$0xff] %v14096_v6  ;;  %v10365_v7 = vmul.f32 -1.442695, %v14096_v6 }
 0x4d2   : > { %13393 = vpow2.f32 %v10365_v7 }
 0x4df   : > { %v13394_v8 = vpop.eup %13393 }
 0x4e0   : > { %v1418_v12 = vadd.f32 1.0, %v13394_v8  ;;  %v10472_v8 = vld [vmem:[%s13969_s8 + $0x500] sm:$0xff] }
 0x4e2   : > { %13395 = vrcp.f32 %v1418_v12  ;;  %v10544_v12 = vld [vmem:[%s13969_s8 + $0x680] sm:$0xff] }
 0x4ef   : > { %v13396_v13 = vpop.eup %13395 }
 0x4f0   : > { %v1433_v42 = vsub.f32 1.0, %v13396_v13  ;;  %v1439_v50 = vmul.f32 %v13396_v13, %v13954_v63  ;;  %v10383_v63 = vld [vmem:[%s13969_s8 + $0x208] sm:$0xff] }
 0x542   : > { %v1424_v14 = vpop.permute.xlu1 %1423 }
 0x543   : > { %v1426_v28 = vmul.f32 %v13396_v13, %v1424_v14 }
 0x545   : > { %1428 = vrot.lane.b32.xlu0 %v1426_v28, %s13548_s10  ;;  %v2647_v28 = vmul.f32 %v10382_v57, %v13973_v1 }
 0x5b7   : > { %v1429_v29 = vpop.permute.xlu0 %1428 }
 0x5b8   : > { %v1431_v36 = vadd.f32 %v10363_v2, %v1429_v29  ;;  %v2047_v2 = vmul.f32 %v10374_v56, %v13973_v1  ;;  %v10545_v56 = vld [vmem:[%s13969_s8 + $0x688] sm:$0xff] }
 0x5ba   : > { %13397 = vtanh.f32 %v1431_v36  ;;  %v14134_v36 = vld [vmem:[%s13961_s26] sm:$0xff] }
 0x5bb   : > { %16534 = vst [vmem:[#allocation20_spill] sm:$0xff] %v14134_v36 }
 0x5c7   : > { %v13398_v39 = vpop.eup %13397 }
 0x5c8   : > { %1435 = vrot.lane.b32.xlu1 %v13398_v39, %s13549_s17  ;;  %v10473_v39 = vld [vmem:[%s13969_s8 + $0x508] sm:$0xff] }
 0x63a   : > { %v1436_v47 = vpop.permute.xlu1 %1435 }
 0x63b   : > { %v1438_v52 = vmul.f32 %v1436_v47, %v1433_v42  ;;  %v14138_v42 = vld [vmem:[%s13961_s26] sm:$0xff]  ;;  %v4477_v47 = vmul.f32 %v10418_v61, %v14115_v60 }
 0x63d   : > { %v14102_v53 = vadd.f32 %v1439_v50, %v1438_v52 }
 0x63f   : > { %1442 = vrot.lane.b32.xlu0 %v14102_v53, %s13549_s17 }
 0x6b1   : > { %v1443_v54 = vpop.permute.xlu0 %1442 }
 0x6b2   : > { %10366 = vst.msk [vmem:[%s13961_s26 + $0x8] sm:$0xff] %vm272_vm1, %v1443_v54 }
 0x6b9   : > { %v14121_v51 = vld [vmem:[%s13961_s26 + $0x8] sm:$0xff] }
 0x6ba   : > { %v14125_v7 = vld [vmem:[%s13961_s26 + $0x8] sm:$0xff]  ;;  %v1456_v13 = vmul.f32 %v14121_v51, %v10369_v58  ;;  %v2051_v14 = vmul.f32 %v10375_v59, %v14121_v51  ;;  %v2651_v29 = vmul.f32 %v10383_v63, %v14121_v51  ;;  %v6352_v63 = vmul.f32 %v10472_v8, %v14134_v36 }
 0x6bb   : > { %16533 = vst [vmem:[#allocation19_spill] sm:$0xff] %v14125_v7  ;;  %v4481_v50 = vmul.f32 %v10419_v62, %v14125_v7  ;;  %v14143_v52 = vld [vmem:[%s13961_s26 + $0x8] sm:$0xff]  ;;  %v8272_v62 = vmul.f32 %v10544_v12, %v14138_v42  ;;  %v16535_v8 = vmov 0.0  }
 0x6bc   : > { %v14146_v55 = vld [vmem:[%s13961_s26 + $0x8] sm:$0xff]  ;;  %v1457_v58 = vadd.f32 %v1456_v13, %v1452_v0  ;;  %v14149_v59 = vadd.f32 %v2051_v14, %v2047_v2  ;;  %v14151_v1 = vadd.f32 %v2651_v29, %v2647_v28  ;;  %v6356_v61 = vmul.f32 %v10473_v39, %v14143_v52 }
 0x6bd   : > { %v14153_v57 = vadd.f32 %v4481_v50, %v4477_v47  ;;  %v8276_v3 = vmul.f32 %v10545_v56, %v14146_v55 }
 0x6be   : > { %1459 = vrot.lane.b32.xlu1 %v1457_v58, %s13545_s11  ;;  %v14160_v6 = vadd.f32 %v6356_v61, %v6352_v63 }
 0x6bf   : > { %v14162_v45 = vadd.f32 %v8276_v3, %v8272_v62 }
 0x730   : > { %v1460_v0 = vpop.permute.xlu1 %1459 }
 0x731   : > { %v1462_v2 = vsel %vm272_vm1, %v1443_v54, %v1460_v0 }
 0x732   : > { %v1464_v13 = vsel %vm274_vm2, %v1462_v2, 0 }
 0x733   : > { %v14166_v14 = vand.u32 4294901760, %v1464_v13 }
 0x735   : > { %v1540_v28 = vsub.f32 %v1464_v13, %v14166_v14  ;;  %11768 = vmatmul.mubr.f32.vlgmr.msra.gmra.mxu1 %v14166_v14 }
 0x736   : > { %11790 = vmatpush3.msra.mxu1 %v13658_v4  ;;  %11805 = vmatprep.mubr.msk.f32.mxu1 %vm13547_vm0, %v16535_v8 }
 0x737   : > { %v1541_v12 = vand.u32 4294901760, %v1540_v28  ;;  %11791 = vmatprep.subr.mxu1 %v16535_v8 }
 0x738   : > { %11792 = vmatpush3.msra.mxu1 %v13660_v5 }
 0x739   : > { %11793 = vmatprep.subr.mxu1 %v16535_v8  ;;  %v1542_v3 = vsub.f32 %v1540_v28, %v1541_v12 }
 0x73a   : > { %11794 = vmatpush3.msra.mxu1 %v13671_v9 }
 0x73b   : > { %11795 = vmatprep.subr.mxu1 %v16535_v8  ;;  %v1543_v54 = vand.u32 4294901760, %v1542_v3 }
 0x73c   : > { %11796 = vmatpush3.msra.mxu1 %v13673_v10 }
 0x73d   : > { %11797 = vmatprep.subr.mxu1 %v16535_v8  ;;  %11749 = vmatmul.mubr.f32.vlgmr.msra.gmra.mxu0 %v1543_v54 }
 0x73e   : > { %11771 = vmatpush3.msra.mxu0 %v13688_v15  ;;  %11798 = vmatpush3.msra.mxu1 %v13676_v11 }
 0x73f   : > { %11772 = vmatprep.subr.mxu0 %v16535_v8  ;;  %11799 = vmatprep.subr.mxu1 %v16535_v8 }
 0x740   : > { %11773 = vmatpush3.msra.mxu0 %v13691_v16  ;;  %11800 = vmatpush3.msra.mxu1 %v13694_v17 }
 0x741   : > { %11774 = vmatprep.subr.mxu0 %v16535_v8  ;;  %11801 = vmatprep.subr.mxu1 %v16535_v8 }
 0x742   : > { %11775 = vmatpush3.msra.mxu0 %v13699_v19  ;;  %11802 = vmatpush3.msra.mxu1 %v13696_v18 }
 0x743   : > { %11776 = vmatprep.subr.mxu0 %v16535_v8  ;;  %11803 = vmatprep.subr.mxu1 %v16535_v8 }
 0x744   : > { %11777 = vmatpush3.msra.mxu0 %v13702_v20  ;;  %11804 = vmatpush3.msra.mxu1 %v13708_v22 }
 0x745   : > { %11778 = vmatprep.subr.mxu0 %v16535_v8  ;;  %11806 = vmatmul.mubr.f32.vlgmr.msra.gmra.mxu1 %v1541_v12 }
 0x746   : > { %11827 = vmatprep.subr.mxu1 %v16535_v8  ;;  %11779 = vmatpush3.msra.mxu0 %v13705_v21 }
 0x747   : > { %11828 = vmatpush3.msra.mxu1 %v13658_v4  ;;  %11780 = vmatprep.subr.mxu0 %v16535_v8 }
 0x748   : > { %11829 = vmatprep.subr.mxu1 %v16535_v8  ;;  %11781 = vmatpush3.msra.mxu0 %v13718_v25 }
 0x749   : > { %11830 = vmatpush3.msra.mxu1 %v13660_v5  ;;  %11782 = vmatprep.subr.mxu0 %v16535_v8 }
 0x74a   : > { %11831 = vmatprep.subr.mxu1 %v16535_v8  ;;  %11783 = vmatpush3.msra.mxu0 %v13736_v31 }
 0x74b   : > { %11832 = vmatpush3.msra.mxu1 %v13671_v9  ;;  %11784 = vmatprep.subr.mxu0 %v16535_v8 }
 0x74c   : > { %11833 = vmatprep.subr.mxu1 %v16535_v8  ;;  %11785 = vmatpush3.msra.mxu0 %v13742_v33 }
 0x74d   : > { %11786 = vmatprep.mubr.msk.f32.mxu0 %vm13547_vm0, %v16535_v8  ;;  %11834 = vmatpush3.msra.mxu1 %v13673_v10 }
 0x74e   : > { %11787 = vmatmul.mubr.f32.vlgmr.msra.gmra.mxu0 %v1540_v28  ;;  %11808 = vmatprep.subr.mxu0 %v16535_v8 }
 0x74f   : > { %11835 = vmatprep.subr.mxu1 %v16535_v8  ;;  %11809 = vmatpush3.msra.mxu0 %v13711_v23 }
 0x750   : > { %11836 = vmatpush3.msra.mxu1 %v13676_v11  ;;  %11810 = vmatprep.subr.mxu0 %v16535_v8 }
 0x751   : > { %11837 = vmatprep.subr.mxu1 %v16535_v8  ;;  %11811 = vmatpush3.msra.mxu0 %v13714_v24 }
 0x752   : > { %11838 = vmatpush3.msra.mxu1 %v13694_v17  ;;  %11812 = vmatprep.subr.mxu0 %v16535_v8 }
 0x753   : > { %11839 = vmatprep.subr.mxu1 %v16535_v8  ;;  %11813 = vmatpush3.msra.mxu0 %v13721_v26 }
 0x754   : > { %11840 = vmatpush3.msra.mxu1 %v13696_v18  ;;  %11814 = vmatprep.subr.mxu0 %v16535_v8 }
 0x755   : > { %11841 = vmatprep.subr.mxu1 %v16535_v8  ;;  %11815 = vmatpush3.msra.mxu0 %v13724_v27 }
 0x756   : > { %11842 = vmatpush3.msra.mxu1 %v13708_v22  ;;  %11843 = vmatprep.mubr.msk.f32.mxu1 %vm13547_vm0, %v16535_v8 }
 0x757   : > { %11816 = vmatprep.subr.mxu0 %v16535_v8  ;;  %11844 = vmatmul.mubr.f32.vlgmr.msra.gmra.mxu1 %v14166_v14 }
 0x758   : > { %11817 = vmatpush3.msra.mxu0 %v13732_v30  ;;  %11824 = vmatprep.mubr.msk.f32.mxu0 %vm13547_vm0, %v16535_v8 }
 0x759   : > { %11818 = vmatprep.subr.mxu0 %v16535_v8  ;;  %11865 = vmatprep.subr.mxu1 %v16535_v8 }
 0x75a   : > { %11819 = vmatpush3.msra.mxu0 %v13751_v37  ;;  %11866 = vmatpush3.msra.mxu1 %v13744_v34 }
 0x75b   : > { %11820 = vmatprep.subr.mxu0 %v16535_v8  ;;  %11867 = vmatprep.subr.mxu1 %v16535_v8 }
 0x75c   : > { %11821 = vmatpush3.msra.mxu0 %v13761_v40  ;;  %11868 = vmatpush3.msra.mxu1 %v13746_v35  ;;  %v10575_v40 = vld [vmem:[%s13969_s8 + $0x710] sm:$0xff] }
 0x75d   : > { %11822 = vmatprep.subr.mxu0 %v16535_v8  ;;  %11869 = vmatprep.subr.mxu1 %v16535_v8 }
 0x75e   : > { %11823 = vmatpush3.msra.mxu0 %v13773_v43  ;;  %11870 = vmatpush3.msra.mxu1 %v13756_v38 }
 0x75f   : > { %11825 = vmatmul.mubr.f32.vlgmr.msra.gmra.mxu0 %v14166_v14  ;;  %11871 = vmatprep.subr.mxu1 %v16535_v8 }
 0x760   : > { %11872 = vmatpush3.msra.mxu1 %v13768_v41  ;;  %11846 = vmatprep.subr.mxu0 %v16535_v8  ;;  %v10497_v41 = vld [vmem:[%s13969_s8 + $0x590] sm:$0xff] }
 0x761   : > { %11873 = vmatprep.subr.mxu1 %v16535_v8  ;;  %11847 = vmatpush3.msra.mxu0 %v13658_v4 }
 0x762   : > { %11874 = vmatpush3.msra.mxu1 %v13779_v44  ;;  %11848 = vmatprep.subr.mxu0 %v16535_v8 }
 0x763   : > { %11875 = vmatprep.subr.mxu1 %v16535_v8  ;;  %11849 = vmatpush3.msra.mxu0 %v13660_v5 }
 0x764   : > { %11876 = vmatpush3.msra.mxu1 %v13787_v46  ;;  %11850 = vmatprep.subr.mxu0 %v16535_v8 }
 0x765   : > { %11877 = vmatprep.subr.mxu1 %v16535_v8  ;;  %11851 = vmatpush3.msra.mxu0 %v13671_v9 }
 0x766   : > { %11878 = vmatpush3.msra.mxu1 %v13795_v48  ;;  %11852 = vmatprep.subr.mxu0 %v16535_v8 }
 0x767   : > { %11879 = vmatprep.subr.mxu1 %v16535_v8  ;;  %11853 = vmatpush3.msra.mxu0 %v13673_v10 }
 0x768   : > { %11880 = vmatpush3.msra.mxu1 %v13802_v49  ;;  %11854 = vmatprep.subr.mxu0 %v16535_v8 }
 0x769   : > { %11881 = vmatprep.mubr.msk.f32.mxu1 %vm13547_vm0, %v16535_v8  ;;  %11903 = vmatprep.subr.mxu1 %v16535_v8 }
 0x76a   : > { %11855 = vmatpush3.msra.mxu0 %v13676_v11  ;;  %11862 = vmatprep.mubr.msk.f32.mxu0 %vm13547_vm0, %v16535_v8 }
 0x76b   : > { %11856 = vmatprep.subr.mxu0 %v16535_v8 }
 0x76c   : > { %11857 = vmatpush3.msra.mxu0 %v13694_v17 }
 0x76d   : > { %11858 = vmatprep.subr.mxu0 %v16535_v8 }
 0x76e   : > { %11859 = vmatpush3.msra.mxu0 %v13696_v18 }
 0x76f   : > { %11860 = vmatprep.subr.mxu0 %v16535_v8 }
 0x770   : > { %11861 = vmatpush3.msra.mxu0 %v13708_v22 }
 0x771   : > { %11884 = vmatprep.subr.mxu0 %v16535_v8 }
 0x7f5   : > { %v1656_v29 = vpop.f32.mrf.mxu1 }
 0x7f7   : > { %v11769_v39 = vpop.f32.mrf.mxu1 }
 0x7f8   : > { %v10367_v39 = vld [vmem:[%s13945_s16 + $0x10] sm:$0xff] }
 0x7fd   : > { %v1545_v47 = vpop.f32.mrf.mxu0 }
 0x7fe   : > { %v1657_v0 = vadd.f32 %v1656_v29, %v1545_v47 }
 0x7ff   : > { %v11750_v50 = vpop.f32.mrf.mxu0 }
 0x805   : > { %v1825_v56 = vpop.f32.mrf.mxu1 }
 0x807   : > { %v11807_v58 = vpop.f32.mrf.mxu1 }
 0x80e   : > { %v1744_v63 = vpop.f32.mrf.mxu0 }
 0x80f   : > { %v1745_v13 = vadd.f32 %v1744_v63, %v1657_v0 }
 0x810   : > { %v11788_v61 = vpop.f32.mrf.mxu0 }
 0x811   : > { %v1826_v14 = vadd.f32 %v1825_v56, %v1745_v13 }
 0x817   : > { %v1999_v62 = vpop.f32.mrf.mxu1 }
 0x819   : > { %v11845_v2 = vpop.f32.mrf.mxu1 }
 0x81f   : > { %v1920_v28 = vpop.f32.mrf.mxu0 }
 0x820   : > { %v1921_v12 = vadd.f32 %v1920_v28, %v1826_v14 }
 0x821   : > { %v11826_v3 = vpop.f32.mrf.mxu0 }
 0x822   : > { %v2000_v54 = vadd.f32 %v1999_v62, %v1921_v12  ;;  %v10393_v12 = vld [vmem:[%s13969_s8 + $0x288] sm:$0xff]  ;;  %v10392_v3 = vld [vmem:[%s13969_s8 + $0x280] sm:$0xff] }
 0x824   : > { %v2016_v49 = vadd.f32 %v2000_v54, %v13933_v32  ;;  %v14283_v50 = vadd.f32 %v10367_v39, %v2000_v54  ;;  %v10435_v54 = vld [vmem:[%s13969_s8 + $0x408] sm:$0xff] }
 0x826   : > { %2018 = vrot.lane.b32.xlu0 %v2016_v49, %s13548_s10  ;;  %16536 = vst [vmem:[#allocation21_spill] sm:$0xff] %v14283_v50  ;;  %v10371_v58 = vmul.f32 -1.442695, %v14283_v50 }
 0x828   : > { %13399 = vpow2.f32 %v10371_v58  ;;  %v10494_v58 = vld [vmem:[%s13969_s8 + $0x580] sm:$0xff] }
 0x835   : > { %v13400_v61 = vpop.eup %13399 }
 0x836   : > { %v2013_v48 = vadd.f32 1.0, %v13400_v61  ;;  %v10495_v61 = vld [vmem:[%s13969_s8 + $0x588] sm:$0xff] }
 0x838   : > { %13401 = vrcp.f32 %v2013_v48 }
 0x845   : > { %v13402_v29 = vpop.eup %13401 }
 0x846   : > { %v2028_v48 = vsub.f32 1.0, %v13402_v29  ;;  %v2034_v2 = vmul.f32 %v13402_v29, %v14102_v53  ;;  %v3256_v53 = vmul.f32 %v10393_v12, %v14121_v51  ;;  %v10475_v51 = vld [vmem:[%s13969_s8 + $0x510] sm:$0xff] }
 0x898   : > { %v2019_v47 = vpop.permute.xlu0 %2018 }
 0x899   : > { %v2021_v56 = vmul.f32 %v13402_v29, %v2019_v47  ;;  %v10573_v29 = vld [vmem:[%s13969_s8 + $0x708] sm:$0xff]  ;;  %v10377_v47 = vld [vmem:[%s13969_s8 + $0x190] sm:$0xff] }
 0x89a   : > { %v8926_v38 = vmul.f32 %v10573_v29, %v14146_v55 }
 0x89b   : > { %2023 = vrot.lane.b32.xlu1 %v2021_v56, %s13548_s10  ;;  %v10385_v56 = vld [vmem:[%s13969_s8 + $0x210] sm:$0xff] }
 0x90d   : > { %v2024_v63 = vpop.permute.xlu1 %2023 }
 0x90e   : > { %v2026_v49 = vadd.f32 %v10367_v39, %v2024_v63  ;;  %v10434_v39 = vld [vmem:[%s13969_s8 + $0x400] sm:$0xff]  ;;  %v3252_v63 = vmul.f32 %v10392_v3, %v14115_v60  ;;  %v6991_v60 = vmul.f32 %v10495_v61, %v14143_v52 }
 0x90f   : > { %v5097_v32 = vmul.f32 %v10434_v39, %v14134_v36  ;;  %v10547_v36 = vld [vmem:[%s13969_s8 + $0x690] sm:$0xff] }
 0x910   : > { %13403 = vtanh.f32 %v2026_v49  ;;  %v10395_v49 = vld [vmem:[%s13969_s8 + $0x290] sm:$0xff]  ;;  %v3257_v50 = vadd.f32 %v3256_v53, %v3252_v63 }
 0x91d   : > { %v13404_v62 = vpop.eup %13403 }
 0x91e   : > { %2030 = vrot.lane.b32.xlu0 %v13404_v62, %s13549_s17  ;;  %v5101_v62 = vmul.f32 %v10435_v54, %v14125_v7  ;;  %v6987_v54 = vmul.f32 %v10494_v58, %v14138_v42 }
 0x920   : > { %v5102_v63 = vadd.f32 %v5101_v62, %v5097_v32  ;;  %v6992_v62 = vadd.f32 %v6991_v60, %v6987_v54  ;;  %v16548_v54 = vld [vmem:[#allocation13_spill] sm:$0xff] }
 0x990   : > { %v2031_v0 = vpop.permute.xlu0 %2030 }
 0x991   : > { %v2033_v13 = vmul.f32 %v2031_v0, %v2028_v48  ;;  %v10572_v48 = vld [vmem:[%s13969_s8 + $0x700] sm:$0xff] }
 0x992   : > { %v14310_v0 = vld [vmem:[%s13961_s26] sm:$0xff] }
 0x993   : > { %v14289_v14 = vadd.f32 %v2034_v2, %v2033_v13  ;;  %v10421_v2 = vld [vmem:[%s13969_s8 + $0x390] sm:$0xff]  ;;  %v8922_v29 = vmul.f32 %v10572_v48, %v14310_v0  ;;  %v16543_v48 = vld [vmem:[#allocation10_spill] sm:$0xff] }
 0x994   : > { %v10437_v13 = vld [vmem:[%s13969_s8 + $0x410] sm:$0xff] }
 0x995   : > { %16537 = vst [vmem:[#allocation22_spill] sm:$0xff] %v14289_v14  ;;  %2037 = vrot.lane.b32.xlu1 %v14289_v14, %s13549_s17 }
 0xa07   : > { %v2038_v28 = vpop.permute.xlu1 %2037 }
 0xa08   : > { %10372 = vst.msk [vmem:[%s13961_s26 + $0x10] sm:$0xff] %vm272_vm1, %v2038_v28 }
 0xa0f   : > { %v10378_v12 = vld [vmem:[%s13961_s26 + $0x10] sm:$0xff] }
 0xa10   : > { %v14317_v14 = vld [vmem:[%s13961_s26 + $0x10] sm:$0xff]  ;;  %v2056_v7 = vmul.f32 %v10378_v12, %v10377_v47  ;;  %v2656_v46 = vmul.f32 %v10385_v56, %v10378_v12  ;;  %v3261_v44 = vmul.f32 %v10395_v49, %v10378_v12  ;;  %v16547_v12 = vld [vmem:[#allocation12_spill] sm:$0xff] }
 0xa11   : > { %v14321_v3 = vld [vmem:[%s13961_s26 + $0x10] sm:$0xff]  ;;  %v4486_v53 = vmul.f32 %v10421_v2, %v14317_v14  ;;  %v5106_v43 = vmul.f32 %v10437_v13, %v14317_v14  ;;  %v16544_v2 = vld [vmem:[#allocation7_spill] sm:$0xff] }
 0xa12   : > { %v6361_v35 = vmul.f32 %v10475_v51, %v14321_v3  ;;  %v14331_v39 = vld [vmem:[%s13961_s26 + $0x10] sm:$0xff]  ;;  %v2057_v58 = vadd.f32 %v2056_v7, %v14149_v59  ;;  %v14337_v61 = vadd.f32 %v2656_v46, %v14151_v1  ;;  %v14339_v47 = vadd.f32 %v3261_v44, %v3257_v50  ;;  %v16546_v51 = vld [vmem:[#allocation11_spill] sm:$0xff] }
 0xa13   : > { %v14343_v56 = vadd.f32 %v4486_v53, %v14153_v57  ;;  %v14345_v32 = vadd.f32 %v5106_v43, %v5102_v63  ;;  %v6996_v7 = vmul.f32 %v10497_v41, %v14321_v3  ;;  %v8281_v46 = vmul.f32 %v10547_v36, %v14331_v39  ;;  %v16541_v36 = vld [vmem:[#allocation8_spill] sm:$0xff]  ;;  %v16545_v13 = vld [vmem:[#allocation9_spill] sm:$0xff]  ;;  %v16549_v53 = vld [vmem:[#allocation14_spill] sm:$0xff] }
 0xa14   : > { %v14348_v49 = vadd.f32 %v6361_v35, %v14160_v6  ;;  %2059 = vrot.lane.b32.xlu0 %v2057_v58, %s13545_s11  ;;  %v8927_v59 = vadd.f32 %v8926_v38, %v8922_v29  ;;  %v8931_v44 = vmul.f32 %v10575_v40, %v14331_v39 }
 0xa15   : > { %16538 = vst [vmem:[#allocation23_spill] sm:$0xff] %v14343_v56  ;;  %v14354_v1 = vadd.f32 %v6996_v7, %v6992_v62  ;;  %v14357_v57 = vadd.f32 %v8281_v46, %v14162_v45 }
 0xa16   : > { %16539 = vst [vmem:[#allocation24_spill] sm:$0xff] %v14348_v49  ;;  %v14359_v43 = vadd.f32 %v8931_v44, %v8927_v59  ;;  %v16550_v49 = vld [vmem:[#allocation15_spill] sm:$0xff] }
 0xa17   : > { %16540 = vst [vmem:[#allocation25_spill] sm:$0xff] %v14357_v57 }
 0xa86   : > { %v2060_v50 = vpop.permute.xlu0 %2059 }
 0xa87   : > { %v2062_v35 = vsel %vm272_vm1, %v2038_v28, %v2060_v50  ;;  %v16542_v28 = vld [vmem:[#allocation6_spill] sm:$0xff] }
 0xa88   : > { %v2064_v6 = vsel %vm274_vm2, %v2062_v35, 0 }
 0xa89   : > { %v14363_v60 = vand.u32 4294901760, %v2064_v6 }
 0xa8b   : > { %v2140_v41 = vsub.f32 %v2064_v6, %v14363_v60  ;;  %11882 = vmatmul.mubr.f32.vlgmr.msra.gmra.mxu1 %v14363_v60 }
 0xa8c   : > { %11904 = vmatpush3.msra.mxu1 %v13658_v4  ;;  %11919 = vmatprep.mubr.msk.f32.mxu1 %vm13547_vm0, %v16535_v8 }
 0xa8d   : > { %v2141_v38 = vand.u32 4294901760, %v2140_v41  ;;  %11905 = vmatprep.subr.mxu1 %v16535_v8 }
 0xa8e   : > { %11906 = vmatpush3.msra.mxu1 %v13660_v5 }
 0xa8f   : > { %11907 = vmatprep.subr.mxu1 %v16535_v8  ;;  %v2142_v40 = vsub.f32 %v2140_v41, %v2141_v38 }
 0xa90   : > { %11908 = vmatpush3.msra.mxu1 %v13671_v9 }
 0xa91   : > { %11909 = vmatprep.subr.mxu1 %v16535_v8  ;;  %v2143_v45 = vand.u32 4294901760, %v2142_v40 }
 0xa92   : > { %11910 = vmatpush3.msra.mxu1 %v13673_v10 }
 0xa93   : > { %11911 = vmatprep.subr.mxu1 %v16535_v8  ;;  %11863 = vmatmul.mubr.f32.vlgmr.msra.gmra.mxu0 %v2143_v45 }
 0xa94   : > { %11885 = vmatpush3.msra.mxu0 %v13688_v15  ;;  %11912 = vmatpush3.msra.mxu1 %v13676_v11 }
 0xa95   : > { %11886 = vmatprep.subr.mxu0 %v16535_v8  ;;  %11913 = vmatprep.subr.mxu1 %v16535_v8 }
 0xa96   : > { %11887 = vmatpush3.msra.mxu0 %v13691_v16  ;;  %11914 = vmatpush3.msra.mxu1 %v13694_v17 }
 0xa97   : > { %11888 = vmatprep.subr.mxu0 %v16535_v8  ;;  %11915 = vmatprep.subr.mxu1 %v16535_v8 }
 0xa98   : > { %11889 = vmatpush3.msra.mxu0 %v13699_v19  ;;  %11916 = vmatpush3.msra.mxu1 %v13696_v18 }
 0xa99   : > { %11890 = vmatprep.subr.mxu0 %v16535_v8  ;;  %11917 = vmatprep.subr.mxu1 %v16535_v8 }
 0xa9a   : > { %11891 = vmatpush3.msra.mxu0 %v13702_v20  ;;  %11918 = vmatpush3.msra.mxu1 %v13708_v22 }
 0xa9b   : > { %11892 = vmatprep.subr.mxu0 %v16535_v8  ;;  %11920 = vmatmul.mubr.f32.vlgmr.msra.gmra.mxu1 %v2141_v38 }
 0xa9c   : > { %11941 = vmatprep.subr.mxu1 %v16535_v8  ;;  %11893 = vmatpush3.msra.mxu0 %v13705_v21 }
 0xa9d   : > { %11942 = vmatpush3.msra.mxu1 %v13658_v4  ;;  %11894 = vmatprep.subr.mxu0 %v16535_v8 }
 0xa9e   : > { %11943 = vmatprep.subr.mxu1 %v16535_v8  ;;  %11895 = vmatpush3.msra.mxu0 %v13718_v25 }
 0xa9f   : > { %11944 = vmatpush3.msra.mxu1 %v13660_v5  ;;  %11896 = vmatprep.subr.mxu0 %v16535_v8 }
 0xaa0   : > { %11945 = vmatprep.subr.mxu1 %v16535_v8  ;;  %11897 = vmatpush3.msra.mxu0 %v13736_v31 }
 0xaa1   : > { %11946 = vmatpush3.msra.mxu1 %v13671_v9  ;;  %11898 = vmatprep.subr.mxu0 %v16535_v8 }
 0xaa2   : > { %11947 = vmatprep.subr.mxu1 %v16535_v8  ;;  %11899 = vmatpush3.msra.mxu0 %v13742_v33 }
 0xaa3   : > { %11900 = vmatprep.mubr.msk.f32.mxu0 %vm13547_vm0, %v16535_v8  ;;  %11948 = vmatpush3.msra.mxu1 %v13673_v10 }
 0xaa4   : > { %11901 = vmatmul.mubr.f32.vlgmr.msra.gmra.mxu0 %v2140_v41  ;;  %11922 = vmatprep.subr.mxu0 %v16535_v8 }
 0xaa5   : > { %11949 = vmatprep.subr.mxu1 %v16535_v8  ;;  %11923 = vmatpush3.msra.mxu0 %v13711_v23 }
 0xaa6   : > { %11950 = vmatpush3.msra.mxu1 %v13676_v11  ;;  %11924 = vmatprep.subr.mxu0 %v16535_v8 }
 0xaa7   : > { %11951 = vmatprep.subr.mxu1 %v16535_v8  ;;  %11925 = vmatpush3.msra.mxu0 %v13714_v24 }
 0xaa8   : > { %11952 = vmatpush3.msra.mxu1 %v13694_v17  ;;  %11926 = vmatprep.subr.mxu0 %v16535_v8 }
 0xaa9   : > { %11953 = vmatprep.subr.mxu1 %v16535_v8  ;;  %11927 = vmatpush3.msra.mxu0 %v13721_v26 }
 0xaaa   : > { %11954 = vmatpush3.msra.mxu1 %v13696_v18  ;;  %11928 = vmatprep.subr.mxu0 %v16535_v8 }
 0xaab   : > { %11955 = vmatprep.subr.mxu1 %v16535_v8  ;;  %11929 = vmatpush3.msra.mxu0 %v13724_v27 }
 0xaac   : > { %11956 = vmatpush3.msra.mxu1 %v13708_v22  ;;  %11957 = vmatprep.mubr.msk.f32.mxu1 %vm13547_vm0, %v16535_v8 }
 0xaad   : > { %11930 = vmatprep.subr.mxu0 %v16535_v8  ;;  %11958 = vmatmul.mubr.f32.vlgmr.msra.gmra.mxu1 %v14363_v60 }
 0xaae   : > { %11931 = vmatpush3.msra.mxu0 %v13732_v30  ;;  %11938 = vmatprep.mubr.msk.f32.mxu0 %vm13547_vm0, %v16535_v8 }
 0xaaf   : > { %11932 = vmatprep.subr.mxu0 %v16535_v8  ;;  %11979 = vmatprep.subr.mxu1 %v16535_v8 }
 0xab0   : > { %11933 = vmatpush3.msra.mxu0 %v13751_v37  ;;  %11980 = vmatpush3.msra.mxu1 %v13744_v34 }
 0xab1   : > { %11934 = vmatprep.subr.mxu0 %v16535_v8  ;;  %11981 = vmatprep.subr.mxu1 %v16535_v8 }
 0xab2   : > { %11935 = vmatpush3.msra.mxu0 %v16541_v36  ;;  %11982 = vmatpush3.msra.mxu1 %v16542_v28 }
 0xab3   : > { %11936 = vmatprep.subr.mxu0 %v16535_v8  ;;  %11983 = vmatprep.subr.mxu1 %v16535_v8 }
 0xab4   : > { %11937 = vmatpush3.msra.mxu0 %v16543_v48  ;;  %11984 = vmatpush3.msra.mxu1 %v16544_v2 }
 0xab5   : > { %11939 = vmatmul.mubr.f32.vlgmr.msra.gmra.mxu0 %v14363_v60  ;;  %11985 = vmatprep.subr.mxu1 %v16535_v8 }
 0xab6   : > { %11986 = vmatpush3.msra.mxu1 %v16545_v13  ;;  %11960 = vmatprep.subr.mxu0 %v16535_v8 }
 0xab7   : > { %11987 = vmatprep.subr.mxu1 %v16535_v8  ;;  %11961 = vmatpush3.msra.mxu0 %v13658_v4 }
 0xab8   : > { %11988 = vmatpush3.msra.mxu1 %v16546_v51  ;;  %11962 = vmatprep.subr.mxu0 %v16535_v8  ;;  %v10499_v51 = vld [vmem:[%s13969_s8 + $0x598] sm:$0xff] }
 0xab9   : > { %11989 = vmatprep.subr.mxu1 %v16535_v8  ;;  %11963 = vmatpush3.msra.mxu0 %v13660_v5 }
 0xaba   : > { %11990 = vmatpush3.msra.mxu1 %v16547_v12  ;;  %11964 = vmatprep.subr.mxu0 %v16535_v8 }
 0xabb   : > { %11991 = vmatprep.subr.mxu1 %v16535_v8  ;;  %11965 = vmatpush3.msra.mxu0 %v13671_v9 }
 0xabc   : > { %11992 = vmatpush3.msra.mxu1 %v16548_v54  ;;  %11966 = vmatprep.subr.mxu0 %v16535_v8  ;;  %v10387_v54 = vld [vmem:[%s13969_s8 + $0x218] sm:$0xff] }
 0xabd   : > { %11993 = vmatprep.subr.mxu1 %v16535_v8  ;;  %11967 = vmatpush3.msra.mxu0 %v13673_v10 }
 0xabe   : > { %11994 = vmatpush3.msra.mxu1 %v16549_v53  ;;  %11968 = vmatprep.subr.mxu0 %v16535_v8 }
 0xabf   : > { %11995 = vmatprep.mubr.msk.f32.mxu1 %vm13547_vm0, %v16535_v8  ;;  %12017 = vmatprep.subr.mxu1 %v16535_v8 }
 0xac0   : > { %11969 = vmatpush3.msra.mxu0 %v13676_v11  ;;  %11976 = vmatprep.mubr.msk.f32.mxu0 %vm13547_vm0, %v16535_v8 }
 0xac1   : > { %11970 = vmatprep.subr.mxu0 %v16535_v8 }
 0xac2   : > { %11971 = vmatpush3.msra.mxu0 %v13694_v17 }
 0xac3   : > { %11972 = vmatprep.subr.mxu0 %v16535_v8 }
 0xac4   : > { %11973 = vmatpush3.msra.mxu0 %v13696_v18 }
 0xac5   : > { %11974 = vmatprep.subr.mxu0 %v16535_v8 }
 0xac6   : > { %11975 = vmatpush3.msra.mxu0 %v13708_v22 }
 0xac7   : > { %11998 = vmatprep.subr.mxu0 %v16535_v8 }
 0xb4b   : > { %v2256_v63 = vpop.f32.mrf.mxu1 }
 0xb4d   : > { %v11883_v58 = vpop.f32.mrf.mxu1 }
 0xb4e   : > { %v10373_v58 = vld [vmem:[%s13945_s16 + $0x18] sm:$0xff] }
 0xb53   : > { %v2145_v29 = vpop.f32.mrf.mxu0 }
 0xb54   : > { %v2257_v35 = vadd.f32 %v2256_v63, %v2145_v29 }
 0xb55   : > { %v11864_v62 = vpop.f32.mrf.mxu0 }
 0xb5b   : > { %v2425_v7 = vpop.f32.mrf.mxu1 }
 0xb5d   : > { %v11921_v46 = vpop.f32.mrf.mxu1 }
 0xb64   : > { %v2344_v59 = vpop.f32.mrf.mxu0 }
 0xb65   : > { %v2345_v60 = vadd.f32 %v2344_v59, %v2257_v35  ;;  %v16552_v35 = vld [vmem:[#allocation22_spill] sm:$0xff] }
 0xb66   : > { %v11902_v44 = vpop.f32.mrf.mxu0 }
 0xb67   : > { %v2426_v41 = vadd.f32 %v2425_v7, %v2345_v60 }
 0xb6d   : > { %v2599_v50 = vpop.f32.mrf.mxu1 }
 0xb6f   : > { %v11959_v6 = vpop.f32.mrf.mxu1 }
 0xb75   : > { %v2520_v38 = vpop.f32.mrf.mxu0 }
 0xb76   : > { %v2521_v40 = vadd.f32 %v2520_v38, %v2426_v41  ;;  %v10405_v38 = vld [vmem:[%s13969_s8 + $0x308] sm:$0xff] }
 0xb77   : > { %v11940_v45 = vpop.f32.mrf.mxu0 }
 0xb78   : > { %v2600_v57 = vadd.f32 %v2599_v50, %v2521_v40  ;;  %v10404_v45 = vld [vmem:[%s13969_s8 + $0x300] sm:$0xff] }
 0xb7a   : > { %v2616_v56 = vadd.f32 %v2600_v57, %v16550_v49  ;;  %v14480_v62 = vadd.f32 %v10373_v58, %v2600_v57  ;;  %v10606_v49 = vld [vmem:[%s13961_s26 + $0x10] sm:$0xff] }
 0xb7c   : > { %2618 = vrot.lane.b32.xlu1 %v2616_v56, %s13548_s10  ;;  %16551 = vst [vmem:[#allocation26_spill] sm:$0xff] %v14480_v62  ;;  %v10379_v46 = vmul.f32 -1.442695, %v14480_v62  ;;  %v10603_v62 = vld [vmem:[%s13969_s8 + $0x788] sm:$0xff] }
 0xb7e   : > { %13405 = vpow2.f32 %v10379_v46  ;;  %v10453_v46 = vld [vmem:[%s13969_s8 + $0x488] sm:$0xff] }
 0xb8b   : > { %v13406_v44 = vpop.eup %13405 }
 0xb8c   : > { %v2613_v53 = vadd.f32 1.0, %v13406_v44  ;;  %v10519_v44 = vld [vmem:[%s13969_s8 + $0x608] sm:$0xff] }
 0xb8e   : > { %13407 = vrcp.f32 %v2613_v53 }
 0xb9b   : > { %v13408_v63 = vpop.eup %13407 }
 0xb9c   : > { %v2628_v53 = vsub.f32 1.0, %v13408_v63  ;;  %v2634_v6 = vmul.f32 %v13408_v63, %v16552_v35  ;;  %v5726_v35 = vmul.f32 %v14143_v52, %v10453_v46  ;;  %v10439_v46 = vld [vmem:[%s13969_s8 + $0x418] sm:$0xff] }
 0xbee   : > { %v2619_v29 = vpop.permute.xlu1 %2618 }
 0xbef   : > { %v2621_v7 = vmul.f32 %v13408_v63, %v2619_v29  ;;  %v16554_v63 = vld [vmem:[#allocation19_spill] sm:$0xff] }
 0xbf0   : > { %v3866_v29 = vmul.f32 %v16554_v63, %v10405_v38  ;;  %v10521_v38 = vld [vmem:[%s13969_s8 + $0x610] sm:$0xff] }
 0xbf1   : > { %2623 = vrot.lane.b32.xlu0 %v2621_v7, %s13548_s10  ;;  %v10452_v7 = vld [vmem:[%s13969_s8 + $0x480] sm:$0xff]  ;;  %v10605_v63 = vld [vmem:[%s13969_s8 + $0x790] sm:$0xff] }
 0xbf2   : > { %v9586_v34 = vmul.f32 %v10606_v49, %v10605_v63 }
 0xc63   : > { %v2624_v59 = vpop.permute.xlu0 %2623 }
 0xc64   : > { %v2626_v56 = vadd.f32 %v10373_v58, %v2624_v59  ;;  %v10407_v58 = vld [vmem:[%s13969_s8 + $0x310] sm:$0xff] }
 0xc65   : > { %v10455_v59 = vld [vmem:[%s13969_s8 + $0x490] sm:$0xff] }
 0xc66   : > { %13409 = vtanh.f32 %v2626_v56  ;;  %v10518_v56 = vld [vmem:[%s13969_s8 + $0x600] sm:$0xff]  ;;  %v5731_v52 = vmul.f32 %v14321_v3, %v10455_v59 }
 0xc73   : > { %v13410_v57 = vpop.eup %13409 }
 0xc74   : > { %2630 = vrot.lane.b32.xlu1 %v13410_v57, %s13549_s17  ;;  %v16555_v57 = vld [vmem:[#allocation18_spill] sm:$0xff] }
 0xce6   : > { %v2631_v50 = vpop.permute.xlu1 %2630 }
 0xce7   : > { %v2633_v60 = vmul.f32 %v2631_v50, %v2628_v53  ;;  %v3862_v53 = vmul.f32 %v10404_v45, %v16555_v57  ;;  %v3871_v50 = vmul.f32 %v14317_v14, %v10407_v58  ;;  %v10397_v45 = vld [vmem:[%s13969_s8 + $0x298] sm:$0xff]  ;;  %v16556_v58 = vld [vmem:[#allocation20_spill] sm:$0xff] }
 0xce8   : > { %v10409_v14 = vld [vmem:[%s13969_s8 + $0x318] sm:$0xff]  ;;  %v5722_v12 = vmul.f32 %v10452_v7, %v16556_v58 }
 0xce9   : > { %v14486_v41 = vadd.f32 %v2634_v6, %v2633_v60  ;;  %v7631_v6 = vmul.f32 %v14146_v55, %v10519_v44  ;;  %v10602_v60 = vld [vmem:[%s13969_s8 + $0x780] sm:$0xff]  ;;  %v3867_v57 = vadd.f32 %v3866_v29, %v3862_v53  ;;  %v7627_v55 = vmul.f32 %v10518_v56, %v14138_v42  ;;  %v10457_v44 = vld [vmem:[%s13969_s8 + $0x498] sm:$0xff] }
 0xcea   : > { %v9577_v13 = vmul.f32 %v10602_v60, %v14310_v0  ;;  %v5727_v29 = vadd.f32 %v5726_v35, %v5722_v12  ;;  %v7636_v42 = vmul.f32 %v14331_v39, %v10521_v38  ;;  %v10523_v58 = vld [vmem:[%s13969_s8 + $0x618] sm:$0xff] }
 0xceb   : > { %16553 = vst [vmem:[#allocation22_spill] sm:$0xff] %v14486_v41  ;;  %2637 = vrot.lane.b32.xlu0 %v14486_v41, %s13549_s17  ;;  %v10604_v41 = vld [vmem:[%s13961_s26 + $0x8] sm:$0xff]  ;;  %v3872_v28 = vadd.f32 %v3871_v50, %v3867_v57  ;;  %v7632_v3 = vadd.f32 %v7631_v6, %v7627_v55  ;;  %v10577_v12 = vld [vmem:[%s13969_s8 + $0x718] sm:$0xff] }
 0xcec   : > { %v9581_v2 = vmul.f32 %v10604_v41, %v10603_v62  ;;  %v5732_v62 = vadd.f32 %v5731_v52, %v5727_v29  ;;  %v10607_v35 = vld [vmem:[%s13969_s8 + $0x798] sm:$0xff] }
 0xced   : > { %v16562_v29 = vld [vmem:[#allocation6_spill] sm:$0xff] }
 0xd5d   : > { %v14491_v40 = vpop.permute.xlu0 %2637 }
 0xd5e   : > { %10380 = vst.msk [vmem:[%s13961_s26 + $0x18] sm:$0xff] %vm272_vm1, %v14491_v40 }
 0xd65   : > { %v10388_v48 = vld [vmem:[%s13961_s26 + $0x18] sm:$0xff] }
 0xd66   : > { %v14526_v36 = vld [vmem:[%s13961_s26 + $0x18] sm:$0xff]  ;;  %v2661_v59 = vmul.f32 %v10388_v48, %v10387_v54  ;;  %v3266_v56 = vmul.f32 %v10397_v45, %v10388_v48  ;;  %v3876_v53 = vmul.f32 %v10409_v14, %v10388_v48  ;;  %v9582_v48 = vadd.f32 %v9581_v2, %v9577_v13 }
 0xd67   : > { %v14529_v7 = vld [vmem:[%s13961_s26 + $0x18] sm:$0xff]  ;;  %v5111_v0 = vmul.f32 %v10439_v46, %v14526_v36  ;;  %v5736_v41 = vmul.f32 %v10457_v44, %v14526_v36  ;;  %v16560_v46 = vld [vmem:[#allocation5_spill] sm:$0xff]  ;;  %v16561_v44 = vld [vmem:[#allocation8_spill] sm:$0xff] }
 0xd68   : > { %v7001_v50 = vmul.f32 %v10499_v51, %v14529_v7  ;;  %v14537_v60 = vld [vmem:[%s13961_s26 + $0x18] sm:$0xff]  ;;  %v2662_v6 = vadd.f32 %v2661_v59, %v14337_v61  ;;  %v14543_v39 = vadd.f32 %v3266_v56, %v14339_v47  ;;  %v14545_v54 = vadd.f32 %v3876_v53, %v3872_v28  ;;  %v16565_v59 = vld [vmem:[#allocation9_spill] sm:$0xff]  ;;  %v16566_v56 = vld [vmem:[#allocation11_spill] sm:$0xff] }
 0xd69   : > { %v14548_v49 = vadd.f32 %v5111_v0, %v14345_v32  ;;  %v14550_v38 = vadd.f32 %v5736_v41, %v5732_v62  ;;  %v7637_v51 = vadd.f32 %v7636_v42, %v7632_v3  ;;  %v7641_v45 = vmul.f32 %v10523_v58, %v14529_v7  ;;  %v16563_v3 = vld [vmem:[#allocation10_spill] sm:$0xff]  ;;  %v16564_v42 = vld [vmem:[#allocation7_spill] sm:$0xff]  ;;  %v16567_v53 = vld [vmem:[#allocation12_spill] sm:$0xff] }
 0xd6a   : > { %v14553_v63 = vadd.f32 %v7001_v50, %v14354_v1  ;;  %2664 = vrot.lane.b32.xlu1 %v2662_v6, %s13545_s11  ;;  %v8936_v61 = vmul.f32 %v10577_v12, %v14537_v60  ;;  %v9587_v47 = vadd.f32 %v9586_v34, %v9582_v48  ;;  %v9591_v28 = vmul.f32 %v10607_v35, %v14537_v60  ;;  %v16568_v58 = vld [vmem:[#allocation13_spill] sm:$0xff]  ;;  %v16569_v0 = vld [vmem:[#allocation14_spill] sm:$0xff] }
 0xd6b   : > { %16557 = vst [vmem:[#allocation19_spill] sm:$0xff] %v14548_v49  ;;  %v14559_v57 = vadd.f32 %v7641_v45, %v7637_v51 }
 0xd6c   : > { %16558 = vst [vmem:[#allocation18_spill] sm:$0xff] %v14553_v63  ;;  %v14562_v32 = vadd.f32 %v8936_v61, %v14359_v43  ;;  %v14564_v2 = vadd.f32 %v9591_v28, %v9587_v47 }
 0xd6e   : > { %16559 = vst [vmem:[#allocation20_spill] sm:$0xff] %v14562_v32 }
 0xddc   : > { %v2665_v13 = vpop.permute.xlu1 %2664 }
 0xddd   : > { %v2667_v1 = vsel %vm272_vm1, %v14491_v40, %v2665_v13 }
 0xdde   : > { %v2669_v14 = vsel %vm274_vm2, %v2667_v1, 0 }
 0xddf   : > { %v14569_v52 = vand.u32 4294901760, %v2669_v14 }
 0xde1   : > { %v2745_v55 = vsub.f32 %v2669_v14, %v14569_v52  ;;  %11996 = vmatmul.mubr.f32.vlgmr.msra.gmra.mxu1 %v14569_v52 }
 0xde2   : > { %12018 = vmatpush3.msra.mxu1 %v13658_v4  ;;  %12033 = vmatprep.mubr.msk.f32.mxu1 %vm13547_vm0, %v16535_v8 }
 0xde3   : > { %v2746_v34 = vand.u32 4294901760, %v2745_v55  ;;  %12019 = vmatprep.subr.mxu1 %v16535_v8 }
 0xde4   : > { %12020 = vmatpush3.msra.mxu1 %v13660_v5 }
 0xde5   : > { %12021 = vmatprep.subr.mxu1 %v16535_v8  ;;  %v2747_v43 = vsub.f32 %v2745_v55, %v2746_v34 }
 0xde6   : > { %12022 = vmatpush3.msra.mxu1 %v13671_v9 }
 0xde7   : > { %12023 = vmatprep.subr.mxu1 %v16535_v8  ;;  %v2748_v40 = vand.u32 4294901760, %v2747_v43 }
 0xde8   : > { %12024 = vmatpush3.msra.mxu1 %v13673_v10 }
 0xde9   : > { %12025 = vmatprep.subr.mxu1 %v16535_v8  ;;  %11977 = vmatmul.mubr.f32.vlgmr.msra.gmra.mxu0 %v2748_v40  ;;  %v10381_v40 = vld [vmem:[%s13945_s16 + $0x20] sm:$0xff] }
 0xdea   : > { %11999 = vmatpush3.msra.mxu0 %v13688_v15  ;;  %12026 = vmatpush3.msra.mxu1 %v13676_v11 }
 0xdeb   : > { %12000 = vmatprep.subr.mxu0 %v16535_v8  ;;  %12027 = vmatprep.subr.mxu1 %v16535_v8 }
 0xdec   : > { %12001 = vmatpush3.msra.mxu0 %v13691_v16  ;;  %12028 = vmatpush3.msra.mxu1 %v13694_v17 }
 0xded   : > { %12002 = vmatprep.subr.mxu0 %v16535_v8  ;;  %12029 = vmatprep.subr.mxu1 %v16535_v8 }
 0xdee   : > { %12003 = vmatpush3.msra.mxu0 %v13699_v19  ;;  %12030 = vmatpush3.msra.mxu1 %v13696_v18 }
 0xdef   : > { %12004 = vmatprep.subr.mxu0 %v16535_v8  ;;  %12031 = vmatprep.subr.mxu1 %v16535_v8 }
 0xdf0   : > { %12005 = vmatpush3.msra.mxu0 %v13702_v20  ;;  %12032 = vmatpush3.msra.mxu1 %v13708_v22 }
 0xdf1   : > { %12006 = vmatprep.subr.mxu0 %v16535_v8  ;;  %12034 = vmatmul.mubr.f32.vlgmr.msra.gmra.mxu1 %v2746_v34  ;;  %v16570_v34 = vld [vmem:[#allocation15_spill] sm:$0xff] }
 0xdf2   : > { %12055 = vmatprep.subr.mxu1 %v16535_v8  ;;  %12007 = vmatpush3.msra.mxu0 %v13705_v21 }
 0xdf3   : > { %12056 = vmatpush3.msra.mxu1 %v13658_v4  ;;  %12008 = vmatprep.subr.mxu0 %v16535_v8 }
 0xdf4   : > { %12057 = vmatprep.subr.mxu1 %v16535_v8  ;;  %12009 = vmatpush3.msra.mxu0 %v13718_v25 }
 0xdf5   : > { %12058 = vmatpush3.msra.mxu1 %v13660_v5  ;;  %12010 = vmatprep.subr.mxu0 %v16535_v8 }
 0xdf6   : > { %12059 = vmatprep.subr.mxu1 %v16535_v8  ;;  %12011 = vmatpush3.msra.mxu0 %v13736_v31 }
 0xdf7   : > { %12060 = vmatpush3.msra.mxu1 %v13671_v9  ;;  %12012 = vmatprep.subr.mxu0 %v16535_v8 }
 0xdf8   : > { %12061 = vmatprep.subr.mxu1 %v16535_v8  ;;  %12013 = vmatpush3.msra.mxu0 %v13742_v33 }
 0xdf9   : > { %12014 = vmatprep.mubr.msk.f32.mxu0 %vm13547_vm0, %v16535_v8  ;;  %12062 = vmatpush3.msra.mxu1 %v13673_v10 }
 0xdfa   : > { %12015 = vmatmul.mubr.f32.vlgmr.msra.gmra.mxu0 %v2745_v55  ;;  %12036 = vmatprep.subr.mxu0 %v16535_v8 }
 0xdfb   : > { %12063 = vmatprep.subr.mxu1 %v16535_v8  ;;  %12037 = vmatpush3.msra.mxu0 %v13711_v23 }
 0xdfc   : > { %12064 = vmatpush3.msra.mxu1 %v13676_v11  ;;  %12038 = vmatprep.subr.mxu0 %v16535_v8 }
 0xdfd   : > { %12065 = vmatprep.subr.mxu1 %v16535_v8  ;;  %12039 = vmatpush3.msra.mxu0 %v13714_v24 }
 0xdfe   : > { %12066 = vmatpush3.msra.mxu1 %v13694_v17  ;;  %12040 = vmatprep.subr.mxu0 %v16535_v8 }
 0xdff   : > { %12067 = vmatprep.subr.mxu1 %v16535_v8  ;;  %12041 = vmatpush3.msra.mxu0 %v13721_v26 }
 0xe00   : > { %12068 = vmatpush3.msra.mxu1 %v13696_v18  ;;  %12042 = vmatprep.subr.mxu0 %v16535_v8 }
 0xe01   : > { %12069 = vmatprep.subr.mxu1 %v16535_v8  ;;  %12043 = vmatpush3.msra.mxu0 %v13724_v27 }
 0xe02   : > { %12070 = vmatpush3.msra.mxu1 %v13708_v22  ;;  %12071 = vmatprep.mubr.msk.f32.mxu1 %vm13547_vm0, %v16535_v8 }
 0xe03   : > { %12044 = vmatprep.subr.mxu0 %v16535_v8  ;;  %12072 = vmatmul.mubr.f32.vlgmr.msra.gmra.mxu1 %v14569_v52 }
 0xe04   : > { %12045 = vmatpush3.msra.mxu0 %v13732_v30  ;;  %12052 = vmatprep.mubr.msk.f32.mxu0 %vm13547_vm0, %v16535_v8 }
 0xe05   : > { %12046 = vmatprep.subr.mxu0 %v16535_v8  ;;  %12093 = vmatprep.subr.mxu1 %v16535_v8 }
 0xe06   : > { %12047 = vmatpush3.msra.mxu0 %v13751_v37  ;;  %12094 = vmatpush3.msra.mxu1 %v16560_v46 }
 0xe07   : > { %12048 = vmatprep.subr.mxu0 %v16535_v8  ;;  %12095 = vmatprep.subr.mxu1 %v16535_v8 }
 0xe08   : > { %12049 = vmatpush3.msra.mxu0 %v16561_v44  ;;  %12096 = vmatpush3.msra.mxu1 %v16562_v29 }
 0xe09   : > { %12050 = vmatprep.subr.mxu0 %v16535_v8  ;;  %12097 = vmatprep.subr.mxu1 %v16535_v8 }
 0xe0a   : > { %12051 = vmatpush3.msra.mxu0 %v16563_v3  ;;  %12098 = vmatpush3.msra.mxu1 %v16564_v42 }
 0xe0b   : > { %12053 = vmatmul.mubr.f32.vlgmr.msra.gmra.mxu0 %v14569_v52  ;;  %12099 = vmatprep.subr.mxu1 %v16535_v8 }
 0xe0c   : > { %12100 = vmatpush3.msra.mxu1 %v16565_v59  ;;  %12074 = vmatprep.subr.mxu0 %v16535_v8 }
 0xe0d   : > { %12101 = vmatprep.subr.mxu1 %v16535_v8  ;;  %12075 = vmatpush3.msra.mxu0 %v13658_v4 }
 0xe0e   : > { %12102 = vmatpush3.msra.mxu1 %v16566_v56  ;;  %12076 = vmatprep.subr.mxu0 %v16535_v8 }
 0xe0f   : > { %12103 = vmatprep.subr.mxu1 %v16535_v8  ;;  %12077 = vmatpush3.msra.mxu0 %v13660_v5 }
 0xe10   : > { %12104 = vmatpush3.msra.mxu1 %v16567_v53  ;;  %12078 = vmatprep.subr.mxu0 %v16535_v8 }
 0xe11   : > { %12105 = vmatprep.subr.mxu1 %v16535_v8  ;;  %12079 = vmatpush3.msra.mxu0 %v13671_v9 }
 0xe12   : > { %12106 = vmatpush3.msra.mxu1 %v16568_v58  ;;  %12080 = vmatprep.subr.mxu0 %v16535_v8 }
 0xe13   : > { %12107 = vmatprep.subr.mxu1 %v16535_v8  ;;  %12081 = vmatpush3.msra.mxu0 %v13673_v10 }
 0xe14   : > { %12108 = vmatpush3.msra.mxu1 %v16569_v0  ;;  %12082 = vmatprep.subr.mxu0 %v16535_v8 }
 0xe15   : > { %12109 = vmatprep.mubr.msk.f32.mxu1 %vm13547_vm0, %v16535_v8  ;;  %12131 = vmatprep.subr.mxu1 %v16535_v8 }
 0xe16   : > { %12083 = vmatpush3.msra.mxu0 %v13676_v11  ;;  %12090 = vmatprep.mubr.msk.f32.mxu0 %vm13547_vm0, %v16535_v8 }
 0xe17   : > { %12084 = vmatprep.subr.mxu0 %v16535_v8 }
 0xe18   : > { %12085 = vmatpush3.msra.mxu0 %v13694_v17 }
 0xe19   : > { %12086 = vmatprep.subr.mxu0 %v16535_v8 }
 0xe1a   : > { %12087 = vmatpush3.msra.mxu0 %v13696_v18 }
 0xe1b   : > { %12088 = vmatprep.subr.mxu0 %v16535_v8 }
 0xe1c   : > { %12089 = vmatpush3.msra.mxu0 %v13708_v22 }
 0xe1d   : > { %12112 = vmatprep.subr.mxu0 %v16535_v8 }
 0xea1   : > { %v2861_v62 = vpop.f32.mrf.mxu1 }
 0xea3   : > { %v11997_v41 = vpop.f32.mrf.mxu1 }
 0xea9   : > { %v2750_v50 = vpop.f32.mrf.mxu0 }
 0xeaa   : > { %v2862_v61 = vadd.f32 %v2861_v62, %v2750_v50 }
 0xeab   : > { %v11978_v12 = vpop.f32.mrf.mxu0 }
 0xeb1   : > { %v3030_v35 = vpop.f32.mrf.mxu1 }
 0xeb3   : > { %v12035_v6 = vpop.f32.mrf.mxu1 }
 0xeba   : > { %v2949_v48 = vpop.f32.mrf.mxu0 }
 0xebb   : > { %v2950_v28 = vadd.f32 %v2949_v48, %v2862_v61 }
 0xebc   : > { %v12016_v51 = vpop.f32.mrf.mxu0 }
 0xebd   : > { %v3031_v13 = vadd.f32 %v3030_v35, %v2950_v28 }
 0xec3   : > { %v3204_v45 = vpop.f32.mrf.mxu1 }
 0xec5   : > { %v12073_v47 = vpop.f32.mrf.mxu1 }
 0xecb   : > { %v3125_v1 = vpop.f32.mrf.mxu0 }
 0xecc   : > { %v3126_v14 = vadd.f32 %v3125_v1, %v3031_v13  ;;  %v16572_v13 = vld [vmem:[#allocation22_spill] sm:$0xff] }
 0xecd   : > { %v12054_v52 = vpop.f32.mrf.mxu0 }
 0xece   : > { %v3205_v55 = vadd.f32 %v3204_v45, %v3126_v14 }
 0xed0   : > { %v3221_v43 = vadd.f32 %v3205_v55, %v16570_v34  ;;  %v14686_v41 = vadd.f32 %v10381_v40, %v3205_v55  ;;  %v10551_v34 = vld [vmem:[%s13969_s8 + $0x6a0] sm:$0xff] }
 0xed2   : > { %3223 = vrot.lane.b32.xlu0 %v3221_v43, %s13548_s10  ;;  %16571 = vst [vmem:[#allocation5_spill] sm:$0xff] %v14686_v41  ;;  %v10389_v12 = vmul.f32 -1.442695, %v14686_v41  ;;  %v10423_v43 = vld [vmem:[%s13969_s8 + $0x398] sm:$0xff] }
 0xed4   : > { %13411 = vpow2.f32 %v10389_v12  ;;  %v4491_v12 = vmul.f32 %v14526_v36, %v10423_v43 }
 0xee1   : > { %v13412_v6 = vpop.eup %13411 }
 0xee2   : > { %v3218_v51 = vadd.f32 1.0, %v13412_v6  ;;  %v10549_v6 = vld [vmem:[%s13969_s8 + $0x698] sm:$0xff] }
 0xee3   : > { %v8286_v32 = vmul.f32 %v14537_v60, %v10549_v6 }
 0xee4   : > { %13413 = vrcp.f32 %v3218_v51  ;;  %v10399_v51 = vld [vmem:[%s13969_s8 + $0x2a0] sm:$0xff] }
 0xef1   : > { %v13414_v62 = vpop.eup %13413 }
 0xef2   : > { %v3233_v47 = vsub.f32 1.0, %v13414_v62  ;;  %v3239_v1 = vmul.f32 %v13414_v62, %v16572_v13 }
 0xf44   : > { %v3224_v50 = vpop.permute.xlu0 %3223 }
 0xf45   : > { %v3226_v35 = vmul.f32 %v13414_v62, %v3224_v50  ;;  %v10411_v62 = vld [vmem:[%s13969_s8 + $0x320] sm:$0xff] }
 0xf46   : > { %v10425_v50 = vld [vmem:[%s13969_s8 + $0x3a0] sm:$0xff] }
 0xf47   : > { %3228 = vrot.lane.b32.xlu1 %v3226_v35, %s13548_s10 }
 0xfb9   : > { %v3229_v48 = vpop.permute.xlu1 %3228 }
 0xfba   : > { %v3231_v45 = vadd.f32 %v10381_v40, %v3229_v48  ;;  %v10477_v40 = vld [vmem:[%s13969_s8 + $0x518] sm:$0xff]  ;;  %v10459_v48 = vld [vmem:[%s13969_s8 + $0x4a0] sm:$0xff] }
 0xfbb   : > { %v6366_v35 = vmul.f32 %v14529_v7, %v10477_v40  ;;  %v16575_v40 = vld [vmem:[#allocation24_spill] sm:$0xff] }
 0xfbc   : > { %13415 = vtanh.f32 %v3231_v45  ;;  %v10479_v45 = vld [vmem:[%s13969_s8 + $0x520] sm:$0xff] }
 0xfbd   : > { %v6367_v63 = vadd.f32 %v6366_v35, %v16575_v40  ;;  %v16578_v35 = vld [vmem:[#allocation25_spill] sm:$0xff] }
 0xfc9   : > { %v13416_v61 = vpop.eup %13415 }
 0xfca   : > { %3235 = vrot.lane.b32.xlu0 %v13416_v61, %s13549_s17  ;;  %v10525_v61 = vld [vmem:[%s13969_s8 + $0x620] sm:$0xff] }
0x103c   : > { %v3236_v28 = vpop.permute.xlu0 %3235 }
0x103d   : > { %v3238_v14 = vmul.f32 %v3236_v28, %v3233_v47  ;;  %v16574_v28 = vld [vmem:[#allocation23_spill] sm:$0xff] }
0x103e   : > { %v4492_v13 = vadd.f32 %v4491_v12, %v16574_v28  ;;  %v10609_v12 = vld [vmem:[%s13969_s8 + $0x7a0] sm:$0xff] }
0x103f   : > { %v14692_v52 = vadd.f32 %v3239_v1, %v3238_v14 }
0x1041   : > { %16573 = vst [vmem:[#allocation8_spill] sm:$0xff] %v14692_v52  ;;  %3242 = vrot.lane.b32.xlu1 %v14692_v52, %s13549_s17 }
0x10b3   : > { %v3243_v55 = vpop.permute.xlu1 %3242 }
0x10b4   : > { %10390 = vst.msk [vmem:[%s13961_s26 + $0x20] sm:$0xff] %vm272_vm1, %v3243_v55 }
0x10bb   : > { %v10400_v47 = vld [vmem:[%s13961_s26 + $0x20] sm:$0xff] }
0x10bc   : > { %v14712_v1 = vld [vmem:[%s13961_s26 + $0x20] sm:$0xff]  ;;  %v3271_v36 = vmul.f32 %v10400_v47, %v10399_v51  ;;  %v3881_v43 = vmul.f32 %v10411_v62, %v10400_v47  ;;  %v4496_v41 = vmul.f32 %v10425_v50, %v10400_v47 }
0x10bd   : > { %v14715_v14 = vld [vmem:[%s13961_s26 + $0x20] sm:$0xff]  ;;  %v5741_v7 = vmul.f32 %v10459_v48, %v14712_v1  ;;  %v6371_v49 = vmul.f32 %v10479_v45, %v14712_v1  ;;  %v8287_v48 = vadd.f32 %v8286_v32, %v16578_v35 }
0x10be   : > { %v7646_v52 = vmul.f32 %v10525_v61, %v14715_v14  ;;  %v14724_v0 = vld [vmem:[%s13961_s26 + $0x20] sm:$0xff]  ;;  %v3272_v28 = vadd.f32 %v3271_v36, %v14543_v39  ;;  %v14729_v51 = vadd.f32 %v3881_v43, %v14545_v54  ;;  %v14731_v62 = vadd.f32 %v4496_v41, %v4492_v13 }
0x10bf   : > { %v14734_v60 = vadd.f32 %v5741_v7, %v14550_v38  ;;  %v14736_v6 = vadd.f32 %v6371_v49, %v6367_v63  ;;  %v8291_v45 = vmul.f32 %v10551_v34, %v14715_v14  ;;  %v9596_v39 = vmul.f32 %v10609_v12, %v14724_v0 }
0x10c0   : > { %v14739_v50 = vadd.f32 %v7646_v52, %v14559_v57  ;;  %3274 = vrot.lane.b32.xlu0 %v3272_v28, %s13545_s11 }
0x10c1   : > { %16576 = vst [vmem:[#allocation6_spill] sm:$0xff] %v14734_v60  ;;  %v14745_v54 = vadd.f32 %v8291_v45, %v8287_v48  ;;  %v14748_v41 = vadd.f32 %v9596_v39, %v14564_v2 }
0x10c2   : > { %16577 = vst [vmem:[#allocation10_spill] sm:$0xff] %v14739_v50  ;;  %v16586_v50 = vld [vmem:[#allocation18_spill] sm:$0xff] }
0x10c3   : > { %16579 = vst [vmem:[#allocation7_spill] sm:$0xff] %v14748_v41 }
0x1132   : > { %v3275_v38 = vpop.permute.xlu0 %3274 }
0x1133   : > { %v3277_v49 = vsel %vm272_vm1, %v3243_v55, %v3275_v38  ;;  %v16580_v55 = vld [vmem:[#allocation14_spill] sm:$0xff] }
0x1134   : > { %v3279_v63 = vsel %vm274_vm2, %v3277_v49, 0 }
0x1135   : > { %v14752_v57 = vand.u32 4294901760, %v3279_v63 }
0x1137   : > { %v3355_v52 = vsub.f32 %v3279_v63, %v14752_v57  ;;  %12110 = vmatmul.mubr.f32.vlgmr.msra.gmra.mxu1 %v14752_v57 }
0x1138   : > { %12132 = vmatpush3.msra.mxu1 %v13658_v4  ;;  %12147 = vmatprep.mubr.msk.f32.mxu1 %vm13547_vm0, %v16535_v8 }
0x1139   : > { %v3356_v32 = vand.u32 4294901760, %v3355_v52  ;;  %12133 = vmatprep.subr.mxu1 %v16535_v8 }
0x113a   : > { %12134 = vmatpush3.msra.mxu1 %v13660_v5 }
0x113b   : > { %12135 = vmatprep.subr.mxu1 %v16535_v8  ;;  %v3357_v2 = vsub.f32 %v3355_v52, %v3356_v32 }
0x113c   : > { %12136 = vmatpush3.msra.mxu1 %v13671_v9 }
0x113d   : > { %12137 = vmatprep.subr.mxu1 %v16535_v8  ;;  %v3358_v34 = vand.u32 4294901760, %v3357_v2  ;;  %v10391_v2 = vld [vmem:[%s13945_s16 + $0x28] sm:$0xff] }
0x113e   : > { %12138 = vmatpush3.msra.mxu1 %v13673_v10 }
0x113f   : > { %12139 = vmatprep.subr.mxu1 %v16535_v8  ;;  %12091 = vmatmul.mubr.f32.vlgmr.msra.gmra.mxu0 %v3358_v34 }
0x1140   : > { %12113 = vmatpush3.msra.mxu0 %v13688_v15  ;;  %12140 = vmatpush3.msra.mxu1 %v13676_v11 }
0x1141   : > { %12114 = vmatprep.subr.mxu0 %v16535_v8  ;;  %12141 = vmatprep.subr.mxu1 %v16535_v8 }
0x1142   : > { %12115 = vmatpush3.msra.mxu0 %v13691_v16  ;;  %12142 = vmatpush3.msra.mxu1 %v13694_v17 }
0x1143   : > { %12116 = vmatprep.subr.mxu0 %v16535_v8  ;;  %12143 = vmatprep.subr.mxu1 %v16535_v8 }
0x1144   : > { %12117 = vmatpush3.msra.mxu0 %v13699_v19  ;;  %12144 = vmatpush3.msra.mxu1 %v13696_v18 }
0x1145   : > { %12118 = vmatprep.subr.mxu0 %v16535_v8  ;;  %12145 = vmatprep.subr.mxu1 %v16535_v8 }
0x1146   : > { %12119 = vmatpush3.msra.mxu0 %v13702_v20  ;;  %12146 = vmatpush3.msra.mxu1 %v13708_v22 }
0x1147   : > { %12120 = vmatprep.subr.mxu0 %v16535_v8  ;;  %12148 = vmatmul.mubr.f32.vlgmr.msra.gmra.mxu1 %v3356_v32 }
0x1148   : > { %12169 = vmatprep.subr.mxu1 %v16535_v8  ;;  %12121 = vmatpush3.msra.mxu0 %v13705_v21 }
0x1149   : > { %12170 = vmatpush3.msra.mxu1 %v13658_v4  ;;  %12122 = vmatprep.subr.mxu0 %v16535_v8 }
0x114a   : > { %12171 = vmatprep.subr.mxu1 %v16535_v8  ;;  %12123 = vmatpush3.msra.mxu0 %v13718_v25 }
0x114b   : > { %12172 = vmatpush3.msra.mxu1 %v13660_v5  ;;  %12124 = vmatprep.subr.mxu0 %v16535_v8 }
0x114c   : > { %12173 = vmatprep.subr.mxu1 %v16535_v8  ;;  %12125 = vmatpush3.msra.mxu0 %v13736_v31 }
0x114d   : > { %12174 = vmatpush3.msra.mxu1 %v13671_v9  ;;  %12126 = vmatprep.subr.mxu0 %v16535_v8 }
0x114e   : > { %12175 = vmatprep.subr.mxu1 %v16535_v8  ;;  %12127 = vmatpush3.msra.mxu0 %v13742_v33 }
0x114f   : > { %12128 = vmatprep.mubr.msk.f32.mxu0 %vm13547_vm0, %v16535_v8  ;;  %12176 = vmatpush3.msra.mxu1 %v13673_v10 }
0x1150   : > { %12129 = vmatmul.mubr.f32.vlgmr.msra.gmra.mxu0 %v3355_v52  ;;  %12150 = vmatprep.subr.mxu0 %v16535_v8  ;;  %v16581_v52 = vld [vmem:[#allocation15_spill] sm:$0xff] }
0x1151   : > { %12177 = vmatprep.subr.mxu1 %v16535_v8  ;;  %12151 = vmatpush3.msra.mxu0 %v13711_v23 }
0x1152   : > { %12178 = vmatpush3.msra.mxu1 %v13676_v11  ;;  %12152 = vmatprep.subr.mxu0 %v16535_v8 }
0x1153   : > { %12179 = vmatprep.subr.mxu1 %v16535_v8  ;;  %12153 = vmatpush3.msra.mxu0 %v13714_v24 }
0x1154   : > { %12180 = vmatpush3.msra.mxu1 %v13694_v17  ;;  %12154 = vmatprep.subr.mxu0 %v16535_v8 }
0x1155   : > { %12181 = vmatprep.subr.mxu1 %v16535_v8  ;;  %12155 = vmatpush3.msra.mxu0 %v13721_v26 }
0x1156   : > { %12182 = vmatpush3.msra.mxu1 %v13696_v18  ;;  %12156 = vmatprep.subr.mxu0 %v16535_v8 }
0x1157   : > { %12183 = vmatprep.subr.mxu1 %v16535_v8  ;;  %12157 = vmatpush3.msra.mxu0 %v13724_v27 }
0x1158   : > { %12184 = vmatpush3.msra.mxu1 %v13708_v22  ;;  %12185 = vmatprep.mubr.msk.f32.mxu1 %vm13547_vm0, %v16535_v8 }
0x1159   : > { %12158 = vmatprep.subr.mxu0 %v16535_v8  ;;  %12186 = vmatmul.mubr.f32.vlgmr.msra.gmra.mxu1 %v14752_v57 }
0x115a   : > { %12159 = vmatpush3.msra.mxu0 %v13732_v30  ;;  %12166 = vmatprep.mubr.msk.f32.mxu0 %vm13547_vm0, %v16535_v8 }
0x115b   : > { %12160 = vmatprep.subr.mxu0 %v16535_v8  ;;  %12207 = vmatprep.subr.mxu1 %v16535_v8 }
0x115c   : > { %12161 = vmatpush3.msra.mxu0 %v13751_v37  ;;  %12208 = vmatpush3.msra.mxu1 %v16560_v46 }
0x115d   : > { %12162 = vmatprep.subr.mxu0 %v16535_v8  ;;  %12209 = vmatprep.subr.mxu1 %v16535_v8 }
0x115e   : > { %12163 = vmatpush3.msra.mxu0 %v16561_v44  ;;  %12210 = vmatpush3.msra.mxu1 %v16562_v29 }
0x115f   : > { %12164 = vmatprep.subr.mxu0 %v16535_v8  ;;  %12211 = vmatprep.subr.mxu1 %v16535_v8 }
0x1160   : > { %12165 = vmatpush3.msra.mxu0 %v16563_v3  ;;  %12212 = vmatpush3.msra.mxu1 %v16564_v42 }
0x1161   : > { %12167 = vmatmul.mubr.f32.vlgmr.msra.gmra.mxu0 %v14752_v57  ;;  %12213 = vmatprep.subr.mxu1 %v16535_v8 }
0x1162   : > { %12214 = vmatpush3.msra.mxu1 %v16565_v59  ;;  %12188 = vmatprep.subr.mxu0 %v16535_v8 }
0x1163   : > { %12215 = vmatprep.subr.mxu1 %v16535_v8  ;;  %12189 = vmatpush3.msra.mxu0 %v13658_v4 }
0x1164   : > { %12216 = vmatpush3.msra.mxu1 %v16566_v56  ;;  %12190 = vmatprep.subr.mxu0 %v16535_v8 }
0x1165   : > { %12217 = vmatprep.subr.mxu1 %v16535_v8  ;;  %12191 = vmatpush3.msra.mxu0 %v13660_v5 }
0x1166   : > { %12218 = vmatpush3.msra.mxu1 %v16567_v53  ;;  %12192 = vmatprep.subr.mxu0 %v16535_v8 }
0x1167   : > { %12219 = vmatprep.subr.mxu1 %v16535_v8  ;;  %12193 = vmatpush3.msra.mxu0 %v13671_v9 }
0x1168   : > { %12220 = vmatpush3.msra.mxu1 %v16568_v58  ;;  %12194 = vmatprep.subr.mxu0 %v16535_v8 }
0x1169   : > { %12221 = vmatprep.subr.mxu1 %v16535_v8  ;;  %12195 = vmatpush3.msra.mxu0 %v13673_v10 }
0x116a   : > { %12222 = vmatpush3.msra.mxu1 %v16580_v55  ;;  %12196 = vmatprep.subr.mxu0 %v16535_v8 }
0x116b   : > { %12223 = vmatprep.mubr.msk.f32.mxu1 %vm13547_vm0, %v16535_v8  ;;  %12245 = vmatprep.subr.mxu1 %v16535_v8 }
0x116c   : > { %12197 = vmatpush3.msra.mxu0 %v13676_v11  ;;  %12204 = vmatprep.mubr.msk.f32.mxu0 %vm13547_vm0, %v16535_v8 }
0x116d   : > { %12198 = vmatprep.subr.mxu0 %v16535_v8 }
0x116e   : > { %12199 = vmatpush3.msra.mxu0 %v13694_v17 }
0x116f   : > { %12200 = vmatprep.subr.mxu0 %v16535_v8 }
0x1170   : > { %12201 = vmatpush3.msra.mxu0 %v13696_v18 }
0x1171   : > { %12202 = vmatprep.subr.mxu0 %v16535_v8 }
0x1172   : > { %12203 = vmatpush3.msra.mxu0 %v13708_v22 }
0x1173   : > { %12226 = vmatprep.subr.mxu0 %v16535_v8 }
0x11f7   : > { %v3471_v61 = vpop.f32.mrf.mxu1 }
0x11f9   : > { %v12111_v47 = vpop.f32.mrf.mxu1 }
0x11ff   : > { %v3360_v13 = vpop.f32.mrf.mxu0 }
0x1200   : > { %v3472_v35 = vadd.f32 %v3471_v61, %v3360_v13 }
0x1201   : > { %v12092_v36 = vpop.f32.mrf.mxu0 }
0x1207   : > { %v3640_v43 = vpop.f32.mrf.mxu1 }
0x1209   : > { %v12149_v7 = vpop.f32.mrf.mxu1 }
0x1210   : > { %v3559_v40 = vpop.f32.mrf.mxu0 }
0x1211   : > { %v3560_v45 = vadd.f32 %v3559_v40, %v3472_v35 }
0x1212   : > { %v12130_v12 = vpop.f32.mrf.mxu0 }
0x1213   : > { %v3641_v39 = vadd.f32 %v3640_v43, %v3560_v45  ;;  %v16583_v45 = vld [vmem:[#allocation8_spill] sm:$0xff] }
0x1219   : > { %v3814_v28 = vpop.f32.mrf.mxu1 }
0x121b   : > { %v12187_v48 = vpop.f32.mrf.mxu1 }
0x1221   : > { %v3735_v38 = vpop.f32.mrf.mxu0 }
0x1222   : > { %v3736_v49 = vadd.f32 %v3735_v38, %v3641_v39 }
0x1223   : > { %v12168_v63 = vpop.f32.mrf.mxu0 }
0x1224   : > { %v3815_v57 = vadd.f32 %v3814_v28, %v3736_v49 }
0x1226   : > { %v3831_v32 = vadd.f32 %v3815_v57, %v16581_v52  ;;  %v14869_v34 = vadd.f32 %v10391_v2, %v3815_v57  ;;  %v10441_v57 = vld [vmem:[%s13969_s8 + $0x420] sm:$0xff] }
0x1228   : > { %3833 = vrot.lane.b32.xlu1 %v3831_v32, %s13548_s10  ;;  %16582 = vst [vmem:[#allocation9_spill] sm:$0xff] %v14869_v34  ;;  %v10401_v47 = vmul.f32 -1.442695, %v14869_v34  ;;  %v10501_v32 = vld [vmem:[%s13969_s8 + $0x5a0] sm:$0xff] }
0x122a   : > { %13417 = vpow2.f32 %v10401_v47  ;;  %v10579_v47 = vld [vmem:[%s13969_s8 + $0x720] sm:$0xff] }
0x1237   : > { %v13418_v36 = vpop.eup %13417 }
0x1238   : > { %v3828_v7 = vadd.f32 1.0, %v13418_v36  ;;  %v10413_v36 = vld [vmem:[%s13969_s8 + $0x328] sm:$0xff] }
0x123a   : > { %13419 = vrcp.f32 %v3828_v7  ;;  %v10427_v7 = vld [vmem:[%s13969_s8 + $0x3a8] sm:$0xff] }
0x1247   : > { %v13420_v61 = vpop.eup %13419 }
0x1248   : > { %v3843_v35 = vsub.f32 1.0, %v13420_v61  ;;  %v3849_v39 = vmul.f32 %v13420_v61, %v16583_v45 }
0x129a   : > { %v3834_v13 = vpop.permute.xlu1 %3833 }
0x129b   : > { %v3836_v43 = vmul.f32 %v13420_v61, %v3834_v13  ;;  %v10443_v61 = vld [vmem:[%s13969_s8 + $0x428] sm:$0xff]  ;;  %v7006_v13 = vmul.f32 %v14715_v14, %v10501_v32 }
0x129d   : > { %3838 = vrot.lane.b32.xlu0 %v3836_v43, %s13548_s10  ;;  %v10481_v43 = vld [vmem:[%s13969_s8 + $0x528] sm:$0xff]  ;;  %v7007_v14 = vadd.f32 %v7006_v13, %v16586_v50 }
0x129e   : > { %v16589_v50 = vld [vmem:[#allocation20_spill] sm:$0xff] }
0x130f   : > { %v3839_v40 = vpop.permute.xlu0 %3838 }
0x1310   : > { %v3841_v12 = vadd.f32 %v10391_v2, %v3839_v40  ;;  %v5116_v2 = vmul.f32 %v14712_v1, %v10441_v57  ;;  %v10503_v40 = vld [vmem:[%s13969_s8 + $0x5a8] sm:$0xff]  ;;  %v8941_v57 = vmul.f32 %v14724_v0, %v10579_v47 }
0x1312   : > { %13421 = vtanh.f32 %v3841_v12  ;;  %v10553_v12 = vld [vmem:[%s13969_s8 + $0x6a8] sm:$0xff] }
0x131f   : > { %v13422_v28 = vpop.eup %13421 }
0x1320   : > { %3845 = vrot.lane.b32.xlu1 %v13422_v28, %s13549_s17 }
0x1392   : > { %v3846_v48 = vpop.permute.xlu1 %3845 }
0x1393   : > { %v3848_v38 = vmul.f32 %v3846_v48, %v3843_v35  ;;  %v16585_v35 = vld [vmem:[#allocation19_spill] sm:$0xff] }
0x1394   : > { %v5117_v48 = vadd.f32 %v5116_v2, %v16585_v35 }
0x1395   : > { %v14875_v49 = vadd.f32 %v3849_v39, %v3848_v38 }
0x1397   : > { %16584 = vst [vmem:[#allocation11_spill] sm:$0xff] %v14875_v49  ;;  %3852 = vrot.lane.b32.xlu0 %v14875_v49, %s13549_s17  ;;  %v10581_v49 = vld [vmem:[%s13969_s8 + $0x728] sm:$0xff] }
0x1409   : > { %v3853_v63 = vpop.permute.xlu0 %3852 }
0x140a   : > { %10402 = vst.msk [vmem:[%s13961_s26 + $0x28] sm:$0xff] %vm272_vm1, %v3853_v63 }
0x1411   : > { %v10414_v28 = vld [vmem:[%s13961_s26 + $0x28] sm:$0xff] }
0x1412   : > { %v14895_v45 = vld [vmem:[%s13961_s26 + $0x28] sm:$0xff]  ;;  %v3886_v38 = vmul.f32 %v10414_v28, %v10413_v36  ;;  %v4501_v34 = vmul.f32 %v10427_v7, %v10414_v28  ;;  %v5121_v1 = vmul.f32 %v10443_v61, %v10414_v28  ;;  %v8942_v7 = vadd.f32 %v8941_v57, %v16589_v50 }
0x1413   : > { %v14898_v39 = vld [vmem:[%s13961_s26 + $0x28] sm:$0xff]  ;;  %v6376_v41 = vmul.f32 %v10481_v43, %v14895_v45  ;;  %v7011_v32 = vmul.f32 %v10503_v40, %v14895_v45 }
0x1414   : > { %v8296_v60 = vmul.f32 %v10553_v12, %v14898_v39  ;;  %v3887_v2 = vadd.f32 %v3886_v38, %v14729_v51  ;;  %v14908_v35 = vadd.f32 %v4501_v34, %v14731_v62  ;;  %v14910_v52 = vadd.f32 %v5121_v1, %v5117_v48 }
0x1415   : > { %v14913_v36 = vadd.f32 %v6376_v41, %v14736_v6  ;;  %v14915_v0 = vadd.f32 %v7011_v32, %v7007_v14  ;;  %v8946_v61 = vmul.f32 %v10581_v49, %v14898_v39 }
0x1416   : > { %v14918_v47 = vadd.f32 %v8296_v60, %v14745_v54  ;;  %3889 = vrot.lane.b32.xlu1 %v3887_v2, %s13545_s11 }
0x1417   : > { %16587 = vst [vmem:[#allocation12_spill] sm:$0xff] %v14913_v36  ;;  %v14923_v51 = vadd.f32 %v8946_v61, %v8942_v7 }
0x1418   : > { %16588 = vst [vmem:[#allocation13_spill] sm:$0xff] %v14918_v47  ;;  %v16595_v47 = vld [vmem:[#allocation10_spill] sm:$0xff] }
0x1488   : > { %v3890_v62 = vpop.permute.xlu1 %3889 }
0x1489   : > { %v3892_v34 = vsel %vm272_vm1, %v3853_v63, %v3890_v62 }
0x148a   : > { %v3894_v13 = vsel %vm274_vm2, %v3892_v34, 0 }
0x148b   : > { %v14927_v6 = vand.u32 4294901760, %v3894_v13 }
0x148d   : > { %v3970_v41 = vsub.f32 %v3894_v13, %v14927_v6  ;;  %12224 = vmatmul.mubr.f32.vlgmr.msra.gmra.mxu1 %v14927_v6  ;;  %v16590_v13 = vld [vmem:[#allocation15_spill] sm:$0xff] }
0x148e   : > { %12246 = vmatpush3.msra.mxu1 %v13658_v4  ;;  %12261 = vmatprep.mubr.msk.f32.mxu1 %vm13547_vm0, %v16535_v8 }
0x148f   : > { %v3971_v60 = vand.u32 4294901760, %v3970_v41  ;;  %12247 = vmatprep.subr.mxu1 %v16535_v8 }
0x1490   : > { %12248 = vmatpush3.msra.mxu1 %v13660_v5 }
0x1491   : > { %12249 = vmatprep.subr.mxu1 %v16535_v8  ;;  %v3972_v54 = vsub.f32 %v3970_v41, %v3971_v60 }
0x1492   : > { %12250 = vmatpush3.msra.mxu1 %v13671_v9 }
0x1493   : > { %12251 = vmatprep.subr.mxu1 %v16535_v8  ;;  %v3973_v49 = vand.u32 4294901760, %v3972_v54 }
0x1494   : > { %12252 = vmatpush3.msra.mxu1 %v13673_v10 }
0x1495   : > { %12253 = vmatprep.subr.mxu1 %v16535_v8  ;;  %12205 = vmatmul.mubr.f32.vlgmr.msra.gmra.mxu0 %v3973_v49 }
0x1496   : > { %12227 = vmatpush3.msra.mxu0 %v13688_v15  ;;  %12254 = vmatpush3.msra.mxu1 %v13676_v11 }
0x1497   : > { %12228 = vmatprep.subr.mxu0 %v16535_v8  ;;  %12255 = vmatprep.subr.mxu1 %v16535_v8 }
0x1498   : > { %12229 = vmatpush3.msra.mxu0 %v13691_v16  ;;  %12256 = vmatpush3.msra.mxu1 %v13694_v17 }
0x1499   : > { %12230 = vmatprep.subr.mxu0 %v16535_v8  ;;  %12257 = vmatprep.subr.mxu1 %v16535_v8 }
0x149a   : > { %12231 = vmatpush3.msra.mxu0 %v13699_v19  ;;  %12258 = vmatpush3.msra.mxu1 %v13696_v18 }
0x149b   : > { %12232 = vmatprep.subr.mxu0 %v16535_v8  ;;  %12259 = vmatprep.subr.mxu1 %v16535_v8 }
0x149c   : > { %12233 = vmatpush3.msra.mxu0 %v13702_v20  ;;  %12260 = vmatpush3.msra.mxu1 %v13708_v22 }
0x149d   : > { %12234 = vmatprep.subr.mxu0 %v16535_v8  ;;  %12262 = vmatmul.mubr.f32.vlgmr.msra.gmra.mxu1 %v3971_v60 }
0x149e   : > { %12283 = vmatprep.subr.mxu1 %v16535_v8  ;;  %12235 = vmatpush3.msra.mxu0 %v13705_v21 }
0x149f   : > { %12284 = vmatpush3.msra.mxu1 %v13658_v4  ;;  %12236 = vmatprep.subr.mxu0 %v16535_v8 }
0x14a0   : > { %12285 = vmatprep.subr.mxu1 %v16535_v8  ;;  %12237 = vmatpush3.msra.mxu0 %v13718_v25 }
0x14a1   : > { %12286 = vmatpush3.msra.mxu1 %v13660_v5  ;;  %12238 = vmatprep.subr.mxu0 %v16535_v8 }
0x14a2   : > { %12287 = vmatprep.subr.mxu1 %v16535_v8  ;;  %12239 = vmatpush3.msra.mxu0 %v13736_v31 }
0x14a3   : > { %12288 = vmatpush3.msra.mxu1 %v13671_v9  ;;  %12240 = vmatprep.subr.mxu0 %v16535_v8 }
0x14a4   : > { %12289 = vmatprep.subr.mxu1 %v16535_v8  ;;  %12241 = vmatpush3.msra.mxu0 %v13742_v33 }
0x14a5   : > { %12242 = vmatprep.mubr.msk.f32.mxu0 %vm13547_vm0, %v16535_v8  ;;  %12290 = vmatpush3.msra.mxu1 %v13673_v10 }
0x14a6   : > { %12243 = vmatmul.mubr.f32.vlgmr.msra.gmra.mxu0 %v3970_v41  ;;  %12264 = vmatprep.subr.mxu0 %v16535_v8  ;;  %v10403_v41 = vld [vmem:[%s13945_s16 + $0x30] sm:$0xff] }
0x14a7   : > { %12291 = vmatprep.subr.mxu1 %v16535_v8  ;;  %12265 = vmatpush3.msra.mxu0 %v13711_v23 }
0x14a8   : > { %12292 = vmatpush3.msra.mxu1 %v13676_v11  ;;  %12266 = vmatprep.subr.mxu0 %v16535_v8 }
0x14a9   : > { %12293 = vmatprep.subr.mxu1 %v16535_v8  ;;  %12267 = vmatpush3.msra.mxu0 %v13714_v24 }
0x14aa   : > { %12294 = vmatpush3.msra.mxu1 %v13694_v17  ;;  %12268 = vmatprep.subr.mxu0 %v16535_v8 }
0x14ab   : > { %12295 = vmatprep.subr.mxu1 %v16535_v8  ;;  %12269 = vmatpush3.msra.mxu0 %v13721_v26 }
0x14ac   : > { %12296 = vmatpush3.msra.mxu1 %v13696_v18  ;;  %12270 = vmatprep.subr.mxu0 %v16535_v8 }
0x14ad   : > { %12297 = vmatprep.subr.mxu1 %v16535_v8  ;;  %12271 = vmatpush3.msra.mxu0 %v13724_v27 }
0x14ae   : > { %12298 = vmatpush3.msra.mxu1 %v13708_v22  ;;  %12299 = vmatprep.mubr.msk.f32.mxu1 %vm13547_vm0, %v16535_v8 }
0x14af   : > { %12272 = vmatprep.subr.mxu0 %v16535_v8  ;;  %12300 = vmatmul.mubr.f32.vlgmr.msra.gmra.mxu1 %v14927_v6 }
0x14b0   : > { %12273 = vmatpush3.msra.mxu0 %v13732_v30  ;;  %12280 = vmatprep.mubr.msk.f32.mxu0 %vm13547_vm0, %v16535_v8 }
0x14b1   : > { %12274 = vmatprep.subr.mxu0 %v16535_v8  ;;  %12321 = vmatprep.subr.mxu1 %v16535_v8 }
0x14b2   : > { %12275 = vmatpush3.msra.mxu0 %v13751_v37  ;;  %12322 = vmatpush3.msra.mxu1 %v16560_v46 }
0x14b3   : > { %12276 = vmatprep.subr.mxu0 %v16535_v8  ;;  %12323 = vmatprep.subr.mxu1 %v16535_v8 }
0x14b4   : > { %12277 = vmatpush3.msra.mxu0 %v16561_v44  ;;  %12324 = vmatpush3.msra.mxu1 %v16562_v29 }
0x14b5   : > { %12278 = vmatprep.subr.mxu0 %v16535_v8  ;;  %12325 = vmatprep.subr.mxu1 %v16535_v8 }
0x14b6   : > { %12279 = vmatpush3.msra.mxu0 %v16563_v3  ;;  %12326 = vmatpush3.msra.mxu1 %v16564_v42 }
0x14b7   : > { %12281 = vmatmul.mubr.f32.vlgmr.msra.gmra.mxu0 %v14927_v6  ;;  %12327 = vmatprep.subr.mxu1 %v16535_v8 }
0x14b8   : > { %12328 = vmatpush3.msra.mxu1 %v16565_v59  ;;  %12302 = vmatprep.subr.mxu0 %v16535_v8 }
0x14b9   : > { %12329 = vmatprep.subr.mxu1 %v16535_v8  ;;  %12303 = vmatpush3.msra.mxu0 %v13658_v4 }
0x14ba   : > { %12330 = vmatpush3.msra.mxu1 %v16566_v56  ;;  %12304 = vmatprep.subr.mxu0 %v16535_v8 }
0x14bb   : > { %12331 = vmatprep.subr.mxu1 %v16535_v8  ;;  %12305 = vmatpush3.msra.mxu0 %v13660_v5 }
0x14bc   : > { %12332 = vmatpush3.msra.mxu1 %v16567_v53  ;;  %12306 = vmatprep.subr.mxu0 %v16535_v8 }
0x14bd   : > { %12333 = vmatprep.subr.mxu1 %v16535_v8  ;;  %12307 = vmatpush3.msra.mxu0 %v13671_v9 }
0x14be   : > { %12334 = vmatpush3.msra.mxu1 %v16568_v58  ;;  %12308 = vmatprep.subr.mxu0 %v16535_v8 }
0x14bf   : > { %12335 = vmatprep.subr.mxu1 %v16535_v8  ;;  %12309 = vmatpush3.msra.mxu0 %v13673_v10 }
0x14c0   : > { %12336 = vmatpush3.msra.mxu1 %v16580_v55  ;;  %12310 = vmatprep.subr.mxu0 %v16535_v8 }
0x14c1   : > { %12337 = vmatprep.mubr.msk.f32.mxu1 %vm13547_vm0, %v16535_v8  ;;  %12359 = vmatprep.subr.mxu1 %v16535_v8 }
0x14c2   : > { %12311 = vmatpush3.msra.mxu0 %v13676_v11  ;;  %12318 = vmatprep.mubr.msk.f32.mxu0 %vm13547_vm0, %v16535_v8 }
0x14c3   : > { %12312 = vmatprep.subr.mxu0 %v16535_v8 }
0x14c4   : > { %12313 = vmatpush3.msra.mxu0 %v13694_v17 }
0x14c5   : > { %12314 = vmatprep.subr.mxu0 %v16535_v8 }
0x14c6   : > { %12315 = vmatpush3.msra.mxu0 %v13696_v18 }
0x14c7   : > { %12316 = vmatprep.subr.mxu0 %v16535_v8 }
0x14c8   : > { %12317 = vmatpush3.msra.mxu0 %v13708_v22 }
0x14c9   : > { %12340 = vmatprep.subr.mxu0 %v16535_v8 }
0x154d   : > { %v4086_v63 = vpop.f32.mrf.mxu1 }
0x154f   : > { %v12225_v43 = vpop.f32.mrf.mxu1 }
0x1555   : > { %v3975_v40 = vpop.f32.mrf.mxu0 }
0x1556   : > { %v4087_v14 = vadd.f32 %v4086_v63, %v3975_v40 }
0x1557   : > { %v12206_v12 = vpop.f32.mrf.mxu0 }
0x155d   : > { %v4255_v28 = vpop.f32.mrf.mxu1 }
0x155f   : > { %v12263_v48 = vpop.f32.mrf.mxu1 }
0x1566   : > { %v4174_v38 = vpop.f32.mrf.mxu0 }
0x1567   : > { %v4175_v2 = vadd.f32 %v4174_v38, %v4087_v14  ;;  %v16592_v14 = vld [vmem:[#allocation11_spill] sm:$0xff] }
0x1568   : > { %v12244_v1 = vpop.f32.mrf.mxu0 }
0x1569   : > { %v4256_v50 = vadd.f32 %v4255_v28, %v4175_v2 }
0x156f   : > { %v4429_v57 = vpop.f32.mrf.mxu1 }
0x1571   : > { %v12301_v32 = vpop.f32.mrf.mxu1 }
0x1577   : > { %v4350_v7 = vpop.f32.mrf.mxu0 }
0x1578   : > { %v4351_v61 = vadd.f32 %v4350_v7, %v4256_v50 }
0x1579   : > { %v12282_v62 = vpop.f32.mrf.mxu0 }
0x157a   : > { %v4430_v34 = vadd.f32 %v4429_v57, %v4351_v61  ;;  %v10461_v61 = vld [vmem:[%s13969_s8 + $0x4a8] sm:$0xff] }
0x157b   : > { %v10527_v62 = vld [vmem:[%s13969_s8 + $0x628] sm:$0xff] }
0x157c   : > { %v4446_v6 = vadd.f32 %v4430_v34, %v16590_v13  ;;  %v15044_v60 = vadd.f32 %v10403_v41, %v4430_v34  ;;  %v5746_v34 = vmul.f32 %v14895_v45, %v10461_v61 }
0x157e   : > { %4448 = vrot.lane.b32.xlu0 %v4446_v6, %s13548_s10  ;;  %16591 = vst [vmem:[#allocation22_spill] sm:$0xff] %v15044_v60  ;;  %v10415_v54 = vmul.f32 -1.442695, %v15044_v60  ;;  %v10611_v6 = vld [vmem:[%s13969_s8 + $0x7a8] sm:$0xff] }
0x1580   : > { %13423 = vpow2.f32 %v10415_v54  ;;  %v10429_v54 = vld [vmem:[%s13969_s8 + $0x3b0] sm:$0xff] }
0x158d   : > { %v13424_v49 = vpop.eup %13423 }
0x158e   : > { %v4443_v43 = vadd.f32 1.0, %v13424_v49  ;;  %v10445_v49 = vld [vmem:[%s13969_s8 + $0x430] sm:$0xff] }
0x1590   : > { %13425 = vrcp.f32 %v4443_v43  ;;  %v10463_v43 = vld [vmem:[%s13969_s8 + $0x4b0] sm:$0xff] }
0x159d   : > { %v13426_v63 = vpop.eup %13425 }
0x159e   : > { %v4458_v1 = vsub.f32 1.0, %v13426_v63  ;;  %v4464_v32 = vmul.f32 %v13426_v63, %v16592_v14 }
0x15f0   : > { %v4449_v40 = vpop.permute.xlu0 %4448 }
0x15f1   : > { %v4451_v12 = vmul.f32 %v13426_v63, %v4449_v40  ;;  %v7651_v63 = vmul.f32 %v14898_v39, %v10527_v62  ;;  %v10505_v40 = vld [vmem:[%s13969_s8 + $0x5b0] sm:$0xff] }
0x15f3   : > { %4453 = vrot.lane.b32.xlu1 %v4451_v12, %s13548_s10  ;;  %v10529_v12 = vld [vmem:[%s13969_s8 + $0x630] sm:$0xff]  ;;  %v7652_v36 = vadd.f32 %v7651_v63, %v16595_v47  ;;  %v16598_v47 = vld [vmem:[#allocation7_spill] sm:$0xff] }
0x1665   : > { %v4454_v28 = vpop.permute.xlu1 %4453 }
0x1666   : > { %v4456_v48 = vadd.f32 %v10403_v41, %v4454_v28  ;;  %v10612_v41 = vld [vmem:[%s13961_s26 + $0x28] sm:$0xff]  ;;  %v10583_v28 = vld [vmem:[%s13969_s8 + $0x730] sm:$0xff] }
0x1667   : > { %v9601_v61 = vmul.f32 %v10612_v41, %v10611_v6 }
0x1668   : > { %13427 = vtanh.f32 %v4456_v48 }
0x1675   : > { %v13428_v38 = vpop.eup %13427 }
0x1676   : > { %4460 = vrot.lane.b32.xlu0 %v13428_v38, %s13549_s17  ;;  %v16594_v38 = vld [vmem:[#allocation6_spill] sm:$0xff] }
0x16e8   : > { %v4461_v57 = vpop.permute.xlu0 %4460 }
0x16e9   : > { %v4463_v2 = vmul.f32 %v4461_v57, %v4458_v1  ;;  %v5747_v1 = vadd.f32 %v5746_v34, %v16594_v38 }
0x16eb   : > { %v15050_v50 = vadd.f32 %v4464_v32, %v4463_v2 }
0x16ed   : > { %16593 = vst [vmem:[#allocation23_spill] sm:$0xff] %v15050_v50  ;;  %4467 = vrot.lane.b32.xlu1 %v15050_v50, %s13549_s17  ;;  %v10613_v50 = vld [vmem:[%s13969_s8 + $0x7b0] sm:$0xff] }
0x175f   : > { %v4468_v7 = vpop.permute.xlu1 %4467 }
0x1760   : > { %10416 = vst.msk [vmem:[%s13961_s26 + $0x30] sm:$0xff] %vm272_vm1, %v4468_v7 }
0x1767   : > { %v10430_v48 = vld [vmem:[%s13961_s26 + $0x30] sm:$0xff] }
0x1768   : > { %v15071_v57 = vld [vmem:[%s13961_s26 + $0x30] sm:$0xff]  ;;  %v4506_v32 = vmul.f32 %v10430_v48, %v10429_v54  ;;  %v5126_v45 = vmul.f32 %v10445_v49, %v10430_v48  ;;  %v5751_v2 = vmul.f32 %v10463_v43, %v10430_v48  ;;  %v9602_v49 = vadd.f32 %v9601_v61, %v16598_v47 }
0x1769   : > { %v15074_v14 = vld [vmem:[%s13961_s26 + $0x30] sm:$0xff]  ;;  %v7016_v60 = vmul.f32 %v10505_v40, %v15071_v57  ;;  %v7656_v39 = vmul.f32 %v10529_v12, %v15071_v57 }
0x176a   : > { %v8951_v62 = vmul.f32 %v10583_v28, %v15074_v14  ;;  %v4507_v13 = vadd.f32 %v4506_v32, %v14908_v35  ;;  %v15083_v34 = vadd.f32 %v5126_v45, %v14910_v52  ;;  %v15085_v38 = vadd.f32 %v5751_v2, %v5747_v1 }
0x176b   : > { %v15088_v54 = vadd.f32 %v7016_v60, %v14915_v0  ;;  %v15090_v6 = vadd.f32 %v7656_v39, %v7652_v36  ;;  %v9606_v43 = vmul.f32 %v10613_v50, %v15074_v14 }
0x176c   : > { %v15093_v41 = vadd.f32 %v8951_v62, %v14923_v51  ;;  %4509 = vrot.lane.b32.xlu0 %v4507_v13, %s13545_s11 }
0x176d   : > { %16596 = vst [vmem:[#allocation24_spill] sm:$0xff] %v15088_v54  ;;  %v15098_v35 = vadd.f32 %v9606_v43, %v9602_v49 }
0x176e   : > { %16597 = vst [vmem:[#allocation25_spill] sm:$0xff] %v15093_v41 }
0x17de   : > { %v4510_v52 = vpop.permute.xlu0 %4509 }
0x17df   : > { %v4512_v63 = vsel %vm272_vm1, %v4468_v7, %v4510_v52 }
0x17e0   : > { %v4514_v40 = vsel %vm274_vm2, %v4512_v63, 0 }
0x17e1   : > { %v15102_v0 = vand.u32 4294901760, %v4514_v40 }
0x17e3   : > { %v4590_v36 = vsub.f32 %v4514_v40, %v15102_v0  ;;  %12338 = vmatmul.mubr.f32.vlgmr.msra.gmra.mxu1 %v15102_v0  ;;  %v16599_v40 = vld [vmem:[#allocation15_spill] sm:$0xff] }
0x17e4   : > { %12360 = vmatpush3.msra.mxu1 %v13658_v4  ;;  %12375 = vmatprep.mubr.msk.f32.mxu1 %vm13547_vm0, %v16535_v8 }
0x17e5   : > { %v4591_v51 = vand.u32 4294901760, %v4590_v36  ;;  %12361 = vmatprep.subr.mxu1 %v16535_v8 }
0x17e6   : > { %12362 = vmatpush3.msra.mxu1 %v13660_v5 }
0x17e7   : > { %12363 = vmatprep.subr.mxu1 %v16535_v8  ;;  %v4592_v13 = vsub.f32 %v4590_v36, %v4591_v51 }
0x17e8   : > { %12364 = vmatpush3.msra.mxu1 %v13671_v9 }
0x17e9   : > { %12365 = vmatprep.subr.mxu1 %v16535_v8  ;;  %v4593_v60 = vand.u32 4294901760, %v4592_v13 }
0x17ea   : > { %12366 = vmatpush3.msra.mxu1 %v13673_v10 }
0x17eb   : > { %12367 = vmatprep.subr.mxu1 %v16535_v8  ;;  %12319 = vmatmul.mubr.f32.vlgmr.msra.gmra.mxu0 %v4593_v60 }
0x17ec   : > { %12341 = vmatpush3.msra.mxu0 %v13688_v15  ;;  %12368 = vmatpush3.msra.mxu1 %v13676_v11 }
0x17ed   : > { %12342 = vmatprep.subr.mxu0 %v16535_v8  ;;  %12369 = vmatprep.subr.mxu1 %v16535_v8 }
0x17ee   : > { %12343 = vmatpush3.msra.mxu0 %v13691_v16  ;;  %12370 = vmatpush3.msra.mxu1 %v13694_v17 }
0x17ef   : > { %12344 = vmatprep.subr.mxu0 %v16535_v8  ;;  %12371 = vmatprep.subr.mxu1 %v16535_v8 }
0x17f0   : > { %12345 = vmatpush3.msra.mxu0 %v13699_v19  ;;  %12372 = vmatpush3.msra.mxu1 %v13696_v18 }
0x17f1   : > { %12346 = vmatprep.subr.mxu0 %v16535_v8  ;;  %12373 = vmatprep.subr.mxu1 %v16535_v8 }
0x17f2   : > { %12347 = vmatpush3.msra.mxu0 %v13702_v20  ;;  %12374 = vmatpush3.msra.mxu1 %v13708_v22 }
0x17f3   : > { %12348 = vmatprep.subr.mxu0 %v16535_v8  ;;  %12376 = vmatmul.mubr.f32.vlgmr.msra.gmra.mxu1 %v4591_v51 }
0x17f4   : > { %12397 = vmatprep.subr.mxu1 %v16535_v8  ;;  %12349 = vmatpush3.msra.mxu0 %v13705_v21 }
0x17f5   : > { %12398 = vmatpush3.msra.mxu1 %v13658_v4  ;;  %12350 = vmatprep.subr.mxu0 %v16535_v8 }
0x17f6   : > { %12399 = vmatprep.subr.mxu1 %v16535_v8  ;;  %12351 = vmatpush3.msra.mxu0 %v13718_v25 }
0x17f7   : > { %12400 = vmatpush3.msra.mxu1 %v13660_v5  ;;  %12352 = vmatprep.subr.mxu0 %v16535_v8 }
0x17f8   : > { %12401 = vmatprep.subr.mxu1 %v16535_v8  ;;  %12353 = vmatpush3.msra.mxu0 %v13736_v31 }
0x17f9   : > { %12402 = vmatpush3.msra.mxu1 %v13671_v9  ;;  %12354 = vmatprep.subr.mxu0 %v16535_v8 }
0x17fa   : > { %12403 = vmatprep.subr.mxu1 %v16535_v8  ;;  %12355 = vmatpush3.msra.mxu0 %v13742_v33 }
0x17fb   : > { %12356 = vmatprep.mubr.msk.f32.mxu0 %vm13547_vm0, %v16535_v8  ;;  %12404 = vmatpush3.msra.mxu1 %v13673_v10 }
0x17fc   : > { %12357 = vmatmul.mubr.f32.vlgmr.msra.gmra.mxu0 %v4590_v36  ;;  %12378 = vmatprep.subr.mxu0 %v16535_v8  ;;  %v10417_v36 = vld [vmem:[%s13945_s16 + $0x38] sm:$0xff] }
0x17fd   : > { %12405 = vmatprep.subr.mxu1 %v16535_v8  ;;  %12379 = vmatpush3.msra.mxu0 %v13711_v23 }
0x17fe   : > { %12406 = vmatpush3.msra.mxu1 %v13676_v11  ;;  %12380 = vmatprep.subr.mxu0 %v16535_v8 }
0x17ff   : > { %12407 = vmatprep.subr.mxu1 %v16535_v8  ;;  %12381 = vmatpush3.msra.mxu0 %v13714_v24 }
0x1800   : > { %12408 = vmatpush3.msra.mxu1 %v13694_v17  ;;  %12382 = vmatprep.subr.mxu0 %v16535_v8 }
0x1801   : > { %12409 = vmatprep.subr.mxu1 %v16535_v8  ;;  %12383 = vmatpush3.msra.mxu0 %v13721_v26 }
0x1802   : > { %12410 = vmatpush3.msra.mxu1 %v13696_v18  ;;  %12384 = vmatprep.subr.mxu0 %v16535_v8 }
0x1803   : > { %12411 = vmatprep.subr.mxu1 %v16535_v8  ;;  %12385 = vmatpush3.msra.mxu0 %v13724_v27 }
0x1804   : > { %12412 = vmatpush3.msra.mxu1 %v13708_v22  ;;  %12413 = vmatprep.mubr.msk.f32.mxu1 %vm13547_vm0, %v16535_v8 }
0x1805   : > { %12386 = vmatprep.subr.mxu0 %v16535_v8  ;;  %12414 = vmatmul.mubr.f32.vlgmr.msra.gmra.mxu1 %v15102_v0 }
0x1806   : > { %12387 = vmatpush3.msra.mxu0 %v13732_v30  ;;  %12394 = vmatprep.mubr.msk.f32.mxu0 %vm13547_vm0, %v16535_v8 }
0x1807   : > { %12388 = vmatprep.subr.mxu0 %v16535_v8  ;;  %12435 = vmatprep.subr.mxu1 %v16535_v8 }
0x1808   : > { %12389 = vmatpush3.msra.mxu0 %v13751_v37  ;;  %12436 = vmatpush3.msra.mxu1 %v16560_v46 }
0x1809   : > { %12390 = vmatprep.subr.mxu0 %v16535_v8  ;;  %12437 = vmatprep.subr.mxu1 %v16535_v8 }
0x180a   : > { %12391 = vmatpush3.msra.mxu0 %v16561_v44  ;;  %12438 = vmatpush3.msra.mxu1 %v16562_v29 }
0x180b   : > { %12392 = vmatprep.subr.mxu0 %v16535_v8  ;;  %12439 = vmatprep.subr.mxu1 %v16535_v8 }
0x180c   : > { %12393 = vmatpush3.msra.mxu0 %v16563_v3  ;;  %12440 = vmatpush3.msra.mxu1 %v16564_v42 }
0x180d   : > { %12395 = vmatmul.mubr.f32.vlgmr.msra.gmra.mxu0 %v15102_v0  ;;  %12441 = vmatprep.subr.mxu1 %v16535_v8 }
0x180e   : > { %12442 = vmatpush3.msra.mxu1 %v16565_v59  ;;  %12416 = vmatprep.subr.mxu0 %v16535_v8 }
0x180f   : > { %12443 = vmatprep.subr.mxu1 %v16535_v8  ;;  %12417 = vmatpush3.msra.mxu0 %v13658_v4 }
0x1810   : > { %12444 = vmatpush3.msra.mxu1 %v16566_v56  ;;  %12418 = vmatprep.subr.mxu0 %v16535_v8 }
0x1811   : > { %12445 = vmatprep.subr.mxu1 %v16535_v8  ;;  %12419 = vmatpush3.msra.mxu0 %v13660_v5 }
0x1812   : > { %12446 = vmatpush3.msra.mxu1 %v16567_v53  ;;  %12420 = vmatprep.subr.mxu0 %v16535_v8 }
0x1813   : > { %12447 = vmatprep.subr.mxu1 %v16535_v8  ;;  %12421 = vmatpush3.msra.mxu0 %v13671_v9 }
0x1814   : > { %12448 = vmatpush3.msra.mxu1 %v16568_v58  ;;  %12422 = vmatprep.subr.mxu0 %v16535_v8 }
0x1815   : > { %12449 = vmatprep.subr.mxu1 %v16535_v8  ;;  %12423 = vmatpush3.msra.mxu0 %v13673_v10 }
0x1816   : > { %12450 = vmatpush3.msra.mxu1 %v16580_v55  ;;  %12424 = vmatprep.subr.mxu0 %v16535_v8 }
0x1817   : > { %12451 = vmatprep.mubr.msk.f32.mxu1 %vm13547_vm0, %v16535_v8  ;;  %12473 = vmatprep.subr.mxu1 %v16535_v8 }
0x1818   : > { %12425 = vmatpush3.msra.mxu0 %v13676_v11  ;;  %12432 = vmatprep.mubr.msk.f32.mxu0 %vm13547_vm0, %v16535_v8 }
0x1819   : > { %12426 = vmatprep.subr.mxu0 %v16535_v8 }
0x181a   : > { %12427 = vmatpush3.msra.mxu0 %v13694_v17 }
0x181b   : > { %12428 = vmatprep.subr.mxu0 %v16535_v8 }
0x181c   : > { %12429 = vmatpush3.msra.mxu0 %v13696_v18 }
0x181d   : > { %12430 = vmatprep.subr.mxu0 %v16535_v8 }
0x181e   : > { %12431 = vmatpush3.msra.mxu0 %v13708_v22 }
0x181f   : > { %12454 = vmatprep.subr.mxu0 %v16535_v8 }
0x18a3   : > { %v4706_v50 = vpop.f32.mrf.mxu1 }
0x18a5   : > { %v12339_v7 = vpop.f32.mrf.mxu1 }
0x18ab   : > { %v4595_v12 = vpop.f32.mrf.mxu0 }
0x18ac   : > { %v4707_v61 = vadd.f32 %v4706_v50, %v4595_v12 }
0x18ad   : > { %v12320_v28 = vpop.f32.mrf.mxu0 }
0x18b3   : > { %v4875_v48 = vpop.f32.mrf.mxu1 }
0x18b5   : > { %v12377_v1 = vpop.f32.mrf.mxu1 }
0x18bc   : > { %v4794_v32 = vpop.f32.mrf.mxu0 }
0x18bd   : > { %v4795_v62 = vadd.f32 %v4794_v32, %v4707_v61  ;;  %v16601_v61 = vld [vmem:[#allocation23_spill] sm:$0xff] }
0x18be   : > { %v12358_v45 = vpop.f32.mrf.mxu0 }
0x18bf   : > { %v4876_v47 = vadd.f32 %v4875_v48, %v4795_v62 }
0x18c5   : > { %v5049_v2 = vpop.f32.mrf.mxu1 }
0x18c7   : > { %v12415_v39 = vpop.f32.mrf.mxu1 }
0x18cd   : > { %v4970_v49 = vpop.f32.mrf.mxu0 }
0x18ce   : > { %v4971_v43 = vadd.f32 %v4970_v49, %v4876_v47 }
0x18cf   : > { %v12396_v52 = vpop.f32.mrf.mxu0 }
0x18d0   : > { %v5050_v63 = vadd.f32 %v5049_v2, %v4971_v43  ;;  %v10483_v43 = vld [vmem:[%s13969_s8 + $0x530] sm:$0xff] }
0x18d1   : > { %v10555_v52 = vld [vmem:[%s13969_s8 + $0x6b0] sm:$0xff] }
0x18d2   : > { %v5066_v0 = vadd.f32 %v5050_v63, %v16599_v40  ;;  %v15219_v51 = vadd.f32 %v10417_v36, %v5050_v63  ;;  %v6381_v63 = vmul.f32 %v15071_v57, %v10483_v43 }
0x18d4   : > { %5068 = vrot.lane.b32.xlu1 %v5066_v0, %s13548_s10  ;;  %16600 = vst [vmem:[#allocation14_spill] sm:$0xff] %v15219_v51  ;;  %v10431_v13 = vmul.f32 -1.442695, %v15219_v51  ;;  %v10447_v0 = vld [vmem:[%s13969_s8 + $0x438] sm:$0xff] }
0x18d6   : > { %13429 = vpow2.f32 %v10431_v13  ;;  %v10485_v13 = vld [vmem:[%s13969_s8 + $0x538] sm:$0xff] }
0x18e3   : > { %v13430_v60 = vpop.eup %13429 }
0x18e4   : > { %v5063_v7 = vadd.f32 1.0, %v13430_v60  ;;  %v8301_v60 = vmul.f32 %v15074_v14, %v10555_v52 }
0x18e6   : > { %13431 = vrcp.f32 %v5063_v7  ;;  %v10531_v7 = vld [vmem:[%s13969_s8 + $0x638] sm:$0xff] }
0x18f3   : > { %v13432_v50 = vpop.eup %13431 }
0x18f4   : > { %v5078_v45 = vsub.f32 1.0, %v13432_v50  ;;  %v5084_v39 = vmul.f32 %v13432_v50, %v16601_v61 }
0x1946   : > { %v5069_v12 = vpop.permute.xlu1 %5068 }
0x1947   : > { %v5071_v28 = vmul.f32 %v13432_v50, %v5069_v12  ;;  %v10557_v50 = vld [vmem:[%s13969_s8 + $0x6b8] sm:$0xff] }
0x1948   : > { %v10615_v12 = vld [vmem:[%s13969_s8 + $0x7b8] sm:$0xff] }
0x1949   : > { %5073 = vrot.lane.b32.xlu0 %v5071_v28, %s13548_s10 }
0x19bb   : > { %v5074_v48 = vpop.permute.xlu0 %5073 }
0x19bc   : > { %v5076_v1 = vadd.f32 %v10417_v36, %v5074_v48  ;;  %v10465_v36 = vld [vmem:[%s13969_s8 + $0x4b8] sm:$0xff] }
0x19be   : > { %13433 = vtanh.f32 %v5076_v1 }
0x19cb   : > { %v13434_v32 = vpop.eup %13433 }
0x19cc   : > { %5080 = vrot.lane.b32.xlu1 %v13434_v32, %s13549_s17 }
0x1a3e   : > { %v5081_v2 = vpop.permute.xlu1 %5080 }
0x1a3f   : > { %v5083_v62 = vmul.f32 %v5081_v2, %v5078_v45  ;;  %v16602_v2 = vld [vmem:[#allocation12_spill] sm:$0xff] }
0x1a40   : > { %v6382_v61 = vadd.f32 %v6381_v63, %v16602_v2 }
0x1a41   : > { %v15225_v47 = vadd.f32 %v5084_v39, %v5083_v62  ;;  %v16603_v62 = vld [vmem:[#allocation13_spill] sm:$0xff] }
0x1a42   : > { %v8302_v43 = vadd.f32 %v8301_v60, %v16603_v62 }
0x1a43   : > { %5087 = vrot.lane.b32.xlu0 %v15225_v47, %s13549_s17 }
0x1ab5   : > { %v5088_v49 = vpop.permute.xlu0 %5087 }
0x1ab6   : > { %10432 = vst.msk [vmem:[%s13961_s26 + $0x38] sm:$0xff] %vm272_vm1, %v5088_v49 }
0x1abd   : > { %v10448_v28 = vld [vmem:[%s13961_s26 + $0x38] sm:$0xff] }
0x1abe   : > { %v15243_v48 = vld [vmem:[%s13961_s26 + $0x38] sm:$0xff]  ;;  %v5131_v32 = vmul.f32 %v10448_v28, %v10447_v0  ;;  %v5756_v45 = vmul.f32 %v10465_v36, %v10448_v28  ;;  %v6386_v39 = vmul.f32 %v10485_v13, %v10448_v28 }
0x1abf   : > { %v15246_v1 = vld [vmem:[%s13961_s26 + $0x38] sm:$0xff]  ;;  %v7661_v57 = vmul.f32 %v10531_v7, %v15243_v48  ;;  %v8306_v51 = vmul.f32 %v10557_v50, %v15243_v48 }
0x1ac0   : > { %v9611_v14 = vmul.f32 %v10615_v12, %v15246_v1  ;;  %v5132_v52 = vadd.f32 %v5131_v32, %v15083_v34  ;;  %v15255_v41 = vadd.f32 %v5756_v45, %v15085_v38  ;;  %v15257_v54 = vadd.f32 %v6386_v39, %v6382_v61 }
0x1ac1   : > { %v15260_v0 = vadd.f32 %v7661_v57, %v15090_v6  ;;  %v15262_v63 = vadd.f32 %v8306_v51, %v8302_v43 }
0x1ac2   : > { %v15265_v36 = vadd.f32 %v9611_v14, %v15098_v35  ;;  %5134 = vrot.lane.b32.xlu1 %v5132_v52, %s13545_s11 }
0x1b34   : > { %v5135_v13 = vpop.permute.xlu1 %5134 }
0x1b35   : > { %v5137_v60 = vsel %vm272_vm1, %v5088_v49, %v5135_v13 }
0x1b36   : > { %v5139_v34 = vsel %vm274_vm2, %v5137_v60, 0 }
0x1b37   : > { %v15270_v7 = vand.u32 4294901760, %v5139_v34 }
0x1b39   : > { %v5215_v38 = vsub.f32 %v5139_v34, %v15270_v7  ;;  %12452 = vmatmul.mubr.f32.vlgmr.msra.gmra.mxu1 %v15270_v7 }
0x1b3a   : > { %12474 = vmatpush3.msra.mxu1 %v13658_v4  ;;  %12489 = vmatprep.mubr.msk.f32.mxu1 %vm13547_vm0, %v16535_v8 }
0x1b3b   : > { %v5216_v6 = vand.u32 4294901760, %v5215_v38  ;;  %12475 = vmatprep.subr.mxu1 %v16535_v8 }
0x1b3c   : > { %12476 = vmatpush3.msra.mxu1 %v13660_v5 }
0x1b3d   : > { %12477 = vmatprep.subr.mxu1 %v16535_v8  ;;  %v5217_v35 = vsub.f32 %v5215_v38, %v5216_v6 }
0x1b3e   : > { %12478 = vmatpush3.msra.mxu1 %v13671_v9 }
0x1b3f   : > { %12479 = vmatprep.subr.mxu1 %v16535_v8  ;;  %v5218_v51 = vand.u32 4294901760, %v5217_v35 }
0x1b40   : > { %12480 = vmatpush3.msra.mxu1 %v13673_v10 }
0x1b41   : > { %12481 = vmatprep.subr.mxu1 %v16535_v8  ;;  %12433 = vmatmul.mubr.f32.vlgmr.msra.gmra.mxu0 %v5218_v51 }
0x1b42   : > { %12455 = vmatpush3.msra.mxu0 %v13688_v15  ;;  %12482 = vmatpush3.msra.mxu1 %v13676_v11 }
0x1b43   : > { %12456 = vmatprep.subr.mxu0 %v16535_v8  ;;  %12483 = vmatprep.subr.mxu1 %v16535_v8 }
0x1b44   : > { %12457 = vmatpush3.msra.mxu0 %v13691_v16  ;;  %12484 = vmatpush3.msra.mxu1 %v13694_v17 }
0x1b45   : > { %12458 = vmatprep.subr.mxu0 %v16535_v8  ;;  %12485 = vmatprep.subr.mxu1 %v16535_v8 }
0x1b46   : > { %12459 = vmatpush3.msra.mxu0 %v13699_v19  ;;  %12486 = vmatpush3.msra.mxu1 %v13696_v18 }
0x1b47   : > { %12460 = vmatprep.subr.mxu0 %v16535_v8  ;;  %12487 = vmatprep.subr.mxu1 %v16535_v8 }
0x1b48   : > { %12461 = vmatpush3.msra.mxu0 %v13702_v20  ;;  %12488 = vmatpush3.msra.mxu1 %v13708_v22 }
0x1b49   : > { %12462 = vmatprep.subr.mxu0 %v16535_v8  ;;  %12490 = vmatmul.mubr.f32.vlgmr.msra.gmra.mxu1 %v5216_v6 }
0x1b4a   : > { %12511 = vmatprep.subr.mxu1 %v16535_v8  ;;  %12463 = vmatpush3.msra.mxu0 %v13705_v21 }
0x1b4b   : > { %12512 = vmatpush3.msra.mxu1 %v13658_v4  ;;  %12464 = vmatprep.subr.mxu0 %v16535_v8 }
0x1b4c   : > { %12513 = vmatprep.subr.mxu1 %v16535_v8  ;;  %12465 = vmatpush3.msra.mxu0 %v13718_v25 }
0x1b4d   : > { %12514 = vmatpush3.msra.mxu1 %v13660_v5  ;;  %12466 = vmatprep.subr.mxu0 %v16535_v8 }
0x1b4e   : > { %12515 = vmatprep.subr.mxu1 %v16535_v8  ;;  %12467 = vmatpush3.msra.mxu0 %v13736_v31 }
0x1b4f   : > { %12516 = vmatpush3.msra.mxu1 %v13671_v9  ;;  %12468 = vmatprep.subr.mxu0 %v16535_v8 }
0x1b50   : > { %12517 = vmatprep.subr.mxu1 %v16535_v8  ;;  %12469 = vmatpush3.msra.mxu0 %v13742_v33 }
0x1b51   : > { %12470 = vmatprep.mubr.msk.f32.mxu0 %vm13547_vm0, %v16535_v8  ;;  %12518 = vmatpush3.msra.mxu1 %v13673_v10 }
0x1b52   : > { %12471 = vmatmul.mubr.f32.vlgmr.msra.gmra.mxu0 %v5215_v38  ;;  %12492 = vmatprep.subr.mxu0 %v16535_v8  ;;  %v10433_v38 = vld [vmem:[%s13945_s16 + $0x40] sm:$0xff] }
0x1b53   : > { %12519 = vmatprep.subr.mxu1 %v16535_v8  ;;  %12493 = vmatpush3.msra.mxu0 %v13711_v23 }
0x1b54   : > { %12520 = vmatpush3.msra.mxu1 %v13676_v11  ;;  %12494 = vmatprep.subr.mxu0 %v16535_v8 }
0x1b55   : > { %12521 = vmatprep.subr.mxu1 %v16535_v8  ;;  %12495 = vmatpush3.msra.mxu0 %v13714_v24 }
0x1b56   : > { %12522 = vmatpush3.msra.mxu1 %v13694_v17  ;;  %12496 = vmatprep.subr.mxu0 %v16535_v8 }
0x1b57   : > { %12523 = vmatprep.subr.mxu1 %v16535_v8  ;;  %12497 = vmatpush3.msra.mxu0 %v13721_v26 }
0x1b58   : > { %12524 = vmatpush3.msra.mxu1 %v13696_v18  ;;  %12498 = vmatprep.subr.mxu0 %v16535_v8 }
0x1b59   : > { %12525 = vmatprep.subr.mxu1 %v16535_v8  ;;  %12499 = vmatpush3.msra.mxu0 %v13724_v27 }
0x1b5a   : > { %12526 = vmatpush3.msra.mxu1 %v13708_v22  ;;  %12527 = vmatprep.mubr.msk.f32.mxu1 %vm13547_vm0, %v16535_v8 }
0x1b5b   : > { %12500 = vmatprep.subr.mxu0 %v16535_v8  ;;  %12528 = vmatmul.mubr.f32.vlgmr.msra.gmra.mxu1 %v15270_v7 }
0x1b5c   : > { %12501 = vmatpush3.msra.mxu0 %v13732_v30  ;;  %12508 = vmatprep.mubr.msk.f32.mxu0 %vm13547_vm0, %v16535_v8 }
0x1b5d   : > { %12502 = vmatprep.subr.mxu0 %v16535_v8  ;;  %12549 = vmatprep.subr.mxu1 %v16535_v8 }
0x1b5e   : > { %12503 = vmatpush3.msra.mxu0 %v13751_v37  ;;  %12550 = vmatpush3.msra.mxu1 %v16560_v46 }
0x1b5f   : > { %12504 = vmatprep.subr.mxu0 %v16535_v8  ;;  %12551 = vmatprep.subr.mxu1 %v16535_v8 }
0x1b60   : > { %12505 = vmatpush3.msra.mxu0 %v16561_v44  ;;  %12552 = vmatpush3.msra.mxu1 %v16562_v29 }
0x1b61   : > { %12506 = vmatprep.subr.mxu0 %v16535_v8  ;;  %12553 = vmatprep.subr.mxu1 %v16535_v8 }
0x1b62   : > { %12507 = vmatpush3.msra.mxu0 %v16563_v3  ;;  %12554 = vmatpush3.msra.mxu1 %v16564_v42 }
0x1b63   : > { %12509 = vmatmul.mubr.f32.vlgmr.msra.gmra.mxu0 %v15270_v7  ;;  %12555 = vmatprep.subr.mxu1 %v16535_v8 }
0x1b64   : > { %12556 = vmatpush3.msra.mxu1 %v16565_v59  ;;  %12530 = vmatprep.subr.mxu0 %v16535_v8 }
0x1b65   : > { %12557 = vmatprep.subr.mxu1 %v16535_v8  ;;  %12531 = vmatpush3.msra.mxu0 %v13658_v4 }
0x1b66   : > { %12558 = vmatpush3.msra.mxu1 %v16566_v56  ;;  %12532 = vmatprep.subr.mxu0 %v16535_v8 }
0x1b67   : > { %12559 = vmatprep.subr.mxu1 %v16535_v8  ;;  %12533 = vmatpush3.msra.mxu0 %v13660_v5 }
0x1b68   : > { %12560 = vmatpush3.msra.mxu1 %v16567_v53  ;;  %12534 = vmatprep.subr.mxu0 %v16535_v8 }
0x1b69   : > { %12561 = vmatprep.subr.mxu1 %v16535_v8  ;;  %12535 = vmatpush3.msra.mxu0 %v13671_v9 }
0x1b6a   : > { %12562 = vmatpush3.msra.mxu1 %v16568_v58  ;;  %12536 = vmatprep.subr.mxu0 %v16535_v8 }
0x1b6b   : > { %12563 = vmatprep.subr.mxu1 %v16535_v8  ;;  %12537 = vmatpush3.msra.mxu0 %v13673_v10 }
0x1b6c   : > { %12564 = vmatpush3.msra.mxu1 %v16580_v55  ;;  %12538 = vmatprep.subr.mxu0 %v16535_v8 }
0x1b6d   : > { %12565 = vmatprep.mubr.msk.f32.mxu1 %vm13547_vm0, %v16535_v8  ;;  %12587 = vmatprep.subr.mxu1 %v16535_v8 }
0x1b6e   : > { %12539 = vmatpush3.msra.mxu0 %v13676_v11  ;;  %12546 = vmatprep.mubr.msk.f32.mxu0 %vm13547_vm0, %v16535_v8 }
0x1b6f   : > { %12540 = vmatprep.subr.mxu0 %v16535_v8 }
0x1b70   : > { %12541 = vmatpush3.msra.mxu0 %v13694_v17 }
0x1b71   : > { %12542 = vmatprep.subr.mxu0 %v16535_v8 }
0x1b72   : > { %12543 = vmatpush3.msra.mxu0 %v13696_v18 }
0x1b73   : > { %12544 = vmatprep.subr.mxu0 %v16535_v8 }
0x1b74   : > { %12545 = vmatpush3.msra.mxu0 %v13708_v22 }
0x1b75   : > { %12568 = vmatprep.subr.mxu0 %v16535_v8 }
0x1bf9   : > { %v5331_v49 = vpop.f32.mrf.mxu1 }
0x1bfb   : > { %v12453_v50 = vpop.f32.mrf.mxu1 }
0x1c01   : > { %v5220_v12 = vpop.f32.mrf.mxu0 }
0x1c02   : > { %v5332_v57 = vadd.f32 %v5331_v49, %v5220_v12 }
0x1c03   : > { %v12434_v28 = vpop.f32.mrf.mxu0 }
0x1c09   : > { %v5500_v32 = vpop.f32.mrf.mxu1 }
0x1c0b   : > { %v12491_v45 = vpop.f32.mrf.mxu1 }
0x1c12   : > { %v5419_v2 = vpop.f32.mrf.mxu0 }
0x1c13   : > { %v5420_v43 = vadd.f32 %v5419_v2, %v5332_v57 }
0x1c14   : > { %v12472_v61 = vpop.f32.mrf.mxu0 }
0x1c15   : > { %v5501_v14 = vadd.f32 %v5500_v32, %v5420_v43 }
0x1c1b   : > { %v5674_v39 = vpop.f32.mrf.mxu1 }
0x1c1d   : > { %v12529_v62 = vpop.f32.mrf.mxu1 }
0x1c23   : > { %v5595_v52 = vpop.f32.mrf.mxu0 }
0x1c24   : > { %v5596_v13 = vadd.f32 %v5595_v52, %v5501_v14  ;;  %v10507_v52 = vld [vmem:[%s13969_s8 + $0x5b8] sm:$0xff] }
0x1c25   : > { %v12510_v60 = vpop.f32.mrf.mxu0 }
0x1c26   : > { %v5675_v34 = vadd.f32 %v5674_v39, %v5596_v13  ;;  %v10585_v13 = vld [vmem:[%s13969_s8 + $0x738] sm:$0xff]  ;;  %v7021_v60 = vmul.f32 %v15243_v48, %v10507_v52 }
0x1c28   : > { %v5691_v7 = vadd.f32 %v5675_v34, %v16599_v40  ;;  %v15387_v6 = vadd.f32 %v10433_v38, %v5675_v34  ;;  %v10467_v34 = vld [vmem:[%s13969_s8 + $0x4c0] sm:$0xff] }
0x1c2a   : > { %5693 = vrot.lane.b32.xlu0 %v5691_v7, %s13548_s10  ;;  %v10449_v35 = vmul.f32 -1.442695, %v15387_v6  ;;  %v10487_v7 = vld [vmem:[%s13969_s8 + $0x540] sm:$0xff] }
0x1c2c   : > { %13435 = vpow2.f32 %v10449_v35  ;;  %v8956_v35 = vmul.f32 %v15246_v1, %v10585_v13 }
0x1c39   : > { %v13436_v51 = vpop.eup %13435 }
0x1c3a   : > { %v5688_v50 = vadd.f32 1.0, %v13436_v51  ;;  %v10587_v51 = vld [vmem:[%s13969_s8 + $0x740] sm:$0xff] }
0x1c3c   : > { %13437 = vrcp.f32 %v5688_v50 }
0x1c49   : > { %v13438_v49 = vpop.eup %13437 }
0x1c4a   : > { %v5703_v61 = vsub.f32 1.0, %v13438_v49  ;;  %v5709_v57 = vmul.f32 %v13438_v49, %v15225_v47  ;;  %v10559_v47 = vld [vmem:[%s13969_s8 + $0x6c0] sm:$0xff] }
0x1c9c   : > { %v5694_v12 = vpop.permute.xlu0 %5693 }
0x1c9d   : > { %v5696_v28 = vmul.f32 %v13438_v49, %v5694_v12 }
0x1c9f   : > { %5698 = vrot.lane.b32.xlu1 %v5696_v28, %s13548_s10 }
0x1d11   : > { %v5699_v32 = vpop.permute.xlu1 %5698 }
0x1d12   : > { %v5701_v45 = vadd.f32 %v10433_v38, %v5699_v32  ;;  %v10509_v38 = vld [vmem:[%s13969_s8 + $0x5c0] sm:$0xff]  ;;  %v16604_v32 = vld [vmem:[#allocation24_spill] sm:$0xff] }
0x1d14   : > { %13439 = vtanh.f32 %v5701_v45  ;;  %v7022_v45 = vadd.f32 %v7021_v60, %v16604_v32 }
0x1d21   : > { %v13440_v2 = vpop.eup %13439 }
0x1d22   : > { %5705 = vrot.lane.b32.xlu0 %v13440_v2, %s13549_s17 }
0x1d94   : > { %v5706_v39 = vpop.permute.xlu0 %5705 }
0x1d95   : > { %v5708_v62 = vmul.f32 %v5706_v39, %v5703_v61  ;;  %v16605_v39 = vld [vmem:[#allocation25_spill] sm:$0xff] }
0x1d97   : > { %v15393_v43 = vadd.f32 %v5709_v57, %v5708_v62  ;;  %v8957_v57 = vadd.f32 %v8956_v35, %v16605_v39 }
0x1d99   : > { %5712 = vrot.lane.b32.xlu1 %v15393_v43, %s13549_s17 }
0x1e0b   : > { %v5713_v14 = vpop.permute.xlu1 %5712 }
0x1e0c   : > { %10450 = vst.msk [vmem:[%s13961_s26 + $0x40] sm:$0xff] %vm272_vm1, %v5713_v14 }
0x1e13   : > { %v10468_v50 = vld [vmem:[%s13961_s26 + $0x40] sm:$0xff] }
0x1e14   : > { %v15410_v49 = vld [vmem:[%s13961_s26 + $0x40] sm:$0xff]  ;;  %v5761_v12 = vmul.f32 %v10468_v50, %v10467_v34  ;;  %v6391_v28 = vmul.f32 %v10487_v7, %v10468_v50  ;;  %v7026_v2 = vmul.f32 %v10509_v38, %v10468_v50 }
0x1e15   : > { %v8311_v61 = vmul.f32 %v10559_v47, %v15410_v49  ;;  %v8961_v48 = vmul.f32 %v10587_v51, %v15410_v49 }
0x1e16   : > { %v5762_v62 = vadd.f32 %v5761_v12, %v15255_v41  ;;  %v15418_v1 = vadd.f32 %v6391_v28, %v15257_v54  ;;  %v15420_v52 = vadd.f32 %v7026_v2, %v7022_v45 }
0x1e17   : > { %v15423_v13 = vadd.f32 %v8311_v61, %v15262_v63  ;;  %v15425_v34 = vadd.f32 %v8961_v48, %v8957_v57 }
0x1e18   : > { %5764 = vrot.lane.b32.xlu0 %v5762_v62, %s13545_s11 }
0x1e8a   : > { %v5765_v60 = vpop.permute.xlu0 %5764 }
0x1e8b   : > { %v5767_v7 = vsel %vm272_vm1, %v5713_v14, %v5765_v60 }
0x1e8c   : > { %v5769_v38 = vsel %vm274_vm2, %v5767_v7, 0 }
0x1e8d   : > { %v15430_v35 = vand.u32 4294901760, %v5769_v38 }
0x1e8f   : > { %v5845_v41 = vsub.f32 %v5769_v38, %v15430_v35  ;;  %12566 = vmatmul.mubr.f32.vlgmr.msra.gmra.mxu1 %v15430_v35 }
0x1e90   : > { %12588 = vmatpush3.msra.mxu1 %v13658_v4  ;;  %12603 = vmatprep.mubr.msk.f32.mxu1 %vm13547_vm0, %v16535_v8 }
0x1e91   : > { %v5846_v54 = vand.u32 4294901760, %v5845_v41  ;;  %12589 = vmatprep.subr.mxu1 %v16535_v8 }
0x1e92   : > { %12590 = vmatpush3.msra.mxu1 %v13660_v5 }
0x1e93   : > { %12591 = vmatprep.subr.mxu1 %v16535_v8  ;;  %v5847_v63 = vsub.f32 %v5845_v41, %v5846_v54 }
0x1e94   : > { %12592 = vmatpush3.msra.mxu1 %v13671_v9 }
0x1e95   : > { %12593 = vmatprep.subr.mxu1 %v16535_v8  ;;  %v5848_v14 = vand.u32 4294901760, %v5847_v63 }
0x1e96   : > { %12594 = vmatpush3.msra.mxu1 %v13673_v10 }
0x1e97   : > { %12595 = vmatprep.subr.mxu1 %v16535_v8  ;;  %12547 = vmatmul.mubr.f32.vlgmr.msra.gmra.mxu0 %v5848_v14 }
0x1e98   : > { %12569 = vmatpush3.msra.mxu0 %v13688_v15  ;;  %12596 = vmatpush3.msra.mxu1 %v13676_v11 }
0x1e99   : > { %12570 = vmatprep.subr.mxu0 %v16535_v8  ;;  %12597 = vmatprep.subr.mxu1 %v16535_v8 }
0x1e9a   : > { %12571 = vmatpush3.msra.mxu0 %v13691_v16  ;;  %12598 = vmatpush3.msra.mxu1 %v13694_v17 }
0x1e9b   : > { %12572 = vmatprep.subr.mxu0 %v16535_v8  ;;  %12599 = vmatprep.subr.mxu1 %v16535_v8 }
0x1e9c   : > { %12573 = vmatpush3.msra.mxu0 %v13699_v19  ;;  %12600 = vmatpush3.msra.mxu1 %v13696_v18 }
0x1e9d   : > { %12574 = vmatprep.subr.mxu0 %v16535_v8  ;;  %12601 = vmatprep.subr.mxu1 %v16535_v8 }
0x1e9e   : > { %12575 = vmatpush3.msra.mxu0 %v13702_v20  ;;  %12602 = vmatpush3.msra.mxu1 %v13708_v22 }
0x1e9f   : > { %12576 = vmatprep.subr.mxu0 %v16535_v8  ;;  %12604 = vmatmul.mubr.f32.vlgmr.msra.gmra.mxu1 %v5846_v54  ;;  %v10451_v54 = vld [vmem:[%s13945_s16 + $0x48] sm:$0xff] }
0x1ea0   : > { %12625 = vmatprep.subr.mxu1 %v16535_v8  ;;  %12577 = vmatpush3.msra.mxu0 %v13705_v21 }
0x1ea1   : > { %12626 = vmatpush3.msra.mxu1 %v13658_v4  ;;  %12578 = vmatprep.subr.mxu0 %v16535_v8 }
0x1ea2   : > { %12627 = vmatprep.subr.mxu1 %v16535_v8  ;;  %12579 = vmatpush3.msra.mxu0 %v13718_v25 }
0x1ea3   : > { %12628 = vmatpush3.msra.mxu1 %v13660_v5  ;;  %12580 = vmatprep.subr.mxu0 %v16535_v8 }
0x1ea4   : > { %12629 = vmatprep.subr.mxu1 %v16535_v8  ;;  %12581 = vmatpush3.msra.mxu0 %v13736_v31 }
0x1ea5   : > { %12630 = vmatpush3.msra.mxu1 %v13671_v9  ;;  %12582 = vmatprep.subr.mxu0 %v16535_v8 }
0x1ea6   : > { %12631 = vmatprep.subr.mxu1 %v16535_v8  ;;  %12583 = vmatpush3.msra.mxu0 %v13742_v33 }
0x1ea7   : > { %12584 = vmatprep.mubr.msk.f32.mxu0 %vm13547_vm0, %v16535_v8  ;;  %12632 = vmatpush3.msra.mxu1 %v13673_v10 }
0x1ea8   : > { %12585 = vmatmul.mubr.f32.vlgmr.msra.gmra.mxu0 %v5845_v41  ;;  %12606 = vmatprep.subr.mxu0 %v16535_v8 }
0x1ea9   : > { %12633 = vmatprep.subr.mxu1 %v16535_v8  ;;  %12607 = vmatpush3.msra.mxu0 %v13711_v23 }
0x1eaa   : > { %12634 = vmatpush3.msra.mxu1 %v13676_v11  ;;  %12608 = vmatprep.subr.mxu0 %v16535_v8 }
0x1eab   : > { %12635 = vmatprep.subr.mxu1 %v16535_v8  ;;  %12609 = vmatpush3.msra.mxu0 %v13714_v24 }
0x1eac   : > { %12636 = vmatpush3.msra.mxu1 %v13694_v17  ;;  %12610 = vmatprep.subr.mxu0 %v16535_v8 }
0x1ead   : > { %12637 = vmatprep.subr.mxu1 %v16535_v8  ;;  %12611 = vmatpush3.msra.mxu0 %v13721_v26 }
0x1eae   : > { %12638 = vmatpush3.msra.mxu1 %v13696_v18  ;;  %12612 = vmatprep.subr.mxu0 %v16535_v8 }
0x1eaf   : > { %12639 = vmatprep.subr.mxu1 %v16535_v8  ;;  %12613 = vmatpush3.msra.mxu0 %v13724_v27 }
0x1eb0   : > { %12640 = vmatpush3.msra.mxu1 %v13708_v22  ;;  %12641 = vmatprep.mubr.msk.f32.mxu1 %vm13547_vm0, %v16535_v8 }
0x1eb1   : > { %12614 = vmatprep.subr.mxu0 %v16535_v8  ;;  %12642 = vmatmul.mubr.f32.vlgmr.msra.gmra.mxu1 %v15430_v35 }
0x1eb2   : > { %12615 = vmatpush3.msra.mxu0 %v13732_v30  ;;  %12622 = vmatprep.mubr.msk.f32.mxu0 %vm13547_vm0, %v16535_v8 }
0x1eb3   : > { %12616 = vmatprep.subr.mxu0 %v16535_v8  ;;  %12663 = vmatprep.subr.mxu1 %v16535_v8 }
0x1eb4   : > { %12617 = vmatpush3.msra.mxu0 %v13751_v37  ;;  %12664 = vmatpush3.msra.mxu1 %v16560_v46 }
0x1eb5   : > { %12618 = vmatprep.subr.mxu0 %v16535_v8  ;;  %12665 = vmatprep.subr.mxu1 %v16535_v8 }
0x1eb6   : > { %12619 = vmatpush3.msra.mxu0 %v16561_v44  ;;  %12666 = vmatpush3.msra.mxu1 %v16562_v29 }
0x1eb7   : > { %12620 = vmatprep.subr.mxu0 %v16535_v8  ;;  %12667 = vmatprep.subr.mxu1 %v16535_v8 }
0x1eb8   : > { %12621 = vmatpush3.msra.mxu0 %v16563_v3  ;;  %12668 = vmatpush3.msra.mxu1 %v16564_v42 }
0x1eb9   : > { %12623 = vmatmul.mubr.f32.vlgmr.msra.gmra.mxu0 %v15430_v35  ;;  %12669 = vmatprep.subr.mxu1 %v16535_v8 }
0x1eba   : > { %12670 = vmatpush3.msra.mxu1 %v16565_v59  ;;  %12644 = vmatprep.subr.mxu0 %v16535_v8 }
0x1ebb   : > { %12671 = vmatprep.subr.mxu1 %v16535_v8  ;;  %12645 = vmatpush3.msra.mxu0 %v13658_v4 }
0x1ebc   : > { %12672 = vmatpush3.msra.mxu1 %v16566_v56  ;;  %12646 = vmatprep.subr.mxu0 %v16535_v8 }
0x1ebd   : > { %12673 = vmatprep.subr.mxu1 %v16535_v8  ;;  %12647 = vmatpush3.msra.mxu0 %v13660_v5 }
0x1ebe   : > { %12674 = vmatpush3.msra.mxu1 %v16567_v53  ;;  %12648 = vmatprep.subr.mxu0 %v16535_v8 }
0x1ebf   : > { %12675 = vmatprep.subr.mxu1 %v16535_v8  ;;  %12649 = vmatpush3.msra.mxu0 %v13671_v9 }
0x1ec0   : > { %12676 = vmatpush3.msra.mxu1 %v16568_v58  ;;  %12650 = vmatprep.subr.mxu0 %v16535_v8 }
0x1ec1   : > { %12677 = vmatprep.subr.mxu1 %v16535_v8  ;;  %12651 = vmatpush3.msra.mxu0 %v13673_v10 }
0x1ec2   : > { %12678 = vmatpush3.msra.mxu1 %v16580_v55  ;;  %12652 = vmatprep.subr.mxu0 %v16535_v8 }
0x1ec3   : > { %12679 = vmatprep.mubr.msk.f32.mxu1 %vm13547_vm0, %v16535_v8  ;;  %12701 = vmatprep.subr.mxu1 %v16535_v8 }
0x1ec4   : > { %12653 = vmatpush3.msra.mxu0 %v13676_v11  ;;  %12660 = vmatprep.mubr.msk.f32.mxu0 %vm13547_vm0, %v16535_v8 }
0x1ec5   : > { %12654 = vmatprep.subr.mxu0 %v16535_v8 }
0x1ec6   : > { %12655 = vmatpush3.msra.mxu0 %v13694_v17 }
0x1ec7   : > { %12656 = vmatprep.subr.mxu0 %v16535_v8 }
0x1ec8   : > { %12657 = vmatpush3.msra.mxu0 %v13696_v18 }
0x1ec9   : > { %12658 = vmatprep.subr.mxu0 %v16535_v8 }
0x1eca   : > { %12659 = vmatpush3.msra.mxu0 %v13708_v22 }
0x1ecb   : > { %12682 = vmatprep.subr.mxu0 %v16535_v8 }
0x1f4f   : > { %v5961_v47 = vpop.f32.mrf.mxu1 }
0x1f51   : > { %v12567_v51 = vpop.f32.mrf.mxu1 }
0x1f57   : > { %v5850_v50 = vpop.f32.mrf.mxu0 }
0x1f58   : > { %v5962_v39 = vadd.f32 %v5961_v47, %v5850_v50 }
0x1f59   : > { %v12548_v12 = vpop.f32.mrf.mxu0 }
0x1f5f   : > { %v6130_v28 = vpop.f32.mrf.mxu1 }
0x1f61   : > { %v12605_v32 = vpop.f32.mrf.mxu1 }
0x1f68   : > { %v6049_v45 = vpop.f32.mrf.mxu0 }
0x1f69   : > { %v6050_v48 = vadd.f32 %v6049_v45, %v5962_v39 }
0x1f6a   : > { %v12586_v2 = vpop.f32.mrf.mxu0 }
0x1f6b   : > { %v6131_v62 = vadd.f32 %v6130_v28, %v6050_v48 }
0x1f71   : > { %v6304_v61 = vpop.f32.mrf.mxu1 }
0x1f73   : > { %v12643_v57 = vpop.f32.mrf.mxu1 }
0x1f79   : > { %v6225_v60 = vpop.f32.mrf.mxu0 }
0x1f7a   : > { %v6226_v7 = vadd.f32 %v6225_v60, %v6131_v62 }
0x1f7b   : > { %v12624_v38 = vpop.f32.mrf.mxu0 }
0x1f7c   : > { %v6305_v35 = vadd.f32 %v6304_v61, %v6226_v7  ;;  %v10533_v7 = vld [vmem:[%s13969_s8 + $0x640] sm:$0xff] }
0x1f7d   : > { %v10617_v38 = vld [vmem:[%s13969_s8 + $0x7c0] sm:$0xff] }
0x1f7e   : > { %v6321_v41 = vadd.f32 %v6305_v35, %v16599_v40  ;;  %v15547_v63 = vadd.f32 %v10451_v54, %v6305_v35  ;;  %v10618_v35 = vld [vmem:[%s13961_s26 + $0x40] sm:$0xff] }
0x1f80   : > { %6323 = vrot.lane.b32.xlu1 %v6321_v41, %s13548_s10  ;;  %v10469_v14 = vmul.f32 -1.442695, %v15547_v63  ;;  %v7666_v41 = vmul.f32 %v15410_v49, %v10533_v7 }
0x1f82   : > { %13441 = vpow2.f32 %v10469_v14  ;;  %v10511_v14 = vld [vmem:[%s13969_s8 + $0x5c8] sm:$0xff] }
0x1f8f   : > { %v13442_v51 = vpop.eup %13441 }
0x1f90   : > { %v6318_v12 = vadd.f32 1.0, %v13442_v51  ;;  %v10535_v51 = vld [vmem:[%s13969_s8 + $0x648] sm:$0xff] }
0x1f92   : > { %13443 = vrcp.f32 %v6318_v12  ;;  %v10589_v12 = vld [vmem:[%s13969_s8 + $0x748] sm:$0xff] }
0x1f9f   : > { %v13444_v47 = vpop.eup %13443 }
0x1fa0   : > { %v6333_v61 = vsub.f32 1.0, %v13444_v47  ;;  %v6339_v57 = vmul.f32 %v13444_v47, %v15393_v43  ;;  %v9616_v43 = vmul.f32 %v10618_v35, %v10617_v38 }
0x1ff2   : > { %v6324_v50 = vpop.permute.xlu1 %6323 }
0x1ff3   : > { %v6326_v28 = vmul.f32 %v13444_v47, %v6324_v50  ;;  %v10619_v47 = vld [vmem:[%s13969_s8 + $0x7c8] sm:$0xff] }
0x1ff5   : > { %6328 = vrot.lane.b32.xlu0 %v6326_v28, %s13548_s10 }
0x2067   : > { %v6329_v32 = vpop.permute.xlu0 %6328 }
0x2068   : > { %v6331_v45 = vadd.f32 %v10451_v54, %v6329_v32  ;;  %v10489_v54 = vld [vmem:[%s13969_s8 + $0x548] sm:$0xff] }
0x206a   : > { %13445 = vtanh.f32 %v6331_v45 }
0x2077   : > { %v13446_v2 = vpop.eup %13445 }
0x2078   : > { %6335 = vrot.lane.b32.xlu1 %v13446_v2, %s13549_s17  ;;  %v7667_v2 = vadd.f32 %v7666_v41, %v15260_v0 }
0x20ea   : > { %v6336_v39 = vpop.permute.xlu1 %6335 }
0x20eb   : > { %v6338_v48 = vmul.f32 %v6336_v39, %v6333_v61 }
0x20ed   : > { %v15553_v62 = vadd.f32 %v6339_v57, %v6338_v48  ;;  %v9617_v57 = vadd.f32 %v9616_v43, %v15265_v36 }
0x20ef   : > { %6342 = vrot.lane.b32.xlu0 %v15553_v62, %s13549_s17 }
0x2161   : > { %v6343_v60 = vpop.permute.xlu0 %6342 }
0x2162   : > { %10470 = vst.msk [vmem:[%s13961_s26 + $0x48] sm:$0xff] %vm272_vm1, %v6343_v60 }
0x2169   : > { %v10490_v50 = vld [vmem:[%s13961_s26 + $0x48] sm:$0xff] }
0x216a   : > { %v15570_v28 = vld [vmem:[%s13961_s26 + $0x48] sm:$0xff]  ;;  %v6396_v32 = vmul.f32 %v10490_v50, %v10489_v54  ;;  %v7031_v45 = vmul.f32 %v10511_v14, %v10490_v50  ;;  %v7671_v61 = vmul.f32 %v10535_v51, %v10490_v50 }
0x216b   : > { %v8966_v39 = vmul.f32 %v10589_v12, %v15570_v28  ;;  %v9621_v49 = vmul.f32 %v10619_v47, %v15570_v28 }
0x216c   : > { %v6397_v48 = vadd.f32 %v6396_v32, %v15418_v1  ;;  %v15578_v7 = vadd.f32 %v7031_v45, %v15420_v52  ;;  %v15580_v38 = vadd.f32 %v7671_v61, %v7667_v2 }
0x216d   : > { %v15583_v35 = vadd.f32 %v8966_v39, %v15425_v34  ;;  %v15585_v54 = vadd.f32 %v9621_v49, %v9617_v57 }
0x216e   : > { %6399 = vrot.lane.b32.xlu1 %v6397_v48, %s13545_s11 }
0x21e0   : > { %v6400_v0 = vpop.permute.xlu1 %6399 }
0x21e1   : > { %v6402_v41 = vsel %vm272_vm1, %v6343_v60, %v6400_v0 }
0x21e2   : > { %v6404_v36 = vsel %vm274_vm2, %v6402_v41, 0 }
0x21e3   : > { %v15590_v14 = vand.u32 4294901760, %v6404_v36 }
0x21e5   : > { %v6480_v1 = vsub.f32 %v6404_v36, %v15590_v14  ;;  %12680 = vmatmul.mubr.f32.vlgmr.msra.gmra.mxu1 %v15590_v14 }
0x21e6   : > { %12702 = vmatpush3.msra.mxu1 %v13658_v4  ;;  %12717 = vmatprep.mubr.msk.f32.mxu1 %vm13547_vm0, %v16535_v8 }
0x21e7   : > { %v6481_v52 = vand.u32 4294901760, %v6480_v1  ;;  %12703 = vmatprep.subr.mxu1 %v16535_v8 }
0x21e8   : > { %12704 = vmatpush3.msra.mxu1 %v13660_v5 }
0x21e9   : > { %12705 = vmatprep.subr.mxu1 %v16535_v8  ;;  %v6482_v34 = vsub.f32 %v6480_v1, %v6481_v52 }
0x21ea   : > { %12706 = vmatpush3.msra.mxu1 %v13671_v9 }
0x21eb   : > { %12707 = vmatprep.subr.mxu1 %v16535_v8  ;;  %v6483_v60 = vand.u32 4294901760, %v6482_v34 }
0x21ec   : > { %12708 = vmatpush3.msra.mxu1 %v13673_v10 }
0x21ed   : > { %12709 = vmatprep.subr.mxu1 %v16535_v8  ;;  %12661 = vmatmul.mubr.f32.vlgmr.msra.gmra.mxu0 %v6483_v60 }
0x21ee   : > { %12683 = vmatpush3.msra.mxu0 %v13688_v15  ;;  %12710 = vmatpush3.msra.mxu1 %v13676_v11 }
0x21ef   : > { %12684 = vmatprep.subr.mxu0 %v16535_v8  ;;  %12711 = vmatprep.subr.mxu1 %v16535_v8 }
0x21f0   : > { %12685 = vmatpush3.msra.mxu0 %v13691_v16  ;;  %12712 = vmatpush3.msra.mxu1 %v13694_v17 }
0x21f1   : > { %12686 = vmatprep.subr.mxu0 %v16535_v8  ;;  %12713 = vmatprep.subr.mxu1 %v16535_v8 }
0x21f2   : > { %12687 = vmatpush3.msra.mxu0 %v13699_v19  ;;  %12714 = vmatpush3.msra.mxu1 %v13696_v18 }
0x21f3   : > { %12688 = vmatprep.subr.mxu0 %v16535_v8  ;;  %12715 = vmatprep.subr.mxu1 %v16535_v8 }
0x21f4   : > { %12689 = vmatpush3.msra.mxu0 %v13702_v20  ;;  %12716 = vmatpush3.msra.mxu1 %v13708_v22 }
0x21f5   : > { %12690 = vmatprep.subr.mxu0 %v16535_v8  ;;  %12718 = vmatmul.mubr.f32.vlgmr.msra.gmra.mxu1 %v6481_v52  ;;  %v10471_v52 = vld [vmem:[%s13945_s16 + $0x50] sm:$0xff] }
0x21f6   : > { %12739 = vmatprep.subr.mxu1 %v16535_v8  ;;  %12691 = vmatpush3.msra.mxu0 %v13705_v21 }
0x21f7   : > { %12740 = vmatpush3.msra.mxu1 %v13658_v4  ;;  %12692 = vmatprep.subr.mxu0 %v16535_v8 }
0x21f8   : > { %12741 = vmatprep.subr.mxu1 %v16535_v8  ;;  %12693 = vmatpush3.msra.mxu0 %v13718_v25 }
0x21f9   : > { %12742 = vmatpush3.msra.mxu1 %v13660_v5  ;;  %12694 = vmatprep.subr.mxu0 %v16535_v8 }
0x21fa   : > { %12743 = vmatprep.subr.mxu1 %v16535_v8  ;;  %12695 = vmatpush3.msra.mxu0 %v13736_v31 }
0x21fb   : > { %12744 = vmatpush3.msra.mxu1 %v13671_v9  ;;  %12696 = vmatprep.subr.mxu0 %v16535_v8 }
0x21fc   : > { %12745 = vmatprep.subr.mxu1 %v16535_v8  ;;  %12697 = vmatpush3.msra.mxu0 %v13742_v33 }
0x21fd   : > { %12698 = vmatprep.mubr.msk.f32.mxu0 %vm13547_vm0, %v16535_v8  ;;  %12746 = vmatpush3.msra.mxu1 %v13673_v10 }
0x21fe   : > { %12699 = vmatmul.mubr.f32.vlgmr.msra.gmra.mxu0 %v6480_v1  ;;  %12720 = vmatprep.subr.mxu0 %v16535_v8 }
0x21ff   : > { %12747 = vmatprep.subr.mxu1 %v16535_v8  ;;  %12721 = vmatpush3.msra.mxu0 %v13711_v23 }
0x2200   : > { %12748 = vmatpush3.msra.mxu1 %v13676_v11  ;;  %12722 = vmatprep.subr.mxu0 %v16535_v8 }
0x2201   : > { %12749 = vmatprep.subr.mxu1 %v16535_v8  ;;  %12723 = vmatpush3.msra.mxu0 %v13714_v24 }
0x2202   : > { %12750 = vmatpush3.msra.mxu1 %v13694_v17  ;;  %12724 = vmatprep.subr.mxu0 %v16535_v8 }
0x2203   : > { %12751 = vmatprep.subr.mxu1 %v16535_v8  ;;  %12725 = vmatpush3.msra.mxu0 %v13721_v26 }
0x2204   : > { %12752 = vmatpush3.msra.mxu1 %v13696_v18  ;;  %12726 = vmatprep.subr.mxu0 %v16535_v8 }
0x2205   : > { %12753 = vmatprep.subr.mxu1 %v16535_v8  ;;  %12727 = vmatpush3.msra.mxu0 %v13724_v27 }
0x2206   : > { %12754 = vmatpush3.msra.mxu1 %v13708_v22  ;;  %12755 = vmatprep.mubr.msk.f32.mxu1 %vm13547_vm0, %v16535_v8 }
0x2207   : > { %12728 = vmatprep.subr.mxu0 %v16535_v8  ;;  %12756 = vmatmul.mubr.f32.vlgmr.msra.gmra.mxu1 %v15590_v14 }
0x2208   : > { %12729 = vmatpush3.msra.mxu0 %v13732_v30  ;;  %12736 = vmatprep.mubr.msk.f32.mxu0 %vm13547_vm0, %v16535_v8 }
0x2209   : > { %12730 = vmatprep.subr.mxu0 %v16535_v8  ;;  %12777 = vmatprep.subr.mxu1 %v16535_v8 }
0x220a   : > { %12731 = vmatpush3.msra.mxu0 %v13751_v37  ;;  %12778 = vmatpush3.msra.mxu1 %v16560_v46 }
0x220b   : > { %12732 = vmatprep.subr.mxu0 %v16535_v8  ;;  %12779 = vmatprep.subr.mxu1 %v16535_v8 }
0x220c   : > { %12733 = vmatpush3.msra.mxu0 %v16561_v44  ;;  %12780 = vmatpush3.msra.mxu1 %v16562_v29 }
0x220d   : > { %12734 = vmatprep.subr.mxu0 %v16535_v8  ;;  %12781 = vmatprep.subr.mxu1 %v16535_v8 }
0x220e   : > { %12735 = vmatpush3.msra.mxu0 %v16563_v3  ;;  %12782 = vmatpush3.msra.mxu1 %v16564_v42 }
0x220f   : > { %12737 = vmatmul.mubr.f32.vlgmr.msra.gmra.mxu0 %v15590_v14  ;;  %12783 = vmatprep.subr.mxu1 %v16535_v8 }
0x2210   : > { %12784 = vmatpush3.msra.mxu1 %v16565_v59  ;;  %12758 = vmatprep.subr.mxu0 %v16535_v8 }
0x2211   : > { %12785 = vmatprep.subr.mxu1 %v16535_v8  ;;  %12759 = vmatpush3.msra.mxu0 %v13658_v4 }
0x2212   : > { %12786 = vmatpush3.msra.mxu1 %v16566_v56  ;;  %12760 = vmatprep.subr.mxu0 %v16535_v8 }
0x2213   : > { %12787 = vmatprep.subr.mxu1 %v16535_v8  ;;  %12761 = vmatpush3.msra.mxu0 %v13660_v5 }
0x2214   : > { %12788 = vmatpush3.msra.mxu1 %v16567_v53  ;;  %12762 = vmatprep.subr.mxu0 %v16535_v8 }
0x2215   : > { %12789 = vmatprep.subr.mxu1 %v16535_v8  ;;  %12763 = vmatpush3.msra.mxu0 %v13671_v9 }
0x2216   : > { %12790 = vmatpush3.msra.mxu1 %v16568_v58  ;;  %12764 = vmatprep.subr.mxu0 %v16535_v8 }
0x2217   : > { %12791 = vmatprep.subr.mxu1 %v16535_v8  ;;  %12765 = vmatpush3.msra.mxu0 %v13673_v10 }
0x2218   : > { %12792 = vmatpush3.msra.mxu1 %v16580_v55  ;;  %12766 = vmatprep.subr.mxu0 %v16535_v8 }
0x2219   : > { %12793 = vmatprep.mubr.msk.f32.mxu1 %vm13547_vm0, %v16535_v8  ;;  %12815 = vmatprep.subr.mxu1 %v16535_v8 }
0x221a   : > { %12767 = vmatpush3.msra.mxu0 %v13676_v11  ;;  %12774 = vmatprep.mubr.msk.f32.mxu0 %vm13547_vm0, %v16535_v8 }
0x221b   : > { %12768 = vmatprep.subr.mxu0 %v16535_v8 }
0x221c   : > { %12769 = vmatpush3.msra.mxu0 %v13694_v17 }
0x221d   : > { %12770 = vmatprep.subr.mxu0 %v16535_v8 }
0x221e   : > { %12771 = vmatpush3.msra.mxu0 %v13696_v18 }
0x221f   : > { %12772 = vmatprep.subr.mxu0 %v16535_v8 }
0x2220   : > { %12773 = vmatpush3.msra.mxu0 %v13708_v22 }
0x2221   : > { %12796 = vmatprep.subr.mxu0 %v16535_v8 }
0x22a5   : > { %v6596_v51 = vpop.f32.mrf.mxu1 }
0x22a7   : > { %v12681_v43 = vpop.f32.mrf.mxu1 }
0x22ad   : > { %v6485_v12 = vpop.f32.mrf.mxu0 }
0x22ae   : > { %v6597_v39 = vadd.f32 %v6596_v51, %v6485_v12 }
0x22af   : > { %v12662_v47 = vpop.f32.mrf.mxu0 }
0x22b5   : > { %v6765_v50 = vpop.f32.mrf.mxu1 }
0x22b7   : > { %v12719_v32 = vpop.f32.mrf.mxu1 }
0x22be   : > { %v6684_v45 = vpop.f32.mrf.mxu0 }
0x22bf   : > { %v6685_v49 = vadd.f32 %v6684_v45, %v6597_v39 }
0x22c0   : > { %v12700_v2 = vpop.f32.mrf.mxu0 }
0x22c1   : > { %v6766_v48 = vadd.f32 %v6765_v50, %v6685_v49 }
0x22c7   : > { %v6939_v61 = vpop.f32.mrf.mxu1 }
0x22c9   : > { %v12757_v57 = vpop.f32.mrf.mxu1 }
0x22cf   : > { %v6860_v0 = vpop.f32.mrf.mxu0 }
0x22d0   : > { %v6861_v41 = vadd.f32 %v6860_v0, %v6766_v48 }
0x22d1   : > { %v12738_v36 = vpop.f32.mrf.mxu0 }
0x22d2   : > { %v6940_v14 = vadd.f32 %v6939_v61, %v6861_v41  ;;  %v10561_v41 = vld [vmem:[%s13969_s8 + $0x6c8] sm:$0xff] }
0x22d3   : > { %v8316_v36 = vmul.f32 %v15570_v28, %v10561_v41 }
0x22d4   : > { %v6956_v1 = vadd.f32 %v6940_v14, %v16599_v40  ;;  %v15707_v34 = vadd.f32 %v10471_v52, %v6940_v14  ;;  %v10513_v14 = vld [vmem:[%s13969_s8 + $0x5d0] sm:$0xff] }
0x22d6   : > { %6958 = vrot.lane.b32.xlu0 %v6956_v1, %s13548_s10  ;;  %v10491_v60 = vmul.f32 -1.442695, %v15707_v34  ;;  %v10537_v1 = vld [vmem:[%s13969_s8 + $0x650] sm:$0xff] }
0x22d8   : > { %13447 = vpow2.f32 %v10491_v60  ;;  %v10621_v60 = vld [vmem:[%s13969_s8 + $0x7d0] sm:$0xff] }
0x22e5   : > { %v13448_v43 = vpop.eup %13447 }
0x22e6   : > { %v6953_v47 = vadd.f32 1.0, %v13448_v43 }
0x22e8   : > { %13449 = vrcp.f32 %v6953_v47 }
0x22f5   : > { %v13450_v51 = vpop.eup %13449 }
0x22f6   : > { %v6968_v61 = vsub.f32 1.0, %v13450_v51  ;;  %v6974_v57 = vmul.f32 %v13450_v51, %v15553_v62 }
0x2348   : > { %v6959_v12 = vpop.permute.xlu0 %6958 }
0x2349   : > { %v6961_v50 = vmul.f32 %v13450_v51, %v6959_v12  ;;  %v8317_v12 = vadd.f32 %v8316_v36, %v15423_v13 }
0x234b   : > { %6963 = vrot.lane.b32.xlu1 %v6961_v50, %s13548_s10 }
0x23bd   : > { %v6964_v32 = vpop.permute.xlu1 %6963 }
0x23be   : > { %v6966_v45 = vadd.f32 %v10471_v52, %v6964_v32  ;;  %v10563_v52 = vld [vmem:[%s13969_s8 + $0x6d0] sm:$0xff] }
0x23c0   : > { %13451 = vtanh.f32 %v6966_v45 }
0x23cd   : > { %v13452_v2 = vpop.eup %13451 }
0x23ce   : > { %6970 = vrot.lane.b32.xlu0 %v13452_v2, %s13549_s17 }
0x2440   : > { %v6971_v39 = vpop.permute.xlu0 %6970 }
0x2441   : > { %v6973_v49 = vmul.f32 %v6971_v39, %v6968_v61 }
0x2443   : > { %v15713_v48 = vadd.f32 %v6974_v57, %v6973_v49 }
0x2445   : > { %6977 = vrot.lane.b32.xlu1 %v15713_v48, %s13549_s17 }
0x24b7   : > { %v6978_v0 = vpop.permute.xlu1 %6977 }
0x24b8   : > { %10492 = vst.msk [vmem:[%s13961_s26 + $0x50] sm:$0xff] %vm272_vm1, %v6978_v0 }
0x24bf   : > { %v10514_v43 = vld [vmem:[%s13961_s26 + $0x50] sm:$0xff] }
0x24c0   : > { %v15727_v47 = vld [vmem:[%s13961_s26 + $0x50] sm:$0xff]  ;;  %v7036_v62 = vmul.f32 %v10514_v43, %v10513_v14  ;;  %v7676_v51 = vmul.f32 %v10537_v1, %v10514_v43  ;;  %v8321_v50 = vmul.f32 %v10563_v52, %v10514_v43 }
0x24c1   : > { %v9626_v32 = vmul.f32 %v10621_v60, %v15727_v47 }
0x24c2   : > { %v7037_v45 = vadd.f32 %v7036_v62, %v15578_v7  ;;  %v15733_v2 = vadd.f32 %v7676_v51, %v15580_v38  ;;  %v15735_v28 = vadd.f32 %v8321_v50, %v8317_v12 }
0x24c3   : > { %v15738_v61 = vadd.f32 %v9626_v32, %v15585_v54 }
0x24c4   : > { %7039 = vrot.lane.b32.xlu0 %v7037_v45, %s13545_s11 }
0x2536   : > { %v7040_v39 = vpop.permute.xlu0 %7039 }
0x2537   : > { %v7042_v57 = vsel %vm272_vm1, %v6978_v0, %v7040_v39 }
0x2538   : > { %v7044_v13 = vsel %vm274_vm2, %v7042_v57, 0 }
0x2539   : > { %v15743_v49 = vand.u32 4294901760, %v7044_v13 }
0x253b   : > { %v7120_v41 = vsub.f32 %v7044_v13, %v15743_v49  ;;  %12794 = vmatmul.mubr.f32.vlgmr.msra.gmra.mxu1 %v15743_v49 }
0x253c   : > { %12816 = vmatpush3.msra.mxu1 %v13658_v4  ;;  %12831 = vmatprep.mubr.msk.f32.mxu1 %vm13547_vm0, %v16535_v8 }
0x253d   : > { %v7121_v7 = vand.u32 4294901760, %v7120_v41  ;;  %12817 = vmatprep.subr.mxu1 %v16535_v8 }
0x253e   : > { %12818 = vmatpush3.msra.mxu1 %v13660_v5 }
0x253f   : > { %12819 = vmatprep.subr.mxu1 %v16535_v8  ;;  %v7122_v38 = vsub.f32 %v7120_v41, %v7121_v7 }
0x2540   : > { %12820 = vmatpush3.msra.mxu1 %v13671_v9 }
0x2541   : > { %12821 = vmatprep.subr.mxu1 %v16535_v8  ;;  %v7123_v54 = vand.u32 4294901760, %v7122_v38 }
0x2542   : > { %12822 = vmatpush3.msra.mxu1 %v13673_v10 }
0x2543   : > { %12823 = vmatprep.subr.mxu1 %v16535_v8  ;;  %12775 = vmatmul.mubr.f32.vlgmr.msra.gmra.mxu0 %v7123_v54 }
0x2544   : > { %12797 = vmatpush3.msra.mxu0 %v13688_v15  ;;  %12824 = vmatpush3.msra.mxu1 %v13676_v11 }
0x2545   : > { %12798 = vmatprep.subr.mxu0 %v16535_v8  ;;  %12825 = vmatprep.subr.mxu1 %v16535_v8 }
0x2546   : > { %12799 = vmatpush3.msra.mxu0 %v13691_v16  ;;  %12826 = vmatpush3.msra.mxu1 %v13694_v17 }
0x2547   : > { %12800 = vmatprep.subr.mxu0 %v16535_v8  ;;  %12827 = vmatprep.subr.mxu1 %v16535_v8 }
0x2548   : > { %12801 = vmatpush3.msra.mxu0 %v13699_v19  ;;  %12828 = vmatpush3.msra.mxu1 %v13696_v18 }
0x2549   : > { %12802 = vmatprep.subr.mxu0 %v16535_v8  ;;  %12829 = vmatprep.subr.mxu1 %v16535_v8 }
0x254a   : > { %12803 = vmatpush3.msra.mxu0 %v13702_v20  ;;  %12830 = vmatpush3.msra.mxu1 %v13708_v22 }
0x254b   : > { %12804 = vmatprep.subr.mxu0 %v16535_v8  ;;  %12832 = vmatmul.mubr.f32.vlgmr.msra.gmra.mxu1 %v7121_v7  ;;  %v10493_v7 = vld [vmem:[%s13945_s16 + $0x58] sm:$0xff] }
0x254c   : > { %12853 = vmatprep.subr.mxu1 %v16535_v8  ;;  %12805 = vmatpush3.msra.mxu0 %v13705_v21 }
0x254d   : > { %12854 = vmatpush3.msra.mxu1 %v13658_v4  ;;  %12806 = vmatprep.subr.mxu0 %v16535_v8 }
0x254e   : > { %12855 = vmatprep.subr.mxu1 %v16535_v8  ;;  %12807 = vmatpush3.msra.mxu0 %v13718_v25 }
0x254f   : > { %12856 = vmatpush3.msra.mxu1 %v13660_v5  ;;  %12808 = vmatprep.subr.mxu0 %v16535_v8 }
0x2550   : > { %12857 = vmatprep.subr.mxu1 %v16535_v8  ;;  %12809 = vmatpush3.msra.mxu0 %v13736_v31 }
0x2551   : > { %12858 = vmatpush3.msra.mxu1 %v13671_v9  ;;  %12810 = vmatprep.subr.mxu0 %v16535_v8 }
0x2552   : > { %12859 = vmatprep.subr.mxu1 %v16535_v8  ;;  %12811 = vmatpush3.msra.mxu0 %v13742_v33 }
0x2553   : > { %12812 = vmatprep.mubr.msk.f32.mxu0 %vm13547_vm0, %v16535_v8  ;;  %12860 = vmatpush3.msra.mxu1 %v13673_v10 }
0x2554   : > { %12813 = vmatmul.mubr.f32.vlgmr.msra.gmra.mxu0 %v7120_v41  ;;  %12834 = vmatprep.subr.mxu0 %v16535_v8 }
0x2555   : > { %12861 = vmatprep.subr.mxu1 %v16535_v8  ;;  %12835 = vmatpush3.msra.mxu0 %v13711_v23 }
0x2556   : > { %12862 = vmatpush3.msra.mxu1 %v13676_v11  ;;  %12836 = vmatprep.subr.mxu0 %v16535_v8 }
0x2557   : > { %12863 = vmatprep.subr.mxu1 %v16535_v8  ;;  %12837 = vmatpush3.msra.mxu0 %v13714_v24 }
0x2558   : > { %12864 = vmatpush3.msra.mxu1 %v13694_v17  ;;  %12838 = vmatprep.subr.mxu0 %v16535_v8 }
0x2559   : > { %12865 = vmatprep.subr.mxu1 %v16535_v8  ;;  %12839 = vmatpush3.msra.mxu0 %v13721_v26 }
0x255a   : > { %12866 = vmatpush3.msra.mxu1 %v13696_v18  ;;  %12840 = vmatprep.subr.mxu0 %v16535_v8 }
0x255b   : > { %12867 = vmatprep.subr.mxu1 %v16535_v8  ;;  %12841 = vmatpush3.msra.mxu0 %v13724_v27 }
0x255c   : > { %12868 = vmatpush3.msra.mxu1 %v13708_v22  ;;  %12869 = vmatprep.mubr.msk.f32.mxu1 %vm13547_vm0, %v16535_v8 }
0x255d   : > { %12842 = vmatprep.subr.mxu0 %v16535_v8  ;;  %12870 = vmatmul.mubr.f32.vlgmr.msra.gmra.mxu1 %v15743_v49 }
0x255e   : > { %12843 = vmatpush3.msra.mxu0 %v13732_v30  ;;  %12850 = vmatprep.mubr.msk.f32.mxu0 %vm13547_vm0, %v16535_v8 }
0x255f   : > { %12844 = vmatprep.subr.mxu0 %v16535_v8  ;;  %12891 = vmatprep.subr.mxu1 %v16535_v8 }
0x2560   : > { %12845 = vmatpush3.msra.mxu0 %v13751_v37  ;;  %12892 = vmatpush3.msra.mxu1 %v16560_v46 }
0x2561   : > { %12846 = vmatprep.subr.mxu0 %v16535_v8  ;;  %12893 = vmatprep.subr.mxu1 %v16535_v8 }
0x2562   : > { %12847 = vmatpush3.msra.mxu0 %v16561_v44  ;;  %12894 = vmatpush3.msra.mxu1 %v16562_v29 }
0x2563   : > { %12848 = vmatprep.subr.mxu0 %v16535_v8  ;;  %12895 = vmatprep.subr.mxu1 %v16535_v8 }
0x2564   : > { %12849 = vmatpush3.msra.mxu0 %v16563_v3  ;;  %12896 = vmatpush3.msra.mxu1 %v16564_v42 }
0x2565   : > { %12851 = vmatmul.mubr.f32.vlgmr.msra.gmra.mxu0 %v15743_v49  ;;  %12897 = vmatprep.subr.mxu1 %v16535_v8 }
0x2566   : > { %12898 = vmatpush3.msra.mxu1 %v16565_v59  ;;  %12872 = vmatprep.subr.mxu0 %v16535_v8 }
0x2567   : > { %12899 = vmatprep.subr.mxu1 %v16535_v8  ;;  %12873 = vmatpush3.msra.mxu0 %v13658_v4 }
0x2568   : > { %12900 = vmatpush3.msra.mxu1 %v16566_v56  ;;  %12874 = vmatprep.subr.mxu0 %v16535_v8 }
0x2569   : > { %12901 = vmatprep.subr.mxu1 %v16535_v8  ;;  %12875 = vmatpush3.msra.mxu0 %v13660_v5 }
0x256a   : > { %12902 = vmatpush3.msra.mxu1 %v16567_v53  ;;  %12876 = vmatprep.subr.mxu0 %v16535_v8 }
0x256b   : > { %12903 = vmatprep.subr.mxu1 %v16535_v8  ;;  %12877 = vmatpush3.msra.mxu0 %v13671_v9 }
0x256c   : > { %12904 = vmatpush3.msra.mxu1 %v16568_v58  ;;  %12878 = vmatprep.subr.mxu0 %v16535_v8 }
0x256d   : > { %12905 = vmatprep.subr.mxu1 %v16535_v8  ;;  %12879 = vmatpush3.msra.mxu0 %v13673_v10 }
0x256e   : > { %12906 = vmatpush3.msra.mxu1 %v16580_v55  ;;  %12880 = vmatprep.subr.mxu0 %v16535_v8 }
0x256f   : > { %12907 = vmatprep.mubr.msk.f32.mxu1 %vm13547_vm0, %v16535_v8  ;;  %12929 = vmatprep.subr.mxu1 %v16535_v8 }
0x2570   : > { %12881 = vmatpush3.msra.mxu0 %v13676_v11  ;;  %12888 = vmatprep.mubr.msk.f32.mxu0 %vm13547_vm0, %v16535_v8 }
0x2571   : > { %12882 = vmatprep.subr.mxu0 %v16535_v8 }
0x2572   : > { %12883 = vmatpush3.msra.mxu0 %v13694_v17 }
0x2573   : > { %12884 = vmatprep.subr.mxu0 %v16535_v8 }
0x2574   : > { %12885 = vmatpush3.msra.mxu0 %v13696_v18 }
0x2575   : > { %12886 = vmatprep.subr.mxu0 %v16535_v8 }
0x2576   : > { %12887 = vmatpush3.msra.mxu0 %v13708_v22 }
0x2577   : > { %12910 = vmatprep.subr.mxu0 %v16535_v8 }
0x25fb   : > { %v7236_v0 = vpop.f32.mrf.mxu1 }
0x25fd   : > { %v12795_v36 = vpop.f32.mrf.mxu1 }
0x2603   : > { %v7125_v14 = vpop.f32.mrf.mxu0 }
0x2604   : > { %v7237_v12 = vadd.f32 %v7236_v0, %v7125_v14 }
0x2605   : > { %v12776_v1 = vpop.f32.mrf.mxu0 }
0x260b   : > { %v7405_v52 = vpop.f32.mrf.mxu1 }
0x260d   : > { %v12833_v60 = vpop.f32.mrf.mxu1 }
0x2614   : > { %v7324_v43 = vpop.f32.mrf.mxu0 }
0x2615   : > { %v7325_v32 = vadd.f32 %v7324_v43, %v7237_v12 }
0x2616   : > { %v12814_v62 = vpop.f32.mrf.mxu0 }
0x2617   : > { %v7406_v45 = vadd.f32 %v7405_v52, %v7325_v32 }
0x261d   : > { %v7579_v51 = vpop.f32.mrf.mxu1 }
0x261f   : > { %v12871_v50 = vpop.f32.mrf.mxu1 }
0x2625   : > { %v7500_v39 = vpop.f32.mrf.mxu0 }
0x2626   : > { %v7501_v57 = vadd.f32 %v7500_v39, %v7406_v45 }
0x2627   : > { %v12852_v13 = vpop.f32.mrf.mxu0 }
0x2628   : > { %v7580_v49 = vadd.f32 %v7579_v51, %v7501_v57  ;;  %v10591_v57 = vld [vmem:[%s13969_s8 + $0x750] sm:$0xff] }
0x2629   : > { %v8971_v13 = vmul.f32 %v15727_v47, %v10591_v57 }
0x262a   : > { %v7596_v41 = vadd.f32 %v7580_v49, %v16599_v40  ;;  %v15860_v38 = vadd.f32 %v10493_v7, %v7580_v49  ;;  %v10539_v49 = vld [vmem:[%s13969_s8 + $0x658] sm:$0xff] }
0x262c   : > { %7598 = vrot.lane.b32.xlu1 %v7596_v41, %s13548_s10  ;;  %v10515_v54 = vmul.f32 -1.442695, %v15860_v38  ;;  %v10565_v41 = vld [vmem:[%s13969_s8 + $0x6d8] sm:$0xff] }
0x262e   : > { %13453 = vpow2.f32 %v10515_v54 }
0x263b   : > { %v13454_v36 = vpop.eup %13453 }
0x263c   : > { %v7593_v1 = vadd.f32 1.0, %v13454_v36 }
0x263e   : > { %13455 = vrcp.f32 %v7593_v1 }
0x264b   : > { %v13456_v0 = vpop.eup %13455 }
0x264c   : > { %v7608_v51 = vsub.f32 1.0, %v13456_v0  ;;  %v7614_v50 = vmul.f32 %v13456_v0, %v15713_v48  ;;  %v8972_v48 = vadd.f32 %v8971_v13, %v15583_v35 }
0x269e   : > { %v7599_v14 = vpop.permute.xlu1 %7598 }
0x269f   : > { %v7601_v52 = vmul.f32 %v13456_v0, %v7599_v14 }
0x26a1   : > { %7603 = vrot.lane.b32.xlu0 %v7601_v52, %s13548_s10 }
0x2713   : > { %v7604_v60 = vpop.permute.xlu0 %7603 }
0x2714   : > { %v7606_v43 = vadd.f32 %v10493_v7, %v7604_v60  ;;  %v10593_v7 = vld [vmem:[%s13969_s8 + $0x758] sm:$0xff] }
0x2716   : > { %13457 = vtanh.f32 %v7606_v43 }
0x2723   : > { %v13458_v62 = vpop.eup %13457 }
0x2724   : > { %7610 = vrot.lane.b32.xlu1 %v13458_v62, %s13549_s17 }
0x2796   : > { %v7611_v12 = vpop.permute.xlu1 %7610 }
0x2797   : > { %v7613_v32 = vmul.f32 %v7611_v12, %v7608_v51 }
0x2799   : > { %v15866_v45 = vadd.f32 %v7614_v50, %v7613_v32 }
0x279b   : > { %7617 = vrot.lane.b32.xlu0 %v15866_v45, %s13549_s17 }
0x280d   : > { %v7618_v39 = vpop.permute.xlu0 %7617 }
0x280e   : > { %10516 = vst.msk [vmem:[%s13961_s26 + $0x58] sm:$0xff] %vm272_vm1, %v7618_v39 }
0x2815   : > { %v10540_v54 = vld [vmem:[%s13961_s26 + $0x58] sm:$0xff] }
0x2816   : > { %v7681_v36 = vmul.f32 %v10540_v54, %v10539_v49  ;;  %v8326_v1 = vmul.f32 %v10565_v41, %v10540_v54  ;;  %v8976_v0 = vmul.f32 %v10593_v7, %v10540_v54 }
0x2818   : > { %v7682_v14 = vadd.f32 %v7681_v36, %v15733_v2  ;;  %v15881_v52 = vadd.f32 %v8326_v1, %v15735_v28  ;;  %v15883_v60 = vadd.f32 %v8976_v0, %v8972_v48 }
0x281a   : > { %7684 = vrot.lane.b32.xlu1 %v7682_v14, %s13545_s11 }
0x288c   : > { %v7685_v43 = vpop.permute.xlu1 %7684 }
0x288d   : > { %v7687_v47 = vsel %vm272_vm1, %v7618_v39, %v7685_v43 }
0x288e   : > { %v7689_v62 = vsel %vm274_vm2, %v7687_v47, 0 }
0x288f   : > { %v15888_v51 = vand.u32 4294901760, %v7689_v62 }
0x2891   : > { %v7765_v12 = vsub.f32 %v7689_v62, %v15888_v51  ;;  %12908 = vmatmul.mubr.f32.vlgmr.msra.gmra.mxu1 %v15888_v51 }
0x2892   : > { %12930 = vmatpush3.msra.mxu1 %v13658_v4  ;;  %12945 = vmatprep.mubr.msk.f32.mxu1 %vm13547_vm0, %v16535_v8 }
0x2893   : > { %v7766_v35 = vand.u32 4294901760, %v7765_v12  ;;  %12931 = vmatprep.subr.mxu1 %v16535_v8 }
0x2894   : > { %12932 = vmatpush3.msra.mxu1 %v13660_v5 }
0x2895   : > { %12933 = vmatprep.subr.mxu1 %v16535_v8  ;;  %v7767_v2 = vsub.f32 %v7765_v12, %v7766_v35 }
0x2896   : > { %12934 = vmatpush3.msra.mxu1 %v13671_v9 }
0x2897   : > { %12935 = vmatprep.subr.mxu1 %v16535_v8  ;;  %v7768_v28 = vand.u32 4294901760, %v7767_v2 }
0x2898   : > { %12936 = vmatpush3.msra.mxu1 %v13673_v10 }
0x2899   : > { %12937 = vmatprep.subr.mxu1 %v16535_v8  ;;  %12889 = vmatmul.mubr.f32.vlgmr.msra.gmra.mxu0 %v7768_v28 }
0x289a   : > { %12911 = vmatpush3.msra.mxu0 %v13688_v15  ;;  %12938 = vmatpush3.msra.mxu1 %v13676_v11 }
0x289b   : > { %12912 = vmatprep.subr.mxu0 %v16535_v8  ;;  %12939 = vmatprep.subr.mxu1 %v16535_v8 }
0x289c   : > { %12913 = vmatpush3.msra.mxu0 %v13691_v16  ;;  %12940 = vmatpush3.msra.mxu1 %v13694_v17 }
0x289d   : > { %12914 = vmatprep.subr.mxu0 %v16535_v8  ;;  %12941 = vmatprep.subr.mxu1 %v16535_v8 }
0x289e   : > { %12915 = vmatpush3.msra.mxu0 %v13699_v19  ;;  %12942 = vmatpush3.msra.mxu1 %v13696_v18 }
0x289f   : > { %12916 = vmatprep.subr.mxu0 %v16535_v8  ;;  %12943 = vmatprep.subr.mxu1 %v16535_v8 }
0x28a0   : > { %12917 = vmatpush3.msra.mxu0 %v13702_v20  ;;  %12944 = vmatpush3.msra.mxu1 %v13708_v22 }
0x28a1   : > { %12918 = vmatprep.subr.mxu0 %v16535_v8  ;;  %12946 = vmatmul.mubr.f32.vlgmr.msra.gmra.mxu1 %v7766_v35 }
0x28a2   : > { %12967 = vmatprep.subr.mxu1 %v16535_v8  ;;  %12919 = vmatpush3.msra.mxu0 %v13705_v21 }
0x28a3   : > { %12968 = vmatpush3.msra.mxu1 %v13658_v4  ;;  %12920 = vmatprep.subr.mxu0 %v16535_v8 }
0x28a4   : > { %12969 = vmatprep.subr.mxu1 %v16535_v8  ;;  %12921 = vmatpush3.msra.mxu0 %v13718_v25 }
0x28a5   : > { %12970 = vmatpush3.msra.mxu1 %v13660_v5  ;;  %12922 = vmatprep.subr.mxu0 %v16535_v8 }
0x28a6   : > { %12971 = vmatprep.subr.mxu1 %v16535_v8  ;;  %12923 = vmatpush3.msra.mxu0 %v13736_v31 }
0x28a7   : > { %12972 = vmatpush3.msra.mxu1 %v13671_v9  ;;  %12924 = vmatprep.subr.mxu0 %v16535_v8 }
0x28a8   : > { %12973 = vmatprep.subr.mxu1 %v16535_v8  ;;  %12925 = vmatpush3.msra.mxu0 %v13742_v33 }
0x28a9   : > { %12926 = vmatprep.mubr.msk.f32.mxu0 %vm13547_vm0, %v16535_v8  ;;  %12974 = vmatpush3.msra.mxu1 %v13673_v10 }
0x28aa   : > { %12927 = vmatmul.mubr.f32.vlgmr.msra.gmra.mxu0 %v7765_v12  ;;  %12948 = vmatprep.subr.mxu0 %v16535_v8  ;;  %v10517_v12 = vld [vmem:[%s13945_s16 + $0x60] sm:$0xff] }
0x28ab   : > { %12975 = vmatprep.subr.mxu1 %v16535_v8  ;;  %12949 = vmatpush3.msra.mxu0 %v13711_v23 }
0x28ac   : > { %12976 = vmatpush3.msra.mxu1 %v13676_v11  ;;  %12950 = vmatprep.subr.mxu0 %v16535_v8 }
0x28ad   : > { %12977 = vmatprep.subr.mxu1 %v16535_v8  ;;  %12951 = vmatpush3.msra.mxu0 %v13714_v24 }
0x28ae   : > { %12978 = vmatpush3.msra.mxu1 %v13694_v17  ;;  %12952 = vmatprep.subr.mxu0 %v16535_v8 }
0x28af   : > { %12979 = vmatprep.subr.mxu1 %v16535_v8  ;;  %12953 = vmatpush3.msra.mxu0 %v13721_v26 }
0x28b0   : > { %12980 = vmatpush3.msra.mxu1 %v13696_v18  ;;  %12954 = vmatprep.subr.mxu0 %v16535_v8 }
0x28b1   : > { %12981 = vmatprep.subr.mxu1 %v16535_v8  ;;  %12955 = vmatpush3.msra.mxu0 %v13724_v27 }
0x28b2   : > { %12982 = vmatpush3.msra.mxu1 %v13708_v22  ;;  %12983 = vmatprep.mubr.msk.f32.mxu1 %vm13547_vm0, %v16535_v8 }
0x28b3   : > { %12956 = vmatprep.subr.mxu0 %v16535_v8  ;;  %12984 = vmatmul.mubr.f32.vlgmr.msra.gmra.mxu1 %v15888_v51 }
0x28b4   : > { %12957 = vmatpush3.msra.mxu0 %v13732_v30  ;;  %12964 = vmatprep.mubr.msk.f32.mxu0 %vm13547_vm0, %v16535_v8 }
0x28b5   : > { %12958 = vmatprep.subr.mxu0 %v16535_v8  ;;  %13005 = vmatprep.subr.mxu1 %v16535_v8 }
0x28b6   : > { %12959 = vmatpush3.msra.mxu0 %v13751_v37  ;;  %13006 = vmatpush3.msra.mxu1 %v16560_v46 }
0x28b7   : > { %12960 = vmatprep.subr.mxu0 %v16535_v8  ;;  %13007 = vmatprep.subr.mxu1 %v16535_v8 }
0x28b8   : > { %12961 = vmatpush3.msra.mxu0 %v16561_v44  ;;  %13008 = vmatpush3.msra.mxu1 %v16562_v29 }
0x28b9   : > { %12962 = vmatprep.subr.mxu0 %v16535_v8  ;;  %13009 = vmatprep.subr.mxu1 %v16535_v8 }
0x28ba   : > { %12963 = vmatpush3.msra.mxu0 %v16563_v3  ;;  %13010 = vmatpush3.msra.mxu1 %v16564_v42 }
0x28bb   : > { %12965 = vmatmul.mubr.f32.vlgmr.msra.gmra.mxu0 %v15888_v51  ;;  %13011 = vmatprep.subr.mxu1 %v16535_v8 }
0x28bc   : > { %13012 = vmatpush3.msra.mxu1 %v16565_v59  ;;  %12986 = vmatprep.subr.mxu0 %v16535_v8 }
0x28bd   : > { %13013 = vmatprep.subr.mxu1 %v16535_v8  ;;  %12987 = vmatpush3.msra.mxu0 %v13658_v4 }
0x28be   : > { %13014 = vmatpush3.msra.mxu1 %v16566_v56  ;;  %12988 = vmatprep.subr.mxu0 %v16535_v8 }
0x28bf   : > { %13015 = vmatprep.subr.mxu1 %v16535_v8  ;;  %12989 = vmatpush3.msra.mxu0 %v13660_v5 }
0x28c0   : > { %13016 = vmatpush3.msra.mxu1 %v16567_v53  ;;  %12990 = vmatprep.subr.mxu0 %v16535_v8 }
0x28c1   : > { %13017 = vmatprep.subr.mxu1 %v16535_v8  ;;  %12991 = vmatpush3.msra.mxu0 %v13671_v9 }
0x28c2   : > { %13018 = vmatpush3.msra.mxu1 %v16568_v58  ;;  %12992 = vmatprep.subr.mxu0 %v16535_v8 }
0x28c3   : > { %13019 = vmatprep.subr.mxu1 %v16535_v8  ;;  %12993 = vmatpush3.msra.mxu0 %v13673_v10 }
0x28c4   : > { %13020 = vmatpush3.msra.mxu1 %v16580_v55  ;;  %12994 = vmatprep.subr.mxu0 %v16535_v8 }
0x28c5   : > { %13021 = vmatprep.mubr.msk.f32.mxu1 %vm13547_vm0, %v16535_v8  ;;  %13043 = vmatprep.subr.mxu1 %v16535_v8 }
0x28c6   : > { %12995 = vmatpush3.msra.mxu0 %v13676_v11  ;;  %13002 = vmatprep.mubr.msk.f32.mxu0 %vm13547_vm0, %v16535_v8 }
0x28c7   : > { %12996 = vmatprep.subr.mxu0 %v16535_v8 }
0x28c8   : > { %12997 = vmatpush3.msra.mxu0 %v13694_v17 }
0x28c9   : > { %12998 = vmatprep.subr.mxu0 %v16535_v8 }
0x28ca   : > { %12999 = vmatpush3.msra.mxu0 %v13696_v18 }
0x28cb   : > { %13000 = vmatprep.subr.mxu0 %v16535_v8 }
0x28cc   : > { %13001 = vmatpush3.msra.mxu0 %v13708_v22 }
0x28cd   : > { %13024 = vmatprep.subr.mxu0 %v16535_v8 }
0x2951   : > { %v7881_v50 = vpop.f32.mrf.mxu1 }
0x2953   : > { %v12909_v32 = vpop.f32.mrf.mxu1 }
0x2959   : > { %v7770_v39 = vpop.f32.mrf.mxu0 }
0x295a   : > { %v7882_v36 = vadd.f32 %v7881_v50, %v7770_v39 }
0x295b   : > { %v12890_v57 = vpop.f32.mrf.mxu0 }
0x2961   : > { %v8050_v13 = vpop.f32.mrf.mxu1 }
0x2963   : > { %v12947_v49 = vpop.f32.mrf.mxu1 }
0x296a   : > { %v7969_v41 = vpop.f32.mrf.mxu0 }
0x296b   : > { %v7970_v48 = vadd.f32 %v7969_v41, %v7882_v36 }
0x296c   : > { %v12928_v7 = vpop.f32.mrf.mxu0 }
0x296d   : > { %v8051_v0 = vadd.f32 %v8050_v13, %v7970_v48 }
0x2973   : > { %v8224_v54 = vpop.f32.mrf.mxu1 }
0x2975   : > { %v12985_v1 = vpop.f32.mrf.mxu1 }
0x297b   : > { %v8145_v14 = vpop.f32.mrf.mxu0 }
0x297c   : > { %v8146_v43 = vadd.f32 %v8145_v14, %v8051_v0  ;;  %v10623_v14 = vld [vmem:[%s13969_s8 + $0x7d8] sm:$0xff] }
0x297d   : > { %v12966_v47 = vpop.f32.mrf.mxu0 }
0x297e   : > { %v8225_v62 = vadd.f32 %v8224_v54, %v8146_v43  ;;  %v10624_v43 = vld [vmem:[%s13961_s26 + $0x58] sm:$0xff] }
0x297f   : > { %v9631_v47 = vmul.f32 %v10624_v43, %v10623_v14 }
0x2980   : > { %v8241_v51 = vadd.f32 %v8225_v62, %v16599_v40  ;;  %v16005_v35 = vadd.f32 %v10517_v12, %v8225_v62  ;;  %v10567_v62 = vld [vmem:[%s13969_s8 + $0x6e0] sm:$0xff] }
0x2982   : > { %8243 = vrot.lane.b32.xlu0 %v8241_v51, %s13548_s10  ;;  %v10541_v2 = vmul.f32 -1.442695, %v16005_v35  ;;  %v10595_v51 = vld [vmem:[%s13969_s8 + $0x760] sm:$0xff] }
0x2984   : > { %13459 = vpow2.f32 %v10541_v2 }
0x2991   : > { %v13460_v28 = vpop.eup %13459 }
0x2992   : > { %v8238_v32 = vadd.f32 1.0, %v13460_v28 }
0x2994   : > { %13461 = vrcp.f32 %v8238_v32 }
0x29a1   : > { %v13462_v50 = vpop.eup %13461 }
0x29a2   : > { %v8253_v7 = vsub.f32 1.0, %v13462_v50  ;;  %v8259_v36 = vmul.f32 %v13462_v50, %v15866_v45  ;;  %v9632_v45 = vadd.f32 %v9631_v47, %v15738_v61 }
0x29f4   : > { %v8244_v39 = vpop.permute.xlu0 %8243 }
0x29f5   : > { %v8246_v57 = vmul.f32 %v13462_v50, %v8244_v39 }
0x29f7   : > { %8248 = vrot.lane.b32.xlu1 %v8246_v57, %s13548_s10 }
0x2a69   : > { %v8249_v13 = vpop.permute.xlu1 %8248 }
0x2a6a   : > { %v8251_v49 = vadd.f32 %v10517_v12, %v8249_v13  ;;  %v10625_v12 = vld [vmem:[%s13969_s8 + $0x7e0] sm:$0xff] }
0x2a6c   : > { %13463 = vtanh.f32 %v8251_v49 }
0x2a79   : > { %v13464_v41 = vpop.eup %13463 }
0x2a7a   : > { %8255 = vrot.lane.b32.xlu0 %v13464_v41, %s13549_s17 }
0x2aec   : > { %v8256_v54 = vpop.permute.xlu0 %8255 }
0x2aed   : > { %v8258_v1 = vmul.f32 %v8256_v54, %v8253_v7 }
0x2aef   : > { %v16011_v48 = vadd.f32 %v8259_v36, %v8258_v1 }
0x2af1   : > { %8262 = vrot.lane.b32.xlu1 %v16011_v48, %s13549_s17 }
0x2b63   : > { %v8263_v0 = vpop.permute.xlu1 %8262 }
0x2b64   : > { %10542 = vst.msk [vmem:[%s13961_s26 + $0x60] sm:$0xff] %vm272_vm1, %v8263_v0 }
0x2b6b   : > { %v10568_v2 = vld [vmem:[%s13961_s26 + $0x60] sm:$0xff] }
0x2b6c   : > { %v8331_v28 = vmul.f32 %v10568_v2, %v10567_v62  ;;  %v8981_v32 = vmul.f32 %v10595_v51, %v10568_v2  ;;  %v9636_v50 = vmul.f32 %v10625_v12, %v10568_v2 }
0x2b6e   : > { %v8332_v39 = vadd.f32 %v8331_v28, %v15881_v52  ;;  %v16026_v57 = vadd.f32 %v8981_v32, %v15883_v60  ;;  %v16028_v13 = vadd.f32 %v9636_v50, %v9632_v45 }
0x2b70   : > { %8334 = vrot.lane.b32.xlu0 %v8332_v39, %s13545_s11 }
0x2be2   : > { %v8335_v49 = vpop.permute.xlu0 %8334 }
0x2be3   : > { %v8337_v41 = vsel %vm272_vm1, %v8263_v0, %v8335_v49 }
0x2be4   : > { %v8339_v7 = vsel %vm274_vm2, %v8337_v41, 0 }
0x2be5   : > { %v16033_v54 = vand.u32 4294901760, %v8339_v7 }
0x2be7   : > { %v8415_v36 = vsub.f32 %v8339_v7, %v16033_v54  ;;  %13022 = vmatmul.mubr.f32.vlgmr.msra.gmra.mxu1 %v16033_v54 }
0x2be8   : > { %13044 = vmatpush3.msra.mxu1 %v13658_v4  ;;  %13059 = vmatprep.mubr.msk.f32.mxu1 %vm13547_vm0, %v16535_v8 }
0x2be9   : > { %v8416_v61 = vand.u32 4294901760, %v8415_v36  ;;  %13045 = vmatprep.subr.mxu1 %v16535_v8 }
0x2bea   : > { %13046 = vmatpush3.msra.mxu1 %v13660_v5 }
0x2beb   : > { %13047 = vmatprep.subr.mxu1 %v16535_v8  ;;  %v8417_v52 = vsub.f32 %v8415_v36, %v8416_v61 }
0x2bec   : > { %13048 = vmatpush3.msra.mxu1 %v13671_v9 }
0x2bed   : > { %13049 = vmatprep.subr.mxu1 %v16535_v8  ;;  %v8418_v60 = vand.u32 4294901760, %v8417_v52 }
0x2bee   : > { %13050 = vmatpush3.msra.mxu1 %v13673_v10 }
0x2bef   : > { %13051 = vmatprep.subr.mxu1 %v16535_v8  ;;  %13003 = vmatmul.mubr.f32.vlgmr.msra.gmra.mxu0 %v8418_v60 }
0x2bf0   : > { %13025 = vmatpush3.msra.mxu0 %v13688_v15  ;;  %13052 = vmatpush3.msra.mxu1 %v13676_v11 }
0x2bf1   : > { %13026 = vmatprep.subr.mxu0 %v16535_v8  ;;  %13053 = vmatprep.subr.mxu1 %v16535_v8 }
0x2bf2   : > { %13027 = vmatpush3.msra.mxu0 %v13691_v16  ;;  %13054 = vmatpush3.msra.mxu1 %v13694_v17 }
0x2bf3   : > { %13028 = vmatprep.subr.mxu0 %v16535_v8  ;;  %13055 = vmatprep.subr.mxu1 %v16535_v8 }
0x2bf4   : > { %13029 = vmatpush3.msra.mxu0 %v13699_v19  ;;  %13056 = vmatpush3.msra.mxu1 %v13696_v18 }
0x2bf5   : > { %13030 = vmatprep.subr.mxu0 %v16535_v8  ;;  %13057 = vmatprep.subr.mxu1 %v16535_v8 }
0x2bf6   : > { %13031 = vmatpush3.msra.mxu0 %v13702_v20  ;;  %13058 = vmatpush3.msra.mxu1 %v13708_v22 }
0x2bf7   : > { %13032 = vmatprep.subr.mxu0 %v16535_v8  ;;  %13060 = vmatmul.mubr.f32.vlgmr.msra.gmra.mxu1 %v8416_v61 }
0x2bf8   : > { %13081 = vmatprep.subr.mxu1 %v16535_v8  ;;  %13033 = vmatpush3.msra.mxu0 %v13705_v21 }
0x2bf9   : > { %13082 = vmatpush3.msra.mxu1 %v13658_v4  ;;  %13034 = vmatprep.subr.mxu0 %v16535_v8 }
0x2bfa   : > { %13083 = vmatprep.subr.mxu1 %v16535_v8  ;;  %13035 = vmatpush3.msra.mxu0 %v13718_v25 }
0x2bfb   : > { %13084 = vmatpush3.msra.mxu1 %v13660_v5  ;;  %13036 = vmatprep.subr.mxu0 %v16535_v8 }
0x2bfc   : > { %13085 = vmatprep.subr.mxu1 %v16535_v8  ;;  %13037 = vmatpush3.msra.mxu0 %v13736_v31 }
0x2bfd   : > { %13086 = vmatpush3.msra.mxu1 %v13671_v9  ;;  %13038 = vmatprep.subr.mxu0 %v16535_v8 }
0x2bfe   : > { %13087 = vmatprep.subr.mxu1 %v16535_v8  ;;  %13039 = vmatpush3.msra.mxu0 %v13742_v33 }
0x2bff   : > { %13040 = vmatprep.mubr.msk.f32.mxu0 %vm13547_vm0, %v16535_v8  ;;  %13088 = vmatpush3.msra.mxu1 %v13673_v10 }
0x2c00   : > { %13041 = vmatmul.mubr.f32.vlgmr.msra.gmra.mxu0 %v8415_v36  ;;  %13062 = vmatprep.subr.mxu0 %v16535_v8  ;;  %v10543_v36 = vld [vmem:[%s13945_s16 + $0x68] sm:$0xff] }
0x2c01   : > { %13089 = vmatprep.subr.mxu1 %v16535_v8  ;;  %13063 = vmatpush3.msra.mxu0 %v13711_v23 }
0x2c02   : > { %13090 = vmatpush3.msra.mxu1 %v13676_v11  ;;  %13064 = vmatprep.subr.mxu0 %v16535_v8 }
0x2c03   : > { %13091 = vmatprep.subr.mxu1 %v16535_v8  ;;  %13065 = vmatpush3.msra.mxu0 %v13714_v24 }
0x2c04   : > { %13092 = vmatpush3.msra.mxu1 %v13694_v17  ;;  %13066 = vmatprep.subr.mxu0 %v16535_v8 }
0x2c05   : > { %13093 = vmatprep.subr.mxu1 %v16535_v8  ;;  %13067 = vmatpush3.msra.mxu0 %v13721_v26 }
0x2c06   : > { %13094 = vmatpush3.msra.mxu1 %v13696_v18  ;;  %13068 = vmatprep.subr.mxu0 %v16535_v8 }
0x2c07   : > { %13095 = vmatprep.subr.mxu1 %v16535_v8  ;;  %13069 = vmatpush3.msra.mxu0 %v13724_v27 }
0x2c08   : > { %13096 = vmatpush3.msra.mxu1 %v13708_v22  ;;  %13097 = vmatprep.mubr.msk.f32.mxu1 %vm13547_vm0, %v16535_v8 }
0x2c09   : > { %13070 = vmatprep.subr.mxu0 %v16535_v8  ;;  %13098 = vmatmul.mubr.f32.vlgmr.msra.gmra.mxu1 %v16033_v54 }
0x2c0a   : > { %13071 = vmatpush3.msra.mxu0 %v13732_v30  ;;  %13078 = vmatprep.mubr.msk.f32.mxu0 %vm13547_vm0, %v16535_v8 }
0x2c0b   : > { %13072 = vmatprep.subr.mxu0 %v16535_v8  ;;  %13119 = vmatprep.subr.mxu1 %v16535_v8 }
0x2c0c   : > { %13073 = vmatpush3.msra.mxu0 %v13751_v37  ;;  %13120 = vmatpush3.msra.mxu1 %v16560_v46 }
0x2c0d   : > { %13074 = vmatprep.subr.mxu0 %v16535_v8  ;;  %13121 = vmatprep.subr.mxu1 %v16535_v8 }
0x2c0e   : > { %13075 = vmatpush3.msra.mxu0 %v16561_v44  ;;  %13122 = vmatpush3.msra.mxu1 %v16562_v29 }
0x2c0f   : > { %13076 = vmatprep.subr.mxu0 %v16535_v8  ;;  %13123 = vmatprep.subr.mxu1 %v16535_v8 }
0x2c10   : > { %13077 = vmatpush3.msra.mxu0 %v16563_v3  ;;  %13124 = vmatpush3.msra.mxu1 %v16564_v42 }
0x2c11   : > { %13079 = vmatmul.mubr.f32.vlgmr.msra.gmra.mxu0 %v16033_v54  ;;  %13125 = vmatprep.subr.mxu1 %v16535_v8 }
0x2c12   : > { %13126 = vmatpush3.msra.mxu1 %v16565_v59  ;;  %13100 = vmatprep.subr.mxu0 %v16535_v8 }
0x2c13   : > { %13127 = vmatprep.subr.mxu1 %v16535_v8  ;;  %13101 = vmatpush3.msra.mxu0 %v13658_v4 }
0x2c14   : > { %13128 = vmatpush3.msra.mxu1 %v16566_v56  ;;  %13102 = vmatprep.subr.mxu0 %v16535_v8 }
0x2c15   : > { %13129 = vmatprep.subr.mxu1 %v16535_v8  ;;  %13103 = vmatpush3.msra.mxu0 %v13660_v5 }
0x2c16   : > { %13130 = vmatpush3.msra.mxu1 %v16567_v53  ;;  %13104 = vmatprep.subr.mxu0 %v16535_v8 }
0x2c17   : > { %13131 = vmatprep.subr.mxu1 %v16535_v8  ;;  %13105 = vmatpush3.msra.mxu0 %v13671_v9 }
0x2c18   : > { %13132 = vmatpush3.msra.mxu1 %v16568_v58  ;;  %13106 = vmatprep.subr.mxu0 %v16535_v8 }
0x2c19   : > { %13133 = vmatprep.subr.mxu1 %v16535_v8  ;;  %13107 = vmatpush3.msra.mxu0 %v13673_v10 }
0x2c1a   : > { %13134 = vmatpush3.msra.mxu1 %v16580_v55  ;;  %13108 = vmatprep.subr.mxu0 %v16535_v8 }
0x2c1b   : > { %13135 = vmatprep.mubr.msk.f32.mxu1 %vm13547_vm0, %v16535_v8  ;;  %13157 = vmatprep.subr.mxu1 %v16535_v8 }
0x2c1c   : > { %13109 = vmatpush3.msra.mxu0 %v13676_v11  ;;  %13116 = vmatprep.mubr.msk.f32.mxu0 %vm13547_vm0, %v16535_v8 }
0x2c1d   : > { %13110 = vmatprep.subr.mxu0 %v16535_v8 }
0x2c1e   : > { %13111 = vmatpush3.msra.mxu0 %v13694_v17 }
0x2c1f   : > { %13112 = vmatprep.subr.mxu0 %v16535_v8 }
0x2c20   : > { %13113 = vmatpush3.msra.mxu0 %v13696_v18 }
0x2c21   : > { %13114 = vmatprep.subr.mxu0 %v16535_v8 }
0x2c22   : > { %13115 = vmatpush3.msra.mxu0 %v13708_v22 }
0x2c23   : > { %13138 = vmatprep.subr.mxu0 %v16535_v8 }
0x2ca7   : > { %v8531_v1 = vpop.f32.mrf.mxu1 }
0x2ca9   : > { %v13023_v0 = vpop.f32.mrf.mxu1 }
0x2caf   : > { %v8420_v14 = vpop.f32.mrf.mxu0 }
0x2cb0   : > { %v8532_v28 = vadd.f32 %v8531_v1, %v8420_v14 }
0x2cb1   : > { %v13004_v43 = vpop.f32.mrf.mxu0 }
0x2cb7   : > { %v8700_v47 = vpop.f32.mrf.mxu1 }
0x2cb9   : > { %v13061_v62 = vpop.f32.mrf.mxu1 }
0x2cc0   : > { %v8619_v51 = vpop.f32.mrf.mxu0 }
0x2cc1   : > { %v8620_v45 = vadd.f32 %v8619_v51, %v8532_v28 }
0x2cc2   : > { %v13042_v12 = vpop.f32.mrf.mxu0 }
0x2cc3   : > { %v8701_v50 = vadd.f32 %v8700_v47, %v8620_v45 }
0x2cc9   : > { %v8874_v2 = vpop.f32.mrf.mxu1 }
0x2ccb   : > { %v13099_v32 = vpop.f32.mrf.mxu1 }
0x2cd1   : > { %v8795_v39 = vpop.f32.mrf.mxu0 }
0x2cd2   : > { %v8796_v49 = vadd.f32 %v8795_v39, %v8701_v50  ;;  %v10597_v39 = vld [vmem:[%s13969_s8 + $0x768] sm:$0xff] }
0x2cd3   : > { %v13080_v41 = vpop.f32.mrf.mxu0 }
0x2cd4   : > { %v8875_v7 = vadd.f32 %v8874_v2, %v8796_v49  ;;  %v10627_v49 = vld [vmem:[%s13969_s8 + $0x7e8] sm:$0xff] }
0x2cd6   : > { %v8891_v54 = vadd.f32 %v8875_v7, %v16599_v40  ;;  %v16150_v61 = vadd.f32 %v10543_v36, %v8875_v7 }
0x2cd8   : > { %8893 = vrot.lane.b32.xlu1 %v8891_v54, %s13548_s10  ;;  %v10569_v52 = vmul.f32 -1.442695, %v16150_v61 }
0x2cda   : > { %13465 = vpow2.f32 %v10569_v52 }
0x2ce7   : > { %v13466_v60 = vpop.eup %13465 }
0x2ce8   : > { %v8888_v0 = vadd.f32 1.0, %v13466_v60 }
0x2cea   : > { %13467 = vrcp.f32 %v8888_v0 }
0x2cf7   : > { %v13468_v1 = vpop.eup %13467 }
0x2cf8   : > { %v8903_v12 = vsub.f32 1.0, %v13468_v1  ;;  %v8909_v28 = vmul.f32 %v13468_v1, %v16011_v48 }
0x2d4a   : > { %v8894_v14 = vpop.permute.xlu1 %8893 }
0x2d4b   : > { %v8896_v43 = vmul.f32 %v13468_v1, %v8894_v14 }
0x2d4d   : > { %8898 = vrot.lane.b32.xlu0 %v8896_v43, %s13548_s10 }
0x2dbf   : > { %v8899_v47 = vpop.permute.xlu0 %8898 }
0x2dc0   : > { %v8901_v62 = vadd.f32 %v10543_v36, %v8899_v47 }
0x2dc2   : > { %13469 = vtanh.f32 %v8901_v62 }
0x2dcf   : > { %v13470_v51 = vpop.eup %13469 }
0x2dd0   : > { %8905 = vrot.lane.b32.xlu1 %v13470_v51, %s13549_s17 }
0x2e42   : > { %v8906_v2 = vpop.permute.xlu1 %8905 }
0x2e43   : > { %v8908_v32 = vmul.f32 %v8906_v2, %v8903_v12 }
0x2e45   : > { %v16156_v45 = vadd.f32 %v8909_v28, %v8908_v32 }
0x2e47   : > { %8912 = vrot.lane.b32.xlu0 %v16156_v45, %s13549_s17 }
0x2eb9   : > { %v8913_v50 = vpop.permute.xlu0 %8912 }
0x2eba   : > { %10570 = vst.msk [vmem:[%s13961_s26 + $0x68] sm:$0xff] %vm272_vm1, %v8913_v50 }
0x2ec1   : > { %v10598_v41 = vld [vmem:[%s13961_s26 + $0x68] sm:$0xff] }
0x2ec2   : > { %v8986_v7 = vmul.f32 %v10598_v41, %v10597_v39  ;;  %v9641_v54 = vmul.f32 %v10627_v49, %v10598_v41  ;;  %v10571_v41 = vld [vmem:[%s13945_s16 + $0x70] sm:$0xff] }
0x2ec4   : > { %v8987_v36 = vadd.f32 %v8986_v7, %v16026_v57  ;;  %v16167_v52 = vadd.f32 %v9641_v54, %v16028_v13 }
0x2ec6   : > { %8989 = vrot.lane.b32.xlu1 %v8987_v36, %s13545_s11 }
0x2f38   : > { %v8990_v48 = vpop.permute.xlu1 %8989 }
0x2f39   : > { %v8992_v60 = vsel %vm272_vm1, %v8913_v50, %v8990_v48 }
0x2f3a   : > { %v8994_v0 = vsel %vm274_vm2, %v8992_v60, 0 }
0x2f3b   : > { %v16172_v1 = vand.u32 4294901760, %v8994_v0 }
0x2f3d   : > { %v9070_v14 = vsub.f32 %v8994_v0, %v16172_v1  ;;  %13136 = vmatmul.mubr.f32.vlgmr.msra.gmra.mxu1 %v16172_v1 }
0x2f3e   : > { %13158 = vmatpush3.msra.mxu1 %v13658_v4  ;;  %13173 = vmatprep.mubr.msk.f32.mxu1 %vm13547_vm0, %v16535_v8 }
0x2f3f   : > { %v9071_v57 = vand.u32 4294901760, %v9070_v14  ;;  %13159 = vmatprep.subr.mxu1 %v16535_v8 }
0x2f40   : > { %13160 = vmatpush3.msra.mxu1 %v13660_v5 }
0x2f41   : > { %13161 = vmatprep.subr.mxu1 %v16535_v8  ;;  %v9072_v13 = vsub.f32 %v9070_v14, %v9071_v57 }
0x2f42   : > { %13162 = vmatpush3.msra.mxu1 %v13671_v9 }
0x2f43   : > { %13163 = vmatprep.subr.mxu1 %v16535_v8  ;;  %v9073_v43 = vand.u32 4294901760, %v9072_v13 }
0x2f44   : > { %13164 = vmatpush3.msra.mxu1 %v13673_v10 }
0x2f45   : > { %13165 = vmatprep.subr.mxu1 %v16535_v8  ;;  %13117 = vmatmul.mubr.f32.vlgmr.msra.gmra.mxu0 %v9073_v43 }
0x2f46   : > { %13139 = vmatpush3.msra.mxu0 %v13688_v15  ;;  %13166 = vmatpush3.msra.mxu1 %v13676_v11 }
0x2f47   : > { %13140 = vmatprep.subr.mxu0 %v16535_v8  ;;  %13167 = vmatprep.subr.mxu1 %v16535_v8 }
0x2f48   : > { %13141 = vmatpush3.msra.mxu0 %v13691_v16  ;;  %13168 = vmatpush3.msra.mxu1 %v13694_v17 }
0x2f49   : > { %13142 = vmatprep.subr.mxu0 %v16535_v8  ;;  %13169 = vmatprep.subr.mxu1 %v16535_v8 }
0x2f4a   : > { %13143 = vmatpush3.msra.mxu0 %v13699_v19  ;;  %13170 = vmatpush3.msra.mxu1 %v13696_v18 }
0x2f4b   : > { %13144 = vmatprep.subr.mxu0 %v16535_v8  ;;  %13171 = vmatprep.subr.mxu1 %v16535_v8 }
0x2f4c   : > { %13145 = vmatpush3.msra.mxu0 %v13702_v20  ;;  %13172 = vmatpush3.msra.mxu1 %v13708_v22 }
0x2f4d   : > { %13146 = vmatprep.subr.mxu0 %v16535_v8  ;;  %13174 = vmatmul.mubr.f32.vlgmr.msra.gmra.mxu1 %v9071_v57 }
0x2f4e   : > { %13195 = vmatprep.subr.mxu1 %v16535_v8  ;;  %13147 = vmatpush3.msra.mxu0 %v13705_v21 }
0x2f4f   : > { %13196 = vmatpush3.msra.mxu1 %v13658_v4  ;;  %13148 = vmatprep.subr.mxu0 %v16535_v8 }
0x2f50   : > { %13197 = vmatprep.subr.mxu1 %v16535_v8  ;;  %13149 = vmatpush3.msra.mxu0 %v13718_v25 }
0x2f51   : > { %13198 = vmatpush3.msra.mxu1 %v13660_v5  ;;  %13150 = vmatprep.subr.mxu0 %v16535_v8 }
0x2f52   : > { %13199 = vmatprep.subr.mxu1 %v16535_v8  ;;  %13151 = vmatpush3.msra.mxu0 %v13736_v31 }
0x2f53   : > { %13200 = vmatpush3.msra.mxu1 %v13671_v9  ;;  %13152 = vmatprep.subr.mxu0 %v16535_v8 }
0x2f54   : > { %13201 = vmatprep.subr.mxu1 %v16535_v8  ;;  %13153 = vmatpush3.msra.mxu0 %v13742_v33 }
0x2f55   : > { %13154 = vmatprep.mubr.msk.f32.mxu0 %vm13547_vm0, %v16535_v8  ;;  %13202 = vmatpush3.msra.mxu1 %v13673_v10 }
0x2f56   : > { %13155 = vmatmul.mubr.f32.vlgmr.msra.gmra.mxu0 %v9070_v14  ;;  %13176 = vmatprep.subr.mxu0 %v16535_v8 }
0x2f57   : > { %13203 = vmatprep.subr.mxu1 %v16535_v8  ;;  %13177 = vmatpush3.msra.mxu0 %v13711_v23 }
0x2f58   : > { %13204 = vmatpush3.msra.mxu1 %v13676_v11  ;;  %13178 = vmatprep.subr.mxu0 %v16535_v8 }
0x2f59   : > { %13205 = vmatprep.subr.mxu1 %v16535_v8  ;;  %13179 = vmatpush3.msra.mxu0 %v13714_v24 }
0x2f5a   : > { %13206 = vmatpush3.msra.mxu1 %v13694_v17  ;;  %13180 = vmatprep.subr.mxu0 %v16535_v8 }
0x2f5b   : > { %13207 = vmatprep.subr.mxu1 %v16535_v8  ;;  %13181 = vmatpush3.msra.mxu0 %v13721_v26 }
0x2f5c   : > { %13208 = vmatpush3.msra.mxu1 %v13696_v18  ;;  %13182 = vmatprep.subr.mxu0 %v16535_v8 }
0x2f5d   : > { %13209 = vmatprep.subr.mxu1 %v16535_v8  ;;  %13183 = vmatpush3.msra.mxu0 %v13724_v27 }
0x2f5e   : > { %13210 = vmatpush3.msra.mxu1 %v13708_v22  ;;  %13211 = vmatprep.mubr.msk.f32.mxu1 %vm13547_vm0, %v16535_v8 }
0x2f5f   : > { %13184 = vmatprep.subr.mxu0 %v16535_v8  ;;  %13212 = vmatmul.mubr.f32.vlgmr.msra.gmra.mxu1 %v16172_v1 }
0x2f60   : > { %13185 = vmatpush3.msra.mxu0 %v13732_v30  ;;  %13192 = vmatprep.mubr.msk.f32.mxu0 %vm13547_vm0, %v16535_v8 }
0x2f61   : > { %13186 = vmatprep.subr.mxu0 %v16535_v8  ;;  %13233 = vmatprep.subr.mxu1 %v16535_v8 }
0x2f62   : > { %13187 = vmatpush3.msra.mxu0 %v13751_v37  ;;  %13234 = vmatpush3.msra.mxu1 %v16560_v46 }
0x2f63   : > { %13188 = vmatprep.subr.mxu0 %v16535_v8  ;;  %13235 = vmatprep.subr.mxu1 %v16535_v8 }
0x2f64   : > { %13189 = vmatpush3.msra.mxu0 %v16561_v44  ;;  %13236 = vmatpush3.msra.mxu1 %v16562_v29 }
0x2f65   : > { %13190 = vmatprep.subr.mxu0 %v16535_v8  ;;  %13237 = vmatprep.subr.mxu1 %v16535_v8 }
0x2f66   : > { %13191 = vmatpush3.msra.mxu0 %v16563_v3  ;;  %13238 = vmatpush3.msra.mxu1 %v16564_v42 }
0x2f67   : > { %13193 = vmatmul.mubr.f32.vlgmr.msra.gmra.mxu0 %v16172_v1  ;;  %13239 = vmatprep.subr.mxu1 %v16535_v8 }
0x2f68   : > { %13240 = vmatpush3.msra.mxu1 %v16565_v59  ;;  %13214 = vmatprep.subr.mxu0 %v16535_v8 }
0x2f69   : > { %13241 = vmatprep.subr.mxu1 %v16535_v8  ;;  %13215 = vmatpush3.msra.mxu0 %v13658_v4 }
0x2f6a   : > { %13242 = vmatpush3.msra.mxu1 %v16566_v56  ;;  %13216 = vmatprep.subr.mxu0 %v16535_v8 }
0x2f6b   : > { %13243 = vmatprep.subr.mxu1 %v16535_v8  ;;  %13217 = vmatpush3.msra.mxu0 %v13660_v5 }
0x2f6c   : > { %13244 = vmatpush3.msra.mxu1 %v16567_v53  ;;  %13218 = vmatprep.subr.mxu0 %v16535_v8 }
0x2f6d   : > { %13245 = vmatprep.subr.mxu1 %v16535_v8  ;;  %13219 = vmatpush3.msra.mxu0 %v13671_v9 }
0x2f6e   : > { %13246 = vmatpush3.msra.mxu1 %v16568_v58  ;;  %13220 = vmatprep.subr.mxu0 %v16535_v8 }
0x2f6f   : > { %13247 = vmatprep.subr.mxu1 %v16535_v8  ;;  %13221 = vmatpush3.msra.mxu0 %v13673_v10 }
0x2f70   : > { %13248 = vmatpush3.msra.mxu1 %v16580_v55  ;;  %13222 = vmatprep.subr.mxu0 %v16535_v8 }
0x2f71   : > { %13249 = vmatprep.mubr.msk.f32.mxu1 %vm13547_vm0, %v16535_v8  ;;  %13271 = vmatprep.subr.mxu1 %v16535_v8 }
0x2f72   : > { %13223 = vmatpush3.msra.mxu0 %v13676_v11  ;;  %13230 = vmatprep.mubr.msk.f32.mxu0 %vm13547_vm0, %v16535_v8 }
0x2f73   : > { %13224 = vmatprep.subr.mxu0 %v16535_v8 }
0x2f74   : > { %13225 = vmatpush3.msra.mxu0 %v13694_v17 }
0x2f75   : > { %13226 = vmatprep.subr.mxu0 %v16535_v8 }
0x2f76   : > { %13227 = vmatpush3.msra.mxu0 %v13696_v18 }
0x2f77   : > { %13228 = vmatprep.subr.mxu0 %v16535_v8 }
0x2f78   : > { %13229 = vmatpush3.msra.mxu0 %v13708_v22 }
0x2f79   : > { %13252 = vmatprep.subr.mxu0 %v16535_v8 }
0x2ffd   : > { %v9186_v46 = vpop.f32.mrf.mxu1 }
0x2fff   : > { %v13137_v29 = vpop.f32.mrf.mxu1 }
0x3005   : > { %v9075_v42 = vpop.f32.mrf.mxu0 }
0x3006   : > { %v9187_v62 = vadd.f32 %v9186_v46, %v9075_v42 }
0x3007   : > { %v13118_v59 = vpop.f32.mrf.mxu0 }
0x300d   : > { %v9355_v56 = vpop.f32.mrf.mxu1 }
0x300f   : > { %v13175_v53 = vpop.f32.mrf.mxu1 }
0x3010   : > { %v10629_v53 = vld [vmem:[%s13969_s8 + $0x7f0] sm:$0xff]  ;;  %s13560_s8 = smov 39  }
0x3016   : > { %v9274_v58 = vpop.f32.mrf.mxu0 }
0x3017   : > { %v9275_v12 = vadd.f32 %v9274_v58, %v9187_v62 }
0x3018   : > { %v13156_v55 = vpop.f32.mrf.mxu0 }
0x3019   : > { %v9356_v2 = vadd.f32 %v9355_v56, %v9275_v12 }
0x301f   : > { %v9529_v47 = vpop.f32.mrf.mxu1 }
0x3021   : > { %v13213_v51 = vpop.f32.mrf.mxu1 }
0x3027   : > { %v9450_v28 = vpop.f32.mrf.mxu0 }
0x3028   : > { %v9451_v32 = vadd.f32 %v9450_v28, %v9356_v2 }
0x3029   : > { %v13194_v50 = vpop.f32.mrf.mxu0 }
0x302a   : > { %v9530_v39 = vadd.f32 %v9529_v47, %v9451_v32 }
0x302c   : > { %v9546_v49 = vadd.f32 %v9530_v39, %v16599_v40  ;;  %v16289_v7 = vadd.f32 %v10571_v41, %v9530_v39  ;;  %v16606_v39 = vld [vmem:[#allocation16_spill] sm:$0xff] }
0x302e   : > { %9548 = vrot.lane.b32.xlu0 %v9546_v49, %s13548_s10  ;;  %v10599_v54 = vmul.f32 -1.442695, %v16289_v7  ;;  %v16608_v49 = vld [vmem:[#allocation5_spill] sm:$0xff] }
0x3030   : > { %13471 = vpow2.f32 %v10599_v54 }
0x303d   : > { %v13472_v36 = vpop.eup %13471 }
0x303e   : > { %v9543_v48 = vadd.f32 1.0, %v13472_v36 }
0x3040   : > { %13473 = vrcp.f32 %v9543_v48 }
0x304d   : > { %v13474_v60 = vpop.eup %13473 }
0x304e   : > { %v9558_v43 = vsub.f32 1.0, %v13474_v60  ;;  %v9564_v29 = vmul.f32 %v13474_v60, %v16156_v45 }
0x30a0   : > { %v9549_v0 = vpop.permute.xlu0 %9548 }
0x30a1   : > { %v9551_v1 = vmul.f32 %v13474_v60, %v9549_v0  ;;  %v16613_v60 = vld [vmem:[#allocation14_spill] sm:$0xff] }
0x30a3   : > { %9553 = vrot.lane.b32.xlu1 %v9551_v1, %s13548_s10 }
0x3115   : > { %v9554_v14 = vpop.permute.xlu1 %9553 }
0x3116   : > { %v9556_v57 = vadd.f32 %v10571_v41, %v9554_v14  ;;  %v16609_v41 = vld [vmem:[#allocation22_spill] sm:$0xff] }
0x3118   : > { %13475 = vtanh.f32 %v9556_v57 }
0x3125   : > { %v13476_v13 = vpop.eup %13475 }
0x3126   : > { %9560 = vrot.lane.b32.xlu0 %v13476_v13, %s13549_s17 }
0x3198   : > { %v9561_v46 = vpop.permute.xlu0 %9560 }
0x3199   : > { %v9563_v42 = vmul.f32 %v9561_v46, %v9558_v43 }
0x319b   : > { %v16295_v59 = vadd.f32 %v9564_v29, %v9563_v42 }
0x319d   : > { %9567 = vrot.lane.b32.xlu1 %v16295_v59, %s13549_s17 }
0x320f   : > { %v9568_v56 = vpop.permute.xlu1 %9567 }
0x3210   : > { %10600 = vst.msk [vmem:[%s13961_s26 + $0x70] sm:$0xff] %vm272_vm1, %v9568_v56 }
0x3217   : > { %v10630_v58 = vld [vmem:[%s13961_s26 + $0x70] sm:$0xff] }
0x3218   : > { %v9646_v55 = vmul.f32 %v10630_v58, %v10629_v53 }
0x321a   : > { %v9647_v47 = vadd.f32 %v9646_v55, %v16167_v52 }
0x321c   : > { %9649 = vrot.lane.b32.xlu0 %v9647_v47, %s13545_s11 }
0x328e   : > { %v9650_v62 = vpop.permute.xlu0 %9649 }
0x328f   : > { %v9652_v51 = vsel %vm272_vm1, %v9568_v56, %v9650_v62 }
0x3290   : > { %v9654_v45 = vsel %vm274_vm2, %v9652_v51, 0  ;;  %vm9538_vm2 = vcmask 121968  }
0x3291   : > { %v16307_v12 = vand.u32 4294901760, %v9654_v45 }
0x3293   : > { %v9730_v2 = vsub.f32 %v9654_v45, %v16307_v12  ;;  %13250 = vmatmul.mubr.f32.vlgmr.msra.gmra.mxu1 %v16307_v12 }
0x3294   : > { %13272 = vmatpush3.msra.mxu1 %v13658_v4  ;;  %13287 = vmatprep.mubr.msk.f32.mxu1 %vm13547_vm0, %v16535_v8 }
0x3295   : > { %v9731_v28 = vand.u32 4294901760, %v9730_v2  ;;  %13273 = vmatprep.subr.mxu1 %v16535_v8 }
0x3296   : > { %13274 = vmatpush3.msra.mxu1 %v13660_v5 }
0x3297   : > { %13275 = vmatprep.subr.mxu1 %v16535_v8  ;;  %v9732_v52 = vsub.f32 %v9730_v2, %v9731_v28 }
0x3298   : > { %13276 = vmatpush3.msra.mxu1 %v13671_v9 }
0x3299   : > { %13277 = vmatprep.subr.mxu1 %v16535_v8  ;;  %v9733_v32 = vand.u32 4294901760, %v9732_v52 }
0x329a   : > { %13278 = vmatpush3.msra.mxu1 %v13673_v10 }
0x329b   : > { %13279 = vmatprep.subr.mxu1 %v16535_v8  ;;  %13231 = vmatmul.mubr.f32.vlgmr.msra.gmra.mxu0 %v9733_v32 }
0x329c   : > { %13253 = vmatpush3.msra.mxu0 %v13688_v15  ;;  %13280 = vmatpush3.msra.mxu1 %v13676_v11 }
0x329d   : > { %13254 = vmatprep.subr.mxu0 %v16535_v8  ;;  %13281 = vmatprep.subr.mxu1 %v16535_v8 }
0x329e   : > { %13255 = vmatpush3.msra.mxu0 %v13691_v16  ;;  %13282 = vmatpush3.msra.mxu1 %v13694_v17 }
0x329f   : > { %13256 = vmatprep.subr.mxu0 %v16535_v8  ;;  %13283 = vmatprep.subr.mxu1 %v16535_v8 }
0x32a0   : > { %13257 = vmatpush3.msra.mxu0 %v13699_v19  ;;  %13284 = vmatpush3.msra.mxu1 %v13696_v18 }
0x32a1   : > { %13258 = vmatprep.subr.mxu0 %v16535_v8  ;;  %13285 = vmatprep.subr.mxu1 %v16535_v8 }
0x32a2   : > { %13259 = vmatpush3.msra.mxu0 %v13702_v20  ;;  %13286 = vmatpush3.msra.mxu1 %v13708_v22 }
0x32a3   : > { %13260 = vmatprep.subr.mxu0 %v16535_v8  ;;  %13288 = vmatmul.mubr.f32.vlgmr.msra.gmra.mxu1 %v9731_v28 }
0x32a4   : > { %13309 = vmatprep.subr.mxu1 %v16535_v8  ;;  %13261 = vmatpush3.msra.mxu0 %v13705_v21 }
0x32a5   : > { %13310 = vmatpush3.msra.mxu1 %v13658_v4  ;;  %13262 = vmatprep.subr.mxu0 %v16535_v8 }
0x32a6   : > { %13311 = vmatprep.subr.mxu1 %v16535_v8  ;;  %13263 = vmatpush3.msra.mxu0 %v13718_v25 }
0x32a7   : > { %13312 = vmatpush3.msra.mxu1 %v13660_v5  ;;  %13264 = vmatprep.subr.mxu0 %v16535_v8 }
0x32a8   : > { %13313 = vmatprep.subr.mxu1 %v16535_v8  ;;  %13265 = vmatpush3.msra.mxu0 %v13736_v31 }
0x32a9   : > { %13314 = vmatpush3.msra.mxu1 %v13671_v9  ;;  %13266 = vmatprep.subr.mxu0 %v16535_v8 }
0x32aa   : > { %13315 = vmatprep.subr.mxu1 %v16535_v8  ;;  %13267 = vmatpush3.msra.mxu0 %v13742_v33 }
0x32ab   : > { %13268 = vmatprep.mubr.msk.f32.mxu0 %vm13547_vm0, %v16535_v8  ;;  %13316 = vmatpush3.msra.mxu1 %v13673_v10 }
0x32ac   : > { %13269 = vmatmul.mubr.f32.vlgmr.msra.gmra.mxu0 %v9730_v2  ;;  %13290 = vmatprep.subr.mxu0 %v16535_v8 }
0x32ad   : > { %13317 = vmatprep.subr.mxu1 %v16535_v8  ;;  %13291 = vmatpush3.msra.mxu0 %v13711_v23 }
0x32ae   : > { %13318 = vmatpush3.msra.mxu1 %v13676_v11  ;;  %13292 = vmatprep.subr.mxu0 %v16535_v8 }
0x32af   : > { %13319 = vmatprep.subr.mxu1 %v16535_v8  ;;  %13293 = vmatpush3.msra.mxu0 %v13714_v24 }
0x32b0   : > { %13320 = vmatpush3.msra.mxu1 %v13694_v17  ;;  %13294 = vmatprep.subr.mxu0 %v16535_v8 }
0x32b1   : > { %13321 = vmatprep.subr.mxu1 %v16535_v8  ;;  %13295 = vmatpush3.msra.mxu0 %v13721_v26 }
0x32b2   : > { %13322 = vmatpush3.msra.mxu1 %v13696_v18  ;;  %13296 = vmatprep.subr.mxu0 %v16535_v8 }
0x32b3   : > { %13323 = vmatprep.subr.mxu1 %v16535_v8  ;;  %13297 = vmatpush3.msra.mxu0 %v13724_v27 }
0x32b4   : > { %13324 = vmatpush3.msra.mxu1 %v13708_v22  ;;  %13325 = vmatprep.mubr.msk.f32.mxu1 %vm13547_vm0, %v16535_v8 }
0x32b5   : > { %13298 = vmatprep.subr.mxu0 %v16535_v8  ;;  %13326 = vmatmul.mubr.f32.vlgmr.msra.gmra.mxu1 %v16307_v12 }
0x32b6   : > { %13299 = vmatpush3.msra.mxu0 %v13732_v30  ;;  %13306 = vmatprep.mubr.msk.f32.mxu0 %vm13547_vm0, %v16535_v8  ;;  %v10601_v30 = vld [vmem:[%s13945_s16 + $0x78] sm:$0xff]  ;;  %s238_s16 = sand.u32 1, %s13535_s19   ;;  %vm8883_vm0 = vcmask 113768  }
0x32b7   : > { %13300 = vmatprep.subr.mxu0 %v16535_v8  ;;  %s10354_s23 = sshll.u32 %s238_s16, 3 }
0x32b8   : > { %13301 = vmatpush3.msra.mxu0 %v13751_v37  ;;  %s16399_s25 = scalar_lea.vmem [#allocation2], %s10354_s23 }
0x32b9   : > { %13302 = vmatprep.subr.mxu0 %v16535_v8 }
0x32ba   : > { %13303 = vmatpush3.msra.mxu0 %v16561_v44 }
0x32bb   : > { %13304 = vmatprep.subr.mxu0 %v16535_v8 }
0x32bc   : > { %13305 = vmatpush3.msra.mxu0 %v16563_v3 }
0x32bd   : > { %13307 = vmatmul.mubr.f32.vlgmr.msra.gmra.mxu0 %v16307_v12 }
0x3353   : > { %v9846_v4 = vpop.f32.mrf.mxu1 }
0x3355   : > { %v13251_v5 = vpop.f32.mrf.mxu1 }
0x335b   : > { %v9735_v9 = vpop.f32.mrf.mxu0 }
0x335c   : > { %v9847_v19 = vadd.f32 %v9846_v4, %v9735_v9 }
0x335d   : > { %v13232_v10 = vpop.f32.mrf.mxu0 }
0x3363   : > { %v10015_v11 = vpop.f32.mrf.mxu1 }
0x3365   : > { %v13289_v15 = vpop.f32.mrf.mxu1 }
0x336c   : > { %v9934_v16 = vpop.f32.mrf.mxu0 }
0x336d   : > { %v9935_v21 = vadd.f32 %v9934_v16, %v9847_v19 }
0x336e   : > { %v13270_v17 = vpop.f32.mrf.mxu0 }
0x336f   : > { %v10016_v22 = vadd.f32 %v10015_v11, %v9935_v21 }
0x3375   : > { %v10189_v18 = vpop.f32.mrf.mxu1 }
0x3377   : > { %v13327_v20 = vpop.f32.mrf.mxu1 }
0x337d   : > { %v10110_v23 = vpop.f32.mrf.mxu0 }
0x337e   : > { %v10111_v24 = vadd.f32 %v10110_v23, %v10016_v22 }
0x337f   : > { %v13308_v25 = vpop.f32.mrf.mxu0 }
0x3380   : > { %v10190_v26 = vadd.f32 %v10189_v18, %v10111_v24 }
0x3382   : > { %v10206_v27 = vadd.f32 %v10190_v26, %v16599_v40  ;;  %v10193_v31 = vadd.f32 %v10601_v30, %v10190_v26  ;;  %v16607_v40 = vld [vmem:[#allocation21_spill] sm:$0xff] }
0x3384   : > { %10208 = vrot.lane.b32.xlu1 %v10206_v27, %s13548_s10  ;;  %v10631_v33 = vmul.f32 -1.442695, %v10193_v31 }
0x3386   : > { %13477 = vpow2.f32 %v10631_v33 }
0x3393   : > { %v13478_v37 = vpop.eup %13477 }
0x3394   : > { %v10203_v8 = vadd.f32 1.0, %v13478_v37 }
0x3396   : > { %13479 = vrcp.f32 %v10203_v8 }
0x33a3   : > { %v13480_v44 = vpop.eup %13479 }
0x33a4   : > { %v10218_v14 = vsub.f32 1.0, %v13480_v44  ;;  %v10224_v13 = vmul.f32 %v13480_v44, %v16295_v59 }
0x33f6   : > { %v10209_v3 = vpop.permute.xlu1 %10208 }
0x33f7   : > { %v10211_v50 = vmul.f32 %v13480_v44, %v10209_v3 }
0x33f9   : > { %10213 = vrot.lane.b32.xlu0 %v10211_v50, %s13548_s10  ;;  %s13555_s10 = smov 44  }
0x33fd   : > { %817 = vrot.lane.b32.xlu0 %v16606_v39, %s13545_s11  ;;  %s13556_s11 = smov 46  }
0x3401   : > { %2005 = vrot.lane.b32.xlu0 %v16607_v40, %s13550_s9  ;;  %s13561_s9 = smov 41  }
0x3405   : > { %3210 = vrot.lane.b32.xlu0 %v16608_v49, %s13551_s12  ;;  %s13562_s12 = smov 43  }
0x3409   : > { %4435 = vrot.lane.b32.xlu0 %v16609_v41, %s13552_s13  ;;  %s13563_s13 = smov 45  }
0x340d   : > { %5680 = vrot.lane.b32.xlu0 %v15387_v6, %s13553_s14  ;;  %s13564_s14 = smov 47  }
0x3411   : > { %6945 = vrot.lane.b32.xlu0 %v15707_v34, %s13554_s15  ;;  %v16610_v34 = vld [vmem:[#allocation17_spill] sm:$0xff]  ;;  %s10254_s15 = sshll.u32 %s16399_s25, 4  ;;  %s10255_s15 = int_to_ptr.vmem [resolvable:$true] %s10254_s15 }
0x3415   : > { %8230 = vrot.lane.b32.xlu0 %v16005_v35, %s13555_s10  ;;  %v16611_v35 = vld [vmem:[#allocation26_spill] sm:$0xff] }
0x3419   : > { %9535 = vrot.lane.b32.xlu0 %v16289_v7, %s13556_s11  ;;  %v16612_v7 = vld [vmem:[#allocation9_spill] sm:$0xff] }
0x346b   : > { %v10214_v54 = vpop.permute.xlu0 %10213 }
0x346c   : > { %v10216_v36 = vadd.f32 %v10601_v30, %v10214_v54 }
0x346e   : > { %13481 = vtanh.f32 %v10216_v36 }
0x346f   : > { %v818_v48 = vpop.permute.xlu0 %817 }
0x3470   : > { %821 = vst.msk [vmem:[%s16399_s25] sm:$0xff] %vm820_vm3, %v818_v48  ;;  %vm10198_vm3 = vcmask 130168  }
0x3473   : > { %v2006_v0 = vpop.permute.xlu0 %2005 }
0x3477   : > { %v3211_v1 = vpop.permute.xlu0 %3210 }
0x347b   : > { %v13482_v6 = vpop.eup %13481  ;;  %v4436_v46 = vpop.permute.xlu0 %4435 }
0x347c   : > { %10220 = vrot.lane.b32.xlu1 %v13482_v6, %s13549_s17 }
0x347f   : > { %v5681_v29 = vpop.permute.xlu0 %5680 }
0x3480   : > { %1410 = vrot.lane.b32.xlu1 %v16610_v34, %s13557_s30  ;;  %s10238_s30 = scalar_lea.sflag [#allocation3], %s238_s16 }
0x3483   : > { %v6946_v56 = vpop.permute.xlu0 %6945 }
0x3484   : > { %2605 = vrot.lane.b32.xlu1 %v16611_v35, %s13558_s6  ;;  %s13483_s6 = scalar_lea.vmem %s10255_s15, 128 }
0x3485   : > { %p13484_p11 = scmp.ne.s32.totalorder %s10255_s15, %s13483_s6 }
0x3487   : > { %v8231_v58 = vpop.permute.xlu0 %8230  ;;  %p13485_p12 = pnand %p13484_p11, %p13634_p5 }
0x3488   : > { %3820 = vrot.lane.b32.xlu1 %v16612_v7, %s13559_s7 }
0x3489   : > { %p13486_p13 = pneg %p13485_p12 }
0x348b   : > { %v9536_v62 = vpop.permute.xlu0 %9535 }
0x348c   : > { %5055 = vrot.lane.b32.xlu1 %v16613_v60, %s13560_s8 }
0x3490   : > { %6310 = vrot.lane.b32.xlu1 %v15547_v63, %s13561_s9 }
0x3494   : > { %7585 = vrot.lane.b32.xlu1 %v15860_v38, %s13562_s12 }
0x3498   : > { %8880 = vrot.lane.b32.xlu1 %v16150_v61, %s13563_s13 }
0x349c   : > { %10195 = vrot.lane.b32.xlu1 %v10193_v31, %s13564_s14 }
0x34ee   : > { %v10221_v57 = vpop.permute.xlu1 %10220 }
0x34ef   : > { %v10223_v43 = vmul.f32 %v10221_v57, %v10218_v14 }
0x34f1   : > { %v10225_v63 = vadd.f32 %v10224_v13, %v10223_v43 }
0x34f2   : > { %v1411_v38 = vpop.permute.xlu1 %1410 }
0x34f3   : > { %1414 = vst.msk [vmem:[%s16399_s25] sm:$0xff] %vm1413_vm4, %v1411_v38  ;;  %10227 = vrot.lane.b32.xlu0 %v10225_v63, %s13549_s17  ;;  %s10634_s17 = sshll.u32 %s13617_s22, 7  ;;  %s13565_s22 = smov [#allocation2]  }
0x34f4   : > { %2009 = vst.msk [vmem:[%s16399_s25] sm:$0xff] %vm2008_vm5, %v2006_v0  ;;  %s16431_s23 = scalar_lea.hbm %s16476_s5, %s10634_s17  ;;  %s13487_s7 = sshll.u32 %s13565_s22, 4  ;;  %s13488_s7 = int_to_ptr.vmem [resolvable:$false] %s13487_s7 }
0x34f5   : > { %s13489_s8 = scalar_lea.vmem %s13488_s7, 256  ;;  %p13490_p0 = scmp.lt.s32.totalorder %s10255_s15, %s13488_s7 }
0x34f6   : > { %v2606_v61 = vpop.permute.xlu1 %2605  ;;  %p13491_p1 = scmp.lt.s32.totalorder %s13489_s8, %s13483_s6 }
0x34f7   : > { %2609 = vst.msk [vmem:[%s16399_s25] sm:$0xff] %vm2608_vm6, %v2606_v61 }
0x34f8   : > { %3214 = vst.msk [vmem:[%s16399_s25] sm:$0xff] %vm3213_vm7, %v3211_v1  ;;  %p13492_p2 = por %p13491_p1, %p13490_p0 }
0x34fa   : > { %v3821_v42 = vpop.permute.xlu1 %3820  ;;  %p13493_p3 = pnand %p13492_p2, %p13486_p13 }
0x34fb   : > { %3824 = vst.msk [vmem:[%s16399_s25] sm:$0xff] %vm3823_vm8, %v3821_v42 }
0x34fc   : > { %4439 = vst.msk [vmem:[%s16399_s25] sm:$0xff] %vm4438_vm9, %v4436_v46 }
0x34fe   : > { %v5056_v59 = vpop.permute.xlu1 %5055 }
0x34ff   : > { %5059 = vst.msk [vmem:[%s16399_s25] sm:$0xff] %vm5058_vm10, %v5056_v59 }
0x3500   : > { %5684 = vst.msk [vmem:[%s16399_s25] sm:$0xff] %vm5683_vm11, %v5681_v29 }
0x3502   : > { %v6311_v53 = vpop.permute.xlu1 %6310 }
0x3503   : > { %6314 = vst.msk [vmem:[%s16399_s25] sm:$0xff] %vm6313_vm12, %v6311_v53 }
0x3504   : > { %6949 = vst.msk [vmem:[%s16399_s25] sm:$0xff] %vm6948_vm13, %v6946_v56 }
0x3506   : > { %v7586_v55 = vpop.permute.xlu1 %7585 }
0x3507   : > { %7589 = vst.msk [vmem:[%s16399_s25] sm:$0xff] %vm7588_vm14, %v7586_v55 }
0x3508   : > { %8234 = vst.msk [vmem:[%s16399_s25] sm:$0xff] %vm8233_vm15, %v8231_v58 }
0x350a   : > { %v8881_v47 = vpop.permute.xlu1 %8880 }
0x350b   : > { %8884 = vst.msk [vmem:[%s16399_s25] sm:$0xff] %vm8883_vm0, %v8881_v47 }
0x350c   : > { %9539 = vst.msk [vmem:[%s16399_s25] sm:$0xff] %vm9538_vm2, %v9536_v62 }
0x350e   : > { %v10196_v51 = vpop.permute.xlu1 %10195 }
0x350f   : > { %10199 = vst.msk [vmem:[%s16399_s25] sm:$0xff] %vm10198_vm3, %v10196_v51 }
0x3510   : > { %13496 = shalt.err (!%p13493_p3)
}
0x3511   : > { %s13497_s25 = scalar_lea.hbm %s16431_s23, 128  ;;  %s13501_s12 = scalar_lea.hbm %s16476_s5, 256 }
0x3512   : > { %p13498_p4 = scmp.ne.s32.totalorder %s16431_s23, %s13497_s25  ;;  %p13502_p9 = scmp.lt.s32.totalorder %s16431_s23, %s16476_s5 }
0x3513   : > { %p13503_p10 = scmp.lt.s32.totalorder %s13501_s12, %s13497_s25 }
0x3514   : > { %p13499_p7 = pnand %p13498_p4, %p13634_p5 }
0x3515   : > { %p13504_p11 = por %p13503_p10, %p13502_p9 }
0x3516   : > { %p13500_p8 = pneg %p13499_p7 }
0x3518   : > { %p13505_p12 = pnand %p13504_p11, %p13500_p8 }
0x351a   : > { %13508 = shalt.err (!%p13505_p12)
}
0x351b   : > { %13328 = dma.vmem_to_hbm [thread:$0]  (%p13634_p5), %s10255_s15, 128, %s16431_s23, %s10238_s30  }
0x3565   : > { %v10228_v45 = vpop.permute.xlu0 %10227 }
0x3566   : > { %10632 = vst.msk [vmem:[%s13961_s26 + $0x78] sm:$0xff] %vm272_vm1, %v10228_v45 }
0x3567 PF: > { %p13334_p13 = scmp.ge.s32.totalorder %s13543_s21, 2  ;;  %s10274_s17 = sand.u32 1, %s13531_s18  }
0x3568   : > { %s10275_s10 = scalar_lea.sflag [#allocation3], %s10274_s17 }
0x3569   : > { %p13331_p0 = pnand %p13334_p13, %p13638_p6 }
0x356b   : > { %p13332_p1 = pneg %p13331_p0 }
0x356d   : > { %13526 = dma.done.wait (%p13332_p1), %s10275_s10, 128  }
0x356e   : > { %13528 = vsyncadd (%p13332_p1), %s10275_s10, 4294967168  ;;  %p16_p5 = scmp.ge.s32.totalorder %s13621_s24, 4   ;;  %s16614_s18 = smov %s13535_s19 }
0x356f   : > { %s16615_s19 = smov %s13539_s20  ;;  %s16616_s20 = smov %s13632_s27 }
0x3570   : > { %s16617_s21 = smov %s13621_s24  ;;  %18 = sbr.rel (!%p16_p5) target bundleno = 3 (0x3), region = 237 }
0x3575   :  { %10280 = vsyncpa [#allocation3], 1 }
0x3576   :  { %10282 = vsyncpa [#allocation3 + $0x1], 1 }

</bundles_post_ra>
